<compile_context>
chip_gen: v5e
topology: v5e:2x2
jax: 0.10.0
libtpu: 0.0.40
codegen_flags: <defaults>
</compile_context>

<pallas_src>
import jax
import jax.numpy as jnp
from jax.experimental import pallas as pl
from jax.experimental.pallas import tpu as pltpu


# -----------------------------------------------------------------------------
# Fused kernel: 1x1 conv + InstanceNorm + ReLU + Linear->tanh->Linear->tanh->Linear
# -----------------------------------------------------------------------------
def _fused_ubox_kernel(x_ref, wc_ref, bc_ref, w1_hbm_ref, b1_ref,
                       w2_hbm_ref, b2_ref, w3_ref, b3_ref,
                       o_ref,
                       w1_vmem, w1_sems, w2_vmem, w2_sem):
    B, C, HW = x_ref.shape          # (2, 4, 256)
    ngf = wc_ref.shape[0]           # 8
    eps = 1e-5

    # 1) Kick off the dominant DMAs immediately, in consumption order:
    #    w1 (bf16, ~2 MiB) in ngf chunks of (HW, 512) so each tail dot can
    #    start as soon as *its* chunk lands, overlapping later chunks' transfer.
    w1_copies = []
    for o in range(ngf):
        cp = pltpu.make_async_copy(
            w1_hbm_ref.at[pl.ds(o * HW, HW), :],
            w1_vmem.at[pl.ds(o * HW, HW), :],
            w1_sems.at[o])
        cp.start()
        w1_copies.append(cp)
    # w2 (f32, 128 KiB) behind the w1 chunks; only needed after the first tanh.
    w2_cp = pltpu.make_async_copy(w2_hbm_ref, w2_vmem, w2_sem)
    w2_cp.start()

    # 2) Head: 1x1 conv as a VPU broadcast MAC over the tiny C=4 contraction
    #    (conv weights/bias are SMEM scalars), then InstanceNorm2d
    #    (affine=False, two-pass variance to match torch) + ReLU.
    #    Entirely hidden under the w1 chunk-0 DMA.
    # TODO(synk): nn.Dropout(drop_rate) is identity in eval mode; not applied.
    xc = [x_ref[:, c, :] for c in range(C)]            # C loads of (B, HW)
    ys = []
    for o in range(ngf):
        y = bc_ref[o] + wc_ref[o, 0] * xc[0]
        for c in range(1, C):
            y = y + wc_ref[o, c] * xc[c]                # (B, HW)
        mean = jnp.mean(y, axis=-1, keepdims=True)
        var = jnp.mean((y - mean) ** 2, axis=-1, keepdims=True)
        y = (y - mean) * jax.lax.rsqrt(var + eps)
        ys.append(jnp.maximum(y, 0.0))

    # 3) Tail: Linear(ngf*HW,512) -> tanh -> Linear(512,64) -> tanh -> Linear(64,8).
    #    First matmul = sum over output channels of (B,HW)@(HW,512), matching
    #    torch's channel-major flatten (index o*HW + p).  Each chunk is waited
    #    on right before its dot (chunked-DMA / compute overlap).
    h = b1_ref[...]                                     # (1, 512), broadcasts
    for o in range(ngf):
        w1_copies[o].wait()
        # bf16 storage/stream; upcast to f32 at the MXU input, f32 accumulate.
        w1_blk = w1_vmem[o * HW:(o + 1) * HW, :].astype(jnp.float32)
        h = h + jnp.dot(ys[o], w1_blk, preferred_element_type=jnp.float32)
    h = jnp.tanh(h)
    w2_cp.wait()
    h = jnp.tanh(jnp.dot(h, w2_vmem[...], preferred_element_type=jnp.float32)
                 + b2_ref[...])
    # (B, 8) output: lane dim < 128 -> masked store; negligible at this size.
    o_ref[...] = (jnp.dot(h, w3_ref[...], preferred_element_type=jnp.float32)
                  + b3_ref[...])


def ubox_block_forward(x_nchw, params):
    B, C, H, W = x_nchw.shape
    HW = H * W
    x_flat = x_nchw.reshape(B, C, HW)        # NCHW with spatial flattened (lane axis)

    w_conv, b_conv = params["w_conv"], params["b_conv"]      # (ngf,C), (ngf,)
    # TODO(synk): in a real deployment w1 would be *stored* bf16 so this cast
    #             is free; here it is done once per call in the wrapper.
    w1 = params["w1"].astype(jnp.bfloat16)                   # (D,512) bf16 stream
    b1 = params["b1"]                                        # (1,512)
    w2, b2 = params["w2"], params["b2"]                      # (512,64), (1,64)
    w3, b3 = params["w3"], params["b3"]                      # (64,8),  (1,8)

    ngf = w_conv.shape[0]
    D, H1 = w1.shape
    H2 = w2.shape[1]
    OUT = w3.shape[1]
    assert D == ngf * HW

    full = lambda shape: pl.BlockSpec(shape, lambda: tuple(0 for _ in shape))

    return pl.pallas_call(
        _fused_ubox_kernel,
        out_shape=jax.ShapeDtypeStruct((B, OUT), jnp.float32),
        grid_spec=pltpu.PrefetchScalarGridSpec(
            num_scalar_prefetch=0,
            grid=(),
            in_specs=[
                full((B, C, HW)),                                   # x       (VMEM)
                pl.BlockSpec(memory_space=pltpu.MemorySpace.SMEM),  # w_conv  (SMEM scalars)
                pl.BlockSpec(memory_space=pltpu.MemorySpace.SMEM),  # b_conv  (SMEM scalars)
                pl.BlockSpec(memory_space=pl.ANY),                  # w1 bf16 (HBM, chunked manual DMA)
                full((1, H1)),                                      # b1
                pl.BlockSpec(memory_space=pl.ANY),                  # w2      (HBM, manual DMA)
                full((1, H2)),                                      # b2
                full((H2, OUT)),                                    # w3
                full((1, OUT)),                                     # b3
            ],
            out_specs=full((B, OUT)),
            scratch_shapes=[
                pltpu.VMEM((D, H1), jnp.bfloat16),   # w1 landing buffer (~2 MiB)
                pltpu.SemaphoreType.DMA((ngf,)),     # per-chunk w1 DMA completion
                pltpu.VMEM((H1, H2), jnp.float32),   # w2 landing buffer (128 KiB)
                pltpu.SemaphoreType.DMA(()),         # w2 DMA completion
            ],
        ),
    )(x_flat, w_conv, b_conv, w1, b1, w2, b2, w3, b3)


# -----------------------------------------------------------------------------
# Params + pure-JAX reference (f32 weights, exactly the torch module's math)
# -----------------------------------------------------------------------------
def make_params(key, input_nc, ngf, im_size):
    d_flat = im_size * im_size * ngf
    ks = jax.random.split(key, 8)
    scale = 0.05
    return {
        "w_conv": scale * jax.random.normal(ks[0], (ngf, input_nc), jnp.float32),
        "b_conv": scale * jax.random.normal(ks[1], (ngf,), jnp.float32),
        "w1": scale * jax.random.normal(ks[2], (d_flat, 512), jnp.float32),
        "b1": scale * jax.random.normal(ks[3], (1, 512), jnp.float32),
        "w2": scale * jax.random.normal(ks[4], (512, 64), jnp.float32),
        "b2": scale * jax.random.normal(ks[5], (1, 64), jnp.float32),
        "w3": scale * jax.random.normal(ks[6], (64, 8), jnp.float32),
        "b3": scale * jax.random.normal(ks[7], (1, 8), jnp.float32),
    }


def reference_forward(x_nchw, p):
    B, C, H, W = x_nchw.shape
    x = x_nchw.reshape(B, C, H * W)
    y = jnp.einsum("oc,bcp->bop", p["w_conv"], x) + p["b_conv"][None, :, None]
    mean = jnp.mean(y, axis=-1, keepdims=True)
    var = jnp.mean((y - mean) ** 2, axis=-1, keepdims=True)
    y = (y - mean) / jnp.sqrt(var + 1e-5)
    y = jnp.maximum(y, 0.0)
    y = y.reshape(B, -1)                     # channel-major flatten (torch view(B,-1))
    h = jnp.tanh(y @ p["w1"] + p["b1"])
    h = jnp.tanh(h @ p["w2"] + p["b2"])
    return h @ p["w3"] + p["b3"]


if __name__ == "__main__":
    # Small shapes consistent with the module: batch=2, input_nc=4, ngf=8, im_size=16
    B, input_nc, ngf, im_size = 2, 4, 8, 16

    key = jax.random.PRNGKey(0)
    k_x, k_p = jax.random.split(key)
    x = jax.random.normal(k_x, (B, input_nc, im_size, im_size), jnp.float32)
    params = make_params(k_p, input_nc, ngf, im_size)

    box = jax.jit(ubox_block_forward)(x, params)
    box = jax.block_until_ready(box)

    ref = reference_forward(x, params)
    assert box.shape == (B, 8), box.shape
    # Tolerance loosened to 1e-2 because w1 is streamed as bf16 (f32 accumulation);
    # observed error through the 2048-deep contraction is ~1e-3.
    assert jnp.allclose(box, ref, atol=1e-2, rtol=1e-2), float(jnp.max(jnp.abs(box - ref)))

    print("KERNEL_OK")
</pallas_src>

<mosaic_0001>
module attributes {stable_mosaic.version = 11 : i64} {
  func.func @_fused_ubox_kernel(%arg0: memref<2x4x256xf32, #tpu.memory_space<vmem>>, %arg1: memref<8x4xf32, #tpu.memory_space<smem>>, %arg2: memref<8xf32, #tpu.memory_space<smem>>, %arg3: memref<2048x512xbf16, #tpu.memory_space<any>>, %arg4: memref<1x512xf32, #tpu.memory_space<vmem>>, %arg5: memref<512x64xf32, #tpu.memory_space<any>>, %arg6: memref<1x64xf32, #tpu.memory_space<vmem>>, %arg7: memref<64x8xf32, #tpu.memory_space<vmem>>, %arg8: memref<1x8xf32, #tpu.memory_space<vmem>>, %arg9: memref<2x8xf32, #tpu.memory_space<vmem>>, %arg10: memref<2048x512xbf16, #tpu.memory_space<vmem>>, %arg11: memref<8x!tpu.dma_semaphore, #tpu.memory_space<semaphore_mem>>, %arg12: memref<512x64xf32, #tpu.memory_space<vmem>>, %arg13: memref<!tpu.dma_semaphore, #tpu.memory_space<semaphore_mem>>) attributes {dimension_semantics = [], scalar_prefetch = 0 : i64, scratch_operands = 4 : i64, tpu.core_type = #tpu.core_type<tc>} {
    %c0_i32 = arith.constant 0 : i32
    %c0_i32_0 = arith.constant 0 : i32
    %c0_i32_1 = arith.constant 0 : i32
    %0 = tpu.memref_slice %arg3[%c0_i32_0, %c0_i32_1] : memref<2048x512xbf16, #tpu.memory_space<any>> -> memref<256x512xbf16, #tpu.memory_space<any>>
    %c0_i32_2 = arith.constant 0 : i32
    %c0_i32_3 = arith.constant 0 : i32
    %1 = tpu.memref_slice %arg10[%c0_i32_2, %c0_i32_3] : memref<2048x512xbf16, #tpu.memory_space<vmem>> -> memref<256x512xbf16, #tpu.memory_space<vmem>>
    %2 = tpu.memref_slice %arg11[%c0_i32] : memref<8x!tpu.dma_semaphore, #tpu.memory_space<semaphore_mem>> -> memref<1x!tpu.dma_semaphore, #tpu.memory_space<semaphore_mem>>
    %3 = tpu.memref_squeeze %2 : memref<1x!tpu.dma_semaphore, #tpu.memory_space<semaphore_mem>> -> memref<!tpu.dma_semaphore, #tpu.memory_space<semaphore_mem>>
    tpu.enqueue_dma source(%0 : memref<256x512xbf16, #tpu.memory_space<any>>) target(%1 : memref<256x512xbf16, #tpu.memory_space<vmem>>) target_semaphore(%3 : memref<!tpu.dma_semaphore, #tpu.memory_space<semaphore_mem>>)
    %c1_i32 = arith.constant 1 : i32
    %c256_i32 = arith.constant 256 : i32
    %c0_i32_4 = arith.constant 0 : i32
    %4 = tpu.memref_slice %arg3[%c256_i32, %c0_i32_4] : memref<2048x512xbf16, #tpu.memory_space<any>> -> memref<256x512xbf16, #tpu.memory_space<any>>
    %c256_i32_5 = arith.constant 256 : i32
    %c0_i32_6 = arith.constant 0 : i32
    %5 = tpu.memref_slice %arg10[%c256_i32_5, %c0_i32_6] : memref<2048x512xbf16, #tpu.memory_space<vmem>> -> memref<256x512xbf16, #tpu.memory_space<vmem>>
    %6 = tpu.memref_slice %arg11[%c1_i32] : memref<8x!tpu.dma_semaphore, #tpu.memory_space<semaphore_mem>> -> memref<1x!tpu.dma_semaphore, #tpu.memory_space<semaphore_mem>>
    %7 = tpu.memref_squeeze %6 : memref<1x!tpu.dma_semaphore, #tpu.memory_space<semaphore_mem>> -> memref<!tpu.dma_semaphore, #tpu.memory_space<semaphore_mem>>
    tpu.enqueue_dma source(%4 : memref<256x512xbf16, #tpu.memory_space<any>>) target(%5 : memref<256x512xbf16, #tpu.memory_space<vmem>>) target_semaphore(%7 : memref<!tpu.dma_semaphore, #tpu.memory_space<semaphore_mem>>)
    %c2_i32 = arith.constant 2 : i32
    %c512_i32 = arith.constant 512 : i32
    %c0_i32_7 = arith.constant 0 : i32
    %8 = tpu.memref_slice %arg3[%c512_i32, %c0_i32_7] : memref<2048x512xbf16, #tpu.memory_space<any>> -> memref<256x512xbf16, #tpu.memory_space<any>>
    %c512_i32_8 = arith.constant 512 : i32
    %c0_i32_9 = arith.constant 0 : i32
    %9 = tpu.memref_slice %arg10[%c512_i32_8, %c0_i32_9] : memref<2048x512xbf16, #tpu.memory_space<vmem>> -> memref<256x512xbf16, #tpu.memory_space<vmem>>
    %10 = tpu.memref_slice %arg11[%c2_i32] : memref<8x!tpu.dma_semaphore, #tpu.memory_space<semaphore_mem>> -> memref<1x!tpu.dma_semaphore, #tpu.memory_space<semaphore_mem>>
    %11 = tpu.memref_squeeze %10 : memref<1x!tpu.dma_semaphore, #tpu.memory_space<semaphore_mem>> -> memref<!tpu.dma_semaphore, #tpu.memory_space<semaphore_mem>>
    tpu.enqueue_dma source(%8 : memref<256x512xbf16, #tpu.memory_space<any>>) target(%9 : memref<256x512xbf16, #tpu.memory_space<vmem>>) target_semaphore(%11 : memref<!tpu.dma_semaphore, #tpu.memory_space<semaphore_mem>>)
    %c3_i32 = arith.constant 3 : i32
    %c768_i32 = arith.constant 768 : i32
    %c0_i32_10 = arith.constant 0 : i32
    %12 = tpu.memref_slice %arg3[%c768_i32, %c0_i32_10] : memref<2048x512xbf16, #tpu.memory_space<any>> -> memref<256x512xbf16, #tpu.memory_space<any>>
    %c768_i32_11 = arith.constant 768 : i32
    %c0_i32_12 = arith.constant 0 : i32
    %13 = tpu.memref_slice %arg10[%c768_i32_11, %c0_i32_12] : memref<2048x512xbf16, #tpu.memory_space<vmem>> -> memref<256x512xbf16, #tpu.memory_space<vmem>>
    %14 = tpu.memref_slice %arg11[%c3_i32] : memref<8x!tpu.dma_semaphore, #tpu.memory_space<semaphore_mem>> -> memref<1x!tpu.dma_semaphore, #tpu.memory_space<semaphore_mem>>
    %15 = tpu.memref_squeeze %14 : memref<1x!tpu.dma_semaphore, #tpu.memory_space<semaphore_mem>> -> memref<!tpu.dma_semaphore, #tpu.memory_space<semaphore_mem>>
    tpu.enqueue_dma source(%12 : memref<256x512xbf16, #tpu.memory_space<any>>) target(%13 : memref<256x512xbf16, #tpu.memory_space<vmem>>) target_semaphore(%15 : memref<!tpu.dma_semaphore, #tpu.memory_space<semaphore_mem>>)
    %c4_i32 = arith.constant 4 : i32
    %c1024_i32 = arith.constant 1024 : i32
    %c0_i32_13 = arith.constant 0 : i32
    %16 = tpu.memref_slice %arg3[%c1024_i32, %c0_i32_13] : memref<2048x512xbf16, #tpu.memory_space<any>> -> memref<256x512xbf16, #tpu.memory_space<any>>
    %c1024_i32_14 = arith.constant 1024 : i32
    %c0_i32_15 = arith.constant 0 : i32
    %17 = tpu.memref_slice %arg10[%c1024_i32_14, %c0_i32_15] : memref<2048x512xbf16, #tpu.memory_space<vmem>> -> memref<256x512xbf16, #tpu.memory_space<vmem>>
    %18 = tpu.memref_slice %arg11[%c4_i32] : memref<8x!tpu.dma_semaphore, #tpu.memory_space<semaphore_mem>> -> memref<1x!tpu.dma_semaphore, #tpu.memory_space<semaphore_mem>>
    %19 = tpu.memref_squeeze %18 : memref<1x!tpu.dma_semaphore, #tpu.memory_space<semaphore_mem>> -> memref<!tpu.dma_semaphore, #tpu.memory_space<semaphore_mem>>
    tpu.enqueue_dma source(%16 : memref<256x512xbf16, #tpu.memory_space<any>>) target(%17 : memref<256x512xbf16, #tpu.memory_space<vmem>>) target_semaphore(%19 : memref<!tpu.dma_semaphore, #tpu.memory_space<semaphore_mem>>)
    %c5_i32 = arith.constant 5 : i32
    %c1280_i32 = arith.constant 1280 : i32
    %c0_i32_16 = arith.constant 0 : i32
    %20 = tpu.memref_slice %arg3[%c1280_i32, %c0_i32_16] : memref<2048x512xbf16, #tpu.memory_space<any>> -> memref<256x512xbf16, #tpu.memory_space<any>>
    %c1280_i32_17 = arith.constant 1280 : i32
    %c0_i32_18 = arith.constant 0 : i32
    %21 = tpu.memref_slice %arg10[%c1280_i32_17, %c0_i32_18] : memref<2048x512xbf16, #tpu.memory_space<vmem>> -> memref<256x512xbf16, #tpu.memory_space<vmem>>
    %22 = tpu.memref_slice %arg11[%c5_i32] : memref<8x!tpu.dma_semaphore, #tpu.memory_space<semaphore_mem>> -> memref<1x!tpu.dma_semaphore, #tpu.memory_space<semaphore_mem>>
    %23 = tpu.memref_squeeze %22 : memref<1x!tpu.dma_semaphore, #tpu.memory_space<semaphore_mem>> -> memref<!tpu.dma_semaphore, #tpu.memory_space<semaphore_mem>>
    tpu.enqueue_dma source(%20 : memref<256x512xbf16, #tpu.memory_space<any>>) target(%21 : memref<256x512xbf16, #tpu.memory_space<vmem>>) target_semaphore(%23 : memref<!tpu.dma_semaphore, #tpu.memory_space<semaphore_mem>>)
    %c6_i32 = arith.constant 6 : i32
    %c1536_i32 = arith.constant 1536 : i32
    %c0_i32_19 = arith.constant 0 : i32
    %24 = tpu.memref_slice %arg3[%c1536_i32, %c0_i32_19] : memref<2048x512xbf16, #tpu.memory_space<any>> -> memref<256x512xbf16, #tpu.memory_space<any>>
    %c1536_i32_20 = arith.constant 1536 : i32
    %c0_i32_21 = arith.constant 0 : i32
    %25 = tpu.memref_slice %arg10[%c1536_i32_20, %c0_i32_21] : memref<2048x512xbf16, #tpu.memory_space<vmem>> -> memref<256x512xbf16, #tpu.memory_space<vmem>>
    %26 = tpu.memref_slice %arg11[%c6_i32] : memref<8x!tpu.dma_semaphore, #tpu.memory_space<semaphore_mem>> -> memref<1x!tpu.dma_semaphore, #tpu.memory_space<semaphore_mem>>
    %27 = tpu.memref_squeeze %26 : memref<1x!tpu.dma_semaphore, #tpu.memory_space<semaphore_mem>> -> memref<!tpu.dma_semaphore, #tpu.memory_space<semaphore_mem>>
    tpu.enqueue_dma source(%24 : memref<256x512xbf16, #tpu.memory_space<any>>) target(%25 : memref<256x512xbf16, #tpu.memory_space<vmem>>) target_semaphore(%27 : memref<!tpu.dma_semaphore, #tpu.memory_space<semaphore_mem>>)
    %c7_i32 = arith.constant 7 : i32
    %c1792_i32 = arith.constant 1792 : i32
    %c0_i32_22 = arith.constant 0 : i32
    %28 = tpu.memref_slice %arg3[%c1792_i32, %c0_i32_22] : memref<2048x512xbf16, #tpu.memory_space<any>> -> memref<256x512xbf16, #tpu.memory_space<any>>
    %c1792_i32_23 = arith.constant 1792 : i32
    %c0_i32_24 = arith.constant 0 : i32
    %29 = tpu.memref_slice %arg10[%c1792_i32_23, %c0_i32_24] : memref<2048x512xbf16, #tpu.memory_space<vmem>> -> memref<256x512xbf16, #tpu.memory_space<vmem>>
    %30 = tpu.memref_slice %arg11[%c7_i32] : memref<8x!tpu.dma_semaphore, #tpu.memory_space<semaphore_mem>> -> memref<1x!tpu.dma_semaphore, #tpu.memory_space<semaphore_mem>>
    %31 = tpu.memref_squeeze %30 : memref<1x!tpu.dma_semaphore, #tpu.memory_space<semaphore_mem>> -> memref<!tpu.dma_semaphore, #tpu.memory_space<semaphore_mem>>
    tpu.enqueue_dma source(%28 : memref<256x512xbf16, #tpu.memory_space<any>>) target(%29 : memref<256x512xbf16, #tpu.memory_space<vmem>>) target_semaphore(%31 : memref<!tpu.dma_semaphore, #tpu.memory_space<semaphore_mem>>)
    tpu.enqueue_dma source(%arg5 : memref<512x64xf32, #tpu.memory_space<any>>) target(%arg12 : memref<512x64xf32, #tpu.memory_space<vmem>>) target_semaphore(%arg13 : memref<!tpu.dma_semaphore, #tpu.memory_space<semaphore_mem>>)
    %c0 = arith.constant 0 : index
    %c0_25 = arith.constant 0 : index
    %c0_26 = arith.constant 0 : index
    %32 = vector.load %arg0[%c0, %c0_25, %c0_26] : memref<2x4x256xf32, #tpu.memory_space<vmem>>, vector<2x1x256xf32>
    %33 = vector.shape_cast %32 : vector<2x1x256xf32> to vector<2x256xf32>
    %c0_27 = arith.constant 0 : index
    %c1 = arith.constant 1 : index
    %c0_28 = arith.constant 0 : index
    %34 = vector.load %arg0[%c0_27, %c1, %c0_28] : memref<2x4x256xf32, #tpu.memory_space<vmem>>, vector<2x1x256xf32>
    %35 = vector.shape_cast %34 : vector<2x1x256xf32> to vector<2x256xf32>
    %c0_29 = arith.constant 0 : index
    %c2 = arith.constant 2 : index
    %c0_30 = arith.constant 0 : index
    %36 = vector.load %arg0[%c0_29, %c2, %c0_30] : memref<2x4x256xf32, #tpu.memory_space<vmem>>, vector<2x1x256xf32>
    %37 = vector.shape_cast %36 : vector<2x1x256xf32> to vector<2x256xf32>
    %c0_31 = arith.constant 0 : index
    %c3 = arith.constant 3 : index
    %c0_32 = arith.constant 0 : index
    %38 = vector.load %arg0[%c0_31, %c3, %c0_32] : memref<2x4x256xf32, #tpu.memory_space<vmem>>, vector<2x1x256xf32>
    %39 = vector.shape_cast %38 : vector<2x1x256xf32> to vector<2x256xf32>
    %c0_33 = arith.constant 0 : index
    %40 = memref.load %arg2[%c0_33] : memref<8xf32, #tpu.memory_space<smem>>
    %c0_34 = arith.constant 0 : index
    %c0_35 = arith.constant 0 : index
    %41 = memref.load %arg1[%c0_34, %c0_35] : memref<8x4xf32, #tpu.memory_space<smem>>
    %42 = vector.broadcast %41 : f32 to vector<2x256xf32>
    %43 = arith.mulf %42, %33 : vector<2x256xf32>
    %44 = vector.broadcast %40 : f32 to vector<2x256xf32>
    %45 = arith.addf %44, %43 : vector<2x256xf32>
    %c0_36 = arith.constant 0 : index
    %c1_37 = arith.constant 1 : index
    %46 = memref.load %arg1[%c0_36, %c1_37] : memref<8x4xf32, #tpu.memory_space<smem>>
    %47 = vector.broadcast %46 : f32 to vector<2x256xf32>
    %48 = arith.mulf %47, %35 : vector<2x256xf32>
    %49 = arith.addf %45, %48 : vector<2x256xf32>
    %c0_38 = arith.constant 0 : index
    %c2_39 = arith.constant 2 : index
    %50 = memref.load %arg1[%c0_38, %c2_39] : memref<8x4xf32, #tpu.memory_space<smem>>
    %51 = vector.broadcast %50 : f32 to vector<2x256xf32>
    %52 = arith.mulf %51, %37 : vector<2x256xf32>
    %53 = arith.addf %49, %52 : vector<2x256xf32>
    %c0_40 = arith.constant 0 : index
    %c3_41 = arith.constant 3 : index
    %54 = memref.load %arg1[%c0_40, %c3_41] : memref<8x4xf32, #tpu.memory_space<smem>>
    %55 = vector.broadcast %54 : f32 to vector<2x256xf32>
    %56 = arith.mulf %55, %39 : vector<2x256xf32>
    %57 = arith.addf %53, %56 : vector<2x256xf32>
    %cst = arith.constant dense<0.000000e+00> : vector<2xf32>
    %58 = vector.multi_reduction <add>, %57, %cst [1] : vector<2x256xf32> to vector<2xf32>
    %59 = vector.shape_cast %58 : vector<2xf32> to vector<2x1xf32>
    %cst_42 = arith.constant 2.560000e+02 : f32
    %60 = vector.broadcast %cst_42 : f32 to vector<2x1xf32>
    %61 = arith.divf %59, %60 : vector<2x1xf32>
    %62 = vector.broadcast %61 : vector<2x1xf32> to vector<2x256xf32>
    %63 = arith.subf %57, %62 : vector<2x256xf32>
    %64 = arith.mulf %63, %63 : vector<2x256xf32>
    %cst_43 = arith.constant dense<0.000000e+00> : vector<2xf32>
    %65 = vector.multi_reduction <add>, %64, %cst_43 [1] : vector<2x256xf32> to vector<2xf32>
    %66 = vector.shape_cast %65 : vector<2xf32> to vector<2x1xf32>
    %cst_44 = arith.constant 2.560000e+02 : f32
    %67 = vector.broadcast %cst_44 : f32 to vector<2x1xf32>
    %68 = arith.divf %66, %67 : vector<2x1xf32>
    %69 = vector.broadcast %61 : vector<2x1xf32> to vector<2x256xf32>
    %70 = arith.subf %57, %69 : vector<2x256xf32>
    %cst_45 = arith.constant 9.99999974E-6 : f32
    %71 = vector.broadcast %cst_45 : f32 to vector<2x1xf32>
    %72 = arith.addf %68, %71 : vector<2x1xf32>
    %73 = math.rsqrt %72 : vector<2x1xf32>
    %74 = vector.broadcast %73 : vector<2x1xf32> to vector<2x256xf32>
    %75 = arith.mulf %70, %74 : vector<2x256xf32>
    %cst_46 = arith.constant 0.000000e+00 : f32
    %76 = vector.broadcast %cst_46 : f32 to vector<2x256xf32>
    %77 = arith.maximumf %75, %76 : vector<2x256xf32>
    %c1_47 = arith.constant 1 : index
    %78 = memref.load %arg2[%c1_47] : memref<8xf32, #tpu.memory_space<smem>>
    %c1_48 = arith.constant 1 : index
    %c0_49 = arith.constant 0 : index
    %79 = memref.load %arg1[%c1_48, %c0_49] : memref<8x4xf32, #tpu.memory_space<smem>>
    %80 = vector.broadcast %79 : f32 to vector<2x256xf32>
    %81 = arith.mulf %80, %33 : vector<2x256xf32>
    %82 = vector.broadcast %78 : f32 to vector<2x256xf32>
    %83 = arith.addf %82, %81 : vector<2x256xf32>
    %c1_50 = arith.constant 1 : index
    %c1_51 = arith.constant 1 : index
    %84 = memref.load %arg1[%c1_50, %c1_51] : memref<8x4xf32, #tpu.memory_space<smem>>
    %85 = vector.broadcast %84 : f32 to vector<2x256xf32>
    %86 = arith.mulf %85, %35 : vector<2x256xf32>
    %87 = arith.addf %83, %86 : vector<2x256xf32>
    %c1_52 = arith.constant 1 : index
    %c2_53 = arith.constant 2 : index
    %88 = memref.load %arg1[%c1_52, %c2_53] : memref<8x4xf32, #tpu.memory_space<smem>>
    %89 = vector.broadcast %88 : f32 to vector<2x256xf32>
    %90 = arith.mulf %89, %37 : vector<2x256xf32>
    %91 = arith.addf %87, %90 : vector<2x256xf32>
    %c1_54 = arith.constant 1 : index
    %c3_55 = arith.constant 3 : index
    %92 = memref.load %arg1[%c1_54, %c3_55] : memref<8x4xf32, #tpu.memory_space<smem>>
    %93 = vector.broadcast %92 : f32 to vector<2x256xf32>
    %94 = arith.mulf %93, %39 : vector<2x256xf32>
    %95 = arith.addf %91, %94 : vector<2x256xf32>
    %cst_56 = arith.constant dense<0.000000e+00> : vector<2xf32>
    %96 = vector.multi_reduction <add>, %95, %cst_56 [1] : vector<2x256xf32> to vector<2xf32>
    %97 = vector.shape_cast %96 : vector<2xf32> to vector<2x1xf32>
    %cst_57 = arith.constant 2.560000e+02 : f32
    %98 = vector.broadcast %cst_57 : f32 to vector<2x1xf32>
    %99 = arith.divf %97, %98 : vector<2x1xf32>
    %100 = vector.broadcast %99 : vector<2x1xf32> to vector<2x256xf32>
    %101 = arith.subf %95, %100 : vector<2x256xf32>
    %102 = arith.mulf %101, %101 : vector<2x256xf32>
    %cst_58 = arith.constant dense<0.000000e+00> : vector<2xf32>
    %103 = vector.multi_reduction <add>, %102, %cst_58 [1] : vector<2x256xf32> to vector<2xf32>
    %104 = vector.shape_cast %103 : vector<2xf32> to vector<2x1xf32>
    %cst_59 = arith.constant 2.560000e+02 : f32
    %105 = vector.broadcast %cst_59 : f32 to vector<2x1xf32>
    %106 = arith.divf %104, %105 : vector<2x1xf32>
    %107 = vector.broadcast %99 : vector<2x1xf32> to vector<2x256xf32>
    %108 = arith.subf %95, %107 : vector<2x256xf32>
    %cst_60 = arith.constant 9.99999974E-6 : f32
    %109 = vector.broadcast %cst_60 : f32 to vector<2x1xf32>
    %110 = arith.addf %106, %109 : vector<2x1xf32>
    %111 = math.rsqrt %110 : vector<2x1xf32>
    %112 = vector.broadcast %111 : vector<2x1xf32> to vector<2x256xf32>
    %113 = arith.mulf %108, %112 : vector<2x256xf32>
    %cst_61 = arith.constant 0.000000e+00 : f32
    %114 = vector.broadcast %cst_61 : f32 to vector<2x256xf32>
    %115 = arith.maximumf %113, %114 : vector<2x256xf32>
    %c2_62 = arith.constant 2 : index
    %116 = memref.load %arg2[%c2_62] : memref<8xf32, #tpu.memory_space<smem>>
    %c2_63 = arith.constant 2 : index
    %c0_64 = arith.constant 0 : index
    %117 = memref.load %arg1[%c2_63, %c0_64] : memref<8x4xf32, #tpu.memory_space<smem>>
    %118 = vector.broadcast %117 : f32 to vector<2x256xf32>
    %119 = arith.mulf %118, %33 : vector<2x256xf32>
    %120 = vector.broadcast %116 : f32 to vector<2x256xf32>
    %121 = arith.addf %120, %119 : vector<2x256xf32>
    %c2_65 = arith.constant 2 : index
    %c1_66 = arith.constant 1 : index
    %122 = memref.load %arg1[%c2_65, %c1_66] : memref<8x4xf32, #tpu.memory_space<smem>>
    %123 = vector.broadcast %122 : f32 to vector<2x256xf32>
    %124 = arith.mulf %123, %35 : vector<2x256xf32>
    %125 = arith.addf %121, %124 : vector<2x256xf32>
    %c2_67 = arith.constant 2 : index
    %c2_68 = arith.constant 2 : index
    %126 = memref.load %arg1[%c2_67, %c2_68] : memref<8x4xf32, #tpu.memory_space<smem>>
    %127 = vector.broadcast %126 : f32 to vector<2x256xf32>
    %128 = arith.mulf %127, %37 : vector<2x256xf32>
    %129 = arith.addf %125, %128 : vector<2x256xf32>
    %c2_69 = arith.constant 2 : index
    %c3_70 = arith.constant 3 : index
    %130 = memref.load %arg1[%c2_69, %c3_70] : memref<8x4xf32, #tpu.memory_space<smem>>
    %131 = vector.broadcast %130 : f32 to vector<2x256xf32>
    %132 = arith.mulf %131, %39 : vector<2x256xf32>
    %133 = arith.addf %129, %132 : vector<2x256xf32>
    %cst_71 = arith.constant dense<0.000000e+00> : vector<2xf32>
    %134 = vector.multi_reduction <add>, %133, %cst_71 [1] : vector<2x256xf32> to vector<2xf32>
    %135 = vector.shape_cast %134 : vector<2xf32> to vector<2x1xf32>
    %cst_72 = arith.constant 2.560000e+02 : f32
    %136 = vector.broadcast %cst_72 : f32 to vector<2x1xf32>
    %137 = arith.divf %135, %136 : vector<2x1xf32>
    %138 = vector.broadcast %137 : vector<2x1xf32> to vector<2x256xf32>
    %139 = arith.subf %133, %138 : vector<2x256xf32>
    %140 = arith.mulf %139, %139 : vector<2x256xf32>
    %cst_73 = arith.constant dense<0.000000e+00> : vector<2xf32>
    %141 = vector.multi_reduction <add>, %140, %cst_73 [1] : vector<2x256xf32> to vector<2xf32>
    %142 = vector.shape_cast %141 : vector<2xf32> to vector<2x1xf32>
    %cst_74 = arith.constant 2.560000e+02 : f32
    %143 = vector.broadcast %cst_74 : f32 to vector<2x1xf32>
    %144 = arith.divf %142, %143 : vector<2x1xf32>
    %145 = vector.broadcast %137 : vector<2x1xf32> to vector<2x256xf32>
    %146 = arith.subf %133, %145 : vector<2x256xf32>
    %cst_75 = arith.constant 9.99999974E-6 : f32
    %147 = vector.broadcast %cst_75 : f32 to vector<2x1xf32>
    %148 = arith.addf %144, %147 : vector<2x1xf32>
    %149 = math.rsqrt %148 : vector<2x1xf32>
    %150 = vector.broadcast %149 : vector<2x1xf32> to vector<2x256xf32>
    %151 = arith.mulf %146, %150 : vector<2x256xf32>
    %cst_76 = arith.constant 0.000000e+00 : f32
    %152 = vector.broadcast %cst_76 : f32 to vector<2x256xf32>
    %153 = arith.maximumf %151, %152 : vector<2x256xf32>
    %c3_77 = arith.constant 3 : index
    %154 = memref.load %arg2[%c3_77] : memref<8xf32, #tpu.memory_space<smem>>
    %c3_78 = arith.constant 3 : index
    %c0_79 = arith.constant 0 : index
    %155 = memref.load %arg1[%c3_78, %c0_79] : memref<8x4xf32, #tpu.memory_space<smem>>
    %156 = vector.broadcast %155 : f32 to vector<2x256xf32>
    %157 = arith.mulf %156, %33 : vector<2x256xf32>
    %158 = vector.broadcast %154 : f32 to vector<2x256xf32>
    %159 = arith.addf %158, %157 : vector<2x256xf32>
    %c3_80 = arith.constant 3 : index
    %c1_81 = arith.constant 1 : index
    %160 = memref.load %arg1[%c3_80, %c1_81] : memref<8x4xf32, #tpu.memory_space<smem>>
    %161 = vector.broadcast %160 : f32 to vector<2x256xf32>
    %162 = arith.mulf %161, %35 : vector<2x256xf32>
    %163 = arith.addf %159, %162 : vector<2x256xf32>
    %c3_82 = arith.constant 3 : index
    %c2_83 = arith.constant 2 : index
    %164 = memref.load %arg1[%c3_82, %c2_83] : memref<8x4xf32, #tpu.memory_space<smem>>
    %165 = vector.broadcast %164 : f32 to vector<2x256xf32>
    %166 = arith.mulf %165, %37 : vector<2x256xf32>
    %167 = arith.addf %163, %166 : vector<2x256xf32>
    %c3_84 = arith.constant 3 : index
    %c3_85 = arith.constant 3 : index
    %168 = memref.load %arg1[%c3_84, %c3_85] : memref<8x4xf32, #tpu.memory_space<smem>>
    %169 = vector.broadcast %168 : f32 to vector<2x256xf32>
    %170 = arith.mulf %169, %39 : vector<2x256xf32>
    %171 = arith.addf %167, %170 : vector<2x256xf32>
    %cst_86 = arith.constant dense<0.000000e+00> : vector<2xf32>
    %172 = vector.multi_reduction <add>, %171, %cst_86 [1] : vector<2x256xf32> to vector<2xf32>
    %173 = vector.shape_cast %172 : vector<2xf32> to vector<2x1xf32>
    %cst_87 = arith.constant 2.560000e+02 : f32
    %174 = vector.broadcast %cst_87 : f32 to vector<2x1xf32>
    %175 = arith.divf %173, %174 : vector<2x1xf32>
    %176 = vector.broadcast %175 : vector<2x1xf32> to vector<2x256xf32>
    %177 = arith.subf %171, %176 : vector<2x256xf32>
    %178 = arith.mulf %177, %177 : vector<2x256xf32>
    %cst_88 = arith.constant dense<0.000000e+00> : vector<2xf32>
    %179 = vector.multi_reduction <add>, %178, %cst_88 [1] : vector<2x256xf32> to vector<2xf32>
    %180 = vector.shape_cast %179 : vector<2xf32> to vector<2x1xf32>
    %cst_89 = arith.constant 2.560000e+02 : f32
    %181 = vector.broadcast %cst_89 : f32 to vector<2x1xf32>
    %182 = arith.divf %180, %181 : vector<2x1xf32>
    %183 = vector.broadcast %175 : vector<2x1xf32> to vector<2x256xf32>
    %184 = arith.subf %171, %183 : vector<2x256xf32>
    %cst_90 = arith.constant 9.99999974E-6 : f32
    %185 = vector.broadcast %cst_90 : f32 to vector<2x1xf32>
    %186 = arith.addf %182, %185 : vector<2x1xf32>
    %187 = math.rsqrt %186 : vector<2x1xf32>
    %188 = vector.broadcast %187 : vector<2x1xf32> to vector<2x256xf32>
    %189 = arith.mulf %184, %188 : vector<2x256xf32>
    %cst_91 = arith.constant 0.000000e+00 : f32
    %190 = vector.broadcast %cst_91 : f32 to vector<2x256xf32>
    %191 = arith.maximumf %189, %190 : vector<2x256xf32>
    %c4 = arith.constant 4 : index
    %192 = memref.load %arg2[%c4] : memref<8xf32, #tpu.memory_space<smem>>
    %c4_92 = arith.constant 4 : index
    %c0_93 = arith.constant 0 : index
    %193 = memref.load %arg1[%c4_92, %c0_93] : memref<8x4xf32, #tpu.memory_space<smem>>
    %194 = vector.broadcast %193 : f32 to vector<2x256xf32>
    %195 = arith.mulf %194, %33 : vector<2x256xf32>
    %196 = vector.broadcast %192 : f32 to vector<2x256xf32>
    %197 = arith.addf %196, %195 : vector<2x256xf32>
    %c4_94 = arith.constant 4 : index
    %c1_95 = arith.constant 1 : index
    %198 = memref.load %arg1[%c4_94, %c1_95] : memref<8x4xf32, #tpu.memory_space<smem>>
    %199 = vector.broadcast %198 : f32 to vector<2x256xf32>
    %200 = arith.mulf %199, %35 : vector<2x256xf32>
    %201 = arith.addf %197, %200 : vector<2x256xf32>
    %c4_96 = arith.constant 4 : index
    %c2_97 = arith.constant 2 : index
    %202 = memref.load %arg1[%c4_96, %c2_97] : memref<8x4xf32, #tpu.memory_space<smem>>
    %203 = vector.broadcast %202 : f32 to vector<2x256xf32>
    %204 = arith.mulf %203, %37 : vector<2x256xf32>
    %205 = arith.addf %201, %204 : vector<2x256xf32>
    %c4_98 = arith.constant 4 : index
    %c3_99 = arith.constant 3 : index
    %206 = memref.load %arg1[%c4_98, %c3_99] : memref<8x4xf32, #tpu.memory_space<smem>>
    %207 = vector.broadcast %206 : f32 to vector<2x256xf32>
    %208 = arith.mulf %207, %39 : vector<2x256xf32>
    %209 = arith.addf %205, %208 : vector<2x256xf32>
    %cst_100 = arith.constant dense<0.000000e+00> : vector<2xf32>
    %210 = vector.multi_reduction <add>, %209, %cst_100 [1] : vector<2x256xf32> to vector<2xf32>
    %211 = vector.shape_cast %210 : vector<2xf32> to vector<2x1xf32>
    %cst_101 = arith.constant 2.560000e+02 : f32
    %212 = vector.broadcast %cst_101 : f32 to vector<2x1xf32>
    %213 = arith.divf %211, %212 : vector<2x1xf32>
    %214 = vector.broadcast %213 : vector<2x1xf32> to vector<2x256xf32>
    %215 = arith.subf %209, %214 : vector<2x256xf32>
    %216 = arith.mulf %215, %215 : vector<2x256xf32>
    %cst_102 = arith.constant dense<0.000000e+00> : vector<2xf32>
    %217 = vector.multi_reduction <add>, %216, %cst_102 [1] : vector<2x256xf32> to vector<2xf32>
    %218 = vector.shape_cast %217 : vector<2xf32> to vector<2x1xf32>
    %cst_103 = arith.constant 2.560000e+02 : f32
    %219 = vector.broadcast %cst_103 : f32 to vector<2x1xf32>
    %220 = arith.divf %218, %219 : vector<2x1xf32>
    %221 = vector.broadcast %213 : vector<2x1xf32> to vector<2x256xf32>
    %222 = arith.subf %209, %221 : vector<2x256xf32>
    %cst_104 = arith.constant 9.99999974E-6 : f32
    %223 = vector.broadcast %cst_104 : f32 to vector<2x1xf32>
    %224 = arith.addf %220, %223 : vector<2x1xf32>
    %225 = math.rsqrt %224 : vector<2x1xf32>
    %226 = vector.broadcast %225 : vector<2x1xf32> to vector<2x256xf32>
    %227 = arith.mulf %222, %226 : vector<2x256xf32>
    %cst_105 = arith.constant 0.000000e+00 : f32
    %228 = vector.broadcast %cst_105 : f32 to vector<2x256xf32>
    %229 = arith.maximumf %227, %228 : vector<2x256xf32>
    %c5 = arith.constant 5 : index
    %230 = memref.load %arg2[%c5] : memref<8xf32, #tpu.memory_space<smem>>
    %c5_106 = arith.constant 5 : index
    %c0_107 = arith.constant 0 : index
    %231 = memref.load %arg1[%c5_106, %c0_107] : memref<8x4xf32, #tpu.memory_space<smem>>
    %232 = vector.broadcast %231 : f32 to vector<2x256xf32>
    %233 = arith.mulf %232, %33 : vector<2x256xf32>
    %234 = vector.broadcast %230 : f32 to vector<2x256xf32>
    %235 = arith.addf %234, %233 : vector<2x256xf32>
    %c5_108 = arith.constant 5 : index
    %c1_109 = arith.constant 1 : index
    %236 = memref.load %arg1[%c5_108, %c1_109] : memref<8x4xf32, #tpu.memory_space<smem>>
    %237 = vector.broadcast %236 : f32 to vector<2x256xf32>
    %238 = arith.mulf %237, %35 : vector<2x256xf32>
    %239 = arith.addf %235, %238 : vector<2x256xf32>
    %c5_110 = arith.constant 5 : index
    %c2_111 = arith.constant 2 : index
    %240 = memref.load %arg1[%c5_110, %c2_111] : memref<8x4xf32, #tpu.memory_space<smem>>
    %241 = vector.broadcast %240 : f32 to vector<2x256xf32>
    %242 = arith.mulf %241, %37 : vector<2x256xf32>
    %243 = arith.addf %239, %242 : vector<2x256xf32>
    %c5_112 = arith.constant 5 : index
    %c3_113 = arith.constant 3 : index
    %244 = memref.load %arg1[%c5_112, %c3_113] : memref<8x4xf32, #tpu.memory_space<smem>>
    %245 = vector.broadcast %244 : f32 to vector<2x256xf32>
    %246 = arith.mulf %245, %39 : vector<2x256xf32>
    %247 = arith.addf %243, %246 : vector<2x256xf32>
    %cst_114 = arith.constant dense<0.000000e+00> : vector<2xf32>
    %248 = vector.multi_reduction <add>, %247, %cst_114 [1] : vector<2x256xf32> to vector<2xf32>
    %249 = vector.shape_cast %248 : vector<2xf32> to vector<2x1xf32>
    %cst_115 = arith.constant 2.560000e+02 : f32
    %250 = vector.broadcast %cst_115 : f32 to vector<2x1xf32>
    %251 = arith.divf %249, %250 : vector<2x1xf32>
    %252 = vector.broadcast %251 : vector<2x1xf32> to vector<2x256xf32>
    %253 = arith.subf %247, %252 : vector<2x256xf32>
    %254 = arith.mulf %253, %253 : vector<2x256xf32>
    %cst_116 = arith.constant dense<0.000000e+00> : vector<2xf32>
    %255 = vector.multi_reduction <add>, %254, %cst_116 [1] : vector<2x256xf32> to vector<2xf32>
    %256 = vector.shape_cast %255 : vector<2xf32> to vector<2x1xf32>
    %cst_117 = arith.constant 2.560000e+02 : f32
    %257 = vector.broadcast %cst_117 : f32 to vector<2x1xf32>
    %258 = arith.divf %256, %257 : vector<2x1xf32>
    %259 = vector.broadcast %251 : vector<2x1xf32> to vector<2x256xf32>
    %260 = arith.subf %247, %259 : vector<2x256xf32>
    %cst_118 = arith.constant 9.99999974E-6 : f32
    %261 = vector.broadcast %cst_118 : f32 to vector<2x1xf32>
    %262 = arith.addf %258, %261 : vector<2x1xf32>
    %263 = math.rsqrt %262 : vector<2x1xf32>
    %264 = vector.broadcast %263 : vector<2x1xf32> to vector<2x256xf32>
    %265 = arith.mulf %260, %264 : vector<2x256xf32>
    %cst_119 = arith.constant 0.000000e+00 : f32
    %266 = vector.broadcast %cst_119 : f32 to vector<2x256xf32>
    %267 = arith.maximumf %265, %266 : vector<2x256xf32>
    %c6 = arith.constant 6 : index
    %268 = memref.load %arg2[%c6] : memref<8xf32, #tpu.memory_space<smem>>
    %c6_120 = arith.constant 6 : index
    %c0_121 = arith.constant 0 : index
    %269 = memref.load %arg1[%c6_120, %c0_121] : memref<8x4xf32, #tpu.memory_space<smem>>
    %270 = vector.broadcast %269 : f32 to vector<2x256xf32>
    %271 = arith.mulf %270, %33 : vector<2x256xf32>
    %272 = vector.broadcast %268 : f32 to vector<2x256xf32>
    %273 = arith.addf %272, %271 : vector<2x256xf32>
    %c6_122 = arith.constant 6 : index
    %c1_123 = arith.constant 1 : index
    %274 = memref.load %arg1[%c6_122, %c1_123] : memref<8x4xf32, #tpu.memory_space<smem>>
    %275 = vector.broadcast %274 : f32 to vector<2x256xf32>
    %276 = arith.mulf %275, %35 : vector<2x256xf32>
    %277 = arith.addf %273, %276 : vector<2x256xf32>
    %c6_124 = arith.constant 6 : index
    %c2_125 = arith.constant 2 : index
    %278 = memref.load %arg1[%c6_124, %c2_125] : memref<8x4xf32, #tpu.memory_space<smem>>
    %279 = vector.broadcast %278 : f32 to vector<2x256xf32>
    %280 = arith.mulf %279, %37 : vector<2x256xf32>
    %281 = arith.addf %277, %280 : vector<2x256xf32>
    %c6_126 = arith.constant 6 : index
    %c3_127 = arith.constant 3 : index
    %282 = memref.load %arg1[%c6_126, %c3_127] : memref<8x4xf32, #tpu.memory_space<smem>>
    %283 = vector.broadcast %282 : f32 to vector<2x256xf32>
    %284 = arith.mulf %283, %39 : vector<2x256xf32>
    %285 = arith.addf %281, %284 : vector<2x256xf32>
    %cst_128 = arith.constant dense<0.000000e+00> : vector<2xf32>
    %286 = vector.multi_reduction <add>, %285, %cst_128 [1] : vector<2x256xf32> to vector<2xf32>
    %287 = vector.shape_cast %286 : vector<2xf32> to vector<2x1xf32>
    %cst_129 = arith.constant 2.560000e+02 : f32
    %288 = vector.broadcast %cst_129 : f32 to vector<2x1xf32>
    %289 = arith.divf %287, %288 : vector<2x1xf32>
    %290 = vector.broadcast %289 : vector<2x1xf32> to vector<2x256xf32>
    %291 = arith.subf %285, %290 : vector<2x256xf32>
    %292 = arith.mulf %291, %291 : vector<2x256xf32>
    %cst_130 = arith.constant dense<0.000000e+00> : vector<2xf32>
    %293 = vector.multi_reduction <add>, %292, %cst_130 [1] : vector<2x256xf32> to vector<2xf32>
    %294 = vector.shape_cast %293 : vector<2xf32> to vector<2x1xf32>
    %cst_131 = arith.constant 2.560000e+02 : f32
    %295 = vector.broadcast %cst_131 : f32 to vector<2x1xf32>
    %296 = arith.divf %294, %295 : vector<2x1xf32>
    %297 = vector.broadcast %289 : vector<2x1xf32> to vector<2x256xf32>
    %298 = arith.subf %285, %297 : vector<2x256xf32>
    %cst_132 = arith.constant 9.99999974E-6 : f32
    %299 = vector.broadcast %cst_132 : f32 to vector<2x1xf32>
    %300 = arith.addf %296, %299 : vector<2x1xf32>
    %301 = math.rsqrt %300 : vector<2x1xf32>
    %302 = vector.broadcast %301 : vector<2x1xf32> to vector<2x256xf32>
    %303 = arith.mulf %298, %302 : vector<2x256xf32>
    %cst_133 = arith.constant 0.000000e+00 : f32
    %304 = vector.broadcast %cst_133 : f32 to vector<2x256xf32>
    %305 = arith.maximumf %303, %304 : vector<2x256xf32>
    %c7 = arith.constant 7 : index
    %306 = memref.load %arg2[%c7] : memref<8xf32, #tpu.memory_space<smem>>
    %c7_134 = arith.constant 7 : index
    %c0_135 = arith.constant 0 : index
    %307 = memref.load %arg1[%c7_134, %c0_135] : memref<8x4xf32, #tpu.memory_space<smem>>
    %308 = vector.broadcast %307 : f32 to vector<2x256xf32>
    %309 = arith.mulf %308, %33 : vector<2x256xf32>
    %310 = vector.broadcast %306 : f32 to vector<2x256xf32>
    %311 = arith.addf %310, %309 : vector<2x256xf32>
    %c7_136 = arith.constant 7 : index
    %c1_137 = arith.constant 1 : index
    %312 = memref.load %arg1[%c7_136, %c1_137] : memref<8x4xf32, #tpu.memory_space<smem>>
    %313 = vector.broadcast %312 : f32 to vector<2x256xf32>
    %314 = arith.mulf %313, %35 : vector<2x256xf32>
    %315 = arith.addf %311, %314 : vector<2x256xf32>
    %c7_138 = arith.constant 7 : index
    %c2_139 = arith.constant 2 : index
    %316 = memref.load %arg1[%c7_138, %c2_139] : memref<8x4xf32, #tpu.memory_space<smem>>
    %317 = vector.broadcast %316 : f32 to vector<2x256xf32>
    %318 = arith.mulf %317, %37 : vector<2x256xf32>
    %319 = arith.addf %315, %318 : vector<2x256xf32>
    %c7_140 = arith.constant 7 : index
    %c3_141 = arith.constant 3 : index
    %320 = memref.load %arg1[%c7_140, %c3_141] : memref<8x4xf32, #tpu.memory_space<smem>>
    %321 = vector.broadcast %320 : f32 to vector<2x256xf32>
    %322 = arith.mulf %321, %39 : vector<2x256xf32>
    %323 = arith.addf %319, %322 : vector<2x256xf32>
    %cst_142 = arith.constant dense<0.000000e+00> : vector<2xf32>
    %324 = vector.multi_reduction <add>, %323, %cst_142 [1] : vector<2x256xf32> to vector<2xf32>
    %325 = vector.shape_cast %324 : vector<2xf32> to vector<2x1xf32>
    %cst_143 = arith.constant 2.560000e+02 : f32
    %326 = vector.broadcast %cst_143 : f32 to vector<2x1xf32>
    %327 = arith.divf %325, %326 : vector<2x1xf32>
    %328 = vector.broadcast %327 : vector<2x1xf32> to vector<2x256xf32>
    %329 = arith.subf %323, %328 : vector<2x256xf32>
    %330 = arith.mulf %329, %329 : vector<2x256xf32>
    %cst_144 = arith.constant dense<0.000000e+00> : vector<2xf32>
    %331 = vector.multi_reduction <add>, %330, %cst_144 [1] : vector<2x256xf32> to vector<2xf32>
    %332 = vector.shape_cast %331 : vector<2xf32> to vector<2x1xf32>
    %cst_145 = arith.constant 2.560000e+02 : f32
    %333 = vector.broadcast %cst_145 : f32 to vector<2x1xf32>
    %334 = arith.divf %332, %333 : vector<2x1xf32>
    %335 = vector.broadcast %327 : vector<2x1xf32> to vector<2x256xf32>
    %336 = arith.subf %323, %335 : vector<2x256xf32>
    %cst_146 = arith.constant 9.99999974E-6 : f32
    %337 = vector.broadcast %cst_146 : f32 to vector<2x1xf32>
    %338 = arith.addf %334, %337 : vector<2x1xf32>
    %339 = math.rsqrt %338 : vector<2x1xf32>
    %340 = vector.broadcast %339 : vector<2x1xf32> to vector<2x256xf32>
    %341 = arith.mulf %336, %340 : vector<2x256xf32>
    %cst_147 = arith.constant 0.000000e+00 : f32
    %342 = vector.broadcast %cst_147 : f32 to vector<2x256xf32>
    %343 = arith.maximumf %341, %342 : vector<2x256xf32>
    %c0_148 = arith.constant 0 : index
    %c0_149 = arith.constant 0 : index
    %344 = vector.load %arg4[%c0_148, %c0_149] : memref<1x512xf32, #tpu.memory_space<vmem>>, vector<1x512xf32>
    %c0_i32_150 = arith.constant 0 : i32
    %c0_i32_151 = arith.constant 0 : i32
    %c0_i32_152 = arith.constant 0 : i32
    %345 = tpu.memref_slice %arg3[%c0_i32_151, %c0_i32_152] : memref<2048x512xbf16, #tpu.memory_space<any>> -> memref<256x512xbf16, #tpu.memory_space<any>>
    %c0_i32_153 = arith.constant 0 : i32
    %c0_i32_154 = arith.constant 0 : i32
    %346 = tpu.memref_slice %arg10[%c0_i32_153, %c0_i32_154] : memref<2048x512xbf16, #tpu.memory_space<vmem>> -> memref<256x512xbf16, #tpu.memory_space<vmem>>
    %347 = tpu.memref_slice %arg11[%c0_i32_150] : memref<8x!tpu.dma_semaphore, #tpu.memory_space<semaphore_mem>> -> memref<1x!tpu.dma_semaphore, #tpu.memory_space<semaphore_mem>>
    %348 = tpu.memref_squeeze %347 : memref<1x!tpu.dma_semaphore, #tpu.memory_space<semaphore_mem>> -> memref<!tpu.dma_semaphore, #tpu.memory_space<semaphore_mem>>
    tpu.wait_dma2 semaphore(%348 : memref<!tpu.dma_semaphore, #tpu.memory_space<semaphore_mem>>) src(%345 : memref<256x512xbf16, #tpu.memory_space<any>>) dst(%346 : memref<256x512xbf16, #tpu.memory_space<vmem>>)
    %c0_155 = arith.constant 0 : index
    %c0_156 = arith.constant 0 : index
    %349 = vector.load %arg10[%c0_155, %c0_156] : memref<2048x512xbf16, #tpu.memory_space<vmem>>, vector<256x512xbf16>
    %350 = arith.extf %349 : vector<256x512xbf16> to vector<256x512xf32>
    %cst_157 = arith.constant dense<0.000000e+00> : vector<2x512xf32>
    %351 = tpu.matmul %77, %350, %cst_157 {dimension_numbers = #tpu.dot_dimension_numbers<[1], [0], [0], [1], [0, 0, 1, 1], [], []>} : vector<2x256xf32>, vector<256x512xf32>, vector<2x512xf32> -> vector<2x512xf32>
    %352 = vector.broadcast %344 : vector<1x512xf32> to vector<2x512xf32>
    %353 = arith.addf %352, %351 : vector<2x512xf32>
    %c1_i32_158 = arith.constant 1 : i32
    %c256_i32_159 = arith.constant 256 : i32
    %c0_i32_160 = arith.constant 0 : i32
    %354 = tpu.memref_slice %arg3[%c256_i32_159, %c0_i32_160] : memref<2048x512xbf16, #tpu.memory_space<any>> -> memref<256x512xbf16, #tpu.memory_space<any>>
    %c256_i32_161 = arith.constant 256 : i32
    %c0_i32_162 = arith.constant 0 : i32
    %355 = tpu.memref_slice %arg10[%c256_i32_161, %c0_i32_162] : memref<2048x512xbf16, #tpu.memory_space<vmem>> -> memref<256x512xbf16, #tpu.memory_space<vmem>>
    %356 = tpu.memref_slice %arg11[%c1_i32_158] : memref<8x!tpu.dma_semaphore, #tpu.memory_space<semaphore_mem>> -> memref<1x!tpu.dma_semaphore, #tpu.memory_space<semaphore_mem>>
    %357 = tpu.memref_squeeze %356 : memref<1x!tpu.dma_semaphore, #tpu.memory_space<semaphore_mem>> -> memref<!tpu.dma_semaphore, #tpu.memory_space<semaphore_mem>>
    tpu.wait_dma2 semaphore(%357 : memref<!tpu.dma_semaphore, #tpu.memory_space<semaphore_mem>>) src(%354 : memref<256x512xbf16, #tpu.memory_space<any>>) dst(%355 : memref<256x512xbf16, #tpu.memory_space<vmem>>)
    %c256 = arith.constant 256 : index
    %c0_163 = arith.constant 0 : index
    %358 = vector.load %arg10[%c256, %c0_163] : memref<2048x512xbf16, #tpu.memory_space<vmem>>, vector<256x512xbf16>
    %359 = arith.extf %358 : vector<256x512xbf16> to vector<256x512xf32>
    %cst_164 = arith.constant dense<0.000000e+00> : vector<2x512xf32>
    %360 = tpu.matmul %115, %359, %cst_164 {dimension_numbers = #tpu.dot_dimension_numbers<[1], [0], [0], [1], [0, 0, 1, 1], [], []>} : vector<2x256xf32>, vector<256x512xf32>, vector<2x512xf32> -> vector<2x512xf32>
    %361 = arith.addf %353, %360 : vector<2x512xf32>
    %c2_i32_165 = arith.constant 2 : i32
    %c512_i32_166 = arith.constant 512 : i32
    %c0_i32_167 = arith.constant 0 : i32
    %362 = tpu.memref_slice %arg3[%c512_i32_166, %c0_i32_167] : memref<2048x512xbf16, #tpu.memory_space<any>> -> memref<256x512xbf16, #tpu.memory_space<any>>
    %c512_i32_168 = arith.constant 512 : i32
    %c0_i32_169 = arith.constant 0 : i32
    %363 = tpu.memref_slice %arg10[%c512_i32_168, %c0_i32_169] : memref<2048x512xbf16, #tpu.memory_space<vmem>> -> memref<256x512xbf16, #tpu.memory_space<vmem>>
    %364 = tpu.memref_slice %arg11[%c2_i32_165] : memref<8x!tpu.dma_semaphore, #tpu.memory_space<semaphore_mem>> -> memref<1x!tpu.dma_semaphore, #tpu.memory_space<semaphore_mem>>
    %365 = tpu.memref_squeeze %364 : memref<1x!tpu.dma_semaphore, #tpu.memory_space<semaphore_mem>> -> memref<!tpu.dma_semaphore, #tpu.memory_space<semaphore_mem>>
    tpu.wait_dma2 semaphore(%365 : memref<!tpu.dma_semaphore, #tpu.memory_space<semaphore_mem>>) src(%362 : memref<256x512xbf16, #tpu.memory_space<any>>) dst(%363 : memref<256x512xbf16, #tpu.memory_space<vmem>>)
    %c512 = arith.constant 512 : index
    %c0_170 = arith.constant 0 : index
    %366 = vector.load %arg10[%c512, %c0_170] : memref<2048x512xbf16, #tpu.memory_space<vmem>>, vector<256x512xbf16>
    %367 = arith.extf %366 : vector<256x512xbf16> to vector<256x512xf32>
    %cst_171 = arith.constant dense<0.000000e+00> : vector<2x512xf32>
    %368 = tpu.matmul %153, %367, %cst_171 {dimension_numbers = #tpu.dot_dimension_numbers<[1], [0], [0], [1], [0, 0, 1, 1], [], []>} : vector<2x256xf32>, vector<256x512xf32>, vector<2x512xf32> -> vector<2x512xf32>
    %369 = arith.addf %361, %368 : vector<2x512xf32>
    %c3_i32_172 = arith.constant 3 : i32
    %c768_i32_173 = arith.constant 768 : i32
    %c0_i32_174 = arith.constant 0 : i32
    %370 = tpu.memref_slice %arg3[%c768_i32_173, %c0_i32_174] : memref<2048x512xbf16, #tpu.memory_space<any>> -> memref<256x512xbf16, #tpu.memory_space<any>>
    %c768_i32_175 = arith.constant 768 : i32
    %c0_i32_176 = arith.constant 0 : i32
    %371 = tpu.memref_slice %arg10[%c768_i32_175, %c0_i32_176] : memref<2048x512xbf16, #tpu.memory_space<vmem>> -> memref<256x512xbf16, #tpu.memory_space<vmem>>
    %372 = tpu.memref_slice %arg11[%c3_i32_172] : memref<8x!tpu.dma_semaphore, #tpu.memory_space<semaphore_mem>> -> memref<1x!tpu.dma_semaphore, #tpu.memory_space<semaphore_mem>>
    %373 = tpu.memref_squeeze %372 : memref<1x!tpu.dma_semaphore, #tpu.memory_space<semaphore_mem>> -> memref<!tpu.dma_semaphore, #tpu.memory_space<semaphore_mem>>
    tpu.wait_dma2 semaphore(%373 : memref<!tpu.dma_semaphore, #tpu.memory_space<semaphore_mem>>) src(%370 : memref<256x512xbf16, #tpu.memory_space<any>>) dst(%371 : memref<256x512xbf16, #tpu.memory_space<vmem>>)
    %c768 = arith.constant 768 : index
    %c0_177 = arith.constant 0 : index
    %374 = vector.load %arg10[%c768, %c0_177] : memref<2048x512xbf16, #tpu.memory_space<vmem>>, vector<256x512xbf16>
    %375 = arith.extf %374 : vector<256x512xbf16> to vector<256x512xf32>
    %cst_178 = arith.constant dense<0.000000e+00> : vector<2x512xf32>
    %376 = tpu.matmul %191, %375, %cst_178 {dimension_numbers = #tpu.dot_dimension_numbers<[1], [0], [0], [1], [0, 0, 1, 1], [], []>} : vector<2x256xf32>, vector<256x512xf32>, vector<2x512xf32> -> vector<2x512xf32>
    %377 = arith.addf %369, %376 : vector<2x512xf32>
    %c4_i32_179 = arith.constant 4 : i32
    %c1024_i32_180 = arith.constant 1024 : i32
    %c0_i32_181 = arith.constant 0 : i32
    %378 = tpu.memref_slice %arg3[%c1024_i32_180, %c0_i32_181] : memref<2048x512xbf16, #tpu.memory_space<any>> -> memref<256x512xbf16, #tpu.memory_space<any>>
    %c1024_i32_182 = arith.constant 1024 : i32
    %c0_i32_183 = arith.constant 0 : i32
    %379 = tpu.memref_slice %arg10[%c1024_i32_182, %c0_i32_183] : memref<2048x512xbf16, #tpu.memory_space<vmem>> -> memref<256x512xbf16, #tpu.memory_space<vmem>>
    %380 = tpu.memref_slice %arg11[%c4_i32_179] : memref<8x!tpu.dma_semaphore, #tpu.memory_space<semaphore_mem>> -> memref<1x!tpu.dma_semaphore, #tpu.memory_space<semaphore_mem>>
    %381 = tpu.memref_squeeze %380 : memref<1x!tpu.dma_semaphore, #tpu.memory_space<semaphore_mem>> -> memref<!tpu.dma_semaphore, #tpu.memory_space<semaphore_mem>>
    tpu.wait_dma2 semaphore(%381 : memref<!tpu.dma_semaphore, #tpu.memory_space<semaphore_mem>>) src(%378 : memref<256x512xbf16, #tpu.memory_space<any>>) dst(%379 : memref<256x512xbf16, #tpu.memory_space<vmem>>)
    %c1024 = arith.constant 1024 : index
    %c0_184 = arith.constant 0 : index
    %382 = vector.load %arg10[%c1024, %c0_184] : memref<2048x512xbf16, #tpu.memory_space<vmem>>, vector<256x512xbf16>
    %383 = arith.extf %382 : vector<256x512xbf16> to vector<256x512xf32>
    %cst_185 = arith.constant dense<0.000000e+00> : vector<2x512xf32>
    %384 = tpu.matmul %229, %383, %cst_185 {dimension_numbers = #tpu.dot_dimension_numbers<[1], [0], [0], [1], [0, 0, 1, 1], [], []>} : vector<2x256xf32>, vector<256x512xf32>, vector<2x512xf32> -> vector<2x512xf32>
    %385 = arith.addf %377, %384 : vector<2x512xf32>
    %c5_i32_186 = arith.constant 5 : i32
    %c1280_i32_187 = arith.constant 1280 : i32
    %c0_i32_188 = arith.constant 0 : i32
    %386 = tpu.memref_slice %arg3[%c1280_i32_187, %c0_i32_188] : memref<2048x512xbf16, #tpu.memory_space<any>> -> memref<256x512xbf16, #tpu.memory_space<any>>
    %c1280_i32_189 = arith.constant 1280 : i32
    %c0_i32_190 = arith.constant 0 : i32
    %387 = tpu.memref_slice %arg10[%c1280_i32_189, %c0_i32_190] : memref<2048x512xbf16, #tpu.memory_space<vmem>> -> memref<256x512xbf16, #tpu.memory_space<vmem>>
    %388 = tpu.memref_slice %arg11[%c5_i32_186] : memref<8x!tpu.dma_semaphore, #tpu.memory_space<semaphore_mem>> -> memref<1x!tpu.dma_semaphore, #tpu.memory_space<semaphore_mem>>
    %389 = tpu.memref_squeeze %388 : memref<1x!tpu.dma_semaphore, #tpu.memory_space<semaphore_mem>> -> memref<!tpu.dma_semaphore, #tpu.memory_space<semaphore_mem>>
    tpu.wait_dma2 semaphore(%389 : memref<!tpu.dma_semaphore, #tpu.memory_space<semaphore_mem>>) src(%386 : memref<256x512xbf16, #tpu.memory_space<any>>) dst(%387 : memref<256x512xbf16, #tpu.memory_space<vmem>>)
    %c1280 = arith.constant 1280 : index
    %c0_191 = arith.constant 0 : index
    %390 = vector.load %arg10[%c1280, %c0_191] : memref<2048x512xbf16, #tpu.memory_space<vmem>>, vector<256x512xbf16>
    %391 = arith.extf %390 : vector<256x512xbf16> to vector<256x512xf32>
    %cst_192 = arith.constant dense<0.000000e+00> : vector<2x512xf32>
    %392 = tpu.matmul %267, %391, %cst_192 {dimension_numbers = #tpu.dot_dimension_numbers<[1], [0], [0], [1], [0, 0, 1, 1], [], []>} : vector<2x256xf32>, vector<256x512xf32>, vector<2x512xf32> -> vector<2x512xf32>
    %393 = arith.addf %385, %392 : vector<2x512xf32>
    %c6_i32_193 = arith.constant 6 : i32
    %c1536_i32_194 = arith.constant 1536 : i32
    %c0_i32_195 = arith.constant 0 : i32
    %394 = tpu.memref_slice %arg3[%c1536_i32_194, %c0_i32_195] : memref<2048x512xbf16, #tpu.memory_space<any>> -> memref<256x512xbf16, #tpu.memory_space<any>>
    %c1536_i32_196 = arith.constant 1536 : i32
    %c0_i32_197 = arith.constant 0 : i32
    %395 = tpu.memref_slice %arg10[%c1536_i32_196, %c0_i32_197] : memref<2048x512xbf16, #tpu.memory_space<vmem>> -> memref<256x512xbf16, #tpu.memory_space<vmem>>
    %396 = tpu.memref_slice %arg11[%c6_i32_193] : memref<8x!tpu.dma_semaphore, #tpu.memory_space<semaphore_mem>> -> memref<1x!tpu.dma_semaphore, #tpu.memory_space<semaphore_mem>>
    %397 = tpu.memref_squeeze %396 : memref<1x!tpu.dma_semaphore, #tpu.memory_space<semaphore_mem>> -> memref<!tpu.dma_semaphore, #tpu.memory_space<semaphore_mem>>
    tpu.wait_dma2 semaphore(%397 : memref<!tpu.dma_semaphore, #tpu.memory_space<semaphore_mem>>) src(%394 : memref<256x512xbf16, #tpu.memory_space<any>>) dst(%395 : memref<256x512xbf16, #tpu.memory_space<vmem>>)
    %c1536 = arith.constant 1536 : index
    %c0_198 = arith.constant 0 : index
    %398 = vector.load %arg10[%c1536, %c0_198] : memref<2048x512xbf16, #tpu.memory_space<vmem>>, vector<256x512xbf16>
    %399 = arith.extf %398 : vector<256x512xbf16> to vector<256x512xf32>
    %cst_199 = arith.constant dense<0.000000e+00> : vector<2x512xf32>
    %400 = tpu.matmul %305, %399, %cst_199 {dimension_numbers = #tpu.dot_dimension_numbers<[1], [0], [0], [1], [0, 0, 1, 1], [], []>} : vector<2x256xf32>, vector<256x512xf32>, vector<2x512xf32> -> vector<2x512xf32>
    %401 = arith.addf %393, %400 : vector<2x512xf32>
    %c7_i32_200 = arith.constant 7 : i32
    %c1792_i32_201 = arith.constant 1792 : i32
    %c0_i32_202 = arith.constant 0 : i32
    %402 = tpu.memref_slice %arg3[%c1792_i32_201, %c0_i32_202] : memref<2048x512xbf16, #tpu.memory_space<any>> -> memref<256x512xbf16, #tpu.memory_space<any>>
    %c1792_i32_203 = arith.constant 1792 : i32
    %c0_i32_204 = arith.constant 0 : i32
    %403 = tpu.memref_slice %arg10[%c1792_i32_203, %c0_i32_204] : memref<2048x512xbf16, #tpu.memory_space<vmem>> -> memref<256x512xbf16, #tpu.memory_space<vmem>>
    %404 = tpu.memref_slice %arg11[%c7_i32_200] : memref<8x!tpu.dma_semaphore, #tpu.memory_space<semaphore_mem>> -> memref<1x!tpu.dma_semaphore, #tpu.memory_space<semaphore_mem>>
    %405 = tpu.memref_squeeze %404 : memref<1x!tpu.dma_semaphore, #tpu.memory_space<semaphore_mem>> -> memref<!tpu.dma_semaphore, #tpu.memory_space<semaphore_mem>>
    tpu.wait_dma2 semaphore(%405 : memref<!tpu.dma_semaphore, #tpu.memory_space<semaphore_mem>>) src(%402 : memref<256x512xbf16, #tpu.memory_space<any>>) dst(%403 : memref<256x512xbf16, #tpu.memory_space<vmem>>)
    %c1792 = arith.constant 1792 : index
    %c0_205 = arith.constant 0 : index
    %406 = vector.load %arg10[%c1792, %c0_205] : memref<2048x512xbf16, #tpu.memory_space<vmem>>, vector<256x512xbf16>
    %407 = arith.extf %406 : vector<256x512xbf16> to vector<256x512xf32>
    %cst_206 = arith.constant dense<0.000000e+00> : vector<2x512xf32>
    %408 = tpu.matmul %343, %407, %cst_206 {dimension_numbers = #tpu.dot_dimension_numbers<[1], [0], [0], [1], [0, 0, 1, 1], [], []>} : vector<2x256xf32>, vector<256x512xf32>, vector<2x512xf32> -> vector<2x512xf32>
    %409 = arith.addf %401, %408 : vector<2x512xf32>
    %410 = math.tanh %409 : vector<2x512xf32>
    tpu.wait_dma2 semaphore(%arg13 : memref<!tpu.dma_semaphore, #tpu.memory_space<semaphore_mem>>) src(%arg5 : memref<512x64xf32, #tpu.memory_space<any>>) dst(%arg12 : memref<512x64xf32, #tpu.memory_space<vmem>>)
    %c0_207 = arith.constant 0 : index
    %c0_208 = arith.constant 0 : index
    %411 = vector.load %arg12[%c0_207, %c0_208] : memref<512x64xf32, #tpu.memory_space<vmem>>, vector<512x64xf32>
    %cst_209 = arith.constant dense<0.000000e+00> : vector<2x64xf32>
    %412 = tpu.matmul %410, %411, %cst_209 {dimension_numbers = #tpu.dot_dimension_numbers<[1], [0], [0], [1], [0, 0, 1, 1], [], []>} : vector<2x512xf32>, vector<512x64xf32>, vector<2x64xf32> -> vector<2x64xf32>
    %c0_210 = arith.constant 0 : index
    %c0_211 = arith.constant 0 : index
    %413 = vector.load %arg6[%c0_210, %c0_211] : memref<1x64xf32, #tpu.memory_space<vmem>>, vector<1x64xf32>
    %414 = vector.broadcast %413 : vector<1x64xf32> to vector<2x64xf32>
    %415 = arith.addf %412, %414 : vector<2x64xf32>
    %416 = math.tanh %415 : vector<2x64xf32>
    %c0_212 = arith.constant 0 : index
    %c0_213 = arith.constant 0 : index
    %417 = vector.load %arg7[%c0_212, %c0_213] : memref<64x8xf32, #tpu.memory_space<vmem>>, vector<64x8xf32>
    %cst_214 = arith.constant dense<0.000000e+00> : vector<2x8xf32>
    %418 = tpu.matmul %416, %417, %cst_214 {dimension_numbers = #tpu.dot_dimension_numbers<[1], [0], [0], [1], [0, 0, 1, 1], [], []>} : vector<2x64xf32>, vector<64x8xf32>, vector<2x8xf32> -> vector<2x8xf32>
    %c0_215 = arith.constant 0 : index
    %c0_216 = arith.constant 0 : index
    %419 = vector.load %arg8[%c0_215, %c0_216] : memref<1x8xf32, #tpu.memory_space<vmem>>, vector<1x8xf32>
    %420 = vector.broadcast %419 : vector<1x8xf32> to vector<2x8xf32>
    %421 = arith.addf %418, %420 : vector<2x8xf32>
    %c0_217 = arith.constant 0 : index
    %c0_218 = arith.constant 0 : index
    %422 = vector.load %arg9[%c0_217, %c0_218] : memref<2x8xf32, #tpu.memory_space<vmem>>, vector<2x8xf32>
    tpu.vector_store %arg9[%c0_217, %c0_218], %421 {strides = array<i32>} : memref<2x8xf32, #tpu.memory_space<vmem>>, vector<2x8xf32>,
    return
  }
}

</mosaic_0001>

<bundles_post_ra>
// kernel: ubox_block_forward.1
= control target key start
LH: loop header
LB: loop body
LE: loop exit
PB: predicated region body
PF: predicated region fallthrough
CT: control target
= control target key end

     0   :  { %14 = vsyncpa [#allocation8], 0  ;;  %s10466_s0 = inlined_call_operand.vmem [shape: f32[2,4,256], index: 0, kind: input, shape index: {}]   ;;  %s10467_s1 = inlined_call_operand.vmem [shape: f32[8,4], index: 1, kind: input, shape index: {}]   ;;  %s10468_s2 = inlined_call_operand.vmem [shape: f32[8], index: 2, kind: input, shape index: {}]   ;;  %s10469_s3 = inlined_call_operand.vmem [shape: bf16[2048,512], index: 3, kind: input, shape index: {}]   ;;  %s10470_s4 = inlined_call_operand.vmem [shape: f32[1,512], index: 4, kind: input, shape index: {}]   ;;  %s10471_s5 = inlined_call_operand.vmem [shape: f32[512,64], index: 5, kind: input, shape index: {}]   ;;  %s10472_s6 = inlined_call_operand.vmem [shape: f32[1,64], index: 6, kind: input, shape index: {}]   ;;  %s10473_s7 = inlined_call_operand.vmem [shape: f32[64,8], index: 7, kind: input, shape index: {}]   ;;  %s10474_s8 = inlined_call_operand.vmem [shape: f32[1,8], index: 8, kind: input, shape index: {}]   ;;  %s10475_s9 = inlined_call_operand.hbm [shape: f32[2,8], index: 9, kind: output, shape index: {}]  }
   0x1   :  { %15 = vsyncpa [#allocation10], 0 }
   0x2   :  { %16 = vsyncpa [#allocation7], 0  ;;  %s24_s11 = sshll.u32 %s10467_s1, 4  ;;  %s33_s14 = sshll.u32 %s10468_s2, 4  ;;  %s25_s11 = int_to_ptr.vmem [resolvable:$true] %s24_s11  ;;  %s34_s14 = int_to_ptr.vmem [resolvable:$true] %s33_s14 }
   0x3   :  { %s5940_s15 = smov [#allocation6]   ;;  %s5941_s16 = smov [#allocation9]  }
   0x4   :  { %27 = dma.vmem_to_smem %s25_s11, 128, %s5940_s15, [#allocation8]  }
   0x5   :  { %36 = dma.vmem_to_smem %s34_s14, 16, %s5941_s16, [#allocation10]  }
   0x6   :  { %5916 = dma.done.wait [#allocation8], 128  }
   0x7   :  { %5917 = vsyncadd [#allocation8], 4294967168 }
   0x8   :  { %5918 = dma.done.wait [#allocation10], 16  }
   0x9   :  { %5919 = vsyncadd [#allocation10], 4294967280 }
   0xa   :  { %53 = sfence }
   0xb   :  { %v6003_v0 = vld [vmem:[%s10469_s3] sm:$0xff]  ;;  %v6008_v1 = vld [vmem:[%s10469_s3 + $0x8] sm:$0xff]  ;;  %v6013_v2 = vld [vmem:[%s10469_s3 + $0x10] sm:$0xff] }
   0xc   :  { %10974 = vst [vmem:[#allocation33_spill] sm:$0xff] %v6003_v0  ;;  %v6018_v3 = vld [vmem:[%s10469_s3 + $0x18] sm:$0xff]  ;;  %v6023_v4 = vld [vmem:[%s10469_s3 + $0x20] sm:$0xff]  ;;  %v6028_v5 = vld [vmem:[%s10469_s3 + $0x28] sm:$0xff] }
   0xd   :  { %10975 = vst [vmem:[#allocation34_spill] sm:$0xff] %v6008_v1  ;;  %v6033_v6 = vld [vmem:[%s10469_s3 + $0x30] sm:$0xff]  ;;  %v6038_v7 = vld [vmem:[%s10469_s3 + $0x38] sm:$0xff]  ;;  %v6043_v8 = vld [vmem:[%s10469_s3 + $0x40] sm:$0xff] }
   0xe   :  { %10976 = vst [vmem:[#allocation35_spill] sm:$0xff] %v6013_v2  ;;  %v6048_v9 = vld [vmem:[%s10469_s3 + $0x48] sm:$0xff]  ;;  %v6053_v10 = vld [vmem:[%s10469_s3 + $0x50] sm:$0xff]  ;;  %v6058_v11 = vld [vmem:[%s10469_s3 + $0x58] sm:$0xff] }
   0xf   :  { %10977 = vst [vmem:[#allocation36_spill] sm:$0xff] %v6018_v3  ;;  %v6063_v12 = vld [vmem:[%s10469_s3 + $0x60] sm:$0xff]  ;;  %v6068_v13 = vld [vmem:[%s10469_s3 + $0x68] sm:$0xff]  ;;  %v6073_v14 = vld [vmem:[%s10469_s3 + $0x70] sm:$0xff] }
  0x10   :  { %10978 = vst [vmem:[#allocation37_spill] sm:$0xff] %v6023_v4  ;;  %v6078_v15 = vld [vmem:[%s10469_s3 + $0x78] sm:$0xff]  ;;  %v6083_v16 = vld [vmem:[%s10469_s3 + $0x80] sm:$0xff]  ;;  %v6088_v17 = vld [vmem:[%s10469_s3 + $0x88] sm:$0xff] }
  0x11   :  { %10979 = vst [vmem:[#allocation38_spill] sm:$0xff] %v6028_v5  ;;  %v6093_v18 = vld [vmem:[%s10469_s3 + $0x90] sm:$0xff]  ;;  %v6098_v19 = vld [vmem:[%s10469_s3 + $0x98] sm:$0xff]  ;;  %v6103_v20 = vld [vmem:[%s10469_s3 + $0xa0] sm:$0xff] }
  0x12   :  { %10980 = vst [vmem:[#allocation39_spill] sm:$0xff] %v6033_v6  ;;  %v6108_v21 = vld [vmem:[%s10469_s3 + $0xa8] sm:$0xff]  ;;  %v6113_v22 = vld [vmem:[%s10469_s3 + $0xb0] sm:$0xff]  ;;  %v6118_v23 = vld [vmem:[%s10469_s3 + $0xb8] sm:$0xff] }
  0x13   :  { %10981 = vst [vmem:[#allocation40_spill] sm:$0xff] %v6038_v7  ;;  %v6123_v24 = vld [vmem:[%s10469_s3 + $0xc0] sm:$0xff]  ;;  %v6128_v25 = vld [vmem:[%s10469_s3 + $0xc8] sm:$0xff]  ;;  %v6133_v26 = vld [vmem:[%s10469_s3 + $0xd0] sm:$0xff] }
  0x14   :  { %10982 = vst [vmem:[#allocation41_spill] sm:$0xff] %v6043_v8  ;;  %v6138_v27 = vld [vmem:[%s10469_s3 + $0xd8] sm:$0xff]  ;;  %v6143_v28 = vld [vmem:[%s10469_s3 + $0xe0] sm:$0xff]  ;;  %v6148_v29 = vld [vmem:[%s10469_s3 + $0xe8] sm:$0xff] }
  0x15   :  { %10983 = vst [vmem:[#allocation42_spill] sm:$0xff] %v6048_v9  ;;  %v6153_v30 = vld [vmem:[%s10469_s3 + $0xf0] sm:$0xff]  ;;  %v6158_v31 = vld [vmem:[%s10469_s3 + $0xf8] sm:$0xff]  ;;  %v6163_v32 = vld [vmem:[%s10469_s3 + $0x100] sm:$0xff] }
  0x16   :  { %10984 = vst [vmem:[#allocation43_spill] sm:$0xff] %v6053_v10  ;;  %v6168_v33 = vld [vmem:[%s10469_s3 + $0x108] sm:$0xff]  ;;  %v6173_v34 = vld [vmem:[%s10469_s3 + $0x110] sm:$0xff]  ;;  %v6178_v35 = vld [vmem:[%s10469_s3 + $0x118] sm:$0xff] }
  0x17   :  { %10985 = vst [vmem:[#allocation44_spill] sm:$0xff] %v6058_v11  ;;  %v6183_v36 = vld [vmem:[%s10469_s3 + $0x120] sm:$0xff]  ;;  %v6188_v37 = vld [vmem:[%s10469_s3 + $0x128] sm:$0xff]  ;;  %v6193_v38 = vld [vmem:[%s10469_s3 + $0x130] sm:$0xff] }
  0x18   :  { %10986 = vst [vmem:[#allocation45_spill] sm:$0xff] %v6063_v12  ;;  %v6198_v39 = vld [vmem:[%s10469_s3 + $0x138] sm:$0xff]  ;;  %v6203_v40 = vld [vmem:[%s10469_s3 + $0x140] sm:$0xff]  ;;  %v6208_v41 = vld [vmem:[%s10469_s3 + $0x148] sm:$0xff] }
  0x19   :  { %10987 = vst [vmem:[#allocation46_spill] sm:$0xff] %v6068_v13  ;;  %v6213_v42 = vld [vmem:[%s10469_s3 + $0x150] sm:$0xff]  ;;  %v6218_v43 = vld [vmem:[%s10469_s3 + $0x158] sm:$0xff]  ;;  %v6223_v44 = vld [vmem:[%s10469_s3 + $0x160] sm:$0xff] }
  0x1a   :  { %10988 = vst [vmem:[#allocation47_spill] sm:$0xff] %v6073_v14  ;;  %v6228_v45 = vld [vmem:[%s10469_s3 + $0x168] sm:$0xff]  ;;  %v6233_v46 = vld [vmem:[%s10469_s3 + $0x170] sm:$0xff]  ;;  %v6238_v47 = vld [vmem:[%s10469_s3 + $0x178] sm:$0xff] }
  0x1b   :  { %10989 = vst [vmem:[#allocation48_spill] sm:$0xff] %v6078_v15  ;;  %v6243_v48 = vld [vmem:[%s10469_s3 + $0x180] sm:$0xff]  ;;  %v6248_v49 = vld [vmem:[%s10469_s3 + $0x188] sm:$0xff]  ;;  %v6253_v50 = vld [vmem:[%s10469_s3 + $0x190] sm:$0xff] }
  0x1c   :  { %10990 = vst [vmem:[#allocation49_spill] sm:$0xff] %v6083_v16  ;;  %v6258_v51 = vld [vmem:[%s10469_s3 + $0x198] sm:$0xff]  ;;  %v6263_v52 = vld [vmem:[%s10469_s3 + $0x1a0] sm:$0xff]  ;;  %v6268_v53 = vld [vmem:[%s10469_s3 + $0x1a8] sm:$0xff] }
  0x1d   :  { %10991 = vst [vmem:[#allocation50_spill] sm:$0xff] %v6088_v17  ;;  %v6273_v54 = vld [vmem:[%s10469_s3 + $0x1b0] sm:$0xff]  ;;  %v6278_v55 = vld [vmem:[%s10469_s3 + $0x1b8] sm:$0xff]  ;;  %v6283_v56 = vld [vmem:[%s10469_s3 + $0x1c0] sm:$0xff] }
  0x1e   :  { %10992 = vst [vmem:[#allocation51_spill] sm:$0xff] %v6098_v19  ;;  %v6288_v57 = vld [vmem:[%s10469_s3 + $0x1c8] sm:$0xff]  ;;  %v6293_v58 = vld [vmem:[%s10469_s3 + $0x1d0] sm:$0xff]  ;;  %v6298_v59 = vld [vmem:[%s10469_s3 + $0x1d8] sm:$0xff] }
  0x1f   :  { %10993 = vst [vmem:[#allocation52_spill] sm:$0xff] %v6108_v21  ;;  %v6303_v60 = vld [vmem:[%s10469_s3 + $0x1e0] sm:$0xff]  ;;  %v6308_v61 = vld [vmem:[%s10469_s3 + $0x1e8] sm:$0xff]  ;;  %v6313_v62 = vld [vmem:[%s10469_s3 + $0x1f0] sm:$0xff] }
  0x20   :  { %10994 = vst [vmem:[#allocation53_spill] sm:$0xff] %v6118_v23  ;;  %v6318_v63 = vld [vmem:[%s10469_s3 + $0x1f8] sm:$0xff] }
  0x21   :  { %10995 = vst [vmem:[#allocation54_spill] sm:$0xff] %v6128_v25 }
  0x22   :  { %10996 = vst [vmem:[#allocation55_spill] sm:$0xff] %v6138_v27 }
  0x23   :  { %10997 = vst [vmem:[#allocation56_spill] sm:$0xff] %v6148_v29 }
  0x24   :  { %10998 = vst [vmem:[#allocation57_spill] sm:$0xff] %v6158_v31 }
  0x25   :  { %10999 = vst [vmem:[#allocation58_spill] sm:$0xff] %v6163_v32 }
  0x26   :  { %11000 = vst [vmem:[#allocation59_spill] sm:$0xff] %v6168_v33 }
  0x27   :  { %11001 = vst [vmem:[#allocation60_spill] sm:$0xff] %v6173_v34 }
  0x28   :  { %11002 = vst [vmem:[#allocation61_spill] sm:$0xff] %v6178_v35 }
  0x29   :  { %11003 = vst [vmem:[#allocation62_spill] sm:$0xff] %v6183_v36 }
  0x2a   :  { %11004 = vst [vmem:[#allocation63_spill] sm:$0xff] %v6188_v37 }
  0x2b   :  { %11005 = vst [vmem:[#allocation64_spill] sm:$0xff] %v6193_v38 }
  0x2c   :  { %11006 = vst [vmem:[#allocation65_spill] sm:$0xff] %v6198_v39 }
  0x2d   :  { %11007 = vst [vmem:[#allocation66_spill] sm:$0xff] %v6203_v40 }
  0x2e   :  { %11008 = vst [vmem:[#allocation67_spill] sm:$0xff] %v6208_v41 }
  0x2f   :  { %11009 = vst [vmem:[#allocation68_spill] sm:$0xff] %v6213_v42 }
  0x30   :  { %11010 = vst [vmem:[#allocation69_spill] sm:$0xff] %v6218_v43 }
  0x31   :  { %11011 = vst [vmem:[#allocation70_spill] sm:$0xff] %v6223_v44 }
  0x32   :  { %11012 = vst [vmem:[#allocation71_spill] sm:$0xff] %v6228_v45 }
  0x33   :  { %11013 = vst [vmem:[#allocation72_spill] sm:$0xff] %v6233_v46 }
  0x34   :  { %11014 = vst [vmem:[#allocation73_spill] sm:$0xff] %v6238_v47 }
  0x35   :  { %11015 = vst [vmem:[#allocation74_spill] sm:$0xff] %v6243_v48 }
  0x36   :  { %11016 = vst [vmem:[#allocation75_spill] sm:$0xff] %v6248_v49 }
  0x37   :  { %11017 = vst [vmem:[#allocation76_spill] sm:$0xff] %v6258_v51 }
  0x38   :  { %11018 = vst [vmem:[#allocation77_spill] sm:$0xff] %v6268_v53 }
  0x39   :  { %11019 = vst [vmem:[#allocation78_spill] sm:$0xff] %v6278_v55 }
  0x3a   :  { %11020 = vst [vmem:[#allocation79_spill] sm:$0xff] %v6288_v57 }
  0x3b   :  { %11021 = vst [vmem:[#allocation80_spill] sm:$0xff] %v6298_v59 }
  0x3c   :  { %11022 = vst [vmem:[#allocation81_spill] sm:$0xff] %v6308_v61 }
  0x3d   :  { %11023 = vst [vmem:[#allocation82_spill] sm:$0xff] %v6318_v63 }
  0x3e   :  { %197 = vsyncadd [#allocation3], 8192  ;;  %v6323_v33 = vld [vmem:[%s10469_s3 + $0x200] sm:$0xff]  ;;  %v6328_v1 = vld [vmem:[%s10469_s3 + $0x208] sm:$0xff] }
  0x3f   :  { %11024 = vst [vmem:[#allocation83_spill] sm:$0xff] %v6323_v33  ;;  %v6333_v35 = vld [vmem:[%s10469_s3 + $0x210] sm:$0xff]  ;;  %v6338_v3 = vld [vmem:[%s10469_s3 + $0x218] sm:$0xff]  ;;  %v6343_v37 = vld [vmem:[%s10469_s3 + $0x220] sm:$0xff] }
  0x40   :  { %11025 = vst [vmem:[#allocation84_spill] sm:$0xff] %v6328_v1  ;;  %v6348_v33 = vld [vmem:[%s10469_s3 + $0x228] sm:$0xff]  ;;  %v6353_v1 = vld [vmem:[%s10469_s3 + $0x230] sm:$0xff] }
  0x41   :  { %11026 = vst [vmem:[#allocation85_spill] sm:$0xff] %v6333_v35  ;;  %v6358_v35 = vld [vmem:[%s10469_s3 + $0x238] sm:$0xff] }
  0x42   :  { %11027 = vst [vmem:[#allocation86_spill] sm:$0xff] %v6338_v3  ;;  %v6363_v3 = vld [vmem:[%s10469_s3 + $0x240] sm:$0xff] }
  0x43   :  { %11028 = vst [vmem:[#allocation87_spill] sm:$0xff] %v6343_v37  ;;  %v6368_v37 = vld [vmem:[%s10469_s3 + $0x248] sm:$0xff] }
  0x44   :  { %11029 = vst [vmem:[#allocation88_spill] sm:$0xff] %v6348_v33  ;;  %v6373_v33 = vld [vmem:[%s10469_s3 + $0x250] sm:$0xff] }
  0x45   :  { %11030 = vst [vmem:[#allocation89_spill] sm:$0xff] %v6353_v1  ;;  %v6378_v1 = vld [vmem:[%s10469_s3 + $0x258] sm:$0xff] }
  0x46   :  { %11031 = vst [vmem:[#allocation90_spill] sm:$0xff] %v6358_v35  ;;  %v6383_v35 = vld [vmem:[%s10469_s3 + $0x260] sm:$0xff] }
  0x47   :  { %11032 = vst [vmem:[#allocation91_spill] sm:$0xff] %v6363_v3  ;;  %v6388_v3 = vld [vmem:[%s10469_s3 + $0x268] sm:$0xff] }
  0x48   :  { %11033 = vst [vmem:[#allocation92_spill] sm:$0xff] %v6368_v37  ;;  %v6393_v37 = vld [vmem:[%s10469_s3 + $0x270] sm:$0xff] }
  0x49   :  { %11034 = vst [vmem:[#allocation93_spill] sm:$0xff] %v6373_v33  ;;  %v6398_v33 = vld [vmem:[%s10469_s3 + $0x278] sm:$0xff] }
  0x4a   :  { %11035 = vst [vmem:[#allocation94_spill] sm:$0xff] %v6378_v1  ;;  %v6403_v1 = vld [vmem:[%s10469_s3 + $0x280] sm:$0xff] }
  0x4b   :  { %11036 = vst [vmem:[#allocation95_spill] sm:$0xff] %v6383_v35  ;;  %v6408_v35 = vld [vmem:[%s10469_s3 + $0x288] sm:$0xff] }
  0x4c   :  { %11037 = vst [vmem:[#allocation96_spill] sm:$0xff] %v6388_v3  ;;  %v6413_v3 = vld [vmem:[%s10469_s3 + $0x290] sm:$0xff] }
  0x4d   :  { %11038 = vst [vmem:[#allocation97_spill] sm:$0xff] %v6393_v37  ;;  %v6418_v37 = vld [vmem:[%s10469_s3 + $0x298] sm:$0xff] }
  0x4e   :  { %11039 = vst [vmem:[#allocation98_spill] sm:$0xff] %v6398_v33  ;;  %v6423_v33 = vld [vmem:[%s10469_s3 + $0x2a0] sm:$0xff] }
  0x4f   :  { %11040 = vst [vmem:[#allocation99_spill] sm:$0xff] %v6403_v1  ;;  %v6428_v1 = vld [vmem:[%s10469_s3 + $0x2a8] sm:$0xff] }
  0x50   :  { %11041 = vst [vmem:[#allocation100_spill] sm:$0xff] %v6408_v35  ;;  %v6433_v35 = vld [vmem:[%s10469_s3 + $0x2b0] sm:$0xff] }
  0x51   :  { %11042 = vst [vmem:[#allocation101_spill] sm:$0xff] %v6413_v3  ;;  %v6438_v3 = vld [vmem:[%s10469_s3 + $0x2b8] sm:$0xff] }
  0x52   :  { %11043 = vst [vmem:[#allocation102_spill] sm:$0xff] %v6418_v37  ;;  %v6443_v37 = vld [vmem:[%s10469_s3 + $0x2c0] sm:$0xff] }
  0x53   :  { %11044 = vst [vmem:[#allocation103_spill] sm:$0xff] %v6423_v33  ;;  %v6448_v33 = vld [vmem:[%s10469_s3 + $0x2c8] sm:$0xff] }
  0x54   :  { %11045 = vst [vmem:[#allocation104_spill] sm:$0xff] %v6428_v1  ;;  %v6453_v1 = vld [vmem:[%s10469_s3 + $0x2d0] sm:$0xff] }
  0x55   :  { %11046 = vst [vmem:[#allocation105_spill] sm:$0xff] %v6433_v35  ;;  %v6458_v35 = vld [vmem:[%s10469_s3 + $0x2d8] sm:$0xff] }
  0x56   :  { %11047 = vst [vmem:[#allocation106_spill] sm:$0xff] %v6438_v3  ;;  %v6463_v3 = vld [vmem:[%s10469_s3 + $0x2e0] sm:$0xff] }
  0x57   :  { %11048 = vst [vmem:[#allocation107_spill] sm:$0xff] %v6443_v37  ;;  %v6468_v37 = vld [vmem:[%s10469_s3 + $0x2e8] sm:$0xff] }
  0x58   :  { %11049 = vst [vmem:[#allocation108_spill] sm:$0xff] %v6448_v33  ;;  %v6473_v33 = vld [vmem:[%s10469_s3 + $0x2f0] sm:$0xff] }
  0x59   :  { %11050 = vst [vmem:[#allocation109_spill] sm:$0xff] %v6453_v1  ;;  %v6478_v1 = vld [vmem:[%s10469_s3 + $0x2f8] sm:$0xff] }
  0x5a   :  { %11051 = vst [vmem:[#allocation110_spill] sm:$0xff] %v6458_v35  ;;  %v6483_v35 = vld [vmem:[%s10469_s3 + $0x300] sm:$0xff] }
  0x5b   :  { %11052 = vst [vmem:[#allocation111_spill] sm:$0xff] %v6463_v3  ;;  %v6488_v3 = vld [vmem:[%s10469_s3 + $0x308] sm:$0xff] }
  0x5c   :  { %11053 = vst [vmem:[#allocation112_spill] sm:$0xff] %v6468_v37  ;;  %v6493_v37 = vld [vmem:[%s10469_s3 + $0x310] sm:$0xff] }
  0x5d   :  { %11054 = vst [vmem:[#allocation113_spill] sm:$0xff] %v6473_v33  ;;  %v6498_v33 = vld [vmem:[%s10469_s3 + $0x318] sm:$0xff] }
  0x5e   :  { %11055 = vst [vmem:[#allocation114_spill] sm:$0xff] %v6478_v1  ;;  %v6503_v1 = vld [vmem:[%s10469_s3 + $0x320] sm:$0xff] }
  0x5f   :  { %11056 = vst [vmem:[#allocation115_spill] sm:$0xff] %v6483_v35  ;;  %v6508_v35 = vld [vmem:[%s10469_s3 + $0x328] sm:$0xff] }
  0x60   :  { %11057 = vst [vmem:[#allocation116_spill] sm:$0xff] %v6488_v3  ;;  %v6513_v3 = vld [vmem:[%s10469_s3 + $0x330] sm:$0xff] }
  0x61   :  { %11058 = vst [vmem:[#allocation117_spill] sm:$0xff] %v6493_v37  ;;  %v6518_v37 = vld [vmem:[%s10469_s3 + $0x338] sm:$0xff] }
  0x62   :  { %11059 = vst [vmem:[#allocation118_spill] sm:$0xff] %v6498_v33  ;;  %v6523_v33 = vld [vmem:[%s10469_s3 + $0x340] sm:$0xff] }
  0x63   :  { %11060 = vst [vmem:[#allocation119_spill] sm:$0xff] %v6503_v1  ;;  %v6528_v1 = vld [vmem:[%s10469_s3 + $0x348] sm:$0xff] }
  0x64   :  { %11061 = vst [vmem:[#allocation120_spill] sm:$0xff] %v6508_v35  ;;  %v6533_v35 = vld [vmem:[%s10469_s3 + $0x350] sm:$0xff] }
  0x65   :  { %11062 = vst [vmem:[#allocation121_spill] sm:$0xff] %v6513_v3  ;;  %v6538_v3 = vld [vmem:[%s10469_s3 + $0x358] sm:$0xff] }
  0x66   :  { %11063 = vst [vmem:[#allocation122_spill] sm:$0xff] %v6518_v37  ;;  %v6543_v37 = vld [vmem:[%s10469_s3 + $0x360] sm:$0xff] }
  0x67   :  { %11064 = vst [vmem:[#allocation123_spill] sm:$0xff] %v6523_v33  ;;  %v6548_v33 = vld [vmem:[%s10469_s3 + $0x368] sm:$0xff] }
  0x68   :  { %11065 = vst [vmem:[#allocation124_spill] sm:$0xff] %v6528_v1  ;;  %v6553_v1 = vld [vmem:[%s10469_s3 + $0x370] sm:$0xff] }
  0x69   :  { %11066 = vst [vmem:[#allocation125_spill] sm:$0xff] %v6533_v35  ;;  %v6558_v35 = vld [vmem:[%s10469_s3 + $0x378] sm:$0xff] }
  0x6a   :  { %11067 = vst [vmem:[#allocation126_spill] sm:$0xff] %v6538_v3  ;;  %v6563_v3 = vld [vmem:[%s10469_s3 + $0x380] sm:$0xff] }
  0x6b   :  { %11068 = vst [vmem:[#allocation127_spill] sm:$0xff] %v6543_v37  ;;  %v6568_v37 = vld [vmem:[%s10469_s3 + $0x388] sm:$0xff] }
  0x6c   :  { %11069 = vst [vmem:[#allocation128_spill] sm:$0xff] %v6548_v33  ;;  %v6573_v33 = vld [vmem:[%s10469_s3 + $0x390] sm:$0xff] }
  0x6d   :  { %11070 = vst [vmem:[#allocation129_spill] sm:$0xff] %v6553_v1  ;;  %v6578_v1 = vld [vmem:[%s10469_s3 + $0x398] sm:$0xff] }
  0x6e   :  { %11071 = vst [vmem:[#allocation130_spill] sm:$0xff] %v6558_v35  ;;  %v6583_v35 = vld [vmem:[%s10469_s3 + $0x3a0] sm:$0xff] }
  0x6f   :  { %11072 = vst [vmem:[#allocation131_spill] sm:$0xff] %v6563_v3  ;;  %v6588_v3 = vld [vmem:[%s10469_s3 + $0x3a8] sm:$0xff] }
  0x70   :  { %11073 = vst [vmem:[#allocation132_spill] sm:$0xff] %v6568_v37  ;;  %v6593_v37 = vld [vmem:[%s10469_s3 + $0x3b0] sm:$0xff] }
  0x71   :  { %11074 = vst [vmem:[#allocation133_spill] sm:$0xff] %v6573_v33  ;;  %v6598_v33 = vld [vmem:[%s10469_s3 + $0x3b8] sm:$0xff] }
  0x72   :  { %11075 = vst [vmem:[#allocation134_spill] sm:$0xff] %v6578_v1  ;;  %v6603_v1 = vld [vmem:[%s10469_s3 + $0x3c0] sm:$0xff] }
  0x73   :  { %11076 = vst [vmem:[#allocation135_spill] sm:$0xff] %v6583_v35  ;;  %v6608_v35 = vld [vmem:[%s10469_s3 + $0x3c8] sm:$0xff] }
  0x74   :  { %11077 = vst [vmem:[#allocation136_spill] sm:$0xff] %v6588_v3  ;;  %v6613_v3 = vld [vmem:[%s10469_s3 + $0x3d0] sm:$0xff] }
  0x75   :  { %11078 = vst [vmem:[#allocation137_spill] sm:$0xff] %v6593_v37  ;;  %v6618_v37 = vld [vmem:[%s10469_s3 + $0x3d8] sm:$0xff] }
  0x76   :  { %11079 = vst [vmem:[#allocation138_spill] sm:$0xff] %v6598_v33  ;;  %v6623_v33 = vld [vmem:[%s10469_s3 + $0x3e0] sm:$0xff] }
  0x77   :  { %11080 = vst [vmem:[#allocation139_spill] sm:$0xff] %v6603_v1  ;;  %v6628_v1 = vld [vmem:[%s10469_s3 + $0x3e8] sm:$0xff] }
  0x78   :  { %11081 = vst [vmem:[#allocation140_spill] sm:$0xff] %v6608_v35  ;;  %v6633_v35 = vld [vmem:[%s10469_s3 + $0x3f0] sm:$0xff] }
  0x79   :  { %11082 = vst [vmem:[#allocation141_spill] sm:$0xff] %v6613_v3  ;;  %v6638_v3 = vld [vmem:[%s10469_s3 + $0x3f8] sm:$0xff] }
  0x7a   :  { %11083 = vst [vmem:[#allocation142_spill] sm:$0xff] %v6618_v37 }
  0x7b   :  { %11084 = vst [vmem:[#allocation143_spill] sm:$0xff] %v6623_v33 }
  0x7c   :  { %11085 = vst [vmem:[#allocation144_spill] sm:$0xff] %v6628_v1 }
  0x7d   :  { %11086 = vst [vmem:[#allocation145_spill] sm:$0xff] %v6633_v35 }
  0x7e   :  { %11087 = vst [vmem:[#allocation146_spill] sm:$0xff] %v6638_v3 }
  0x7f   :  { %344 = vsyncadd [#allocation3 + $0x1], 8192  ;;  %v6643_v37 = vld [vmem:[%s10469_s3 + $0x400] sm:$0xff]  ;;  %v6648_v1 = vld [vmem:[%s10469_s3 + $0x408] sm:$0xff] }
  0x80   :  { %11088 = vst [vmem:[#allocation147_spill] sm:$0xff] %v6643_v37  ;;  %v6653_v33 = vld [vmem:[%s10469_s3 + $0x410] sm:$0xff]  ;;  %v6658_v3 = vld [vmem:[%s10469_s3 + $0x418] sm:$0xff]  ;;  %v6663_v35 = vld [vmem:[%s10469_s3 + $0x420] sm:$0xff] }
  0x81   :  { %11089 = vst [vmem:[#allocation148_spill] sm:$0xff] %v6648_v1  ;;  %v6668_v37 = vld [vmem:[%s10469_s3 + $0x428] sm:$0xff]  ;;  %v6673_v1 = vld [vmem:[%s10469_s3 + $0x430] sm:$0xff] }
  0x82   :  { %11090 = vst [vmem:[#allocation149_spill] sm:$0xff] %v6653_v33  ;;  %v6678_v33 = vld [vmem:[%s10469_s3 + $0x438] sm:$0xff] }
  0x83   :  { %11091 = vst [vmem:[#allocation150_spill] sm:$0xff] %v6658_v3  ;;  %v6683_v3 = vld [vmem:[%s10469_s3 + $0x440] sm:$0xff] }
  0x84   :  { %11092 = vst [vmem:[#allocation151_spill] sm:$0xff] %v6663_v35  ;;  %v6688_v35 = vld [vmem:[%s10469_s3 + $0x448] sm:$0xff] }
  0x85   :  { %11093 = vst [vmem:[#allocation152_spill] sm:$0xff] %v6668_v37  ;;  %v6693_v37 = vld [vmem:[%s10469_s3 + $0x450] sm:$0xff] }
  0x86   :  { %11094 = vst [vmem:[#allocation153_spill] sm:$0xff] %v6673_v1  ;;  %v6698_v1 = vld [vmem:[%s10469_s3 + $0x458] sm:$0xff] }
  0x87   :  { %11095 = vst [vmem:[#allocation154_spill] sm:$0xff] %v6678_v33  ;;  %v6703_v33 = vld [vmem:[%s10469_s3 + $0x460] sm:$0xff] }
  0x88   :  { %11096 = vst [vmem:[#allocation155_spill] sm:$0xff] %v6683_v3  ;;  %v6708_v3 = vld [vmem:[%s10469_s3 + $0x468] sm:$0xff] }
  0x89   :  { %11097 = vst [vmem:[#allocation156_spill] sm:$0xff] %v6688_v35  ;;  %v6713_v35 = vld [vmem:[%s10469_s3 + $0x470] sm:$0xff] }
  0x8a   :  { %11098 = vst [vmem:[#allocation157_spill] sm:$0xff] %v6693_v37  ;;  %v6718_v37 = vld [vmem:[%s10469_s3 + $0x478] sm:$0xff] }
  0x8b   :  { %11099 = vst [vmem:[#allocation158_spill] sm:$0xff] %v6698_v1  ;;  %v6723_v1 = vld [vmem:[%s10469_s3 + $0x480] sm:$0xff] }
  0x8c   :  { %11100 = vst [vmem:[#allocation159_spill] sm:$0xff] %v6703_v33  ;;  %v6728_v33 = vld [vmem:[%s10469_s3 + $0x488] sm:$0xff] }
  0x8d   :  { %11101 = vst [vmem:[#allocation160_spill] sm:$0xff] %v6708_v3  ;;  %v6733_v3 = vld [vmem:[%s10469_s3 + $0x490] sm:$0xff] }
  0x8e   :  { %11102 = vst [vmem:[#allocation161_spill] sm:$0xff] %v6713_v35  ;;  %v6738_v35 = vld [vmem:[%s10469_s3 + $0x498] sm:$0xff] }
  0x8f   :  { %11103 = vst [vmem:[#allocation162_spill] sm:$0xff] %v6718_v37  ;;  %v6743_v37 = vld [vmem:[%s10469_s3 + $0x4a0] sm:$0xff] }
  0x90   :  { %11104 = vst [vmem:[#allocation163_spill] sm:$0xff] %v6723_v1  ;;  %v6748_v1 = vld [vmem:[%s10469_s3 + $0x4a8] sm:$0xff] }
  0x91   :  { %11105 = vst [vmem:[#allocation164_spill] sm:$0xff] %v6728_v33  ;;  %v6753_v33 = vld [vmem:[%s10469_s3 + $0x4b0] sm:$0xff] }
  0x92   :  { %11106 = vst [vmem:[#allocation165_spill] sm:$0xff] %v6733_v3  ;;  %v6758_v3 = vld [vmem:[%s10469_s3 + $0x4b8] sm:$0xff] }
  0x93   :  { %11107 = vst [vmem:[#allocation166_spill] sm:$0xff] %v6738_v35  ;;  %v6763_v35 = vld [vmem:[%s10469_s3 + $0x4c0] sm:$0xff] }
  0x94   :  { %11108 = vst [vmem:[#allocation167_spill] sm:$0xff] %v6743_v37  ;;  %v6768_v37 = vld [vmem:[%s10469_s3 + $0x4c8] sm:$0xff] }
  0x95   :  { %11109 = vst [vmem:[#allocation168_spill] sm:$0xff] %v6748_v1  ;;  %v6773_v1 = vld [vmem:[%s10469_s3 + $0x4d0] sm:$0xff] }
  0x96   :  { %11110 = vst [vmem:[#allocation169_spill] sm:$0xff] %v6753_v33  ;;  %v6778_v33 = vld [vmem:[%s10469_s3 + $0x4d8] sm:$0xff] }
  0x97   :  { %11111 = vst [vmem:[#allocation170_spill] sm:$0xff] %v6758_v3  ;;  %v6783_v3 = vld [vmem:[%s10469_s3 + $0x4e0] sm:$0xff] }
  0x98   :  { %11112 = vst [vmem:[#allocation171_spill] sm:$0xff] %v6763_v35  ;;  %v6788_v35 = vld [vmem:[%s10469_s3 + $0x4e8] sm:$0xff] }
  0x99   :  { %11113 = vst [vmem:[#allocation172_spill] sm:$0xff] %v6768_v37  ;;  %v6793_v37 = vld [vmem:[%s10469_s3 + $0x4f0] sm:$0xff] }
  0x9a   :  { %11114 = vst [vmem:[#allocation173_spill] sm:$0xff] %v6773_v1  ;;  %v6798_v1 = vld [vmem:[%s10469_s3 + $0x4f8] sm:$0xff] }
  0x9b   :  { %11115 = vst [vmem:[#allocation174_spill] sm:$0xff] %v6778_v33  ;;  %v6803_v33 = vld [vmem:[%s10469_s3 + $0x500] sm:$0xff] }
  0x9c   :  { %11116 = vst [vmem:[#allocation175_spill] sm:$0xff] %v6783_v3  ;;  %v6808_v3 = vld [vmem:[%s10469_s3 + $0x508] sm:$0xff] }
  0x9d   :  { %11117 = vst [vmem:[#allocation176_spill] sm:$0xff] %v6788_v35  ;;  %v6813_v35 = vld [vmem:[%s10469_s3 + $0x510] sm:$0xff] }
  0x9e   :  { %11118 = vst [vmem:[#allocation177_spill] sm:$0xff] %v6793_v37  ;;  %v6818_v37 = vld [vmem:[%s10469_s3 + $0x518] sm:$0xff] }
  0x9f   :  { %11119 = vst [vmem:[#allocation178_spill] sm:$0xff] %v6798_v1  ;;  %v6823_v1 = vld [vmem:[%s10469_s3 + $0x520] sm:$0xff] }
  0xa0   :  { %11120 = vst [vmem:[#allocation179_spill] sm:$0xff] %v6803_v33  ;;  %v6828_v33 = vld [vmem:[%s10469_s3 + $0x528] sm:$0xff] }
  0xa1   :  { %11121 = vst [vmem:[#allocation180_spill] sm:$0xff] %v6808_v3  ;;  %v6833_v3 = vld [vmem:[%s10469_s3 + $0x530] sm:$0xff] }
  0xa2   :  { %11122 = vst [vmem:[#allocation181_spill] sm:$0xff] %v6813_v35  ;;  %v6838_v35 = vld [vmem:[%s10469_s3 + $0x538] sm:$0xff] }
  0xa3   :  { %11123 = vst [vmem:[#allocation182_spill] sm:$0xff] %v6818_v37  ;;  %v6843_v37 = vld [vmem:[%s10469_s3 + $0x540] sm:$0xff] }
  0xa4   :  { %11124 = vst [vmem:[#allocation183_spill] sm:$0xff] %v6823_v1  ;;  %v6848_v1 = vld [vmem:[%s10469_s3 + $0x548] sm:$0xff] }
  0xa5   :  { %11125 = vst [vmem:[#allocation184_spill] sm:$0xff] %v6828_v33  ;;  %v6853_v33 = vld [vmem:[%s10469_s3 + $0x550] sm:$0xff] }
  0xa6   :  { %11126 = vst [vmem:[#allocation185_spill] sm:$0xff] %v6833_v3  ;;  %v6858_v3 = vld [vmem:[%s10469_s3 + $0x558] sm:$0xff] }
  0xa7   :  { %11127 = vst [vmem:[#allocation186_spill] sm:$0xff] %v6838_v35  ;;  %v6863_v35 = vld [vmem:[%s10469_s3 + $0x560] sm:$0xff] }
  0xa8   :  { %11128 = vst [vmem:[#allocation187_spill] sm:$0xff] %v6843_v37  ;;  %v6868_v37 = vld [vmem:[%s10469_s3 + $0x568] sm:$0xff] }
  0xa9   :  { %11129 = vst [vmem:[#allocation188_spill] sm:$0xff] %v6848_v1  ;;  %v6873_v1 = vld [vmem:[%s10469_s3 + $0x570] sm:$0xff] }
  0xaa   :  { %11130 = vst [vmem:[#allocation189_spill] sm:$0xff] %v6853_v33  ;;  %v6878_v33 = vld [vmem:[%s10469_s3 + $0x578] sm:$0xff] }
  0xab   :  { %11131 = vst [vmem:[#allocation190_spill] sm:$0xff] %v6858_v3  ;;  %v6883_v3 = vld [vmem:[%s10469_s3 + $0x580] sm:$0xff] }
  0xac   :  { %11132 = vst [vmem:[#allocation191_spill] sm:$0xff] %v6863_v35  ;;  %v6888_v35 = vld [vmem:[%s10469_s3 + $0x588] sm:$0xff] }
  0xad   :  { %11133 = vst [vmem:[#allocation192_spill] sm:$0xff] %v6868_v37  ;;  %v6893_v37 = vld [vmem:[%s10469_s3 + $0x590] sm:$0xff] }
  0xae   :  { %11134 = vst [vmem:[#allocation193_spill] sm:$0xff] %v6873_v1  ;;  %v6898_v1 = vld [vmem:[%s10469_s3 + $0x598] sm:$0xff] }
  0xaf   :  { %11135 = vst [vmem:[#allocation194_spill] sm:$0xff] %v6878_v33  ;;  %v6903_v33 = vld [vmem:[%s10469_s3 + $0x5a0] sm:$0xff] }
  0xb0   :  { %11136 = vst [vmem:[#allocation195_spill] sm:$0xff] %v6883_v3  ;;  %v6908_v3 = vld [vmem:[%s10469_s3 + $0x5a8] sm:$0xff] }
  0xb1   :  { %11137 = vst [vmem:[#allocation196_spill] sm:$0xff] %v6888_v35  ;;  %v6913_v35 = vld [vmem:[%s10469_s3 + $0x5b0] sm:$0xff] }
  0xb2   :  { %11138 = vst [vmem:[#allocation197_spill] sm:$0xff] %v6893_v37  ;;  %v6918_v37 = vld [vmem:[%s10469_s3 + $0x5b8] sm:$0xff] }
  0xb3   :  { %11139 = vst [vmem:[#allocation198_spill] sm:$0xff] %v6898_v1  ;;  %v6923_v1 = vld [vmem:[%s10469_s3 + $0x5c0] sm:$0xff] }
  0xb4   :  { %11140 = vst [vmem:[#allocation199_spill] sm:$0xff] %v6903_v33  ;;  %v6928_v33 = vld [vmem:[%s10469_s3 + $0x5c8] sm:$0xff] }
  0xb5   :  { %11141 = vst [vmem:[#allocation200_spill] sm:$0xff] %v6908_v3  ;;  %v6933_v3 = vld [vmem:[%s10469_s3 + $0x5d0] sm:$0xff] }
  0xb6   :  { %11142 = vst [vmem:[#allocation201_spill] sm:$0xff] %v6913_v35  ;;  %v6938_v35 = vld [vmem:[%s10469_s3 + $0x5d8] sm:$0xff] }
  0xb7   :  { %11143 = vst [vmem:[#allocation202_spill] sm:$0xff] %v6918_v37  ;;  %v6943_v37 = vld [vmem:[%s10469_s3 + $0x5e0] sm:$0xff] }
  0xb8   :  { %11144 = vst [vmem:[#allocation203_spill] sm:$0xff] %v6923_v1  ;;  %v6948_v1 = vld [vmem:[%s10469_s3 + $0x5e8] sm:$0xff] }
  0xb9   :  { %11145 = vst [vmem:[#allocation204_spill] sm:$0xff] %v6928_v33  ;;  %v6953_v33 = vld [vmem:[%s10469_s3 + $0x5f0] sm:$0xff] }
  0xba   :  { %11146 = vst [vmem:[#allocation205_spill] sm:$0xff] %v6933_v3  ;;  %v6958_v3 = vld [vmem:[%s10469_s3 + $0x5f8] sm:$0xff] }
  0xbb   :  { %11147 = vst [vmem:[#allocation206_spill] sm:$0xff] %v6938_v35 }
  0xbc   :  { %11148 = vst [vmem:[#allocation207_spill] sm:$0xff] %v6943_v37 }
  0xbd   :  { %11149 = vst [vmem:[#allocation208_spill] sm:$0xff] %v6948_v1 }
  0xbe   :  { %11150 = vst [vmem:[#allocation209_spill] sm:$0xff] %v6953_v33 }
  0xbf   :  { %11151 = vst [vmem:[#allocation210_spill] sm:$0xff] %v6958_v3 }
  0xc0   :  { %491 = vsyncadd [#allocation3 + $0x2], 8192  ;;  %v6963_v35 = vld [vmem:[%s10469_s3 + $0x600] sm:$0xff]  ;;  %v6968_v1 = vld [vmem:[%s10469_s3 + $0x608] sm:$0xff] }
  0xc1   :  { %11152 = vst [vmem:[#allocation211_spill] sm:$0xff] %v6963_v35  ;;  %v6973_v37 = vld [vmem:[%s10469_s3 + $0x610] sm:$0xff]  ;;  %v6978_v3 = vld [vmem:[%s10469_s3 + $0x618] sm:$0xff]  ;;  %v6983_v33 = vld [vmem:[%s10469_s3 + $0x620] sm:$0xff] }
  0xc2   :  { %11153 = vst [vmem:[#allocation212_spill] sm:$0xff] %v6968_v1  ;;  %v6988_v35 = vld [vmem:[%s10469_s3 + $0x628] sm:$0xff]  ;;  %v6993_v1 = vld [vmem:[%s10469_s3 + $0x630] sm:$0xff] }
  0xc3   :  { %11154 = vst [vmem:[#allocation213_spill] sm:$0xff] %v6973_v37  ;;  %v6998_v37 = vld [vmem:[%s10469_s3 + $0x638] sm:$0xff] }
  0xc4   :  { %11155 = vst [vmem:[#allocation214_spill] sm:$0xff] %v6978_v3  ;;  %v7003_v3 = vld [vmem:[%s10469_s3 + $0x640] sm:$0xff] }
  0xc5   :  { %11156 = vst [vmem:[#allocation215_spill] sm:$0xff] %v6983_v33  ;;  %v7008_v33 = vld [vmem:[%s10469_s3 + $0x648] sm:$0xff] }
  0xc6   :  { %11157 = vst [vmem:[#allocation216_spill] sm:$0xff] %v6988_v35  ;;  %v7013_v35 = vld [vmem:[%s10469_s3 + $0x650] sm:$0xff] }
  0xc7   :  { %11158 = vst [vmem:[#allocation217_spill] sm:$0xff] %v6993_v1  ;;  %v7018_v1 = vld [vmem:[%s10469_s3 + $0x658] sm:$0xff] }
  0xc8   :  { %11159 = vst [vmem:[#allocation218_spill] sm:$0xff] %v6998_v37  ;;  %v7023_v37 = vld [vmem:[%s10469_s3 + $0x660] sm:$0xff] }
  0xc9   :  { %11160 = vst [vmem:[#allocation219_spill] sm:$0xff] %v7003_v3  ;;  %v7028_v3 = vld [vmem:[%s10469_s3 + $0x668] sm:$0xff] }
  0xca   :  { %11161 = vst [vmem:[#allocation220_spill] sm:$0xff] %v7008_v33  ;;  %v7033_v33 = vld [vmem:[%s10469_s3 + $0x670] sm:$0xff] }
  0xcb   :  { %11162 = vst [vmem:[#allocation221_spill] sm:$0xff] %v7013_v35  ;;  %v7038_v35 = vld [vmem:[%s10469_s3 + $0x678] sm:$0xff] }
  0xcc   :  { %11163 = vst [vmem:[#allocation222_spill] sm:$0xff] %v7018_v1  ;;  %v7043_v1 = vld [vmem:[%s10469_s3 + $0x680] sm:$0xff] }
  0xcd   :  { %11164 = vst [vmem:[#allocation223_spill] sm:$0xff] %v7023_v37  ;;  %v7048_v37 = vld [vmem:[%s10469_s3 + $0x688] sm:$0xff] }
  0xce   :  { %11165 = vst [vmem:[#allocation224_spill] sm:$0xff] %v7028_v3  ;;  %v7053_v3 = vld [vmem:[%s10469_s3 + $0x690] sm:$0xff] }
  0xcf   :  { %11166 = vst [vmem:[#allocation225_spill] sm:$0xff] %v7033_v33  ;;  %v7058_v33 = vld [vmem:[%s10469_s3 + $0x698] sm:$0xff] }
  0xd0   :  { %11167 = vst [vmem:[#allocation226_spill] sm:$0xff] %v7038_v35  ;;  %v7063_v35 = vld [vmem:[%s10469_s3 + $0x6a0] sm:$0xff] }
  0xd1   :  { %11168 = vst [vmem:[#allocation227_spill] sm:$0xff] %v7043_v1  ;;  %v7068_v1 = vld [vmem:[%s10469_s3 + $0x6a8] sm:$0xff] }
  0xd2   :  { %11169 = vst [vmem:[#allocation228_spill] sm:$0xff] %v7048_v37  ;;  %v7073_v37 = vld [vmem:[%s10469_s3 + $0x6b0] sm:$0xff] }
  0xd3   :  { %11170 = vst [vmem:[#allocation229_spill] sm:$0xff] %v7053_v3  ;;  %v7078_v3 = vld [vmem:[%s10469_s3 + $0x6b8] sm:$0xff] }
  0xd4   :  { %11171 = vst [vmem:[#allocation230_spill] sm:$0xff] %v7058_v33  ;;  %v7083_v33 = vld [vmem:[%s10469_s3 + $0x6c0] sm:$0xff] }
  0xd5   :  { %11172 = vst [vmem:[#allocation231_spill] sm:$0xff] %v7063_v35  ;;  %v7088_v35 = vld [vmem:[%s10469_s3 + $0x6c8] sm:$0xff] }
  0xd6   :  { %11173 = vst [vmem:[#allocation232_spill] sm:$0xff] %v7068_v1  ;;  %v7093_v1 = vld [vmem:[%s10469_s3 + $0x6d0] sm:$0xff] }
  0xd7   :  { %11174 = vst [vmem:[#allocation233_spill] sm:$0xff] %v7073_v37  ;;  %v7098_v37 = vld [vmem:[%s10469_s3 + $0x6d8] sm:$0xff] }
  0xd8   :  { %11175 = vst [vmem:[#allocation234_spill] sm:$0xff] %v7078_v3  ;;  %v7103_v3 = vld [vmem:[%s10469_s3 + $0x6e0] sm:$0xff] }
  0xd9   :  { %11176 = vst [vmem:[#allocation235_spill] sm:$0xff] %v7083_v33  ;;  %v7108_v33 = vld [vmem:[%s10469_s3 + $0x6e8] sm:$0xff] }
  0xda   :  { %11177 = vst [vmem:[#allocation236_spill] sm:$0xff] %v7088_v35  ;;  %v7113_v35 = vld [vmem:[%s10469_s3 + $0x6f0] sm:$0xff] }
  0xdb   :  { %11178 = vst [vmem:[#allocation237_spill] sm:$0xff] %v7093_v1  ;;  %v7118_v1 = vld [vmem:[%s10469_s3 + $0x6f8] sm:$0xff] }
  0xdc   :  { %11179 = vst [vmem:[#allocation238_spill] sm:$0xff] %v7098_v37  ;;  %v7123_v37 = vld [vmem:[%s10469_s3 + $0x700] sm:$0xff] }
  0xdd   :  { %11180 = vst [vmem:[#allocation239_spill] sm:$0xff] %v7103_v3  ;;  %v7128_v3 = vld [vmem:[%s10469_s3 + $0x708] sm:$0xff] }
  0xde   :  { %11181 = vst [vmem:[#allocation240_spill] sm:$0xff] %v7108_v33  ;;  %v7133_v33 = vld [vmem:[%s10469_s3 + $0x710] sm:$0xff] }
  0xdf   :  { %11182 = vst [vmem:[#allocation241_spill] sm:$0xff] %v7113_v35  ;;  %v7138_v35 = vld [vmem:[%s10469_s3 + $0x718] sm:$0xff] }
  0xe0   :  { %11183 = vst [vmem:[#allocation242_spill] sm:$0xff] %v7118_v1  ;;  %v7143_v1 = vld [vmem:[%s10469_s3 + $0x720] sm:$0xff] }
  0xe1   :  { %11184 = vst [vmem:[#allocation243_spill] sm:$0xff] %v7123_v37  ;;  %v7148_v37 = vld [vmem:[%s10469_s3 + $0x728] sm:$0xff] }
  0xe2   :  { %11185 = vst [vmem:[#allocation244_spill] sm:$0xff] %v7128_v3  ;;  %v7153_v3 = vld [vmem:[%s10469_s3 + $0x730] sm:$0xff] }
  0xe3   :  { %11186 = vst [vmem:[#allocation245_spill] sm:$0xff] %v7133_v33  ;;  %v7158_v33 = vld [vmem:[%s10469_s3 + $0x738] sm:$0xff] }
  0xe4   :  { %11187 = vst [vmem:[#allocation246_spill] sm:$0xff] %v7138_v35  ;;  %v7163_v35 = vld [vmem:[%s10469_s3 + $0x740] sm:$0xff] }
  0xe5   :  { %11188 = vst [vmem:[#allocation247_spill] sm:$0xff] %v7143_v1  ;;  %v7168_v1 = vld [vmem:[%s10469_s3 + $0x748] sm:$0xff] }
  0xe6   :  { %11189 = vst [vmem:[#allocation248_spill] sm:$0xff] %v7148_v37  ;;  %v7173_v37 = vld [vmem:[%s10469_s3 + $0x750] sm:$0xff] }
  0xe7   :  { %11190 = vst [vmem:[#allocation249_spill] sm:$0xff] %v7153_v3  ;;  %v7178_v3 = vld [vmem:[%s10469_s3 + $0x758] sm:$0xff] }
  0xe8   :  { %11191 = vst [vmem:[#allocation250_spill] sm:$0xff] %v7158_v33  ;;  %v7183_v33 = vld [vmem:[%s10469_s3 + $0x760] sm:$0xff] }
  0xe9   :  { %11192 = vst [vmem:[#allocation251_spill] sm:$0xff] %v7163_v35  ;;  %v7188_v35 = vld [vmem:[%s10469_s3 + $0x768] sm:$0xff] }
  0xea   :  { %11193 = vst [vmem:[#allocation252_spill] sm:$0xff] %v7168_v1  ;;  %v7193_v1 = vld [vmem:[%s10469_s3 + $0x770] sm:$0xff] }
  0xeb   :  { %11194 = vst [vmem:[#allocation253_spill] sm:$0xff] %v7173_v37  ;;  %v7198_v37 = vld [vmem:[%s10469_s3 + $0x778] sm:$0xff] }
  0xec   :  { %11195 = vst [vmem:[#allocation254_spill] sm:$0xff] %v7178_v3  ;;  %v7203_v3 = vld [vmem:[%s10469_s3 + $0x780] sm:$0xff] }
  0xed   :  { %11196 = vst [vmem:[#allocation255_spill] sm:$0xff] %v7183_v33  ;;  %v7208_v33 = vld [vmem:[%s10469_s3 + $0x788] sm:$0xff] }
  0xee   :  { %11197 = vst [vmem:[#allocation256_spill] sm:$0xff] %v7188_v35  ;;  %v7213_v35 = vld [vmem:[%s10469_s3 + $0x790] sm:$0xff] }
  0xef   :  { %11198 = vst [vmem:[#allocation257_spill] sm:$0xff] %v7193_v1  ;;  %v7218_v1 = vld [vmem:[%s10469_s3 + $0x798] sm:$0xff] }
  0xf0   :  { %11199 = vst [vmem:[#allocation258_spill] sm:$0xff] %v7198_v37  ;;  %v7223_v37 = vld [vmem:[%s10469_s3 + $0x7a0] sm:$0xff] }
  0xf1   :  { %11200 = vst [vmem:[#allocation259_spill] sm:$0xff] %v7203_v3  ;;  %v7228_v3 = vld [vmem:[%s10469_s3 + $0x7a8] sm:$0xff] }
  0xf2   :  { %11201 = vst [vmem:[#allocation260_spill] sm:$0xff] %v7208_v33  ;;  %v7233_v33 = vld [vmem:[%s10469_s3 + $0x7b0] sm:$0xff] }
  0xf3   :  { %11202 = vst [vmem:[#allocation261_spill] sm:$0xff] %v7213_v35  ;;  %v7238_v35 = vld [vmem:[%s10469_s3 + $0x7b8] sm:$0xff] }
  0xf4   :  { %11203 = vst [vmem:[#allocation262_spill] sm:$0xff] %v7218_v1  ;;  %v7243_v1 = vld [vmem:[%s10469_s3 + $0x7c0] sm:$0xff] }
  0xf5   :  { %11204 = vst [vmem:[#allocation263_spill] sm:$0xff] %v7223_v37  ;;  %v7248_v37 = vld [vmem:[%s10469_s3 + $0x7c8] sm:$0xff] }
  0xf6   :  { %11205 = vst [vmem:[#allocation264_spill] sm:$0xff] %v7228_v3  ;;  %v7253_v3 = vld [vmem:[%s10469_s3 + $0x7d0] sm:$0xff] }
  0xf7   :  { %11206 = vst [vmem:[#allocation265_spill] sm:$0xff] %v7233_v33  ;;  %v7258_v33 = vld [vmem:[%s10469_s3 + $0x7d8] sm:$0xff] }
  0xf8   :  { %11207 = vst [vmem:[#allocation266_spill] sm:$0xff] %v7238_v35  ;;  %v7263_v35 = vld [vmem:[%s10469_s3 + $0x7e0] sm:$0xff] }
  0xf9   :  { %11208 = vst [vmem:[#allocation267_spill] sm:$0xff] %v7243_v1  ;;  %v7268_v1 = vld [vmem:[%s10469_s3 + $0x7e8] sm:$0xff] }
  0xfa   :  { %11209 = vst [vmem:[#allocation268_spill] sm:$0xff] %v7248_v37  ;;  %v7273_v37 = vld [vmem:[%s10469_s3 + $0x7f0] sm:$0xff] }
  0xfb   :  { %11210 = vst [vmem:[#allocation269_spill] sm:$0xff] %v7253_v3  ;;  %v7278_v3 = vld [vmem:[%s10469_s3 + $0x7f8] sm:$0xff] }
  0xfc   :  { %11211 = vst [vmem:[#allocation270_spill] sm:$0xff] %v7258_v33 }
  0xfd   :  { %11212 = vst [vmem:[#allocation271_spill] sm:$0xff] %v7263_v35 }
  0xfe   :  { %11213 = vst [vmem:[#allocation272_spill] sm:$0xff] %v7268_v1 }
  0xff   :  { %11214 = vst [vmem:[#allocation273_spill] sm:$0xff] %v7273_v37 }
 0x100   :  { %11215 = vst [vmem:[#allocation274_spill] sm:$0xff] %v7278_v3 }
 0x101   :  { %638 = vsyncadd [#allocation3 + $0x3], 8192  ;;  %v7283_v33 = vld [vmem:[%s10469_s3 + $0x800] sm:$0xff]  ;;  %v7288_v1 = vld [vmem:[%s10469_s3 + $0x808] sm:$0xff] }
 0x102   :  { %11216 = vst [vmem:[#allocation275_spill] sm:$0xff] %v7283_v33  ;;  %v7293_v35 = vld [vmem:[%s10469_s3 + $0x810] sm:$0xff]  ;;  %v7298_v3 = vld [vmem:[%s10469_s3 + $0x818] sm:$0xff]  ;;  %v7303_v37 = vld [vmem:[%s10469_s3 + $0x820] sm:$0xff] }
 0x103   :  { %11217 = vst [vmem:[#allocation276_spill] sm:$0xff] %v7288_v1  ;;  %v7308_v33 = vld [vmem:[%s10469_s3 + $0x828] sm:$0xff]  ;;  %v7313_v1 = vld [vmem:[%s10469_s3 + $0x830] sm:$0xff] }
 0x104   :  { %11218 = vst [vmem:[#allocation277_spill] sm:$0xff] %v7293_v35  ;;  %v7318_v35 = vld [vmem:[%s10469_s3 + $0x838] sm:$0xff] }
 0x105   :  { %11219 = vst [vmem:[#allocation278_spill] sm:$0xff] %v7298_v3  ;;  %v7323_v3 = vld [vmem:[%s10469_s3 + $0x840] sm:$0xff] }
 0x106   :  { %11220 = vst [vmem:[#allocation279_spill] sm:$0xff] %v7303_v37  ;;  %v7328_v37 = vld [vmem:[%s10469_s3 + $0x848] sm:$0xff] }
 0x107   :  { %11221 = vst [vmem:[#allocation280_spill] sm:$0xff] %v7308_v33  ;;  %v7333_v33 = vld [vmem:[%s10469_s3 + $0x850] sm:$0xff] }
 0x108   :  { %11222 = vst [vmem:[#allocation281_spill] sm:$0xff] %v7313_v1  ;;  %v7338_v1 = vld [vmem:[%s10469_s3 + $0x858] sm:$0xff] }
 0x109   :  { %11223 = vst [vmem:[#allocation282_spill] sm:$0xff] %v7318_v35  ;;  %v7343_v35 = vld [vmem:[%s10469_s3 + $0x860] sm:$0xff] }
 0x10a   :  { %11224 = vst [vmem:[#allocation283_spill] sm:$0xff] %v7323_v3  ;;  %v7348_v3 = vld [vmem:[%s10469_s3 + $0x868] sm:$0xff] }
 0x10b   :  { %11225 = vst [vmem:[#allocation284_spill] sm:$0xff] %v7328_v37  ;;  %v7353_v37 = vld [vmem:[%s10469_s3 + $0x870] sm:$0xff] }
 0x10c   :  { %11226 = vst [vmem:[#allocation285_spill] sm:$0xff] %v7333_v33  ;;  %v7358_v33 = vld [vmem:[%s10469_s3 + $0x878] sm:$0xff] }
 0x10d   :  { %11227 = vst [vmem:[#allocation286_spill] sm:$0xff] %v7338_v1  ;;  %v7363_v1 = vld [vmem:[%s10469_s3 + $0x880] sm:$0xff] }
 0x10e   :  { %11228 = vst [vmem:[#allocation287_spill] sm:$0xff] %v7343_v35  ;;  %v7368_v35 = vld [vmem:[%s10469_s3 + $0x888] sm:$0xff] }
 0x10f   :  { %11229 = vst [vmem:[#allocation288_spill] sm:$0xff] %v7348_v3  ;;  %v7373_v3 = vld [vmem:[%s10469_s3 + $0x890] sm:$0xff] }
 0x110   :  { %11230 = vst [vmem:[#allocation289_spill] sm:$0xff] %v7353_v37  ;;  %v7378_v37 = vld [vmem:[%s10469_s3 + $0x898] sm:$0xff] }
 0x111   :  { %11231 = vst [vmem:[#allocation290_spill] sm:$0xff] %v7358_v33  ;;  %v7383_v33 = vld [vmem:[%s10469_s3 + $0x8a0] sm:$0xff] }
 0x112   :  { %11232 = vst [vmem:[#allocation291_spill] sm:$0xff] %v7363_v1  ;;  %v7388_v1 = vld [vmem:[%s10469_s3 + $0x8a8] sm:$0xff] }
 0x113   :  { %11233 = vst [vmem:[#allocation292_spill] sm:$0xff] %v7368_v35  ;;  %v7393_v35 = vld [vmem:[%s10469_s3 + $0x8b0] sm:$0xff] }
 0x114   :  { %11234 = vst [vmem:[#allocation293_spill] sm:$0xff] %v7373_v3  ;;  %v7398_v3 = vld [vmem:[%s10469_s3 + $0x8b8] sm:$0xff] }
 0x115   :  { %11235 = vst [vmem:[#allocation294_spill] sm:$0xff] %v7378_v37  ;;  %v7403_v37 = vld [vmem:[%s10469_s3 + $0x8c0] sm:$0xff] }
 0x116   :  { %11236 = vst [vmem:[#allocation295_spill] sm:$0xff] %v7383_v33  ;;  %v7408_v33 = vld [vmem:[%s10469_s3 + $0x8c8] sm:$0xff] }
 0x117   :  { %11237 = vst [vmem:[#allocation296_spill] sm:$0xff] %v7388_v1  ;;  %v7413_v1 = vld [vmem:[%s10469_s3 + $0x8d0] sm:$0xff] }
 0x118   :  { %11238 = vst [vmem:[#allocation297_spill] sm:$0xff] %v7393_v35  ;;  %v7418_v35 = vld [vmem:[%s10469_s3 + $0x8d8] sm:$0xff] }
 0x119   :  { %11239 = vst [vmem:[#allocation298_spill] sm:$0xff] %v7398_v3  ;;  %v7423_v3 = vld [vmem:[%s10469_s3 + $0x8e0] sm:$0xff] }
 0x11a   :  { %11240 = vst [vmem:[#allocation299_spill] sm:$0xff] %v7403_v37  ;;  %v7428_v37 = vld [vmem:[%s10469_s3 + $0x8e8] sm:$0xff] }
 0x11b   :  { %11241 = vst [vmem:[#allocation300_spill] sm:$0xff] %v7408_v33  ;;  %v7433_v33 = vld [vmem:[%s10469_s3 + $0x8f0] sm:$0xff] }
 0x11c   :  { %11242 = vst [vmem:[#allocation301_spill] sm:$0xff] %v7413_v1  ;;  %v7438_v1 = vld [vmem:[%s10469_s3 + $0x8f8] sm:$0xff] }
 0x11d   :  { %11243 = vst [vmem:[#allocation302_spill] sm:$0xff] %v7418_v35  ;;  %v7443_v35 = vld [vmem:[%s10469_s3 + $0x900] sm:$0xff] }
 0x11e   :  { %11244 = vst [vmem:[#allocation303_spill] sm:$0xff] %v7423_v3  ;;  %v7448_v3 = vld [vmem:[%s10469_s3 + $0x908] sm:$0xff] }
 0x11f   :  { %11245 = vst [vmem:[#allocation304_spill] sm:$0xff] %v7428_v37  ;;  %v7453_v37 = vld [vmem:[%s10469_s3 + $0x910] sm:$0xff] }
 0x120   :  { %11246 = vst [vmem:[#allocation305_spill] sm:$0xff] %v7433_v33  ;;  %v7458_v33 = vld [vmem:[%s10469_s3 + $0x918] sm:$0xff] }
 0x121   :  { %11247 = vst [vmem:[#allocation306_spill] sm:$0xff] %v7438_v1  ;;  %v7463_v1 = vld [vmem:[%s10469_s3 + $0x920] sm:$0xff] }
 0x122   :  { %11248 = vst [vmem:[#allocation307_spill] sm:$0xff] %v7443_v35  ;;  %v7468_v35 = vld [vmem:[%s10469_s3 + $0x928] sm:$0xff] }
 0x123   :  { %11249 = vst [vmem:[#allocation308_spill] sm:$0xff] %v7448_v3  ;;  %v7473_v3 = vld [vmem:[%s10469_s3 + $0x930] sm:$0xff] }
 0x124   :  { %11250 = vst [vmem:[#allocation309_spill] sm:$0xff] %v7453_v37  ;;  %v7478_v37 = vld [vmem:[%s10469_s3 + $0x938] sm:$0xff] }
 0x125   :  { %11251 = vst [vmem:[#allocation310_spill] sm:$0xff] %v7458_v33  ;;  %v7483_v33 = vld [vmem:[%s10469_s3 + $0x940] sm:$0xff] }
 0x126   :  { %11252 = vst [vmem:[#allocation311_spill] sm:$0xff] %v7463_v1  ;;  %v7488_v1 = vld [vmem:[%s10469_s3 + $0x948] sm:$0xff] }
 0x127   :  { %11253 = vst [vmem:[#allocation312_spill] sm:$0xff] %v7468_v35  ;;  %v7493_v35 = vld [vmem:[%s10469_s3 + $0x950] sm:$0xff] }
 0x128   :  { %11254 = vst [vmem:[#allocation313_spill] sm:$0xff] %v7473_v3  ;;  %v7498_v3 = vld [vmem:[%s10469_s3 + $0x958] sm:$0xff] }
 0x129   :  { %11255 = vst [vmem:[#allocation314_spill] sm:$0xff] %v7478_v37  ;;  %v7503_v37 = vld [vmem:[%s10469_s3 + $0x960] sm:$0xff] }
 0x12a   :  { %11256 = vst [vmem:[#allocation315_spill] sm:$0xff] %v7483_v33  ;;  %v7508_v33 = vld [vmem:[%s10469_s3 + $0x968] sm:$0xff] }
 0x12b   :  { %11257 = vst [vmem:[#allocation316_spill] sm:$0xff] %v7488_v1  ;;  %v7513_v1 = vld [vmem:[%s10469_s3 + $0x970] sm:$0xff] }
 0x12c   :  { %11258 = vst [vmem:[#allocation317_spill] sm:$0xff] %v7493_v35  ;;  %v7518_v35 = vld [vmem:[%s10469_s3 + $0x978] sm:$0xff] }
 0x12d   :  { %11259 = vst [vmem:[#allocation318_spill] sm:$0xff] %v7498_v3  ;;  %v7523_v3 = vld [vmem:[%s10469_s3 + $0x980] sm:$0xff] }
 0x12e   :  { %11260 = vst [vmem:[#allocation319_spill] sm:$0xff] %v7503_v37  ;;  %v7528_v37 = vld [vmem:[%s10469_s3 + $0x988] sm:$0xff] }
 0x12f   :  { %11261 = vst [vmem:[#allocation320_spill] sm:$0xff] %v7508_v33  ;;  %v7533_v33 = vld [vmem:[%s10469_s3 + $0x990] sm:$0xff] }
 0x130   :  { %11262 = vst [vmem:[#allocation321_spill] sm:$0xff] %v7513_v1  ;;  %v7538_v1 = vld [vmem:[%s10469_s3 + $0x998] sm:$0xff] }
 0x131   :  { %11263 = vst [vmem:[#allocation322_spill] sm:$0xff] %v7518_v35  ;;  %v7543_v35 = vld [vmem:[%s10469_s3 + $0x9a0] sm:$0xff] }
 0x132   :  { %11264 = vst [vmem:[#allocation323_spill] sm:$0xff] %v7523_v3  ;;  %v7548_v3 = vld [vmem:[%s10469_s3 + $0x9a8] sm:$0xff] }
 0x133   :  { %11265 = vst [vmem:[#allocation324_spill] sm:$0xff] %v7528_v37  ;;  %v7553_v37 = vld [vmem:[%s10469_s3 + $0x9b0] sm:$0xff] }
 0x134   :  { %11266 = vst [vmem:[#allocation325_spill] sm:$0xff] %v7533_v33  ;;  %v7558_v33 = vld [vmem:[%s10469_s3 + $0x9b8] sm:$0xff] }
 0x135   :  { %11267 = vst [vmem:[#allocation326_spill] sm:$0xff] %v7538_v1  ;;  %v7563_v1 = vld [vmem:[%s10469_s3 + $0x9c0] sm:$0xff] }
 0x136   :  { %11268 = vst [vmem:[#allocation327_spill] sm:$0xff] %v7543_v35  ;;  %v7568_v35 = vld [vmem:[%s10469_s3 + $0x9c8] sm:$0xff] }
 0x137   :  { %11269 = vst [vmem:[#allocation328_spill] sm:$0xff] %v7548_v3  ;;  %v7573_v3 = vld [vmem:[%s10469_s3 + $0x9d0] sm:$0xff] }
 0x138   :  { %11270 = vst [vmem:[#allocation329_spill] sm:$0xff] %v7553_v37  ;;  %v7578_v37 = vld [vmem:[%s10469_s3 + $0x9d8] sm:$0xff] }
 0x139   :  { %11271 = vst [vmem:[#allocation330_spill] sm:$0xff] %v7558_v33  ;;  %v7583_v33 = vld [vmem:[%s10469_s3 + $0x9e0] sm:$0xff] }
 0x13a   :  { %11272 = vst [vmem:[#allocation331_spill] sm:$0xff] %v7563_v1  ;;  %v7588_v1 = vld [vmem:[%s10469_s3 + $0x9e8] sm:$0xff] }
 0x13b   :  { %11273 = vst [vmem:[#allocation332_spill] sm:$0xff] %v7568_v35  ;;  %v7593_v35 = vld [vmem:[%s10469_s3 + $0x9f0] sm:$0xff] }
 0x13c   :  { %11274 = vst [vmem:[#allocation333_spill] sm:$0xff] %v7573_v3  ;;  %v7598_v3 = vld [vmem:[%s10469_s3 + $0x9f8] sm:$0xff] }
 0x13d   :  { %11275 = vst [vmem:[#allocation334_spill] sm:$0xff] %v7578_v37 }
 0x13e   :  { %11276 = vst [vmem:[#allocation335_spill] sm:$0xff] %v7583_v33 }
 0x13f   :  { %11277 = vst [vmem:[#allocation336_spill] sm:$0xff] %v7588_v1 }
 0x140   :  { %11278 = vst [vmem:[#allocation337_spill] sm:$0xff] %v7593_v35 }
 0x141   :  { %11279 = vst [vmem:[#allocation338_spill] sm:$0xff] %v7598_v3 }
 0x142   :  { %785 = vsyncadd [#allocation3 + $0x4], 8192  ;;  %v7603_v37 = vld [vmem:[%s10469_s3 + $0xa00] sm:$0xff]  ;;  %v7608_v1 = vld [vmem:[%s10469_s3 + $0xa08] sm:$0xff] }
 0x143   :  { %11280 = vst [vmem:[#allocation339_spill] sm:$0xff] %v7603_v37  ;;  %v7613_v33 = vld [vmem:[%s10469_s3 + $0xa10] sm:$0xff]  ;;  %v7618_v3 = vld [vmem:[%s10469_s3 + $0xa18] sm:$0xff]  ;;  %v7623_v35 = vld [vmem:[%s10469_s3 + $0xa20] sm:$0xff] }
 0x144   :  { %11281 = vst [vmem:[#allocation340_spill] sm:$0xff] %v7608_v1  ;;  %v7628_v37 = vld [vmem:[%s10469_s3 + $0xa28] sm:$0xff]  ;;  %v7633_v1 = vld [vmem:[%s10469_s3 + $0xa30] sm:$0xff] }
 0x145   :  { %11282 = vst [vmem:[#allocation341_spill] sm:$0xff] %v7613_v33  ;;  %v7638_v33 = vld [vmem:[%s10469_s3 + $0xa38] sm:$0xff] }
 0x146   :  { %11283 = vst [vmem:[#allocation342_spill] sm:$0xff] %v7618_v3  ;;  %v7643_v3 = vld [vmem:[%s10469_s3 + $0xa40] sm:$0xff] }
 0x147   :  { %11284 = vst [vmem:[#allocation343_spill] sm:$0xff] %v7623_v35  ;;  %v7648_v35 = vld [vmem:[%s10469_s3 + $0xa48] sm:$0xff] }
 0x148   :  { %11285 = vst [vmem:[#allocation344_spill] sm:$0xff] %v7628_v37  ;;  %v7653_v37 = vld [vmem:[%s10469_s3 + $0xa50] sm:$0xff] }
 0x149   :  { %11286 = vst [vmem:[#allocation345_spill] sm:$0xff] %v7633_v1  ;;  %v7658_v1 = vld [vmem:[%s10469_s3 + $0xa58] sm:$0xff] }
 0x14a   :  { %11287 = vst [vmem:[#allocation346_spill] sm:$0xff] %v7638_v33  ;;  %v7663_v33 = vld [vmem:[%s10469_s3 + $0xa60] sm:$0xff] }
 0x14b   :  { %11288 = vst [vmem:[#allocation347_spill] sm:$0xff] %v7643_v3  ;;  %v7668_v3 = vld [vmem:[%s10469_s3 + $0xa68] sm:$0xff] }
 0x14c   :  { %11289 = vst [vmem:[#allocation348_spill] sm:$0xff] %v7648_v35  ;;  %v7673_v35 = vld [vmem:[%s10469_s3 + $0xa70] sm:$0xff] }
 0x14d   :  { %11290 = vst [vmem:[#allocation349_spill] sm:$0xff] %v7653_v37  ;;  %v7678_v37 = vld [vmem:[%s10469_s3 + $0xa78] sm:$0xff] }
 0x14e   :  { %11291 = vst [vmem:[#allocation350_spill] sm:$0xff] %v7658_v1  ;;  %v7683_v1 = vld [vmem:[%s10469_s3 + $0xa80] sm:$0xff] }
 0x14f   :  { %11292 = vst [vmem:[#allocation351_spill] sm:$0xff] %v7663_v33  ;;  %v7688_v33 = vld [vmem:[%s10469_s3 + $0xa88] sm:$0xff] }
 0x150   :  { %11293 = vst [vmem:[#allocation352_spill] sm:$0xff] %v7668_v3  ;;  %v7693_v3 = vld [vmem:[%s10469_s3 + $0xa90] sm:$0xff] }
 0x151   :  { %11294 = vst [vmem:[#allocation353_spill] sm:$0xff] %v7673_v35  ;;  %v7698_v35 = vld [vmem:[%s10469_s3 + $0xa98] sm:$0xff] }
 0x152   :  { %11295 = vst [vmem:[#allocation354_spill] sm:$0xff] %v7678_v37  ;;  %v7703_v37 = vld [vmem:[%s10469_s3 + $0xaa0] sm:$0xff] }
 0x153   :  { %11296 = vst [vmem:[#allocation355_spill] sm:$0xff] %v7683_v1  ;;  %v7708_v1 = vld [vmem:[%s10469_s3 + $0xaa8] sm:$0xff] }
 0x154   :  { %11297 = vst [vmem:[#allocation356_spill] sm:$0xff] %v7688_v33  ;;  %v7713_v33 = vld [vmem:[%s10469_s3 + $0xab0] sm:$0xff] }
 0x155   :  { %11298 = vst [vmem:[#allocation357_spill] sm:$0xff] %v7693_v3  ;;  %v7718_v3 = vld [vmem:[%s10469_s3 + $0xab8] sm:$0xff] }
 0x156   :  { %11299 = vst [vmem:[#allocation358_spill] sm:$0xff] %v7698_v35  ;;  %v7723_v35 = vld [vmem:[%s10469_s3 + $0xac0] sm:$0xff] }
 0x157   :  { %11300 = vst [vmem:[#allocation359_spill] sm:$0xff] %v7703_v37  ;;  %v7728_v37 = vld [vmem:[%s10469_s3 + $0xac8] sm:$0xff] }
 0x158   :  { %11301 = vst [vmem:[#allocation360_spill] sm:$0xff] %v7708_v1  ;;  %v7733_v1 = vld [vmem:[%s10469_s3 + $0xad0] sm:$0xff] }
 0x159   :  { %11302 = vst [vmem:[#allocation361_spill] sm:$0xff] %v7713_v33  ;;  %v7738_v33 = vld [vmem:[%s10469_s3 + $0xad8] sm:$0xff] }
 0x15a   :  { %11303 = vst [vmem:[#allocation362_spill] sm:$0xff] %v7718_v3  ;;  %v7743_v3 = vld [vmem:[%s10469_s3 + $0xae0] sm:$0xff] }
 0x15b   :  { %11304 = vst [vmem:[#allocation363_spill] sm:$0xff] %v7723_v35  ;;  %v7748_v35 = vld [vmem:[%s10469_s3 + $0xae8] sm:$0xff] }
 0x15c   :  { %11305 = vst [vmem:[#allocation364_spill] sm:$0xff] %v7728_v37  ;;  %v7753_v37 = vld [vmem:[%s10469_s3 + $0xaf0] sm:$0xff] }
 0x15d   :  { %11306 = vst [vmem:[#allocation365_spill] sm:$0xff] %v7733_v1  ;;  %v7758_v1 = vld [vmem:[%s10469_s3 + $0xaf8] sm:$0xff] }
 0x15e   :  { %11307 = vst [vmem:[#allocation366_spill] sm:$0xff] %v7738_v33  ;;  %v7763_v33 = vld [vmem:[%s10469_s3 + $0xb00] sm:$0xff] }
 0x15f   :  { %11308 = vst [vmem:[#allocation367_spill] sm:$0xff] %v7743_v3  ;;  %v7768_v3 = vld [vmem:[%s10469_s3 + $0xb08] sm:$0xff] }
 0x160   :  { %11309 = vst [vmem:[#allocation368_spill] sm:$0xff] %v7748_v35  ;;  %v7773_v35 = vld [vmem:[%s10469_s3 + $0xb10] sm:$0xff] }
 0x161   :  { %11310 = vst [vmem:[#allocation369_spill] sm:$0xff] %v7753_v37  ;;  %v7778_v37 = vld [vmem:[%s10469_s3 + $0xb18] sm:$0xff] }
 0x162   :  { %11311 = vst [vmem:[#allocation370_spill] sm:$0xff] %v7758_v1  ;;  %v7783_v1 = vld [vmem:[%s10469_s3 + $0xb20] sm:$0xff] }
 0x163   :  { %11312 = vst [vmem:[#allocation371_spill] sm:$0xff] %v7763_v33  ;;  %v7788_v33 = vld [vmem:[%s10469_s3 + $0xb28] sm:$0xff] }
 0x164   :  { %11313 = vst [vmem:[#allocation372_spill] sm:$0xff] %v7768_v3  ;;  %v7793_v3 = vld [vmem:[%s10469_s3 + $0xb30] sm:$0xff] }
 0x165   :  { %11314 = vst [vmem:[#allocation373_spill] sm:$0xff] %v7773_v35  ;;  %v7798_v35 = vld [vmem:[%s10469_s3 + $0xb38] sm:$0xff] }
 0x166   :  { %11315 = vst [vmem:[#allocation374_spill] sm:$0xff] %v7778_v37  ;;  %v7803_v37 = vld [vmem:[%s10469_s3 + $0xb40] sm:$0xff] }
 0x167   :  { %11316 = vst [vmem:[#allocation375_spill] sm:$0xff] %v7783_v1  ;;  %v7808_v1 = vld [vmem:[%s10469_s3 + $0xb48] sm:$0xff] }
 0x168   :  { %11317 = vst [vmem:[#allocation376_spill] sm:$0xff] %v7788_v33  ;;  %v7813_v33 = vld [vmem:[%s10469_s3 + $0xb50] sm:$0xff] }
 0x169   :  { %11318 = vst [vmem:[#allocation377_spill] sm:$0xff] %v7793_v3  ;;  %v7818_v3 = vld [vmem:[%s10469_s3 + $0xb58] sm:$0xff] }
 0x16a   :  { %11319 = vst [vmem:[#allocation378_spill] sm:$0xff] %v7798_v35  ;;  %v7823_v35 = vld [vmem:[%s10469_s3 + $0xb60] sm:$0xff] }
 0x16b   :  { %11320 = vst [vmem:[#allocation379_spill] sm:$0xff] %v7803_v37  ;;  %v7828_v37 = vld [vmem:[%s10469_s3 + $0xb68] sm:$0xff] }
 0x16c   :  { %11321 = vst [vmem:[#allocation380_spill] sm:$0xff] %v7808_v1  ;;  %v7833_v1 = vld [vmem:[%s10469_s3 + $0xb70] sm:$0xff] }
 0x16d   :  { %11322 = vst [vmem:[#allocation381_spill] sm:$0xff] %v7813_v33  ;;  %v7838_v33 = vld [vmem:[%s10469_s3 + $0xb78] sm:$0xff] }
 0x16e   :  { %11323 = vst [vmem:[#allocation382_spill] sm:$0xff] %v7818_v3  ;;  %v7843_v3 = vld [vmem:[%s10469_s3 + $0xb80] sm:$0xff] }
 0x16f   :  { %11324 = vst [vmem:[#allocation383_spill] sm:$0xff] %v7823_v35  ;;  %v7848_v35 = vld [vmem:[%s10469_s3 + $0xb88] sm:$0xff] }
 0x170   :  { %11325 = vst [vmem:[#allocation384_spill] sm:$0xff] %v7828_v37  ;;  %v7853_v37 = vld [vmem:[%s10469_s3 + $0xb90] sm:$0xff] }
 0x171   :  { %11326 = vst [vmem:[#allocation385_spill] sm:$0xff] %v7833_v1  ;;  %v7858_v1 = vld [vmem:[%s10469_s3 + $0xb98] sm:$0xff] }
 0x172   :  { %11327 = vst [vmem:[#allocation386_spill] sm:$0xff] %v7838_v33  ;;  %v7863_v33 = vld [vmem:[%s10469_s3 + $0xba0] sm:$0xff] }
 0x173   :  { %11328 = vst [vmem:[#allocation387_spill] sm:$0xff] %v7843_v3  ;;  %v7868_v3 = vld [vmem:[%s10469_s3 + $0xba8] sm:$0xff] }
 0x174   :  { %11329 = vst [vmem:[#allocation388_spill] sm:$0xff] %v7848_v35  ;;  %v7873_v35 = vld [vmem:[%s10469_s3 + $0xbb0] sm:$0xff] }
 0x175   :  { %11330 = vst [vmem:[#allocation389_spill] sm:$0xff] %v7853_v37  ;;  %v7878_v37 = vld [vmem:[%s10469_s3 + $0xbb8] sm:$0xff] }
 0x176   :  { %11331 = vst [vmem:[#allocation390_spill] sm:$0xff] %v7858_v1  ;;  %v7883_v1 = vld [vmem:[%s10469_s3 + $0xbc0] sm:$0xff] }
 0x177   :  { %11332 = vst [vmem:[#allocation391_spill] sm:$0xff] %v7863_v33  ;;  %v7888_v33 = vld [vmem:[%s10469_s3 + $0xbc8] sm:$0xff] }
 0x178   :  { %11333 = vst [vmem:[#allocation392_spill] sm:$0xff] %v7868_v3  ;;  %v7893_v3 = vld [vmem:[%s10469_s3 + $0xbd0] sm:$0xff] }
 0x179   :  { %11334 = vst [vmem:[#allocation393_spill] sm:$0xff] %v7873_v35  ;;  %v7898_v35 = vld [vmem:[%s10469_s3 + $0xbd8] sm:$0xff] }
 0x17a   :  { %11335 = vst [vmem:[#allocation394_spill] sm:$0xff] %v7878_v37  ;;  %v7903_v37 = vld [vmem:[%s10469_s3 + $0xbe0] sm:$0xff] }
 0x17b   :  { %11336 = vst [vmem:[#allocation395_spill] sm:$0xff] %v7883_v1  ;;  %v7908_v1 = vld [vmem:[%s10469_s3 + $0xbe8] sm:$0xff] }
 0x17c   :  { %11337 = vst [vmem:[#allocation396_spill] sm:$0xff] %v7888_v33  ;;  %v7913_v33 = vld [vmem:[%s10469_s3 + $0xbf0] sm:$0xff] }
 0x17d   :  { %11338 = vst [vmem:[#allocation397_spill] sm:$0xff] %v7893_v3  ;;  %v7918_v3 = vld [vmem:[%s10469_s3 + $0xbf8] sm:$0xff] }
 0x17e   :  { %11339 = vst [vmem:[#allocation398_spill] sm:$0xff] %v7898_v35 }
 0x17f   :  { %11340 = vst [vmem:[#allocation399_spill] sm:$0xff] %v7903_v37 }
 0x180   :  { %11341 = vst [vmem:[#allocation400_spill] sm:$0xff] %v7908_v1 }
 0x181   :  { %11342 = vst [vmem:[#allocation401_spill] sm:$0xff] %v7913_v33 }
 0x182   :  { %11343 = vst [vmem:[#allocation402_spill] sm:$0xff] %v7918_v3 }
 0x183   :  { %932 = vsyncadd [#allocation3 + $0x5], 8192  ;;  %v7923_v35 = vld [vmem:[%s10469_s3 + $0xc00] sm:$0xff]  ;;  %v7928_v1 = vld [vmem:[%s10469_s3 + $0xc08] sm:$0xff] }
 0x184   :  { %11344 = vst [vmem:[#allocation403_spill] sm:$0xff] %v7923_v35  ;;  %v7933_v37 = vld [vmem:[%s10469_s3 + $0xc10] sm:$0xff]  ;;  %v7938_v3 = vld [vmem:[%s10469_s3 + $0xc18] sm:$0xff]  ;;  %v7943_v33 = vld [vmem:[%s10469_s3 + $0xc20] sm:$0xff] }
 0x185   :  { %11345 = vst [vmem:[#allocation404_spill] sm:$0xff] %v7928_v1  ;;  %v7948_v35 = vld [vmem:[%s10469_s3 + $0xc28] sm:$0xff]  ;;  %v7953_v1 = vld [vmem:[%s10469_s3 + $0xc30] sm:$0xff] }
 0x186   :  { %11346 = vst [vmem:[#allocation405_spill] sm:$0xff] %v7933_v37  ;;  %v7958_v37 = vld [vmem:[%s10469_s3 + $0xc38] sm:$0xff] }
 0x187   :  { %11347 = vst [vmem:[#allocation406_spill] sm:$0xff] %v7938_v3  ;;  %v7963_v3 = vld [vmem:[%s10469_s3 + $0xc40] sm:$0xff] }
 0x188   :  { %11348 = vst [vmem:[#allocation407_spill] sm:$0xff] %v7943_v33  ;;  %v7968_v33 = vld [vmem:[%s10469_s3 + $0xc48] sm:$0xff] }
 0x189   :  { %11349 = vst [vmem:[#allocation408_spill] sm:$0xff] %v7948_v35  ;;  %v7973_v35 = vld [vmem:[%s10469_s3 + $0xc50] sm:$0xff] }
 0x18a   :  { %11350 = vst [vmem:[#allocation409_spill] sm:$0xff] %v7953_v1  ;;  %v7978_v1 = vld [vmem:[%s10469_s3 + $0xc58] sm:$0xff] }
 0x18b   :  { %11351 = vst [vmem:[#allocation410_spill] sm:$0xff] %v7958_v37  ;;  %v7983_v37 = vld [vmem:[%s10469_s3 + $0xc60] sm:$0xff] }
 0x18c   :  { %11352 = vst [vmem:[#allocation411_spill] sm:$0xff] %v7963_v3  ;;  %v7988_v3 = vld [vmem:[%s10469_s3 + $0xc68] sm:$0xff] }
 0x18d   :  { %11353 = vst [vmem:[#allocation412_spill] sm:$0xff] %v7968_v33  ;;  %v7993_v33 = vld [vmem:[%s10469_s3 + $0xc70] sm:$0xff] }
 0x18e   :  { %11354 = vst [vmem:[#allocation413_spill] sm:$0xff] %v7973_v35  ;;  %v7998_v35 = vld [vmem:[%s10469_s3 + $0xc78] sm:$0xff] }
 0x18f   :  { %11355 = vst [vmem:[#allocation414_spill] sm:$0xff] %v7978_v1  ;;  %v8003_v1 = vld [vmem:[%s10469_s3 + $0xc80] sm:$0xff] }
 0x190   :  { %11356 = vst [vmem:[#allocation415_spill] sm:$0xff] %v7983_v37  ;;  %v8008_v37 = vld [vmem:[%s10469_s3 + $0xc88] sm:$0xff] }
 0x191   :  { %11357 = vst [vmem:[#allocation416_spill] sm:$0xff] %v7988_v3  ;;  %v8013_v3 = vld [vmem:[%s10469_s3 + $0xc90] sm:$0xff] }
 0x192   :  { %11358 = vst [vmem:[#allocation417_spill] sm:$0xff] %v7993_v33  ;;  %v8018_v33 = vld [vmem:[%s10469_s3 + $0xc98] sm:$0xff] }
 0x193   :  { %11359 = vst [vmem:[#allocation418_spill] sm:$0xff] %v7998_v35  ;;  %v8023_v35 = vld [vmem:[%s10469_s3 + $0xca0] sm:$0xff] }
 0x194   :  { %11360 = vst [vmem:[#allocation419_spill] sm:$0xff] %v8003_v1  ;;  %v8028_v1 = vld [vmem:[%s10469_s3 + $0xca8] sm:$0xff] }
 0x195   :  { %11361 = vst [vmem:[#allocation420_spill] sm:$0xff] %v8008_v37  ;;  %v8033_v37 = vld [vmem:[%s10469_s3 + $0xcb0] sm:$0xff] }
 0x196   :  { %11362 = vst [vmem:[#allocation421_spill] sm:$0xff] %v8013_v3  ;;  %v8038_v3 = vld [vmem:[%s10469_s3 + $0xcb8] sm:$0xff] }
 0x197   :  { %11363 = vst [vmem:[#allocation422_spill] sm:$0xff] %v8018_v33  ;;  %v8043_v33 = vld [vmem:[%s10469_s3 + $0xcc0] sm:$0xff] }
 0x198   :  { %11364 = vst [vmem:[#allocation423_spill] sm:$0xff] %v8023_v35  ;;  %v8048_v35 = vld [vmem:[%s10469_s3 + $0xcc8] sm:$0xff] }
 0x199   :  { %11365 = vst [vmem:[#allocation424_spill] sm:$0xff] %v8028_v1  ;;  %v8053_v1 = vld [vmem:[%s10469_s3 + $0xcd0] sm:$0xff] }
 0x19a   :  { %11366 = vst [vmem:[#allocation425_spill] sm:$0xff] %v8033_v37  ;;  %v8058_v37 = vld [vmem:[%s10469_s3 + $0xcd8] sm:$0xff] }
 0x19b   :  { %11367 = vst [vmem:[#allocation426_spill] sm:$0xff] %v8038_v3  ;;  %v8063_v3 = vld [vmem:[%s10469_s3 + $0xce0] sm:$0xff] }
 0x19c   :  { %11368 = vst [vmem:[#allocation427_spill] sm:$0xff] %v8043_v33  ;;  %v8068_v33 = vld [vmem:[%s10469_s3 + $0xce8] sm:$0xff] }
 0x19d   :  { %11369 = vst [vmem:[#allocation428_spill] sm:$0xff] %v8048_v35  ;;  %v8073_v35 = vld [vmem:[%s10469_s3 + $0xcf0] sm:$0xff] }
 0x19e   :  { %11370 = vst [vmem:[#allocation429_spill] sm:$0xff] %v8053_v1  ;;  %v8078_v1 = vld [vmem:[%s10469_s3 + $0xcf8] sm:$0xff] }
 0x19f   :  { %11371 = vst [vmem:[#allocation430_spill] sm:$0xff] %v8058_v37  ;;  %v8083_v37 = vld [vmem:[%s10469_s3 + $0xd00] sm:$0xff] }
 0x1a0   :  { %11372 = vst [vmem:[#allocation431_spill] sm:$0xff] %v8063_v3  ;;  %v8088_v3 = vld [vmem:[%s10469_s3 + $0xd08] sm:$0xff] }
 0x1a1   :  { %11373 = vst [vmem:[#allocation432_spill] sm:$0xff] %v8068_v33  ;;  %v8093_v33 = vld [vmem:[%s10469_s3 + $0xd10] sm:$0xff] }
 0x1a2   :  { %11374 = vst [vmem:[#allocation433_spill] sm:$0xff] %v8073_v35  ;;  %v8098_v35 = vld [vmem:[%s10469_s3 + $0xd18] sm:$0xff] }
 0x1a3   :  { %11375 = vst [vmem:[#allocation434_spill] sm:$0xff] %v8078_v1  ;;  %v8103_v1 = vld [vmem:[%s10469_s3 + $0xd20] sm:$0xff] }
 0x1a4   :  { %11376 = vst [vmem:[#allocation435_spill] sm:$0xff] %v8083_v37  ;;  %v8108_v37 = vld [vmem:[%s10469_s3 + $0xd28] sm:$0xff] }
 0x1a5   :  { %11377 = vst [vmem:[#allocation436_spill] sm:$0xff] %v8088_v3  ;;  %v8113_v3 = vld [vmem:[%s10469_s3 + $0xd30] sm:$0xff] }
 0x1a6   :  { %11378 = vst [vmem:[#allocation437_spill] sm:$0xff] %v8093_v33  ;;  %v8118_v33 = vld [vmem:[%s10469_s3 + $0xd38] sm:$0xff] }
 0x1a7   :  { %11379 = vst [vmem:[#allocation438_spill] sm:$0xff] %v8098_v35  ;;  %v8123_v35 = vld [vmem:[%s10469_s3 + $0xd40] sm:$0xff] }
 0x1a8   :  { %11380 = vst [vmem:[#allocation439_spill] sm:$0xff] %v8103_v1  ;;  %v8128_v1 = vld [vmem:[%s10469_s3 + $0xd48] sm:$0xff] }
 0x1a9   :  { %11381 = vst [vmem:[#allocation440_spill] sm:$0xff] %v8108_v37  ;;  %v8133_v37 = vld [vmem:[%s10469_s3 + $0xd50] sm:$0xff] }
 0x1aa   :  { %11382 = vst [vmem:[#allocation441_spill] sm:$0xff] %v8113_v3  ;;  %v8138_v3 = vld [vmem:[%s10469_s3 + $0xd58] sm:$0xff] }
 0x1ab   :  { %11383 = vst [vmem:[#allocation442_spill] sm:$0xff] %v8118_v33  ;;  %v8143_v33 = vld [vmem:[%s10469_s3 + $0xd60] sm:$0xff] }
 0x1ac   :  { %11384 = vst [vmem:[#allocation443_spill] sm:$0xff] %v8123_v35  ;;  %v8148_v35 = vld [vmem:[%s10469_s3 + $0xd68] sm:$0xff] }
 0x1ad   :  { %11385 = vst [vmem:[#allocation444_spill] sm:$0xff] %v8128_v1  ;;  %v8153_v1 = vld [vmem:[%s10469_s3 + $0xd70] sm:$0xff] }
 0x1ae   :  { %11386 = vst [vmem:[#allocation445_spill] sm:$0xff] %v8133_v37  ;;  %v8158_v37 = vld [vmem:[%s10469_s3 + $0xd78] sm:$0xff] }
 0x1af   :  { %11387 = vst [vmem:[#allocation446_spill] sm:$0xff] %v8138_v3  ;;  %v8163_v3 = vld [vmem:[%s10469_s3 + $0xd80] sm:$0xff] }
 0x1b0   :  { %11388 = vst [vmem:[#allocation447_spill] sm:$0xff] %v8143_v33  ;;  %v8168_v33 = vld [vmem:[%s10469_s3 + $0xd88] sm:$0xff] }
 0x1b1   :  { %11389 = vst [vmem:[#allocation448_spill] sm:$0xff] %v8148_v35  ;;  %v8173_v35 = vld [vmem:[%s10469_s3 + $0xd90] sm:$0xff] }
 0x1b2   :  { %11390 = vst [vmem:[#allocation449_spill] sm:$0xff] %v8153_v1  ;;  %v8178_v1 = vld [vmem:[%s10469_s3 + $0xd98] sm:$0xff] }
 0x1b3   :  { %11391 = vst [vmem:[#allocation450_spill] sm:$0xff] %v8158_v37  ;;  %v8183_v37 = vld [vmem:[%s10469_s3 + $0xda0] sm:$0xff] }
 0x1b4   :  { %11392 = vst [vmem:[#allocation451_spill] sm:$0xff] %v8163_v3  ;;  %v8188_v3 = vld [vmem:[%s10469_s3 + $0xda8] sm:$0xff] }
 0x1b5   :  { %11393 = vst [vmem:[#allocation452_spill] sm:$0xff] %v8168_v33  ;;  %v8193_v33 = vld [vmem:[%s10469_s3 + $0xdb0] sm:$0xff] }
 0x1b6   :  { %11394 = vst [vmem:[#allocation453_spill] sm:$0xff] %v8173_v35  ;;  %v8198_v35 = vld [vmem:[%s10469_s3 + $0xdb8] sm:$0xff] }
 0x1b7   :  { %11395 = vst [vmem:[#allocation454_spill] sm:$0xff] %v8178_v1  ;;  %v8203_v1 = vld [vmem:[%s10469_s3 + $0xdc0] sm:$0xff] }
 0x1b8   :  { %11396 = vst [vmem:[#allocation455_spill] sm:$0xff] %v8183_v37  ;;  %v8208_v37 = vld [vmem:[%s10469_s3 + $0xdc8] sm:$0xff] }
 0x1b9   :  { %11397 = vst [vmem:[#allocation456_spill] sm:$0xff] %v8188_v3  ;;  %v8213_v3 = vld [vmem:[%s10469_s3 + $0xdd0] sm:$0xff] }
 0x1ba   :  { %11398 = vst [vmem:[#allocation457_spill] sm:$0xff] %v8193_v33  ;;  %v8218_v33 = vld [vmem:[%s10469_s3 + $0xdd8] sm:$0xff] }
 0x1bb   :  { %11399 = vst [vmem:[#allocation458_spill] sm:$0xff] %v8198_v35  ;;  %v8223_v35 = vld [vmem:[%s10469_s3 + $0xde0] sm:$0xff] }
 0x1bc   :  { %11400 = vst [vmem:[#allocation459_spill] sm:$0xff] %v8203_v1  ;;  %v8228_v1 = vld [vmem:[%s10469_s3 + $0xde8] sm:$0xff] }
 0x1bd   :  { %11401 = vst [vmem:[#allocation460_spill] sm:$0xff] %v8208_v37  ;;  %v8233_v37 = vld [vmem:[%s10469_s3 + $0xdf0] sm:$0xff] }
 0x1be   :  { %11402 = vst [vmem:[#allocation461_spill] sm:$0xff] %v8213_v3  ;;  %v8238_v3 = vld [vmem:[%s10469_s3 + $0xdf8] sm:$0xff] }
 0x1bf   :  { %11403 = vst [vmem:[#allocation462_spill] sm:$0xff] %v8218_v33 }
 0x1c0   :  { %11404 = vst [vmem:[#allocation463_spill] sm:$0xff] %v8223_v35 }
 0x1c1   :  { %11405 = vst [vmem:[#allocation464_spill] sm:$0xff] %v8228_v1 }
 0x1c2   :  { %11406 = vst [vmem:[#allocation465_spill] sm:$0xff] %v8233_v37 }
 0x1c3   :  { %11407 = vst [vmem:[#allocation466_spill] sm:$0xff] %v8238_v3 }
 0x1c4   :  { %1079 = vsyncadd [#allocation3 + $0x6], 8192  ;;  %v8243_v33 = vld [vmem:[%s10469_s3 + $0xe00] sm:$0xff]  ;;  %v8248_v1 = vld [vmem:[%s10469_s3 + $0xe08] sm:$0xff] }
 0x1c5   :  { %11408 = vst [vmem:[#allocation467_spill] sm:$0xff] %v8243_v33  ;;  %v8253_v35 = vld [vmem:[%s10469_s3 + $0xe10] sm:$0xff]  ;;  %v8258_v3 = vld [vmem:[%s10469_s3 + $0xe18] sm:$0xff]  ;;  %v8263_v37 = vld [vmem:[%s10469_s3 + $0xe20] sm:$0xff] }
 0x1c6   :  { %11409 = vst [vmem:[#allocation468_spill] sm:$0xff] %v8248_v1  ;;  %v8268_v33 = vld [vmem:[%s10469_s3 + $0xe28] sm:$0xff]  ;;  %v8273_v1 = vld [vmem:[%s10469_s3 + $0xe30] sm:$0xff] }
 0x1c7   :  { %11410 = vst [vmem:[#allocation469_spill] sm:$0xff] %v8253_v35  ;;  %v8278_v35 = vld [vmem:[%s10469_s3 + $0xe38] sm:$0xff] }
 0x1c8   :  { %11411 = vst [vmem:[#allocation470_spill] sm:$0xff] %v8258_v3  ;;  %v8283_v3 = vld [vmem:[%s10469_s3 + $0xe40] sm:$0xff] }
 0x1c9   :  { %11412 = vst [vmem:[#allocation471_spill] sm:$0xff] %v8263_v37  ;;  %v8288_v37 = vld [vmem:[%s10469_s3 + $0xe48] sm:$0xff] }
 0x1ca   :  { %11413 = vst [vmem:[#allocation472_spill] sm:$0xff] %v8268_v33  ;;  %v8293_v33 = vld [vmem:[%s10469_s3 + $0xe50] sm:$0xff] }
 0x1cb   :  { %11414 = vst [vmem:[#allocation473_spill] sm:$0xff] %v8273_v1  ;;  %v8298_v1 = vld [vmem:[%s10469_s3 + $0xe58] sm:$0xff] }
 0x1cc   :  { %11415 = vst [vmem:[#allocation474_spill] sm:$0xff] %v8278_v35  ;;  %v8303_v35 = vld [vmem:[%s10469_s3 + $0xe60] sm:$0xff] }
 0x1cd   :  { %11416 = vst [vmem:[#allocation475_spill] sm:$0xff] %v8283_v3  ;;  %v8308_v3 = vld [vmem:[%s10469_s3 + $0xe68] sm:$0xff] }
 0x1ce   :  { %11417 = vst [vmem:[#allocation476_spill] sm:$0xff] %v8288_v37  ;;  %v8313_v37 = vld [vmem:[%s10469_s3 + $0xe70] sm:$0xff] }
 0x1cf   :  { %11418 = vst [vmem:[#allocation477_spill] sm:$0xff] %v8293_v33  ;;  %v8318_v33 = vld [vmem:[%s10469_s3 + $0xe78] sm:$0xff] }
 0x1d0   :  { %11419 = vst [vmem:[#allocation478_spill] sm:$0xff] %v8298_v1  ;;  %v8323_v1 = vld [vmem:[%s10469_s3 + $0xe80] sm:$0xff] }
 0x1d1   :  { %11420 = vst [vmem:[#allocation479_spill] sm:$0xff] %v8303_v35  ;;  %v8328_v35 = vld [vmem:[%s10469_s3 + $0xe88] sm:$0xff] }
 0x1d2   :  { %11421 = vst [vmem:[#allocation480_spill] sm:$0xff] %v8308_v3  ;;  %v8333_v3 = vld [vmem:[%s10469_s3 + $0xe90] sm:$0xff] }
 0x1d3   :  { %11422 = vst [vmem:[#allocation481_spill] sm:$0xff] %v8313_v37  ;;  %v8338_v37 = vld [vmem:[%s10469_s3 + $0xe98] sm:$0xff] }
 0x1d4   :  { %11423 = vst [vmem:[#allocation482_spill] sm:$0xff] %v8318_v33  ;;  %v8343_v33 = vld [vmem:[%s10469_s3 + $0xea0] sm:$0xff] }
 0x1d5   :  { %11424 = vst [vmem:[#allocation483_spill] sm:$0xff] %v8323_v1  ;;  %v8348_v1 = vld [vmem:[%s10469_s3 + $0xea8] sm:$0xff] }
 0x1d6   :  { %11425 = vst [vmem:[#allocation484_spill] sm:$0xff] %v8328_v35  ;;  %v8353_v35 = vld [vmem:[%s10469_s3 + $0xeb0] sm:$0xff] }
 0x1d7   :  { %11426 = vst [vmem:[#allocation485_spill] sm:$0xff] %v8333_v3  ;;  %v8358_v3 = vld [vmem:[%s10469_s3 + $0xeb8] sm:$0xff] }
 0x1d8   :  { %11427 = vst [vmem:[#allocation486_spill] sm:$0xff] %v8338_v37  ;;  %v8363_v37 = vld [vmem:[%s10469_s3 + $0xec0] sm:$0xff] }
 0x1d9   :  { %11428 = vst [vmem:[#allocation487_spill] sm:$0xff] %v8343_v33  ;;  %v8368_v33 = vld [vmem:[%s10469_s3 + $0xec8] sm:$0xff] }
 0x1da   :  { %11429 = vst [vmem:[#allocation488_spill] sm:$0xff] %v8348_v1  ;;  %v8373_v1 = vld [vmem:[%s10469_s3 + $0xed0] sm:$0xff] }
 0x1db   :  { %11430 = vst [vmem:[#allocation489_spill] sm:$0xff] %v8353_v35  ;;  %v8378_v35 = vld [vmem:[%s10469_s3 + $0xed8] sm:$0xff] }
 0x1dc   :  { %11431 = vst [vmem:[#allocation490_spill] sm:$0xff] %v8358_v3  ;;  %v8383_v3 = vld [vmem:[%s10469_s3 + $0xee0] sm:$0xff] }
 0x1dd   :  { %11432 = vst [vmem:[#allocation491_spill] sm:$0xff] %v8363_v37  ;;  %v8388_v37 = vld [vmem:[%s10469_s3 + $0xee8] sm:$0xff] }
 0x1de   :  { %11433 = vst [vmem:[#allocation492_spill] sm:$0xff] %v8368_v33  ;;  %v8393_v33 = vld [vmem:[%s10469_s3 + $0xef0] sm:$0xff] }
 0x1df   :  { %11434 = vst [vmem:[#allocation493_spill] sm:$0xff] %v8373_v1  ;;  %v8398_v1 = vld [vmem:[%s10469_s3 + $0xef8] sm:$0xff] }
 0x1e0   :  { %11435 = vst [vmem:[#allocation494_spill] sm:$0xff] %v8378_v35  ;;  %v8403_v35 = vld [vmem:[%s10469_s3 + $0xf00] sm:$0xff] }
 0x1e1   :  { %11436 = vst [vmem:[#allocation495_spill] sm:$0xff] %v8383_v3  ;;  %v8408_v3 = vld [vmem:[%s10469_s3 + $0xf08] sm:$0xff] }
 0x1e2   :  { %11437 = vst [vmem:[#allocation496_spill] sm:$0xff] %v8388_v37  ;;  %v8413_v37 = vld [vmem:[%s10469_s3 + $0xf10] sm:$0xff] }
 0x1e3   :  { %11438 = vst [vmem:[#allocation497_spill] sm:$0xff] %v8393_v33  ;;  %v8418_v33 = vld [vmem:[%s10469_s3 + $0xf18] sm:$0xff] }
 0x1e4   :  { %11439 = vst [vmem:[#allocation498_spill] sm:$0xff] %v8398_v1  ;;  %v8423_v1 = vld [vmem:[%s10469_s3 + $0xf20] sm:$0xff] }
 0x1e5   :  { %11440 = vst [vmem:[#allocation499_spill] sm:$0xff] %v8403_v35  ;;  %v8428_v35 = vld [vmem:[%s10469_s3 + $0xf28] sm:$0xff] }
 0x1e6   :  { %11441 = vst [vmem:[#allocation500_spill] sm:$0xff] %v8408_v3  ;;  %v8433_v3 = vld [vmem:[%s10469_s3 + $0xf30] sm:$0xff] }
 0x1e7   :  { %11442 = vst [vmem:[#allocation501_spill] sm:$0xff] %v8413_v37  ;;  %v8438_v37 = vld [vmem:[%s10469_s3 + $0xf38] sm:$0xff] }
 0x1e8   :  { %11443 = vst [vmem:[#allocation502_spill] sm:$0xff] %v8418_v33  ;;  %v8443_v33 = vld [vmem:[%s10469_s3 + $0xf40] sm:$0xff] }
 0x1e9   :  { %11444 = vst [vmem:[#allocation503_spill] sm:$0xff] %v8423_v1  ;;  %v8448_v1 = vld [vmem:[%s10469_s3 + $0xf48] sm:$0xff] }
 0x1ea   :  { %11445 = vst [vmem:[#allocation504_spill] sm:$0xff] %v8428_v35  ;;  %v8453_v35 = vld [vmem:[%s10469_s3 + $0xf50] sm:$0xff] }
 0x1eb   :  { %11446 = vst [vmem:[#allocation505_spill] sm:$0xff] %v8433_v3  ;;  %v8458_v3 = vld [vmem:[%s10469_s3 + $0xf58] sm:$0xff] }
 0x1ec   :  { %11447 = vst [vmem:[#allocation506_spill] sm:$0xff] %v8438_v37  ;;  %v8463_v37 = vld [vmem:[%s10469_s3 + $0xf60] sm:$0xff] }
 0x1ed   :  { %11448 = vst [vmem:[#allocation507_spill] sm:$0xff] %v8443_v33  ;;  %v8468_v33 = vld [vmem:[%s10469_s3 + $0xf68] sm:$0xff] }
 0x1ee   :  { %11449 = vst [vmem:[#allocation508_spill] sm:$0xff] %v8448_v1  ;;  %v8473_v1 = vld [vmem:[%s10469_s3 + $0xf70] sm:$0xff] }
 0x1ef   :  { %11450 = vst [vmem:[#allocation509_spill] sm:$0xff] %v8453_v35  ;;  %v8478_v35 = vld [vmem:[%s10469_s3 + $0xf78] sm:$0xff] }
 0x1f0   :  { %11451 = vst [vmem:[#allocation510_spill] sm:$0xff] %v8458_v3  ;;  %v8483_v3 = vld [vmem:[%s10469_s3 + $0xf80] sm:$0xff] }
 0x1f1   :  { %11452 = vst [vmem:[#allocation511_spill] sm:$0xff] %v8463_v37  ;;  %v8488_v37 = vld [vmem:[%s10469_s3 + $0xf88] sm:$0xff] }
 0x1f2   :  { %11453 = vst [vmem:[#allocation512_spill] sm:$0xff] %v8468_v33  ;;  %v8493_v33 = vld [vmem:[%s10469_s3 + $0xf90] sm:$0xff] }
 0x1f3   :  { %11454 = vst [vmem:[#allocation513_spill] sm:$0xff] %v8473_v1  ;;  %v8498_v1 = vld [vmem:[%s10469_s3 + $0xf98] sm:$0xff] }
 0x1f4   :  { %11455 = vst [vmem:[#allocation514_spill] sm:$0xff] %v8478_v35  ;;  %v8503_v35 = vld [vmem:[%s10469_s3 + $0xfa0] sm:$0xff] }
 0x1f5   :  { %11456 = vst [vmem:[#allocation515_spill] sm:$0xff] %v8483_v3  ;;  %v8508_v3 = vld [vmem:[%s10469_s3 + $0xfa8] sm:$0xff] }
 0x1f6   :  { %11457 = vst [vmem:[#allocation516_spill] sm:$0xff] %v8488_v37  ;;  %v8513_v37 = vld [vmem:[%s10469_s3 + $0xfb0] sm:$0xff] }
 0x1f7   :  { %11458 = vst [vmem:[#allocation517_spill] sm:$0xff] %v8493_v33  ;;  %v8518_v33 = vld [vmem:[%s10469_s3 + $0xfb8] sm:$0xff] }
 0x1f8   :  { %11459 = vst [vmem:[#allocation518_spill] sm:$0xff] %v8498_v1  ;;  %v8523_v1 = vld [vmem:[%s10469_s3 + $0xfc0] sm:$0xff] }
 0x1f9   :  { %11460 = vst [vmem:[#allocation519_spill] sm:$0xff] %v8503_v35  ;;  %v8528_v35 = vld [vmem:[%s10469_s3 + $0xfc8] sm:$0xff] }
 0x1fa   :  { %11461 = vst [vmem:[#allocation520_spill] sm:$0xff] %v8508_v3  ;;  %v8533_v3 = vld [vmem:[%s10469_s3 + $0xfd0] sm:$0xff] }
 0x1fb   :  { %11462 = vst [vmem:[#allocation521_spill] sm:$0xff] %v8513_v37  ;;  %v8538_v37 = vld [vmem:[%s10469_s3 + $0xfd8] sm:$0xff] }
 0x1fc   :  { %11463 = vst [vmem:[#allocation522_spill] sm:$0xff] %v8518_v33  ;;  %v8543_v33 = vld [vmem:[%s10469_s3 + $0xfe0] sm:$0xff] }
 0x1fd   :  { %11464 = vst [vmem:[#allocation523_spill] sm:$0xff] %v8523_v1  ;;  %v8548_v1 = vld [vmem:[%s10469_s3 + $0xfe8] sm:$0xff] }
 0x1fe   :  { %11465 = vst [vmem:[#allocation524_spill] sm:$0xff] %v8528_v35  ;;  %v8553_v35 = vld [vmem:[%s10469_s3 + $0xff0] sm:$0xff] }
 0x1ff   :  { %11466 = vst [vmem:[#allocation525_spill] sm:$0xff] %v8533_v3  ;;  %v8558_v3 = vld [vmem:[%s10469_s3 + $0xff8] sm:$0xff] }
 0x200   :  { %11467 = vst [vmem:[#allocation526_spill] sm:$0xff] %v8538_v37 }
 0x201   :  { %11468 = vst [vmem:[#allocation527_spill] sm:$0xff] %v8543_v33 }
 0x202   :  { %11469 = vst [vmem:[#allocation528_spill] sm:$0xff] %v8548_v1 }
 0x203   :  { %11470 = vst [vmem:[#allocation529_spill] sm:$0xff] %v8553_v35 }
 0x204   :  { %11471 = vst [vmem:[#allocation530_spill] sm:$0xff] %v8558_v3 }
 0x205   :  { %1226 = vsyncadd [#allocation3 + $0x7], 8192  ;;  %v8563_v37 = vld [vmem:[%s10471_s5] sm:$0xff]  ;;  %v8568_v1 = vld [vmem:[%s10471_s5 + $0x8] sm:$0xff]  ;;  %s1386_s3 = sld [smem:[#allocation9]] }
 0x206   :  { %11472 = vst [vmem:[#allocation531_spill] sm:$0xff] %v8563_v37  ;;  %v8573_v33 = vld [vmem:[%s10471_s5 + $0x10] sm:$0xff]  ;;  %v8578_v3 = vld [vmem:[%s10471_s5 + $0x18] sm:$0xff]  ;;  %v8583_v35 = vld [vmem:[%s10471_s5 + $0x20] sm:$0xff] }
 0x207   :  { %11473 = vst [vmem:[#allocation532_spill] sm:$0xff] %v8568_v1  ;;  %v8588_v37 = vld [vmem:[%s10471_s5 + $0x28] sm:$0xff]  ;;  %v8593_v1 = vld [vmem:[%s10471_s5 + $0x30] sm:$0xff] }
 0x208   :  { %11474 = vst [vmem:[#allocation533_spill] sm:$0xff] %v8573_v33  ;;  %v8598_v33 = vld [vmem:[%s10471_s5 + $0x38] sm:$0xff] }
 0x209   :  { %11475 = vst [vmem:[#allocation534_spill] sm:$0xff] %v8578_v3  ;;  %v8603_v3 = vld [vmem:[%s10471_s5 + $0x40] sm:$0xff] }
 0x20a   :  { %11476 = vst [vmem:[#allocation535_spill] sm:$0xff] %v8583_v35  ;;  %v8608_v35 = vld [vmem:[%s10471_s5 + $0x48] sm:$0xff] }
 0x20b   :  { %11477 = vst [vmem:[#allocation536_spill] sm:$0xff] %v8588_v37  ;;  %v8613_v37 = vld [vmem:[%s10471_s5 + $0x50] sm:$0xff] }
 0x20c   :  { %11478 = vst [vmem:[#allocation537_spill] sm:$0xff] %v8593_v1  ;;  %v8618_v1 = vld [vmem:[%s10471_s5 + $0x58] sm:$0xff] }
 0x20d   :  { %11479 = vst [vmem:[#allocation538_spill] sm:$0xff] %v8598_v33  ;;  %v8623_v33 = vld [vmem:[%s10471_s5 + $0x60] sm:$0xff] }
 0x20e   :  { %11480 = vst [vmem:[#allocation539_spill] sm:$0xff] %v8603_v3  ;;  %v8628_v3 = vld [vmem:[%s10471_s5 + $0x68] sm:$0xff] }
 0x20f   :  { %11481 = vst [vmem:[#allocation540_spill] sm:$0xff] %v8608_v35  ;;  %v8633_v35 = vld [vmem:[%s10471_s5 + $0x70] sm:$0xff] }
 0x210   :  { %11482 = vst [vmem:[#allocation541_spill] sm:$0xff] %v8613_v37  ;;  %v8638_v37 = vld [vmem:[%s10471_s5 + $0x78] sm:$0xff] }
 0x211   :  { %11483 = vst [vmem:[#allocation542_spill] sm:$0xff] %v8618_v1  ;;  %v8643_v1 = vld [vmem:[%s10471_s5 + $0x80] sm:$0xff] }
 0x212   :  { %11484 = vst [vmem:[#allocation543_spill] sm:$0xff] %v8623_v33  ;;  %v8648_v33 = vld [vmem:[%s10471_s5 + $0x88] sm:$0xff] }
 0x213   :  { %11485 = vst [vmem:[#allocation544_spill] sm:$0xff] %v8628_v3  ;;  %v8653_v3 = vld [vmem:[%s10471_s5 + $0x90] sm:$0xff] }
 0x214   :  { %11486 = vst [vmem:[#allocation545_spill] sm:$0xff] %v8633_v35  ;;  %v8658_v35 = vld [vmem:[%s10471_s5 + $0x98] sm:$0xff] }
 0x215   :  { %11487 = vst [vmem:[#allocation546_spill] sm:$0xff] %v8638_v37  ;;  %v8663_v37 = vld [vmem:[%s10471_s5 + $0xa0] sm:$0xff] }
 0x216   :  { %11488 = vst [vmem:[#allocation547_spill] sm:$0xff] %v8643_v1  ;;  %v8668_v1 = vld [vmem:[%s10471_s5 + $0xa8] sm:$0xff] }
 0x217   :  { %11489 = vst [vmem:[#allocation548_spill] sm:$0xff] %v8648_v33  ;;  %v8673_v33 = vld [vmem:[%s10471_s5 + $0xb0] sm:$0xff] }
 0x218   :  { %11490 = vst [vmem:[#allocation549_spill] sm:$0xff] %v8653_v3  ;;  %v8678_v3 = vld [vmem:[%s10471_s5 + $0xb8] sm:$0xff] }
 0x219   :  { %11491 = vst [vmem:[#allocation550_spill] sm:$0xff] %v8658_v35  ;;  %v8683_v35 = vld [vmem:[%s10471_s5 + $0xc0] sm:$0xff] }
 0x21a   :  { %11492 = vst [vmem:[#allocation551_spill] sm:$0xff] %v8663_v37  ;;  %v8688_v37 = vld [vmem:[%s10471_s5 + $0xc8] sm:$0xff] }
 0x21b   :  { %11493 = vst [vmem:[#allocation552_spill] sm:$0xff] %v8668_v1  ;;  %v8693_v1 = vld [vmem:[%s10471_s5 + $0xd0] sm:$0xff] }
 0x21c   :  { %11494 = vst [vmem:[#allocation553_spill] sm:$0xff] %v8673_v33  ;;  %v8698_v33 = vld [vmem:[%s10471_s5 + $0xd8] sm:$0xff] }
 0x21d   :  { %11495 = vst [vmem:[#allocation554_spill] sm:$0xff] %v8678_v3  ;;  %v8703_v3 = vld [vmem:[%s10471_s5 + $0xe0] sm:$0xff] }
 0x21e   :  { %11496 = vst [vmem:[#allocation555_spill] sm:$0xff] %v8683_v35  ;;  %v8708_v35 = vld [vmem:[%s10471_s5 + $0xe8] sm:$0xff] }
 0x21f   :  { %11497 = vst [vmem:[#allocation556_spill] sm:$0xff] %v8688_v37  ;;  %v8713_v37 = vld [vmem:[%s10471_s5 + $0xf0] sm:$0xff] }
 0x220   :  { %11498 = vst [vmem:[#allocation557_spill] sm:$0xff] %v8693_v1  ;;  %v8718_v1 = vld [vmem:[%s10471_s5 + $0xf8] sm:$0xff] }
 0x221   :  { %11499 = vst [vmem:[#allocation558_spill] sm:$0xff] %v8698_v33  ;;  %v8723_v33 = vld [vmem:[%s10471_s5 + $0x100] sm:$0xff] }
 0x222   :  { %11500 = vst [vmem:[#allocation559_spill] sm:$0xff] %v8703_v3  ;;  %v8728_v3 = vld [vmem:[%s10471_s5 + $0x108] sm:$0xff] }
 0x223   :  { %11501 = vst [vmem:[#allocation560_spill] sm:$0xff] %v8708_v35  ;;  %v8733_v35 = vld [vmem:[%s10471_s5 + $0x110] sm:$0xff] }
 0x224   :  { %11502 = vst [vmem:[#allocation561_spill] sm:$0xff] %v8713_v37  ;;  %v8738_v37 = vld [vmem:[%s10471_s5 + $0x118] sm:$0xff] }
 0x225   :  { %11503 = vst [vmem:[#allocation562_spill] sm:$0xff] %v8718_v1  ;;  %v8743_v1 = vld [vmem:[%s10471_s5 + $0x120] sm:$0xff] }
 0x226   :  { %11504 = vst [vmem:[#allocation563_spill] sm:$0xff] %v8723_v33  ;;  %v8748_v33 = vld [vmem:[%s10471_s5 + $0x128] sm:$0xff] }
 0x227   :  { %11505 = vst [vmem:[#allocation564_spill] sm:$0xff] %v8728_v3  ;;  %v8753_v3 = vld [vmem:[%s10471_s5 + $0x130] sm:$0xff] }
 0x228   :  { %11506 = vst [vmem:[#allocation565_spill] sm:$0xff] %v8733_v35  ;;  %v8758_v35 = vld [vmem:[%s10471_s5 + $0x138] sm:$0xff] }
 0x229   :  { %11507 = vst [vmem:[#allocation566_spill] sm:$0xff] %v8738_v37  ;;  %v8763_v37 = vld [vmem:[%s10471_s5 + $0x140] sm:$0xff] }
 0x22a   :  { %11508 = vst [vmem:[#allocation567_spill] sm:$0xff] %v8743_v1  ;;  %v8768_v1 = vld [vmem:[%s10471_s5 + $0x148] sm:$0xff] }
 0x22b   :  { %11509 = vst [vmem:[#allocation568_spill] sm:$0xff] %v8748_v33  ;;  %v8773_v33 = vld [vmem:[%s10471_s5 + $0x150] sm:$0xff] }
 0x22c   :  { %11510 = vst [vmem:[#allocation569_spill] sm:$0xff] %v8753_v3  ;;  %v8778_v3 = vld [vmem:[%s10471_s5 + $0x158] sm:$0xff] }
 0x22d   :  { %11511 = vst [vmem:[#allocation570_spill] sm:$0xff] %v8758_v35  ;;  %v8783_v35 = vld [vmem:[%s10471_s5 + $0x160] sm:$0xff] }
 0x22e   :  { %11512 = vst [vmem:[#allocation571_spill] sm:$0xff] %v8763_v37  ;;  %v8788_v37 = vld [vmem:[%s10471_s5 + $0x168] sm:$0xff] }
 0x22f   :  { %11513 = vst [vmem:[#allocation572_spill] sm:$0xff] %v8768_v1  ;;  %v8793_v1 = vld [vmem:[%s10471_s5 + $0x170] sm:$0xff] }
 0x230   :  { %11514 = vst [vmem:[#allocation573_spill] sm:$0xff] %v8773_v33  ;;  %v8798_v33 = vld [vmem:[%s10471_s5 + $0x178] sm:$0xff] }
 0x231   :  { %11515 = vst [vmem:[#allocation574_spill] sm:$0xff] %v8778_v3  ;;  %v8803_v3 = vld [vmem:[%s10471_s5 + $0x180] sm:$0xff] }
 0x232   :  { %11516 = vst [vmem:[#allocation575_spill] sm:$0xff] %v8783_v35  ;;  %v8808_v35 = vld [vmem:[%s10471_s5 + $0x188] sm:$0xff] }
 0x233   :  { %11517 = vst [vmem:[#allocation576_spill] sm:$0xff] %v8788_v37  ;;  %v8813_v37 = vld [vmem:[%s10471_s5 + $0x190] sm:$0xff] }
 0x234   :  { %11518 = vst [vmem:[#allocation577_spill] sm:$0xff] %v8793_v1  ;;  %v8818_v1 = vld [vmem:[%s10471_s5 + $0x198] sm:$0xff] }
 0x235   :  { %11519 = vst [vmem:[#allocation578_spill] sm:$0xff] %v8798_v33  ;;  %v8823_v33 = vld [vmem:[%s10471_s5 + $0x1a0] sm:$0xff] }
 0x236   :  { %11520 = vst [vmem:[#allocation579_spill] sm:$0xff] %v8803_v3  ;;  %v8828_v3 = vld [vmem:[%s10471_s5 + $0x1a8] sm:$0xff] }
 0x237   :  { %11521 = vst [vmem:[#allocation580_spill] sm:$0xff] %v8808_v35  ;;  %v8833_v35 = vld [vmem:[%s10471_s5 + $0x1b0] sm:$0xff] }
 0x238   :  { %11522 = vst [vmem:[#allocation581_spill] sm:$0xff] %v8813_v37  ;;  %v8838_v37 = vld [vmem:[%s10471_s5 + $0x1b8] sm:$0xff] }
 0x239   :  { %11523 = vst [vmem:[#allocation582_spill] sm:$0xff] %v8818_v1  ;;  %v8843_v1 = vld [vmem:[%s10471_s5 + $0x1c0] sm:$0xff] }
 0x23a   :  { %11524 = vst [vmem:[#allocation583_spill] sm:$0xff] %v8823_v33  ;;  %v8848_v33 = vld [vmem:[%s10471_s5 + $0x1c8] sm:$0xff] }
 0x23b   :  { %11525 = vst [vmem:[#allocation584_spill] sm:$0xff] %v8828_v3  ;;  %v8853_v3 = vld [vmem:[%s10471_s5 + $0x1d0] sm:$0xff] }
 0x23c   :  { %11526 = vst [vmem:[#allocation585_spill] sm:$0xff] %v8833_v35  ;;  %v8858_v35 = vld [vmem:[%s10471_s5 + $0x1d8] sm:$0xff] }
 0x23d   :  { %11527 = vst [vmem:[#allocation586_spill] sm:$0xff] %v8838_v37  ;;  %v8863_v37 = vld [vmem:[%s10471_s5 + $0x1e0] sm:$0xff] }
 0x23e   :  { %11528 = vst [vmem:[#allocation587_spill] sm:$0xff] %v8843_v1  ;;  %v8868_v1 = vld [vmem:[%s10471_s5 + $0x1e8] sm:$0xff] }
 0x23f   :  { %11529 = vst [vmem:[#allocation588_spill] sm:$0xff] %v8848_v33  ;;  %v8873_v33 = vld [vmem:[%s10471_s5 + $0x1f0] sm:$0xff] }
 0x240   :  { %11530 = vst [vmem:[#allocation589_spill] sm:$0xff] %v8853_v3  ;;  %v8878_v3 = vld [vmem:[%s10471_s5 + $0x1f8] sm:$0xff] }
 0x241   :  { %11531 = vst [vmem:[#allocation590_spill] sm:$0xff] %v8858_v35 }
 0x242   :  { %11532 = vst [vmem:[#allocation591_spill] sm:$0xff] %v8863_v37 }
 0x243   :  { %11533 = vst [vmem:[#allocation592_spill] sm:$0xff] %v8868_v1 }
 0x244   :  { %11534 = vst [vmem:[#allocation593_spill] sm:$0xff] %v8873_v33 }
 0x245   :  { %11535 = vst [vmem:[#allocation594_spill] sm:$0xff] %v8878_v3 }
 0x246   :  { %1370 = vsyncadd [#allocation5], 8192  ;;  %s1387_s14 = sld [smem:[#allocation6]]  ;;  %v8883_v35 = vld [vmem:[%s10466_s0] ss:$4 sm:$0x3]  ;;  %v1391_v7 = vstv %s1386_s3 }
 0x247   :  { %s5786_s15 = sld [smem:[#allocation6 + $0x1]]  ;;  %v8888_v37 = vld [vmem:[%s10466_s0 + $0x8] ss:$4 sm:$0x3]  ;;  %vm1421_vm0 = vcmask 1041408  }
 0x248   :  { %s5787_s16 = sld [smem:[#allocation6 + $0x2]]  ;;  %v8893_v1 = vld [vmem:[%s10466_s0 + $0x1] ss:$4 sm:$0x3] }
 0x249   :  { %s5788_s17 = sld [smem:[#allocation6 + $0x3]]  ;;  %v8898_v33 = vld [vmem:[%s10466_s0 + $0x9] ss:$4 sm:$0x3] }
 0x24a   :  { %v8903_v3 = vld [vmem:[%s10466_s0 + $0x2] ss:$4 sm:$0x3]  ;;  %v8908_v5 = vld [vmem:[%s10466_s0 + $0xa] ss:$4 sm:$0x3] }
 0x24b   :  { %v8915_v11 = vld [vmem:[%s10466_s0 + $0x3] ss:$4 sm:$0x3]  ;;  %v8920_v45 = vld [vmem:[%s10466_s0 + $0xb] ss:$4 sm:$0x3] }
 0x24c   :  { %v1388_v39 = vstv %s1387_s14  ;;  %s5790_s0 = sld [smem:[#allocation6 + $0x80]] }
 0x24d   :  { %v1389_v41 = vmul.f32 %v1388_v39, %v8883_v35  ;;  %v1390_v9 = vmul.f32 %v8888_v37, %v1388_v39  ;;  %v1395_v43 = vstv %s5786_s15  ;;  %s5789_s10 = sld [smem:[#allocation9 + $0x1]] }
 0x24e   :  { %v1396_v13 = vmul.f32 %v8893_v1, %v1395_v43  ;;  %v1397_v47 = vmul.f32 %v8898_v33, %v1395_v43  ;;  %v1401_v15 = vstv %s5787_s16  ;;  %s5791_s11 = sld [smem:[#allocation6 + $0x81]] }
 0x24f   :  { %v1392_v49 = vadd.f32 %v1391_v7, %v1389_v41  ;;  %v1393_v17 = vadd.f32 %v1391_v7, %v1390_v9  ;;  %v1402_v39 = vmul.f32 %v8903_v3, %v1401_v15  ;;  %v1403_v51 = vmul.f32 %v8908_v5, %v1401_v15  ;;  %s5792_s12 = sld [smem:[#allocation6 + $0x82]] }
 0x250   :  { %v1407_v19 = vstv %s5788_s17  ;;  %s5793_s13 = sld [smem:[#allocation6 + $0x83]] }
 0x251   :  { %v1398_v53 = vadd.f32 %v1396_v13, %v1392_v49  ;;  %v1399_v21 = vadd.f32 %v1397_v47, %v1393_v17  ;;  %v1408_v55 = vmul.f32 %v8915_v11, %v1407_v19  ;;  %v1409_v23 = vmul.f32 %v8920_v45, %v1407_v19  ;;  %s5795_s3 = sld [smem:[#allocation6 + $0x100]] }
 0x252   :  { %v5942_v13 = vmov 256.0   ;;  %s5794_s14 = sld [smem:[#allocation9 + $0x2]] }
 0x253   :  { %v1404_v57 = vadd.f32 %v1402_v39, %v1398_v53  ;;  %v1405_v25 = vadd.f32 %v1403_v51, %v1399_v21  ;;  %5838 = vrcp.f32 %v5942_v13  ;;  %s5796_s15 = sld [smem:[#allocation6 + $0x101]] }
 0x254   :  { %s5797_s16 = sld [smem:[#allocation6 + $0x102]] }
 0x255   :  { %v1410_v59 = vadd.f32 %v1408_v55, %v1404_v57  ;;  %v1411_v27 = vadd.f32 %v1409_v23, %v1405_v25  ;;  %v1481_v25 = vstv %s5790_s0  ;;  %v1484_v55 = vstv %s5789_s10  ;;  %s5798_s17 = sld [smem:[#allocation6 + $0x103]] }
 0x256   :  { %v1482_v51 = vmul.f32 %v1481_v25, %v8883_v35  ;;  %v1483_v53 = vmul.f32 %v8888_v37, %v1481_v25  ;;  %v1488_v57 = vstv %s5791_s11  ;;  %v1494_v13 = vstv %s5792_s12  ;;  %s5800_s18 = sld [smem:[#allocation6 + $0x180]] }
 0x257   :  { %1414 = vst [vmem:[#allocation1] ss:$9 sm:$0xff] %v1410_v59  ;;  %v1495_v25 = vmul.f32 %v8903_v3, %v1494_v13  ;;  %v1500_v61 = vstv %s5793_s13  ;;  %s5799_s1 = sld [smem:[#allocation9 + $0x3]] }
 0x258   :  { %1416 = vst [vmem:[#allocation1 + $0x1] ss:$9 sm:$0xff] %v1411_v27  ;;  %s5801_s19 = sld [smem:[#allocation6 + $0x181]] }
 0x259   :  { %v5839_v17 = vpop.eup %5838  ;;  %s5802_s2 = sld [smem:[#allocation6 + $0x182]] }
 0x25a   :  { %v1428_v47 = vmul.f32 256.0, %v5839_v17  ;;  %vm1432_vm1 = vweird.f32 %v5839_v17  ;;  %s5803_s20 = sld [smem:[#allocation6 + $0x183]] }
 0x25b   :  { %s5805_s21 = sld [smem:[#allocation6 + $0x200]] }
 0x25c   :  { %v1429_v19 = vsub.f32 1.0, %v1428_v47  ;;  %s5804_s5 = sld [smem:[#allocation9 + $0x4]] }
 0x25d   :  { %s5806_s22 = sld [smem:[#allocation6 + $0x201]] }
 0x25e   :  { %v1430_v21 = vmul.f32 %v5839_v17, %v1429_v19  ;;  %s5807_s23 = sld [smem:[#allocation6 + $0x202]] }
 0x25f   :  { %v1417_v41 = vld [vmem:[#allocation1] sm:$0xff]  ;;  %v1418_v7 = vld [vmem:[#allocation1 + $0x9] sm:$0xff]  ;;  %s5808_s24 = sld [smem:[#allocation6 + $0x203]] }
 0x260   :  { %v1422_v9 = vsel %vm1421_vm0, %v1417_v41, 0.0  ;;  %v1423_v15 = vsel %vm1421_vm0, %v1418_v7, 0.0  ;;  %v1431_v23 = vadd.f32 %v5839_v17, %v1430_v21  ;;  %v1485_v7 = vadd.f32 %v1484_v55, %v1482_v51  ;;  %s5810_s25 = sld [smem:[#allocation6 + $0x280]] }
 0x261   :  { %v1424_v43 = vadd.f32 %v1423_v15, %v1422_v9  ;;  %v1489_v9 = vmul.f32 %v8893_v1, %v1488_v57  ;;  %v1490_v15 = vmul.f32 %v8898_v33, %v1488_v57  ;;  %v1502_v57 = vmul.f32 %v8920_v45, %v1500_v61  ;;  %s5809_s26 = sld [smem:[#allocation9 + $0x5]] }
 0x262   :  { %v8930_v49 = vsel %vm1432_vm1, %v5839_v17, %v1431_v23  ;;  %s5811_s27 = sld [smem:[#allocation6 + $0x281]] }
 0x263   :  { %1425 = vadd.xlane.f32.xlu0 %v1424_v43  ;;  %v1486_v43 = vadd.f32 %v1484_v55, %v1483_v53  ;;  %v1491_v23 = vadd.f32 %v1489_v9, %v1485_v7  ;;  %s5812_s28 = sld [smem:[#allocation6 + $0x282]] }
 0x264   :  { %s5813_s29 = sld [smem:[#allocation6 + $0x283]] }
 0x265   :  { %v1492_v29 = vadd.f32 %v1490_v15, %v1486_v43  ;;  %v1497_v55 = vadd.f32 %v1495_v25, %v1491_v23  ;;  %s5815_s30 = sld [smem:[#allocation6 + $0x300]] }
 0x266   :  { %s5814_s0 = sld [smem:[#allocation9 + $0x6]] }
 0x267   :  { %s5816_s10 = sld [smem:[#allocation6 + $0x301]] }
 0x268   :  { %s5817_s11 = sld [smem:[#allocation6 + $0x302]] }
 0x269   :  { %s5818_s12 = sld [smem:[#allocation6 + $0x303]] }
 0x26a   :  { %s5820_s13 = sld [smem:[#allocation6 + $0x380]] }
 0x2d6   :  { %v1426_v39 = vpop.xlane.xlu0 %1425 }
 0x2d7   :  { %v1434_v41 = vmul.f32 %v8930_v49, %v1426_v39  ;;  %v1496_v39 = vmul.f32 %v8908_v5, %v1494_v13 }
 0x2d9   :  { %v1436_v47 = vperm.slane %v1434_v41, 0  ;;  %v1437_v17 = vperm.slane %v1434_v41, 1 }
 0x2db   :  { %v8937_v19 = vsub.f32 %v1410_v59, %v1436_v47  ;;  %v8939_v21 = vsub.f32 %v1411_v27, %v1437_v17  ;;  %v1501_v59 = vmul.f32 %v8915_v11, %v1500_v61  ;;  %v1498_v27 = vadd.f32 %v1496_v39, %v1492_v29 }
 0x2dc   :  { %v1566_v29 = vstv %s5795_s3  ;;  %v1569_v39 = vstv %s5794_s14  ;;  %s5819_s3 = sld [smem:[#allocation9 + $0x7]] }
 0x2dd   :  { %v1442_v51 = vmul.f32 %v8937_v19, %v8937_v19  ;;  %v1443_v53 = vmul.f32 %v8939_v21, %v8939_v21  ;;  %v1503_v41 = vadd.f32 %v1501_v59, %v1497_v55  ;;  %v1504_v7 = vadd.f32 %v1502_v57, %v1498_v27  ;;  %s5821_s14 = sld [smem:[#allocation6 + $0x381]] }
 0x2de   :  { %v1567_v61 = vmul.f32 %v1566_v29, %v8883_v35  ;;  %v1568_v25 = vmul.f32 %v8888_v37, %v1566_v29  ;;  %v1579_v57 = vstv %s5797_s16  ;;  %s5823_s16 = sld [smem:[#allocation6 + $0x383]] }
 0x2df   :  { %1446 = vst [vmem:[#allocation1] ss:$9 sm:$0xff] %v1442_v51  ;;  %v1573_v51 = vstv %s5796_s15  ;;  %v1580_v31 = vmul.f32 %v8903_v3, %v1579_v57  ;;  %v1581_v32 = vmul.f32 %v8908_v5, %v1579_v57  ;;  %s5822_s15 = sld [smem:[#allocation6 + $0x382]] }
 0x2e0   :  { %1448 = vst [vmem:[#allocation1 + $0x1] ss:$9 sm:$0xff] %v1443_v53  ;;  %v1570_v59 = vadd.f32 %v1569_v39, %v1567_v61  ;;  %v1574_v27 = vmul.f32 %v8893_v1, %v1573_v51 }
 0x2e2   :  { %v1576_v29 = vadd.f32 %v1574_v27, %v1570_v59 }
 0x2e7   :  { %v8949_v9 = vld [vmem:[#allocation1] sm:$0xff]  ;;  %v8951_v15 = vld [vmem:[#allocation1 + $0x9] sm:$0xff] }
 0x2e8   :  { %1507 = vst [vmem:[#allocation1] ss:$9 sm:$0xff] %v1503_v41 }
 0x2e9   :  { %1509 = vst [vmem:[#allocation1 + $0x1] ss:$9 sm:$0xff] %v1504_v7 }
 0x2f0   :  { %v1510_v43 = vld [vmem:[#allocation1] sm:$0xff]  ;;  %v1511_v13 = vld [vmem:[#allocation1 + $0x9] sm:$0xff] }
 0x2f1   :  { %v1514_v47 = vsel %vm1421_vm0, %v1510_v43, 0.0  ;;  %v1515_v17 = vsel %vm1421_vm0, %v1511_v13, 0.0  ;;  %v1571_v43 = vadd.f32 %v1569_v39, %v1568_v25  ;;  %v1575_v13 = vmul.f32 %v8898_v33, %v1573_v51 }
 0x2f2   :  { %v1516_v23 = vadd.f32 %v1515_v17, %v1514_v47  ;;  %v1582_v39 = vadd.f32 %v1580_v31, %v1576_v29 }
 0x2f3   :  { %v1577_v0 = vadd.f32 %v1575_v13, %v1571_v43 }
 0x2f4   :  { %1517 = vadd.xlane.f32.xlu0 %v1516_v23 }
 0x367   :  { %v1518_v53 = vpop.xlane.xlu0 %1517 }
 0x368   :  { %v1519_v55 = vmul.f32 %v1518_v53, %v8930_v49  ;;  %v1585_v53 = vstv %s5798_s17 }
 0x369   :  { %v1587_v51 = vmul.f32 %v8920_v45, %v1585_v53 }
 0x36a   :  { %v1521_v47 = vperm.slane %v1519_v55, 0  ;;  %v1522_v17 = vperm.slane %v1519_v55, 1 }
 0x36c   :  { %v8960_v23 = vsub.f32 %v1503_v41, %v1521_v47  ;;  %v8962_v63 = vsub.f32 %v1504_v7, %v1522_v17  ;;  %v1586_v41 = vmul.f32 %v8915_v11, %v1585_v53  ;;  %v1583_v7 = vadd.f32 %v1581_v32, %v1577_v0 }
 0x36d   :  { %v1651_v0 = vstv %s5800_s18  ;;  %v1654_v53 = vstv %s5799_s1 }
 0x36e   :  { %v1527_v61 = vmul.f32 %v8960_v23, %v8960_v23  ;;  %v1528_v25 = vmul.f32 %v8962_v63, %v8962_v63  ;;  %v1588_v55 = vadd.f32 %v1586_v41, %v1582_v39  ;;  %v1589_v59 = vadd.f32 %v1587_v51, %v1583_v7 }
 0x36f   :  { %v1652_v32 = vmul.f32 %v1651_v0, %v8883_v35  ;;  %v1653_v29 = vmul.f32 %v8888_v37, %v1651_v0 }
 0x370   :  { %1531 = vst [vmem:[#allocation1] ss:$9 sm:$0xff] %v1527_v61  ;;  %v1658_v61 = vstv %s5801_s19 }
 0x371   :  { %1533 = vst [vmem:[#allocation1 + $0x1] ss:$9 sm:$0xff] %v1528_v25  ;;  %v1655_v41 = vadd.f32 %v1654_v53, %v1652_v32  ;;  %v1656_v7 = vadd.f32 %v1654_v53, %v1653_v29  ;;  %v1659_v51 = vmul.f32 %v8893_v1, %v1658_v61  ;;  %v1670_v53 = vstv %s5803_s20 }
 0x373   :  { %v1661_v0 = vadd.f32 %v1659_v51, %v1655_v41 }
 0x378   :  { %v8972_v27 = vld [vmem:[#allocation1] sm:$0xff]  ;;  %v8974_v57 = vld [vmem:[#allocation1 + $0x9] sm:$0xff] }
 0x379   :  { %1592 = vst [vmem:[#allocation1] ss:$9 sm:$0xff] %v1588_v55 }
 0x37a   :  { %1594 = vst [vmem:[#allocation1 + $0x1] ss:$9 sm:$0xff] %v1589_v59 }
 0x381   :  { %v1595_v43 = vld [vmem:[#allocation1] sm:$0xff]  ;;  %v1596_v13 = vld [vmem:[#allocation1 + $0x9] sm:$0xff] }
 0x382   :  { %v1599_v47 = vsel %vm1421_vm0, %v1595_v43, 0.0  ;;  %v1600_v31 = vsel %vm1421_vm0, %v1596_v13, 0.0  ;;  %v1660_v43 = vmul.f32 %v8898_v33, %v1658_v61 }
 0x383   :  { %v1601_v17 = vadd.f32 %v1600_v31, %v1599_v47  ;;  %v1664_v31 = vstv %s5802_s2 }
 0x384   :  { %v1662_v2 = vadd.f32 %v1660_v43, %v1656_v7  ;;  %v1665_v36 = vmul.f32 %v8903_v3, %v1664_v31  ;;  %v1666_v29 = vmul.f32 %v8908_v5, %v1664_v31 }
 0x385   :  { %1602 = vadd.xlane.f32.xlu1 %v1601_v17 }
 0x386   :  { %v1667_v61 = vadd.f32 %v1665_v36, %v1661_v0 }
 0x3f8   :  { %v1603_v25 = vpop.xlane.xlu1 %1602 }
 0x3f9   :  { %v1604_v39 = vmul.f32 %v1603_v25, %v8930_v49 }
 0x3fb   :  { %v1606_v13 = vperm.slane %v1604_v39, 0  ;;  %v1607_v47 = vperm.slane %v1604_v39, 1  ;;  %v1672_v39 = vmul.f32 %v8920_v45, %v1670_v53 }
 0x3fd   :  { %v8983_v17 = vsub.f32 %v1588_v55, %v1606_v13  ;;  %v8985_v34 = vsub.f32 %v1589_v59, %v1607_v47  ;;  %v1671_v55 = vmul.f32 %v8915_v11, %v1670_v53  ;;  %v1668_v59 = vadd.f32 %v1666_v29, %v1662_v2 }
 0x3fe   :  { %v1736_v2 = vstv %s5805_s21  ;;  %v1739_v29 = vstv %s5804_s5  ;;  %v1743_v53 = vstv %s5806_s22 }
 0x3ff   :  { %v1612_v25 = vmul.f32 %v8983_v17, %v8983_v17  ;;  %v1613_v32 = vmul.f32 %v8985_v34, %v8985_v34  ;;  %v1673_v41 = vadd.f32 %v1671_v55, %v1667_v61  ;;  %v1674_v7 = vadd.f32 %v1672_v39, %v1668_v59 }
 0x400   :  { %v1737_v0 = vmul.f32 %v1736_v2, %v8883_v35 }
 0x401   :  { %1616 = vst [vmem:[#allocation1] ss:$9 sm:$0xff] %v1612_v25 }
 0x402   :  { %1618 = vst [vmem:[#allocation1 + $0x1] ss:$9 sm:$0xff] %v1613_v32  ;;  %v1738_v32 = vmul.f32 %v8888_v37, %v1736_v2  ;;  %v1740_v59 = vadd.f32 %v1739_v29, %v1737_v0 }
 0x404   :  { %v1741_v39 = vadd.f32 %v1739_v29, %v1738_v32  ;;  %v1755_v29 = vstv %s5808_s24 }
 0x409   :  { %v8995_v51 = vld [vmem:[#allocation1] sm:$0xff]  ;;  %v8997_v43 = vld [vmem:[#allocation1 + $0x9] sm:$0xff] }
 0x40a   :  { %1677 = vst [vmem:[#allocation1] ss:$9 sm:$0xff] %v1673_v41 }
 0x40b   :  { %1679 = vst [vmem:[#allocation1 + $0x1] ss:$9 sm:$0xff] %v1674_v7 }
 0x412   :  { %v1680_v13 = vld [vmem:[#allocation1] sm:$0xff]  ;;  %v1681_v47 = vld [vmem:[#allocation1 + $0x9] sm:$0xff] }
 0x413   :  { %v1684_v31 = vsel %vm1421_vm0, %v1680_v13, 0.0  ;;  %v1685_v25 = vsel %vm1421_vm0, %v1681_v47, 0.0  ;;  %v1744_v13 = vmul.f32 %v8893_v1, %v1743_v53  ;;  %v1745_v47 = vmul.f32 %v8898_v33, %v1743_v53 }
 0x414   :  { %v1686_v36 = vadd.f32 %v1685_v25, %v1684_v31 }
 0x415   :  { %v1746_v2 = vadd.f32 %v1744_v13, %v1740_v59  ;;  %v1747_v6 = vadd.f32 %v1745_v47, %v1741_v39 }
 0x416   :  { %1687 = vadd.xlane.f32.xlu1 %v1686_v36  ;;  %v1749_v36 = vstv %s5807_s23 }
 0x417   :  { %v1750_v40 = vmul.f32 %v8903_v3, %v1749_v36  ;;  %v1751_v32 = vmul.f32 %v8908_v5, %v1749_v36 }
 0x419   :  { %v1752_v53 = vadd.f32 %v1750_v40, %v1746_v2 }
 0x489   :  { %v1688_v61 = vpop.xlane.xlu1 %1687 }
 0x48a   :  { %v1689_v55 = vmul.f32 %v1688_v61, %v8930_v49 }
 0x48c   :  { %v1691_v31 = vperm.slane %v1689_v55, 0  ;;  %v1692_v25 = vperm.slane %v1689_v55, 1  ;;  %v1757_v55 = vmul.f32 %v8920_v45, %v1755_v29 }
 0x48e   :  { %v9006_v4 = vsub.f32 %v1673_v41, %v1691_v31  ;;  %v9008_v38 = vsub.f32 %v1674_v7, %v1692_v25  ;;  %v1756_v41 = vmul.f32 %v8915_v11, %v1755_v29  ;;  %v1753_v7 = vadd.f32 %v1751_v32, %v1747_v6 }
 0x48f   :  { %v1821_v6 = vstv %s5810_s25  ;;  %v1828_v32 = vstv %s5811_s27 }
 0x490   :  { %v1697_v61 = vmul.f32 %v9006_v4, %v9006_v4  ;;  %v1698_v0 = vmul.f32 %v9008_v38, %v9008_v38  ;;  %v1758_v59 = vadd.f32 %v1756_v41, %v1752_v53  ;;  %v1759_v39 = vadd.f32 %v1757_v55, %v1753_v7 }
 0x491   :  { %v1822_v40 = vmul.f32 %v1821_v6, %v8883_v35  ;;  %v1823_v2 = vmul.f32 %v8888_v37, %v1821_v6  ;;  %v1830_v55 = vmul.f32 %v8898_v33, %v1828_v32 }
 0x492   :  { %1701 = vst [vmem:[#allocation1] ss:$9 sm:$0xff] %v1697_v61 }
 0x493   :  { %1703 = vst [vmem:[#allocation1 + $0x1] ss:$9 sm:$0xff] %v1698_v0  ;;  %v1824_v0 = vstv %s5809_s26 }
 0x494   :  { %v1825_v41 = vadd.f32 %v1824_v0, %v1822_v40  ;;  %v1826_v7 = vadd.f32 %v1824_v0, %v1823_v2  ;;  %v1840_v0 = vstv %s5813_s29 }
 0x496   :  { %v1832_v10 = vadd.f32 %v1830_v55, %v1826_v7 }
 0x49a   :  { %v1704_v13 = vld [vmem:[#allocation1] sm:$0xff]  ;;  %v1705_v47 = vld [vmem:[#allocation1 + $0x9] sm:$0xff] }
 0x49b   :  { %1762 = vst [vmem:[#allocation1] ss:$9 sm:$0xff] %v1758_v59 }
 0x49c   :  { %1764 = vst [vmem:[#allocation1 + $0x1] ss:$9 sm:$0xff] %v1759_v39 }
 0x4a3   :  { %v1765_v31 = vld [vmem:[#allocation1] sm:$0xff]  ;;  %v1766_v25 = vld [vmem:[#allocation1 + $0x9] sm:$0xff] }
 0x4a4   :  { %v1769_v8 = vsel %vm1421_vm0, %v1765_v31, 0.0  ;;  %v1770_v36 = vsel %vm1421_vm0, %v1766_v25, 0.0 }
 0x4a5   :  { %v1771_v61 = vadd.f32 %v1770_v36, %v1769_v8  ;;  %v1829_v8 = vmul.f32 %v8893_v1, %v1828_v32  ;;  %v1834_v36 = vstv %s5812_s28 }
 0x4a6   :  { %v1835_v44 = vmul.f32 %v8903_v3, %v1834_v36  ;;  %v1836_v2 = vmul.f32 %v8908_v5, %v1834_v36 }
 0x4a7   :  { %1772 = vadd.xlane.f32.xlu2 %v1771_v61  ;;  %v1831_v6 = vadd.f32 %v1829_v8, %v1825_v41 }
 0x4a9   :  { %v1837_v32 = vadd.f32 %v1835_v44, %v1831_v6  ;;  %v1454_v6 = vsel %vm1421_vm0, %v8951_v15, 0.0  ;;  %v1913_v15 = vstv %s5816_s10 }
 0x51a   :  { %v1773_v29 = vpop.xlane.xlu2 %1772 }
 0x51b   :  { %v1774_v53 = vmul.f32 %v1773_v29, %v8930_v49 }
 0x51d   :  { %v1776_v31 = vperm.slane %v1774_v53, 0  ;;  %v1777_v25 = vperm.slane %v1774_v53, 1  ;;  %v1842_v53 = vmul.f32 %v8920_v45, %v1840_v0 }
 0x51f   :  { %v9025_v61 = vsub.f32 %v1758_v59, %v1776_v31  ;;  %v9027_v42 = vsub.f32 %v1759_v39, %v1777_v25  ;;  %v1841_v59 = vmul.f32 %v8915_v11, %v1840_v0  ;;  %v1838_v39 = vadd.f32 %v1836_v2, %v1832_v10 }
 0x520   :  { %v1453_v10 = vsel %vm1421_vm0, %v8949_v9, 0.0  ;;  %v1708_v2 = vsel %vm1421_vm0, %v1704_v13, 0.0  ;;  %v1709_v0 = vsel %vm1421_vm0, %v1705_v47, 0.0  ;;  %v1914_v47 = vmul.f32 %v8893_v1, %v1913_v15 }
 0x521   :  { %v1782_v29 = vmul.f32 %v9025_v61, %v9025_v61  ;;  %v1783_v40 = vmul.f32 %v9027_v42, %v9027_v42  ;;  %v1843_v41 = vadd.f32 %v1841_v59, %v1837_v32  ;;  %v1844_v7 = vadd.f32 %v1842_v53, %v1838_v39 }
 0x522   :  { %v1710_v32 = vadd.f32 %v1709_v0, %v1708_v2  ;;  %v1906_v59 = vstv %s5815_s30  ;;  %v1909_v53 = vstv %s5814_s0 }
 0x523   :  { %1786 = vst [vmem:[#allocation1] ss:$9 sm:$0xff] %v1782_v29  ;;  %v1907_v39 = vmul.f32 %v1906_v59, %v8883_v35  ;;  %v1908_v9 = vmul.f32 %v8888_v37, %v1906_v59  ;;  %v1925_v59 = vstv %s5818_s12 }
 0x524   :  { %1788 = vst [vmem:[#allocation1 + $0x1] ss:$9 sm:$0xff] %v1783_v40  ;;  %v1455_v40 = vadd.f32 %v1454_v6, %v1453_v10 }
 0x525   :  { %v1910_v13 = vadd.f32 %v1909_v53, %v1907_v39 }
 0x527   :  { %v1916_v0 = vadd.f32 %v1914_v47, %v1910_v13  ;;  %v1927_v13 = vmul.f32 %v8920_v45, %v1925_v59 }
 0x52b   :  { %v9037_v8 = vld [vmem:[#allocation1] sm:$0xff]  ;;  %v9039_v55 = vld [vmem:[#allocation1 + $0x9] sm:$0xff] }
 0x52c   :  { %1847 = vst [vmem:[#allocation1] ss:$9 sm:$0xff] %v1843_v41 }
 0x52d   :  { %1849 = vst [vmem:[#allocation1 + $0x1] ss:$9 sm:$0xff] %v1844_v7 }
 0x534   :  { %v1850_v31 = vld [vmem:[#allocation1] sm:$0xff]  ;;  %v1851_v25 = vld [vmem:[#allocation1 + $0x9] sm:$0xff] }
 0x535   :  { %v1854_v36 = vsel %vm1421_vm0, %v1850_v31, 0.0  ;;  %v1855_v29 = vsel %vm1421_vm0, %v1851_v25, 0.0 }
 0x536   :  { %v1856_v44 = vadd.f32 %v1855_v29, %v1854_v36  ;;  %v1915_v36 = vmul.f32 %v8898_v33, %v1913_v15  ;;  %v1911_v29 = vadd.f32 %v1909_v53, %v1908_v9 }
 0x538   :  { %1857 = vadd.xlane.f32.xlu2 %v1856_v44  ;;  %v1919_v44 = vstv %s5817_s11  ;;  %v1917_v12 = vadd.f32 %v1915_v36, %v1911_v29 }
 0x540   :  { %1456 = vadd.xlane.f32.xlu2 %v1455_v40 }
 0x548   :  { %1711 = vadd.xlane.f32.xlu2 %v1710_v32  ;;  %v1920_v32 = vmul.f32 %v8903_v3, %v1919_v44 }
 0x54a   :  { %v1922_v15 = vadd.f32 %v1920_v32, %v1916_v0 }
 0x5ab   :  { %v1858_v31 = vpop.xlane.xlu2 %1857 }
 0x5ac   :  { %v1859_v25 = vmul.f32 %v1858_v31, %v8930_v49  ;;  %v1921_v31 = vmul.f32 %v8908_v5, %v1919_v44 }
 0x5ae   :  { %v1861_v10 = vperm.slane %v1859_v25, 0  ;;  %v1862_v6 = vperm.slane %v1859_v25, 1  ;;  %v1923_v25 = vadd.f32 %v1921_v31, %v1917_v12 }
 0x5b0   :  { %v9054_v40 = vsub.f32 %v1843_v41, %v1861_v10  ;;  %v9056_v2 = vsub.f32 %v1844_v7, %v1862_v6  ;;  %v1926_v7 = vmul.f32 %v8915_v11, %v1925_v59  ;;  %v9069_v29 = vadd.f32 %v1927_v13, %v1923_v25 }
 0x5b2   :  { %v1867_v39 = vmul.f32 %v9054_v40, %v9054_v40  ;;  %v1868_v9 = vmul.f32 %v9056_v2, %v9056_v2  ;;  %v9067_v36 = vadd.f32 %v1926_v7, %v1922_v15 }
 0x5b3   :  { %v1457_v53 = vpop.xlane.xlu2 %1456 }
 0x5b4   :  { %1871 = vst [vmem:[#allocation1] ss:$9 sm:$0xff] %v1867_v39  ;;  %v1458_v41 = vmul.f32 %v1457_v53, %v8930_v49 }
 0x5b5   :  { %1873 = vst [vmem:[#allocation1 + $0x1] ss:$9 sm:$0xff] %v1868_v9 }
 0x5b6   :  { %v1459_v47 = vadd.f32 1e-05, %v1458_v41 }
 0x5b8   :  { %5840 = vrsqrt.f32 %v1459_v47  ;;  %vm1466_vm3 = vweird.f32 %v1459_v47 }
 0x5bb   :  { %v1712_v44 = vpop.xlane.xlu2 %1711 }
 0x5bc   :  { %v1713_v10 = vmul.f32 %v1712_v44, %v8930_v49  ;;  %v9072_v6 = vld [vmem:[#allocation1] sm:$0xff]  ;;  %v9074_v39 = vld [vmem:[#allocation1 + $0x9] sm:$0xff] }
 0x5bd   :  { %1932 = vst [vmem:[#allocation1] ss:$9 sm:$0xff] %v9067_v36 }
 0x5be   :  { %v5841_v0 = vpop.eup %5840  ;;  %v1714_v32 = vadd.f32 1e-05, %v1713_v10  ;;  %1934 = vst [vmem:[#allocation1 + $0x1] ss:$9 sm:$0xff] %v9069_v29 }
 0x5bf   :  { %v1461_v12 = vmul.f32 %v5841_v0, %v1459_v47  ;;  %vm1467_vm2 = vweird.f32 %v5841_v0  ;;  %v1539_v47 = vsel %vm1421_vm0, %v8974_v57, 0.0  ;;  %v1793_v57 = vsel %vm1421_vm0, %v9037_v8, 0.0 }
 0x5c0   :  { %5842 = vrsqrt.f32 %v1714_v32  ;;  %vm1468_vm4 = vmor %vm1466_vm3, %vm1467_vm2  ;;  %vm1721_vm6 = vweird.f32 %v1714_v32  ;;  %v1998_v8 = vstv %s5821_s14 }
 0x5c1   :  { %v1462_v59 = vmul.f32 %v5841_v0, %v1461_v12 }
 0x5c3   :  { %v1463_v31 = vmul.f32 0.5, %v1462_v59 }
 0x5c5   :  { %v1464_v9 = vsub.f32 1.5, %v1463_v31  ;;  %v1935_v53 = vld [vmem:[#allocation1] sm:$0xff]  ;;  %v1936_v41 = vld [vmem:[#allocation1 + $0x9] sm:$0xff] }
 0x5c6   :  { %v5843_v15 = vpop.eup %5842  ;;  %v1939_v7 = vsel %vm1421_vm0, %v1935_v53, 0.0  ;;  %v1940_v25 = vsel %vm1421_vm0, %v1936_v41, 0.0  ;;  %v1538_v53 = vsel %vm1421_vm0, %v8972_v27, 0.0 }
 0x5c7   :  { %v1465_v13 = vmul.f32 %v5841_v0, %v1464_v9  ;;  %v1716_v44 = vmul.f32 %v5843_v15, %v1714_v32  ;;  %v1941_v46 = vadd.f32 %v1940_v25, %v1939_v7  ;;  %vm1722_vm5 = vweird.f32 %v5843_v15 }
 0x5c8   :  { %vm1723_vm7 = vmor %vm1721_vm6, %vm1722_vm5  ;;  %v1794_v25 = vsel %vm1421_vm0, %v9039_v55, 0.0 }
 0x5c9   :  { %v1469_v10 = vsel %vm1468_vm4, %v5841_v0, %v1465_v13  ;;  %v1717_v14 = vmul.f32 %v5843_v15, %v1716_v44  ;;  %1942 = vadd.xlane.f32.xlu0 %v1941_v46 }
 0x5ca   :  { %v1471_v48 = vperm.slane %v1469_v10, 0  ;;  %v1472_v12 = vperm.slane %v1469_v10, 1  ;;  %v1994_v10 = vstv %s5819_s3 }
 0x5cb   :  { %v1718_v59 = vmul.f32 0.5, %v1717_v14  ;;  %v1540_v14 = vadd.f32 %v1539_v47, %v1538_v53  ;;  %v1999_v53 = vmul.f32 %v8893_v1, %v1998_v8  ;;  %v2004_v47 = vstv %s5822_s15 }
 0x5cc   :  { %v9081_v31 = vmul.f32 %v1471_v48, %v8937_v19  ;;  %v9084_v16 = vmul.f32 %v1472_v12, %v8939_v21 }
 0x5cd   :  { %v1719_v9 = vsub.f32 1.5, %v1718_v59 }
 0x5ce   :  { %v1477_v0 = vmax.f32 %v9081_v31, 0.0  ;;  %v1478_v46 = vmax.f32 %v9084_v16, 0.0 }
 0x5cf   :  { %v1720_v41 = vmul.f32 %v5843_v15, %v1719_v9 }
 0x5d1   :  { %v1724_v48 = vsel %vm1723_vm7, %v5843_v15, %v1720_v41  ;;  %1541 = vadd.xlane.f32.xlu0 %v1540_v14  ;;  %v1795_v15 = vadd.f32 %v1794_v25, %v1793_v57  ;;  %v2000_v41 = vmul.f32 %v8898_v33, %v1998_v8  ;;  %v2006_v57 = vmul.f32 %v8908_v5, %v2004_v47 }
 0x5d2   :  { %v1726_v19 = vperm.slane %v1724_v48, 0  ;;  %v1727_v21 = vperm.slane %v1724_v48, 1 }
 0x5d4   :  { %v9093_v7 = vmul.f32 %v1726_v19, %v9006_v4  ;;  %v9096_v27 = vmul.f32 %v1727_v21, %v9008_v38  ;;  %v1991_v4 = vstv %s5820_s13  ;;  %v2005_v21 = vmul.f32 %v8903_v3, %v2004_v47 }
 0x5d5   :  { %v1992_v38 = vmul.f32 %v1991_v4, %v8883_v35  ;;  %v1993_v44 = vmul.f32 %v8888_v37, %v1991_v4 }
 0x5d6   :  { %v1732_v32 = vmax.f32 %v9093_v7, 0.0  ;;  %v1733_v13 = vmax.f32 %v9096_v27, 0.0 }
 0x5d7   :  { %v1995_v59 = vadd.f32 %v1994_v10, %v1992_v38  ;;  %v1996_v9 = vadd.f32 %v1994_v10, %v1993_v44 }
 0x5d9   :  { %1796 = vadd.xlane.f32.xlu0 %v1795_v15  ;;  %v2001_v37 = vadd.f32 %v1999_v53, %v1995_v59  ;;  %v2002_v25 = vadd.f32 %v2000_v41, %v1996_v9  ;;  %v2010_v15 = vstv %s5823_s16 }
 0x5da   :  { %v2012_v3 = vmul.f32 %v8920_v45, %v2010_v15 }
 0x5db   :  { %v2007_v38 = vadd.f32 %v2005_v21, %v2001_v37  ;;  %v2008_v44 = vadd.f32 %v2006_v57, %v2002_v25 }
 0x5dd   :  { %v9126_v8 = vadd.f32 %v2012_v3, %v2008_v44 }
 0x63c   :  { %v1943_v12 = vpop.xlane.xlu0 %1942 }
 0x63d   :  { %v1944_v55 = vmul.f32 %v1943_v12, %v8930_v49 }
 0x63f   :  { %v1946_v14 = vperm.slane %v1944_v55, 0  ;;  %v1947_v48 = vperm.slane %v1944_v55, 1 }
 0x641   :  { %v9110_v19 = vsub.f32 %v9067_v36, %v1946_v14  ;;  %v9113_v35 = vsub.f32 %v9069_v29, %v1947_v48  ;;  %v2011_v29 = vmul.f32 %v8915_v11, %v2010_v15 }
 0x643   :  { %v1952_v1 = vmul.f32 %v9110_v19, %v9110_v19  ;;  %v1953_v33 = vmul.f32 %v9113_v35, %v9113_v35  ;;  %v9124_v10 = vadd.f32 %v2011_v29, %v2007_v38 }
 0x644   :  { %v1542_v4 = vpop.xlane.xlu0 %1541 }
 0x645   :  { %1956 = vst [vmem:[#allocation1] ss:$9 sm:$0xff] %v1952_v1  ;;  %v1543_v36 = vmul.f32 %v1542_v4, %v8930_v49 }
 0x646   :  { %1958 = vst [vmem:[#allocation1 + $0x1] ss:$9 sm:$0xff] %v1953_v33 }
 0x647   :  { %v1544_v5 = vadd.f32 1e-05, %v1543_v36 }
 0x649   :  { %5844 = vrsqrt.f32 %v1544_v5  ;;  %vm1551_vm9 = vweird.f32 %v1544_v5 }
 0x64c   :  { %v1797_v12 = vpop.xlane.xlu0 %1796 }
 0x64d   :  { %v1798_v55 = vmul.f32 %v1797_v12, %v8930_v49  ;;  %v1959_v59 = vld [vmem:[#allocation1] sm:$0xff]  ;;  %v1960_v53 = vld [vmem:[#allocation1 + $0x9] sm:$0xff] }
 0x64e   :  { %v1963_v47 = vsel %vm1421_vm0, %v1959_v59, 0.0  ;;  %v1964_v9 = vsel %vm1421_vm0, %v1960_v53, 0.0  ;;  %2017 = vst [vmem:[#allocation1] ss:$9 sm:$0xff] %v9124_v10 }
 0x64f   :  { %v5845_v11 = vpop.eup %5844  ;;  %v1799_v41 = vadd.f32 1e-05, %v1798_v55  ;;  %v1965_v45 = vadd.f32 %v1964_v9, %v1963_v47  ;;  %2019 = vst [vmem:[#allocation1 + $0x1] ss:$9 sm:$0xff] %v9126_v8  ;;  %v1623_v47 = vsel %vm1421_vm0, %v8995_v51, 0.0 }
 0x650   :  { %v1546_v14 = vmul.f32 %v5845_v11, %v1544_v5  ;;  %vm1552_vm8 = vweird.f32 %v5845_v11  ;;  %v1624_v5 = vsel %vm1421_vm0, %v8997_v43, 0.0  ;;  %v1878_v43 = vsel %vm1421_vm0, %v9072_v6, 0.0 }
 0x651   :  { %5846 = vrsqrt.f32 %v1799_v41  ;;  %1966 = vadd.xlane.f32.xlu2 %v1965_v45  ;;  %vm1553_vm10 = vmor %vm1551_vm9, %vm1552_vm8  ;;  %vm1806_vm12 = vweird.f32 %v1799_v41 }
 0x652   :  { %v1547_v48 = vmul.f32 %v5845_v11, %v1546_v14 }
 0x654   :  { %v1548_v37 = vmul.f32 0.5, %v1547_v48  ;;  %v1625_v48 = vadd.f32 %v1624_v5, %v1623_v47 }
 0x656   :  { %v1549_v21 = vsub.f32 1.5, %v1548_v37  ;;  %v2020_v57 = vld [vmem:[#allocation1] sm:$0xff]  ;;  %v2021_v25 = vld [vmem:[#allocation1 + $0x9] sm:$0xff] }
 0x657   :  { %v5847_v15 = vpop.eup %5846  ;;  %v2024_v1 = vsel %vm1421_vm0, %v2020_v57, 0.0  ;;  %v2025_v33 = vsel %vm1421_vm0, %v2021_v25, 0.0  ;;  %v1879_v57 = vsel %vm1421_vm0, %v9074_v39, 0.0 }
 0x658   :  { %v1550_v4 = vmul.f32 %v5845_v11, %v1549_v21  ;;  %v1801_v36 = vmul.f32 %v5847_v15, %v1799_v41  ;;  %v2026_v38 = vadd.f32 %v2025_v33, %v2024_v1  ;;  %vm1807_vm11 = vweird.f32 %v5847_v15 }
 0x659   :  { %vm1808_vm13 = vmor %vm1806_vm12, %vm1807_vm11 }
 0x65a   :  { %v1554_v29 = vsel %vm1553_vm10, %v5845_v11, %v1550_v4  ;;  %v1802_v44 = vmul.f32 %v5847_v15, %v1801_v36  ;;  %2027 = vadd.xlane.f32.xlu1 %v2026_v38 }
 0x65b   :  { %v1556_v3 = vperm.slane %v1554_v29, 0  ;;  %v1557_v12 = vperm.slane %v1554_v29, 1 }
 0x65c   :  { %v1803_v55 = vmul.f32 0.5, %v1802_v44 }
 0x65d   :  { %v9136_v59 = vmul.f32 %v1556_v3, %v8960_v23  ;;  %v9139_v53 = vmul.f32 %v1557_v12, %v8962_v63 }
 0x65e   :  { %v1804_v9 = vsub.f32 1.5, %v1803_v55 }
 0x65f   :  { %v1562_v11 = vmax.f32 %v9136_v59, 0.0  ;;  %v1563_v45 = vmax.f32 %v9139_v53, 0.0 }
 0x660   :  { %v1805_v14 = vmul.f32 %v5847_v15, %v1804_v9 }
 0x662   :  { %v1809_v23 = vsel %vm1808_vm13, %v5847_v15, %v1805_v14  ;;  %1626 = vadd.xlane.f32.xlu1 %v1625_v48  ;;  %v1880_v15 = vadd.f32 %v1879_v57, %v1878_v43 }
 0x663   :  { %v1811_v63 = vperm.slane %v1809_v23, 0  ;;  %v1812_v37 = vperm.slane %v1809_v23, 1 }
 0x665   :  { %v9148_v21 = vmul.f32 %v1811_v63, %v9025_v61  ;;  %v9151_v51 = vmul.f32 %v1812_v37, %v9027_v42 }
 0x667   :  { %v1817_v41 = vmax.f32 %v9148_v21, 0.0  ;;  %v1818_v25 = vmax.f32 %v9151_v51, 0.0 }
 0x66a   :  { %1881 = vadd.xlane.f32.xlu1 %v1880_v15 }
 0x6c4   :  { %v1967_v1 = vpop.xlane.xlu2 %1966 }
 0x6c5   :  { %v1968_v33 = vmul.f32 %v1967_v1, %v8930_v49 }
 0x6c7   :  { %v1969_v61 = vadd.f32 1e-05, %v1968_v33 }
 0x6c9   :  { %5848 = vrsqrt.f32 %v1969_v61  ;;  %vm1976_vm15 = vweird.f32 %v1969_v61 }
 0x6cd   :  { %v2028_v4 = vpop.xlane.xlu1 %2027 }
 0x6ce   :  { %v2029_v42 = vmul.f32 %v2028_v4, %v8930_v49 }
 0x6cf   :  { %v5849_v36 = vpop.eup %5848 }
 0x6d0   :  { %v1971_v38 = vmul.f32 %v5849_v36, %v1969_v61  ;;  %v2031_v6 = vperm.slane %v2029_v42, 0  ;;  %v2032_v29 = vperm.slane %v2029_v42, 1  ;;  %vm1977_vm14 = vweird.f32 %v5849_v36 }
 0x6d1   :  { %vm1978_vm1 = vmor %vm1976_vm15, %vm1977_vm14 }
 0x6d2   :  { %v1972_v44 = vmul.f32 %v5849_v36, %v1971_v38  ;;  %v9162_v39 = vsub.f32 %v9124_v10, %v2031_v6  ;;  %v9165_v3 = vsub.f32 %v9126_v8, %v2032_v29 }
 0x6d4   :  { %v1973_v12 = vmul.f32 0.5, %v1972_v44  ;;  %v2037_v55 = vmul.f32 %v9162_v39, %v9162_v39  ;;  %v2038_v47 = vmul.f32 %v9165_v3, %v9165_v3 }
 0x6d5   :  { %v1627_v5 = vpop.xlane.xlu1 %1626 }
 0x6d6   :  { %v1974_v9 = vsub.f32 1.5, %v1973_v12  ;;  %2041 = vst [vmem:[#allocation1] ss:$9 sm:$0xff] %v2037_v55  ;;  %v1628_v14 = vmul.f32 %v1627_v5, %v8930_v49 }
 0x6d7   :  { %2043 = vst [vmem:[#allocation1 + $0x1] ss:$9 sm:$0xff] %v2038_v47 }
 0x6d8   :  { %v1975_v48 = vmul.f32 %v5849_v36, %v1974_v9  ;;  %v1629_v10 = vadd.f32 1e-05, %v1628_v14 }
 0x6da   :  { %v1979_v8 = vsel %vm1978_vm1, %v5849_v36, %v1975_v48  ;;  %5850 = vrsqrt.f32 %v1629_v10  ;;  %vm1636_vm3 = vweird.f32 %v1629_v10 }
 0x6db   :  { %v1981_v23 = vperm.slane %v1979_v8, 0  ;;  %v1982_v63 = vperm.slane %v1979_v8, 1 }
 0x6dd   :  { %v9173_v37 = vmul.f32 %v1981_v23, %v9110_v19  ;;  %v9176_v43 = vmul.f32 %v1982_v63, %v9113_v35  ;;  %v1882_v57 = vpop.xlane.xlu1 %1881 }
 0x6de   :  { %v1883_v15 = vmul.f32 %v1882_v57, %v8930_v49  ;;  %v2044_v1 = vld [vmem:[#allocation1] sm:$0xff]  ;;  %v2045_v33 = vld [vmem:[#allocation1 + $0x9] sm:$0xff] }
 0x6df   :  { %v1987_v4 = vmax.f32 %v9173_v37, 0.0  ;;  %v1988_v61 = vmax.f32 %v9176_v43, 0.0  ;;  %v2048_v42 = vsel %vm1421_vm0, %v2044_v1, 0.0  ;;  %v2049_v36 = vsel %vm1421_vm0, %v2045_v33, 0.0 }
 0x6e0   :  { %v5851_v38 = vpop.eup %5850  ;;  %v1884_v6 = vadd.f32 1e-05, %v1883_v15  ;;  %v2050_v19 = vadd.f32 %v2049_v36, %v2048_v42 }
 0x6e1   :  { %v1631_v29 = vmul.f32 %v5851_v38, %v1629_v10  ;;  %vm1637_vm2 = vweird.f32 %v5851_v38 }
 0x6e2   :  { %5852 = vrsqrt.f32 %v1884_v6  ;;  %2051 = vadd.xlane.f32.xlu0 %v2050_v19  ;;  %vm1638_vm4 = vmor %vm1636_vm3, %vm1637_vm2  ;;  %vm1891_vm5 = vweird.f32 %v1884_v6 }
 0x6e3   :  { %v1632_v35 = vmul.f32 %v5851_v38, %v1631_v29 }
 0x6e5   :  { %v1633_v44 = vmul.f32 0.5, %v1632_v35  ;;  %v9202_v35 = vld [vmem:[%s10470_s4] sm:$0xf] }
 0x6e7   :  { %v1634_v12 = vsub.f32 1.5, %v1633_v44 }
 0x6e8   :  { %v5853_v55 = vpop.eup %5852 }
 0x6e9   :  { %v1635_v47 = vmul.f32 %v5851_v38, %v1634_v12  ;;  %v1886_v5 = vmul.f32 %v5853_v55, %v1884_v6  ;;  %vm1892_vm0 = vweird.f32 %v5853_v55 }
 0x6ea   :  { %vm1893_vm6 = vmor %vm1891_vm5, %vm1892_vm0 }
 0x6eb   :  { %v1639_v9 = vsel %vm1638_vm4, %v5851_v38, %v1635_v47  ;;  %v1887_v14 = vmul.f32 %v5853_v55, %v1886_v5 }
 0x6ec   :  { %v1641_v48 = vperm.slane %v1639_v9, 0  ;;  %v1642_v8 = vperm.slane %v1639_v9, 1 }
 0x6ed   :  { %v1888_v23 = vmul.f32 0.5, %v1887_v14 }
 0x6ee   :  { %v9184_v63 = vmul.f32 %v1641_v48, %v8983_v17  ;;  %v9187_v57 = vmul.f32 %v1642_v8, %v8985_v34 }
 0x6ef   :  { %v1889_v15 = vsub.f32 1.5, %v1888_v23 }
 0x6f0   :  { %v1647_v1 = vmax.f32 %v9184_v63, 0.0  ;;  %v1648_v33 = vmax.f32 %v9187_v57, 0.0 }
 0x6f1   :  { %v1890_v10 = vmul.f32 %v5853_v55, %v1889_v15 }
 0x6f3   :  { %v1894_v42 = vsel %vm1893_vm6, %v5853_v55, %v1890_v10 }
 0x6f4   :  { %v1896_v36 = vperm.slane %v1894_v42, 0  ;;  %v1897_v38 = vperm.slane %v1894_v42, 1  ;;  %v2204_v42 = vunpack.c.h.bf16 %v6153_v30 }
 0x6f6   :  { %v9192_v19 = vmul.f32 %v1896_v36, %v9054_v40  ;;  %v9195_v17 = vmul.f32 %v1897_v38, %v9056_v2  ;;  %v2268_v36 = vunpack.c.h.bf16 %v6313_v62  ;;  %v2200_v38 = vunpack.c.h.bf16 %v6143_v28 }
 0x6f8   :  { %v1902_v34 = vmax.f32 %v9192_v19, 0.0  ;;  %v1903_v29 = vmax.f32 %v9195_v17, 0.0 }
 0x755   :  { %v2052_v6 = vpop.xlane.xlu0 %2051 }
 0x756   :  { %v2053_v44 = vmul.f32 %v2052_v6, %v8930_v49  ;;  %v2264_v6 = vunpack.c.h.bf16 %v6303_v60 }
 0x758   :  { %v2054_v12 = vadd.f32 1e-05, %v2053_v44 }
 0x75a   :  { %5854 = vrsqrt.f32 %v2054_v12  ;;  %vm2061_vm8 = vweird.f32 %v2054_v12 }
 0x760   :  { %v5855_v55 = vpop.eup %5854 }
 0x761   :  { %v2056_v40 = vmul.f32 %v5855_v55, %v2054_v12  ;;  %vm2062_vm7 = vweird.f32 %v5855_v55 }
 0x762   :  { %vm2063_vm9 = vmor %vm2061_vm8, %vm2062_vm7 }
 0x763   :  { %v2057_v47 = vmul.f32 %v5855_v55, %v2056_v40 }
 0x765   :  { %v2058_v5 = vmul.f32 0.5, %v2057_v47 }
 0x767   :  { %v2059_v2 = vsub.f32 1.5, %v2058_v5 }
 0x769   :  { %v2060_v9 = vmul.f32 %v5855_v55, %v2059_v2 }
 0x76b   :  { %v2064_v14 = vsel %vm2063_vm9, %v5855_v55, %v2060_v9 }
 0x76c   :  { %v2066_v48 = vperm.slane %v2064_v14, 0  ;;  %v2067_v8 = vperm.slane %v2064_v14, 1 }
 0x76e   :  { %v9206_v23 = vmul.f32 %v2066_v48, %v9162_v39  ;;  %v9209_v15 = vmul.f32 %v2067_v8, %v9165_v3 }
 0x770   :  { %v2072_v49 = vmax.f32 %v9206_v23, 0.0  ;;  %v2073_v10 = vmax.f32 %v9209_v15, 0.0 }
 0x771   :  { %5920 = dma.done.wait [#allocation3], 8192 }
 0x772   :  { %5921 = vsyncadd [#allocation3], 4294959104  ;;  %v2203_v39 = vunpack.c.l.bf16 %v6153_v30  ;;  %v2267_v44 = vunpack.c.l.bf16 %v6313_v62  ;;  %2273 = vst [vmem:[#allocation1] ss:$9 sm:$0xff] %v1477_v0  ;;  %2320 = vmatpush.msra.mxu2 %v2204_v42  ;;  %2340 = vmatpush.msra.mxu3 %v2268_v36  ;;  %v2196_v3 = vunpack.c.h.bf16 %v6133_v26  ;;  %v2260_v12 = vunpack.c.h.bf16 %v6293_v58  ;;  %v11536_v14 = vld [vmem:[#allocation49_spill] sm:$0xff]  ;;  %v11537_v8 = vld [vmem:[#allocation74_spill] sm:$0xff] }
 0x773   :  { %v2199_v55 = vunpack.c.l.bf16 %v6143_v28  ;;  %v2263_v40 = vunpack.c.l.bf16 %v6303_v60  ;;  %2275 = vst [vmem:[#allocation1 + $0x1] ss:$9 sm:$0xff] %v1478_v46  ;;  %v2195_v30 = vunpack.c.l.bf16 %v6133_v26  ;;  %v2259_v62 = vunpack.c.l.bf16 %v6293_v58  ;;  %v11538_v36 = vld [vmem:[#allocation47_spill] sm:$0xff] }
 0x774   :  { %2280 = vmatpush.msra.mxu0 %v2203_v39  ;;  %2300 = vmatpush.msra.mxu1 %v2267_v44  ;;  %v2192_v31 = vunpack.c.h.bf16 %v6123_v24  ;;  %v2256_v0 = vunpack.c.h.bf16 %v6283_v56  ;;  %v2191_v28 = vunpack.c.l.bf16 %v6123_v24  ;;  %v2255_v60 = vunpack.c.l.bf16 %v6283_v56  ;;  %v11540_v44 = vld [vmem:[#allocation45_spill] sm:$0xff] }
 0x775   :  { %2321 = vmatpush.msra.mxu2 %v2200_v38  ;;  %2341 = vmatpush.msra.mxu3 %v2264_v6  ;;  %v2188_v16 = vunpack.c.h.bf16 %v6113_v22  ;;  %v2252_v26 = vunpack.c.h.bf16 %v6273_v54  ;;  %v2187_v58 = vunpack.c.l.bf16 %v6113_v22  ;;  %v2251_v46 = vunpack.c.l.bf16 %v6273_v54  ;;  %v11539_v6 = vld [vmem:[#allocation72_spill] sm:$0xff] }
 0x776   :  { %2281 = vmatpush.msra.mxu0 %v2199_v55  ;;  %2301 = vmatpush.msra.mxu1 %v2263_v40  ;;  %v2184_v47 = vunpack.c.h.bf16 %v6103_v20  ;;  %v2248_v24 = vunpack.c.h.bf16 %v6263_v52  ;;  %v2183_v56 = vunpack.c.l.bf16 %v6103_v20  ;;  %v2247_v5 = vunpack.c.l.bf16 %v6263_v52 }
 0x777   :  { %2322 = vmatpush.msra.mxu2 %v2196_v3  ;;  %2342 = vmatpush.msra.mxu3 %v2260_v12  ;;  %v2180_v2 = vunpack.c.h.bf16 %v6093_v18  ;;  %v2244_v22 = vunpack.c.h.bf16 %v6253_v50  ;;  %v2179_v54 = vunpack.c.l.bf16 %v6093_v18  ;;  %v2243_v9 = vunpack.c.l.bf16 %v6253_v50  ;;  %v11541_v12 = vld [vmem:[#allocation70_spill] sm:$0xff] }
 0x778   :  { %2282 = vmatpush.msra.mxu0 %v2195_v30  ;;  %2302 = vmatpush.msra.mxu1 %v2259_v62  ;;  %v2176_v48 = vunpack.c.h.bf16 %v11536_v14  ;;  %v2240_v20 = vunpack.c.h.bf16 %v11537_v8  ;;  %v2175_v52 = vunpack.c.l.bf16 %v11536_v14  ;;  %v2239_v42 = vunpack.c.l.bf16 %v11537_v8  ;;  %v11542_v62 = vld [vmem:[#allocation43_spill] sm:$0xff] }
 0x779   :  { %2323 = vmatpush.msra.mxu2 %v2192_v31  ;;  %2343 = vmatpush.msra.mxu3 %v2256_v0  ;;  %v2172_v38 = vunpack.c.h.bf16 %v11538_v36  ;;  %v2236_v18 = vunpack.c.h.bf16 %v11539_v6  ;;  %v2171_v50 = vunpack.c.l.bf16 %v11538_v36  ;;  %v2235_v39 = vunpack.c.l.bf16 %v11539_v6  ;;  %v11543_v0 = vld [vmem:[#allocation68_spill] sm:$0xff] }
 0x77a   :  { %2283 = vmatpush.msra.mxu0 %v2191_v28  ;;  %2303 = vmatpush.msra.mxu1 %v2255_v60  ;;  %v2168_v3 = vunpack.c.h.bf16 %v11540_v44  ;;  %v2232_v55 = vunpack.c.h.bf16 %v11541_v12  ;;  %v2167_v40 = vunpack.c.l.bf16 %v11540_v44  ;;  %v2231_v30 = vunpack.c.l.bf16 %v11541_v12 }
 0x77b   :  { %2324 = vmatpush.msra.mxu2 %v2188_v16  ;;  %2344 = vmatpush.msra.mxu3 %v2252_v26  ;;  %v2164_v31 = vunpack.c.h.bf16 %v11542_v62  ;;  %v2228_v28 = vunpack.c.h.bf16 %v11543_v0  ;;  %v2163_v60 = vunpack.c.l.bf16 %v11542_v62  ;;  %v2227_v16 = vunpack.c.l.bf16 %v11543_v0  ;;  %v11544_v26 = vld [vmem:[#allocation41_spill] sm:$0xff] }
 0x77c   :  { %2284 = vmatpush.msra.mxu0 %v2187_v58  ;;  %2304 = vmatpush.msra.mxu1 %v2251_v46  ;;  %v2160_v58 = vunpack.c.h.bf16 %v11544_v26  ;;  %v11545_v46 = vld [vmem:[#allocation66_spill] sm:$0xff] }
 0x77d   :  { %2325 = vmatpush.msra.mxu2 %v2184_v47  ;;  %2345 = vmatpush.msra.mxu3 %v2248_v24  ;;  %v2224_v47 = vunpack.c.h.bf16 %v11545_v46  ;;  %v2159_v24 = vunpack.c.l.bf16 %v11544_v26 }
 0x77e   :  { %2285 = vmatpush.msra.mxu0 %v2183_v56  ;;  %2305 = vmatpush.msra.mxu1 %v2247_v5  ;;  %v2223_v56 = vunpack.c.l.bf16 %v11545_v46  ;;  %v11546_v5 = vld [vmem:[#allocation39_spill] sm:$0xff] }
 0x77f   :  { %2326 = vmatpush.msra.mxu2 %v2180_v2  ;;  %2346 = vmatpush.msra.mxu3 %v2244_v22  ;;  %v2156_v2 = vunpack.c.h.bf16 %v11546_v5  ;;  %v11547_v22 = vld [vmem:[#allocation64_spill] sm:$0xff] }
 0x780   :  { %2286 = vmatpush.msra.mxu0 %v2179_v54  ;;  %2306 = vmatpush.msra.mxu1 %v2243_v9  ;;  %v2220_v54 = vunpack.c.h.bf16 %v11547_v22  ;;  %v2155_v9 = vunpack.c.l.bf16 %v11546_v5  ;;  %v2219_v14 = vunpack.c.l.bf16 %v11547_v22 }
 0x781   :  { %2327 = vmatpush.msra.mxu2 %v2176_v48  ;;  %2347 = vmatpush.msra.mxu3 %v2240_v20  ;;  %v11548_v48 = vld [vmem:[#allocation37_spill] sm:$0xff]  ;;  %v11549_v20 = vld [vmem:[#allocation62_spill] sm:$0xff] }
 0x782   :  { %2287 = vmatpush.msra.mxu0 %v2175_v52  ;;  %2307 = vmatpush.msra.mxu1 %v2239_v42  ;;  %v2152_v8 = vunpack.c.h.bf16 %v11548_v48  ;;  %v2216_v52 = vunpack.c.h.bf16 %v11549_v20  ;;  %v2151_v42 = vunpack.c.l.bf16 %v11548_v48  ;;  %v2215_v36 = vunpack.c.l.bf16 %v11549_v20 }
 0x783   :  { %2328 = vmatpush.msra.mxu2 %v2172_v38  ;;  %2348 = vmatpush.msra.mxu3 %v2236_v18  ;;  %v11550_v38 = vld [vmem:[#allocation35_spill] sm:$0xff]  ;;  %v11551_v18 = vld [vmem:[#allocation60_spill] sm:$0xff] }
 0x784   :  { %2288 = vmatpush.msra.mxu0 %v2171_v50  ;;  %2308 = vmatpush.msra.mxu1 %v2235_v39  ;;  %v2148_v6 = vunpack.c.h.bf16 %v11550_v38  ;;  %v2212_v50 = vunpack.c.h.bf16 %v11551_v18  ;;  %v2147_v39 = vunpack.c.l.bf16 %v11550_v38  ;;  %v2211_v44 = vunpack.c.l.bf16 %v11551_v18 }
 0x785   :  { %2329 = vmatpush.msra.mxu2 %v2168_v3  ;;  %2349 = vmatpush.msra.mxu3 %v2232_v55  ;;  %v11552_v3 = vld [vmem:[#allocation33_spill] sm:$0xff]  ;;  %v11553_v55 = vld [vmem:[#allocation58_spill] sm:$0xff] }
 0x786   :  { %2289 = vmatpush.msra.mxu0 %v2167_v40  ;;  %2309 = vmatpush.msra.mxu1 %v2231_v30  ;;  %v2144_v12 = vunpack.c.h.bf16 %v11552_v3  ;;  %v2208_v40 = vunpack.c.h.bf16 %v11553_v55  ;;  %v11554_v30 = vld [vmem:[#allocation57_spill] sm:$0xff] }
 0x787   :  { %2330 = vmatpush.msra.mxu2 %v2164_v31  ;;  %2350 = vmatpush.msra.mxu3 %v2228_v28  ;;  %v2206_v62 = vunpack.c.h.bf16 %v11554_v30  ;;  %v11555_v31 = vld [vmem:[#allocation82_spill] sm:$0xff]  ;;  %v2143_v28 = vunpack.c.l.bf16 %v11552_v3 }
 0x788   :  { %2290 = vmatpush.msra.mxu0 %v2163_v60  ;;  %2310 = vmatpush.msra.mxu1 %v2227_v16  ;;  %v2270_v0 = vunpack.c.h.bf16 %v11555_v31  ;;  %v2207_v60 = vunpack.c.l.bf16 %v11553_v55  ;;  %v11556_v16 = vld [vmem:[#allocation56_spill] sm:$0xff] }
 0x789   :  { %2331 = vmatpush.msra.mxu2 %v2160_v58  ;;  %2351 = vmatpush.msra.mxu3 %v2224_v47  ;;  %v2202_v26 = vunpack.c.h.bf16 %v11556_v16  ;;  %v11557_v58 = vld [vmem:[#allocation81_spill] sm:$0xff]  ;;  %v2205_v47 = vunpack.c.l.bf16 %v11554_v30 }
 0x78a   :  { %2291 = vmatpush.msra.mxu0 %v2159_v24  ;;  %2311 = vmatpush.msra.mxu1 %v2223_v56  ;;  %v2266_v46 = vunpack.c.h.bf16 %v11557_v58  ;;  %v2269_v24 = vunpack.c.l.bf16 %v11555_v31  ;;  %v11558_v56 = vld [vmem:[#allocation55_spill] sm:$0xff] }
 0x78b   :  { %2332 = vmatpush.msra.mxu2 %v2156_v2  ;;  %2352 = vmatpush.msra.mxu3 %v2220_v54  ;;  %v2198_v5 = vunpack.c.h.bf16 %v11558_v56  ;;  %v11559_v2 = vld [vmem:[#allocation80_spill] sm:$0xff]  ;;  %v2201_v54 = vunpack.c.l.bf16 %v11556_v16 }
 0x78c   :  { %2292 = vmatpush.msra.mxu0 %v2155_v9  ;;  %2312 = vmatpush.msra.mxu1 %v2219_v14  ;;  %v2262_v22 = vunpack.c.h.bf16 %v11559_v2  ;;  %v2265_v9 = vunpack.c.l.bf16 %v11557_v58  ;;  %v11560_v14 = vld [vmem:[#allocation54_spill] sm:$0xff] }
 0x78d   :  { %2333 = vmatpush.msra.mxu2 %v2152_v8  ;;  %2353 = vmatpush.msra.mxu3 %v2216_v52  ;;  %v2194_v48 = vunpack.c.h.bf16 %v11560_v14  ;;  %v11561_v8 = vld [vmem:[#allocation79_spill] sm:$0xff]  ;;  %v2197_v52 = vunpack.c.l.bf16 %v11558_v56 }
 0x78e   :  { %2293 = vmatpush.msra.mxu0 %v2151_v42  ;;  %2313 = vmatpush.msra.mxu1 %v2215_v36  ;;  %v2258_v20 = vunpack.c.h.bf16 %v11561_v8  ;;  %v2261_v42 = vunpack.c.l.bf16 %v11559_v2  ;;  %v11562_v36 = vld [vmem:[#allocation53_spill] sm:$0xff] }
 0x78f   :  { %2334 = vmatpush.msra.mxu2 %v2148_v6  ;;  %2354 = vmatpush.msra.mxu3 %v2212_v50  ;;  %v2190_v38 = vunpack.c.h.bf16 %v11562_v36  ;;  %v11563_v6 = vld [vmem:[#allocation78_spill] sm:$0xff]  ;;  %v2193_v50 = vunpack.c.l.bf16 %v11560_v14 }
 0x790   :  { %2294 = vmatpush.msra.mxu0 %v2147_v39  ;;  %2314 = vmatpush.msra.mxu1 %v2211_v44  ;;  %v2254_v18 = vunpack.c.h.bf16 %v11563_v6  ;;  %v2257_v39 = vunpack.c.l.bf16 %v11561_v8  ;;  %v11564_v44 = vld [vmem:[#allocation52_spill] sm:$0xff]  ;;  %v2253_v30 = vunpack.c.l.bf16 %v11563_v6 }
 0x791   :  { %2335 = vmatpush.msra.mxu2 %v2144_v12  ;;  %2355 = vmatpush.msra.mxu3 %v2208_v40  ;;  %v2186_v3 = vunpack.c.h.bf16 %v11564_v44  ;;  %v11565_v12 = vld [vmem:[#allocation77_spill] sm:$0xff]  ;;  %v2189_v40 = vunpack.c.l.bf16 %v11562_v36 }
 0x792   :  { %2295 = vmatpush.msra.mxu0 %v2143_v28  ;;  %2315 = vmatpush.msra.mxu1 %v2207_v60  ;;  %v2250_v55 = vunpack.c.h.bf16 %v11565_v12  ;;  %v2185_v60 = vunpack.c.l.bf16 %v11564_v44  ;;  %v2249_v16 = vunpack.c.l.bf16 %v11565_v12 }
 0x793   :  { %2400 = vmatpush.msrb.mxu2 %v2206_v62  ;;  %2420 = vmatpush.msrb.mxu3 %v2270_v0  ;;  %v11566_v62 = vld [vmem:[#allocation51_spill] sm:$0xff]  ;;  %v11567_v0 = vld [vmem:[#allocation76_spill] sm:$0xff] }
 0x794   :  { %2360 = vmatpush.msrb.mxu0 %v2205_v47  ;;  %2380 = vmatpush.msrb.mxu1 %v2269_v24  ;;  %v2182_v31 = vunpack.c.h.bf16 %v11566_v62  ;;  %v2246_v28 = vunpack.c.h.bf16 %v11567_v0  ;;  %v2181_v24 = vunpack.c.l.bf16 %v11566_v62  ;;  %v2245_v56 = vunpack.c.l.bf16 %v11567_v0 }
 0x795   :  { %2401 = vmatpush.msrb.mxu2 %v2202_v26  ;;  %2421 = vmatpush.msrb.mxu3 %v2266_v46  ;;  %v11568_v26 = vld [vmem:[#allocation50_spill] sm:$0xff]  ;;  %v11569_v46 = vld [vmem:[#allocation75_spill] sm:$0xff] }
 0x796   :  { %2361 = vmatpush.msrb.mxu0 %v2201_v54  ;;  %2381 = vmatpush.msrb.mxu1 %v2265_v9  ;;  %v2178_v58 = vunpack.c.h.bf16 %v11568_v26  ;;  %v2242_v47 = vunpack.c.h.bf16 %v11569_v46  ;;  %v2177_v9 = vunpack.c.l.bf16 %v11568_v26  ;;  %v2241_v14 = vunpack.c.l.bf16 %v11569_v46 }
 0x797   :  { %2402 = vmatpush.msrb.mxu2 %v2198_v5  ;;  %2422 = vmatpush.msrb.mxu3 %v2262_v22  ;;  %v11570_v5 = vld [vmem:[#allocation48_spill] sm:$0xff]  ;;  %v11571_v22 = vld [vmem:[#allocation73_spill] sm:$0xff] }
 0x798   :  { %2362 = vmatpush.msrb.mxu0 %v2197_v52  ;;  %2382 = vmatpush.msrb.mxu1 %v2261_v42  ;;  %v2174_v2 = vunpack.c.h.bf16 %v11570_v5  ;;  %v2238_v54 = vunpack.c.h.bf16 %v11571_v22  ;;  %v2173_v42 = vunpack.c.l.bf16 %v11570_v5  ;;  %v2237_v36 = vunpack.c.l.bf16 %v11571_v22 }
 0x799   :  { %2403 = vmatpush.msrb.mxu2 %v2194_v48  ;;  %2423 = vmatpush.msrb.mxu3 %v2258_v20  ;;  %v11572_v48 = vld [vmem:[#allocation46_spill] sm:$0xff]  ;;  %v11573_v20 = vld [vmem:[#allocation71_spill] sm:$0xff] }
 0x79a   :  { %2363 = vmatpush.msrb.mxu0 %v2193_v50  ;;  %2383 = vmatpush.msrb.mxu1 %v2257_v39  ;;  %v2170_v8 = vunpack.c.h.bf16 %v11572_v48  ;;  %v2234_v52 = vunpack.c.h.bf16 %v11573_v20  ;;  %v11576_v39 = vld [vmem:[#allocation42_spill] sm:$0xff]  ;;  %v2233_v62 = vunpack.c.l.bf16 %v11573_v20 }
 0x79b   :  { %2404 = vmatpush.msrb.mxu2 %v2190_v38  ;;  %2424 = vmatpush.msrb.mxu3 %v2254_v18  ;;  %v11574_v38 = vld [vmem:[#allocation44_spill] sm:$0xff]  ;;  %v11575_v18 = vld [vmem:[#allocation69_spill] sm:$0xff]  ;;  %v2162_v44 = vunpack.c.h.bf16 %v11576_v39 }
 0x79c   :  { %2364 = vmatpush.msrb.mxu0 %v2189_v40  ;;  %2384 = vmatpush.msrb.mxu1 %v2253_v30  ;;  %v2166_v6 = vunpack.c.h.bf16 %v11574_v38  ;;  %v2230_v50 = vunpack.c.h.bf16 %v11575_v18  ;;  %v2277_v40 = vld [vmem:[#allocation1 + $0x9] sm:$0xff]  ;;  %v2169_v30 = vunpack.c.l.bf16 %v11572_v48  ;;  %v2229_v26 = vunpack.c.l.bf16 %v11575_v18 }
 0x79d   :  { %2405 = vmatpush.msrb.mxu2 %v2186_v3  ;;  %2425 = vmatpush.msrb.mxu3 %v2250_v55  ;;  %v11577_v3 = vld [vmem:[#allocation67_spill] sm:$0xff] }
 0x79e   :  { %2365 = vmatpush.msrb.mxu0 %v2185_v60  ;;  %2385 = vmatpush.msrb.mxu1 %v2249_v16  ;;  %v2226_v12 = vunpack.c.h.bf16 %v11577_v3  ;;  %v2276_v55 = vld [vmem:[#allocation1] sm:$0xff]  ;;  %v2165_v16 = vunpack.c.l.bf16 %v11574_v38  ;;  %v2225_v5 = vunpack.c.l.bf16 %v11577_v3 }
 0x79f   :  { %2406 = vmatpush.msrb.mxu2 %v2182_v31  ;;  %2426 = vmatpush.msrb.mxu3 %v2246_v28  ;;  %v11578_v31 = vld [vmem:[#allocation40_spill] sm:$0xff]  ;;  %v11579_v28 = vld [vmem:[#allocation65_spill] sm:$0xff] }
 0x7a0   :  { %2366 = vmatpush.msrb.mxu0 %v2181_v24  ;;  %2386 = vmatpush.msrb.mxu1 %v2245_v56  ;;  %v2158_v0 = vunpack.c.h.bf16 %v11578_v31  ;;  %v2222_v60 = vunpack.c.h.bf16 %v11579_v28  ;;  %v2161_v56 = vunpack.c.l.bf16 %v11576_v39  ;;  %v2221_v48 = vunpack.c.l.bf16 %v11579_v28 }
 0x7a1   :  { %2407 = vmatpush.msrb.mxu2 %v2178_v58  ;;  %2427 = vmatpush.msrb.mxu3 %v2242_v47  ;;  %v11580_v58 = vld [vmem:[#allocation38_spill] sm:$0xff]  ;;  %v11581_v47 = vld [vmem:[#allocation63_spill] sm:$0xff] }
 0x7a2   :  { %2367 = vmatpush.msrb.mxu0 %v2177_v9  ;;  %2387 = vmatpush.msrb.mxu1 %v2241_v14  ;;  %v2154_v46 = vunpack.c.h.bf16 %v11580_v58  ;;  %v2218_v24 = vunpack.c.h.bf16 %v11581_v47  ;;  %v2157_v14 = vunpack.c.l.bf16 %v11578_v31  ;;  %v2217_v38 = vunpack.c.l.bf16 %v11581_v47 }
 0x7a3   :  { %2408 = vmatpush.msrb.mxu2 %v2174_v2  ;;  %2428 = vmatpush.msrb.mxu3 %v2238_v54  ;;  %v11582_v2 = vld [vmem:[#allocation36_spill] sm:$0xff]  ;;  %v11583_v54 = vld [vmem:[#allocation61_spill] sm:$0xff] }
 0x7a4   :  { %2368 = vmatpush.msrb.mxu0 %v2173_v42  ;;  %2388 = vmatpush.msrb.mxu1 %v2237_v36  ;;  %v2150_v22 = vunpack.c.h.bf16 %v11582_v2  ;;  %v2214_v9 = vunpack.c.h.bf16 %v11583_v54  ;;  %v2153_v36 = vunpack.c.l.bf16 %v11580_v58  ;;  %v2213_v18 = vunpack.c.l.bf16 %v11583_v54 }
 0x7a5   :  { %2409 = vmatpush.msrb.mxu2 %v2170_v8  ;;  %2429 = vmatpush.msrb.mxu3 %v2234_v52  ;;  %v11584_v8 = vld [vmem:[#allocation34_spill] sm:$0xff]  ;;  %v11585_v52 = vld [vmem:[#allocation59_spill] sm:$0xff] }
 0x7a6   :  { %2336 = vmatmul.f32.vlgmr.msra.gmra.mxu2 %v2276_v55  ;;  %2356 = vmatmul.f32.vlgmr.msra.gmra.mxu3 %v2277_v40  ;;  %v2146_v20 = vunpack.c.h.bf16 %v11584_v8  ;;  %v2210_v42 = vunpack.c.h.bf16 %v11585_v52  ;;  %v2209_v39 = vunpack.c.l.bf16 %v11585_v52 }
 0x7a7   :  { %2410 = vmatpush.msrb.mxu2 %v2166_v6  ;;  %2430 = vmatpush.msrb.mxu3 %v2230_v50  ;;  %v2149_v6 = vunpack.c.l.bf16 %v11582_v2  ;;  %v2145_v50 = vunpack.c.l.bf16 %v11584_v8 }
 0x7a8   :  { %2369 = vmatpush.msrb.mxu0 %v2169_v30  ;;  %2389 = vmatpush.msrb.mxu1 %v2233_v62  ;;  %v2441_v30 = vperm.slane %v9202_v35, 0 }
 0x7a9   :  { %2411 = vmatpush.msrb.mxu2 %v2162_v44  ;;  %2431 = vmatpush.msrb.mxu3 %v2226_v12  ;;  %v2442_v44 = vperm.slane %v9202_v35, 1 }
 0x7aa   :  { %2370 = vmatpush.msrb.mxu0 %v2165_v16  ;;  %2390 = vmatpush.msrb.mxu1 %v2229_v26  ;;  %v2443_v26 = vperm.slane %v9202_v35, 2 }
 0x7ab   :  { %2412 = vmatpush.msrb.mxu2 %v2158_v0  ;;  %2432 = vmatpush.msrb.mxu3 %v2222_v60 }
 0x7ac   :  { %2371 = vmatpush.msrb.mxu0 %v2161_v56  ;;  %2391 = vmatpush.msrb.mxu1 %v2225_v5 }
 0x7ad   :  { %2413 = vmatpush.msrb.mxu2 %v2154_v46  ;;  %2433 = vmatpush.msrb.mxu3 %v2218_v24 }
 0x7ae   :  { %2296 = vmatmul.f32.vlgmr.msra.gmra.mxu0 %v2276_v55  ;;  %2316 = vmatmul.f32.vlgmr.msra.gmra.mxu1 %v2277_v40 }
 0x7af   :  { %2414 = vmatpush.msrb.mxu2 %v2150_v22  ;;  %2434 = vmatpush.msrb.mxu3 %v2214_v9  ;;  %v11586_v22 = vld [vmem:[#allocation113_spill] sm:$0xff] }
 0x7b0   :  { %2372 = vmatpush.msrb.mxu0 %v2157_v14  ;;  %2392 = vmatpush.msrb.mxu1 %v2221_v48  ;;  %v2580_v54 = vunpack.c.h.bf16 %v11586_v22  ;;  %v11587_v9 = vld [vmem:[#allocation145_spill] sm:$0xff]  ;;  %v11588_v48 = vld [vmem:[#allocation111_spill] sm:$0xff] }
 0x7b1   :  { %2415 = vmatpush.msrb.mxu2 %v2146_v20  ;;  %2435 = vmatpush.msrb.mxu3 %v2210_v42  ;;  %v2644_v14 = vunpack.c.h.bf16 %v11587_v9  ;;  %v2576_v8 = vunpack.c.h.bf16 %v11588_v48  ;;  %v11589_v20 = vld [vmem:[#allocation143_spill] sm:$0xff] }
 0x7b2   :  { %2416 = vmatmul.f32.vlgmr.msrb.gmra.mxu2 %v2276_v55  ;;  %2436 = vmatmul.f32.vlgmr.msrb.gmra.mxu3 %v2277_v40  ;;  %v2640_v52 = vunpack.c.h.bf16 %v11589_v20 }
 0x7b3   :  { %2373 = vmatpush.msrb.mxu0 %v2153_v36  ;;  %2393 = vmatpush.msrb.mxu1 %v2217_v38 }
 0x7b5   :  { %2374 = vmatpush.msrb.mxu0 %v2149_v6  ;;  %2394 = vmatpush.msrb.mxu1 %v2213_v18 }
 0x7b7   :  { %2375 = vmatpush.msrb.mxu0 %v2145_v50  ;;  %2395 = vmatpush.msrb.mxu1 %v2209_v39 }
 0x7b8   :  { %2376 = vmatmul.f32.vlgmr.msrb.gmra.mxu0 %v2276_v55  ;;  %2396 = vmatmul.f32.vlgmr.msrb.gmra.mxu1 %v2277_v40  ;;  %v2444_v55 = vperm.slane %v9202_v35, 3 }
 0x829   :  { %v2337_v3 = vpop.f32.mrf.mxu2  ;;  %v2357_v12 = vpop.f32.mrf.mxu3 }
 0x82a   :  { %v2358_v62 = vadd.f32 %v2357_v12, %v2337_v3 }
 0x82b   :  { %v2297_v31 = vpop.f32.mrf.mxu0  ;;  %v2317_v0 = vpop.f32.mrf.mxu1 }
 0x82c   :  { %v2318_v28 = vadd.f32 %v2317_v0, %v2297_v31  ;;  %v9347_v60 = vadd.f32 %v2442_v44, %v2358_v62 }
 0x82e   :  { %v9349_v16 = vadd.f32 %v2441_v30, %v2318_v28 }
 0x835   :  { %v2377_v58 = vpop.f32.mrf.mxu0  ;;  %v2397_v46 = vpop.f32.mrf.mxu1 }
 0x836   :  { %v2398_v40 = vadd.f32 %v2397_v46, %v2377_v58  ;;  %v2417_v47 = vpop.f32.mrf.mxu2  ;;  %v2437_v24 = vpop.f32.mrf.mxu3 }
 0x837   :  { %v2438_v56 = vadd.f32 %v2437_v24, %v2417_v47 }
 0x838   :  { %v9353_v5 = vadd.f32 %v2443_v26, %v2398_v40 }
 0x839   :  { %v9355_v2 = vadd.f32 %v2444_v55, %v2438_v56 }
 0x83a   :  { %5922 = dma.done.wait [#allocation3 + $0x1], 8192 }
 0x83b   :  { %5923 = vsyncadd [#allocation3 + $0x1], 4294959104  ;;  %v2579_v35 = vunpack.c.l.bf16 %v11586_v22  ;;  %v2643_v42 = vunpack.c.l.bf16 %v11587_v9  ;;  %2649 = vst [vmem:[#allocation1] ss:$9 sm:$0xff] %v1562_v11  ;;  %2696 = vmatpush.msra.mxu2 %v2580_v54  ;;  %2716 = vmatpush.msra.mxu3 %v2644_v14  ;;  %v11590_v36 = vld [vmem:[#allocation109_spill] sm:$0xff]  ;;  %v2575_v50 = vunpack.c.l.bf16 %v11588_v48  ;;  %v2639_v39 = vunpack.c.l.bf16 %v11589_v20  ;;  %v11592_v11 = vld [vmem:[#allocation107_spill] sm:$0xff] }
 0x83c   :  { %v2572_v38 = vunpack.c.h.bf16 %v11590_v36  ;;  %v11591_v6 = vld [vmem:[#allocation141_spill] sm:$0xff]  ;;  %2651 = vst [vmem:[#allocation1 + $0x1] ss:$9 sm:$0xff] %v1563_v45  ;;  %v2571_v44 = vunpack.c.l.bf16 %v11590_v36  ;;  %v2568_v3 = vunpack.c.h.bf16 %v11592_v11  ;;  %v11593_v12 = vld [vmem:[#allocation139_spill] sm:$0xff]  ;;  %v2567_v62 = vunpack.c.l.bf16 %v11592_v11 }
 0x83d   :  { %v2636_v18 = vunpack.c.h.bf16 %v11591_v6  ;;  %2656 = vmatpush.msra.mxu0 %v2579_v35  ;;  %2676 = vmatpush.msra.mxu1 %v2643_v42  ;;  %v2635_v59 = vunpack.c.l.bf16 %v11591_v6  ;;  %v2632_v30 = vunpack.c.h.bf16 %v11593_v12  ;;  %v2631_v31 = vunpack.c.l.bf16 %v11593_v12  ;;  %v11594_v53 = vld [vmem:[#allocation105_spill] sm:$0xff]  ;;  %v11596_v46 = vld [vmem:[#allocation103_spill] sm:$0xff] }
 0x83e   :  { %2697 = vmatpush.msra.mxu2 %v2576_v8  ;;  %2717 = vmatpush.msra.mxu3 %v2640_v52  ;;  %v2564_v45 = vunpack.c.h.bf16 %v11594_v53  ;;  %v11595_v0 = vld [vmem:[#allocation137_spill] sm:$0xff]  ;;  %v2563_v26 = vunpack.c.l.bf16 %v11594_v53  ;;  %v2560_v55 = vunpack.c.h.bf16 %v11596_v46  ;;  %v11597_v40 = vld [vmem:[#allocation135_spill] sm:$0xff]  ;;  %v2559_v24 = vunpack.c.l.bf16 %v11596_v46 }
 0x83f   :  { %2657 = vmatpush.msra.mxu0 %v2575_v50  ;;  %2677 = vmatpush.msra.mxu1 %v2639_v39  ;;  %v2628_v28 = vunpack.c.h.bf16 %v11595_v0  ;;  %v2627_v58 = vunpack.c.l.bf16 %v11595_v0  ;;  %v2624_v47 = vunpack.c.h.bf16 %v11597_v40  ;;  %v2623_v56 = vunpack.c.l.bf16 %v11597_v40  ;;  %v11598_v22 = vld [vmem:[#allocation101_spill] sm:$0xff]  ;;  %v11600_v20 = vld [vmem:[#allocation99_spill] sm:$0xff] }
 0x840   :  { %2698 = vmatpush.msra.mxu2 %v2572_v38  ;;  %2718 = vmatpush.msra.mxu3 %v2636_v18  ;;  %v2556_v54 = vunpack.c.h.bf16 %v11598_v22  ;;  %v11599_v9 = vld [vmem:[#allocation133_spill] sm:$0xff]  ;;  %v2555_v48 = vunpack.c.l.bf16 %v11598_v22  ;;  %v2552_v52 = vunpack.c.h.bf16 %v11600_v20  ;;  %v11601_v35 = vld [vmem:[#allocation131_spill] sm:$0xff]  ;;  %v2551_v36 = vunpack.c.l.bf16 %v11600_v20 }
 0x841   :  { %2658 = vmatpush.msra.mxu0 %v2571_v44  ;;  %2678 = vmatpush.msra.mxu1 %v2635_v59  ;;  %v2620_v14 = vunpack.c.h.bf16 %v11599_v9  ;;  %v2619_v8 = vunpack.c.l.bf16 %v11599_v9  ;;  %v2616_v42 = vunpack.c.h.bf16 %v11601_v35  ;;  %v2615_v38 = vunpack.c.l.bf16 %v11601_v35  ;;  %v11602_v6 = vld [vmem:[#allocation97_spill] sm:$0xff]  ;;  %v11604_v11 = vld [vmem:[#allocation95_spill] sm:$0xff] }
 0x842   :  { %2699 = vmatpush.msra.mxu2 %v2568_v3  ;;  %2719 = vmatpush.msra.mxu3 %v2632_v30  ;;  %v2548_v18 = vunpack.c.h.bf16 %v11602_v6  ;;  %v11603_v50 = vld [vmem:[#allocation129_spill] sm:$0xff]  ;;  %v2547_v44 = vunpack.c.l.bf16 %v11602_v6  ;;  %v2544_v3 = vunpack.c.h.bf16 %v11604_v11  ;;  %v11605_v12 = vld [vmem:[#allocation127_spill] sm:$0xff] }
 0x843   :  { %2659 = vmatpush.msra.mxu0 %v2567_v62  ;;  %2679 = vmatpush.msra.mxu1 %v2631_v31  ;;  %v2612_v39 = vunpack.c.h.bf16 %v11603_v50  ;;  %v2611_v59 = vunpack.c.l.bf16 %v11603_v50  ;;  %v2608_v30 = vunpack.c.h.bf16 %v11605_v12  ;;  %v2543_v62 = vunpack.c.l.bf16 %v11604_v11  ;;  %v11606_v53 = vld [vmem:[#allocation93_spill] sm:$0xff]  ;;  %v11608_v46 = vld [vmem:[#allocation91_spill] sm:$0xff] }
 0x844   :  { %2700 = vmatpush.msra.mxu2 %v2564_v45  ;;  %2720 = vmatpush.msra.mxu3 %v2628_v28  ;;  %v2607_v31 = vunpack.c.l.bf16 %v11605_v12  ;;  %v2540_v45 = vunpack.c.h.bf16 %v11606_v53  ;;  %v11607_v0 = vld [vmem:[#allocation125_spill] sm:$0xff]  ;;  %v11609_v40 = vld [vmem:[#allocation123_spill] sm:$0xff] }
 0x845   :  { %2660 = vmatpush.msra.mxu0 %v2563_v26  ;;  %2680 = vmatpush.msra.mxu1 %v2627_v58  ;;  %v2604_v28 = vunpack.c.h.bf16 %v11607_v0  ;;  %v2539_v26 = vunpack.c.l.bf16 %v11606_v53  ;;  %v2603_v58 = vunpack.c.l.bf16 %v11607_v0  ;;  %v11610_v22 = vld [vmem:[#allocation89_spill] sm:$0xff]  ;;  %v11612_v20 = vld [vmem:[#allocation87_spill] sm:$0xff]  ;;  %v11619_v53 = vld [vmem:[#allocation146_spill] sm:$0xff] }
 0x846   :  { %2701 = vmatpush.msra.mxu2 %v2560_v55  ;;  %2721 = vmatpush.msra.mxu3 %v2624_v47  ;;  %v2536_v55 = vunpack.c.h.bf16 %v11608_v46  ;;  %v2600_v47 = vunpack.c.h.bf16 %v11609_v40  ;;  %v11611_v9 = vld [vmem:[#allocation121_spill] sm:$0xff]  ;;  %v11613_v35 = vld [vmem:[#allocation119_spill] sm:$0xff] }
 0x847   :  { %2661 = vmatpush.msra.mxu0 %v2559_v24  ;;  %2681 = vmatpush.msra.mxu1 %v2623_v56  ;;  %v2535_v24 = vunpack.c.l.bf16 %v11608_v46  ;;  %v2599_v56 = vunpack.c.l.bf16 %v11609_v40  ;;  %v11614_v6 = vld [vmem:[#allocation85_spill] sm:$0xff]  ;;  %v11616_v11 = vld [vmem:[#allocation83_spill] sm:$0xff]  ;;  %v11621_v46 = vld [vmem:[#allocation144_spill] sm:$0xff] }
 0x848   :  { %2702 = vmatpush.msra.mxu2 %v2556_v54  ;;  %2722 = vmatpush.msra.mxu3 %v2620_v14  ;;  %v2532_v54 = vunpack.c.h.bf16 %v11610_v22  ;;  %v2596_v14 = vunpack.c.h.bf16 %v11611_v9  ;;  %v11615_v50 = vld [vmem:[#allocation117_spill] sm:$0xff]  ;;  %v11617_v12 = vld [vmem:[#allocation115_spill] sm:$0xff]  ;;  %v2519_v0 = vunpack.c.l.bf16 %v11616_v11 }
 0x849   :  { %2662 = vmatpush.msra.mxu0 %v2555_v48  ;;  %2682 = vmatpush.msra.mxu1 %v2619_v8  ;;  %v2531_v48 = vunpack.c.l.bf16 %v11610_v22  ;;  %v2595_v8 = vunpack.c.l.bf16 %v11611_v9  ;;  %v11623_v22 = vld [vmem:[#allocation142_spill] sm:$0xff] }
 0x84a   :  { %2703 = vmatpush.msra.mxu2 %v2552_v52  ;;  %2723 = vmatpush.msra.mxu3 %v2616_v42  ;;  %v2528_v52 = vunpack.c.h.bf16 %v11612_v20  ;;  %v2592_v42 = vunpack.c.h.bf16 %v11613_v35 }
 0x84b   :  { %2663 = vmatpush.msra.mxu0 %v2551_v36  ;;  %2683 = vmatpush.msra.mxu1 %v2615_v38  ;;  %v2527_v36 = vunpack.c.l.bf16 %v11612_v20  ;;  %v2591_v38 = vunpack.c.l.bf16 %v11613_v35  ;;  %v11625_v20 = vld [vmem:[#allocation140_spill] sm:$0xff] }
 0x84c   :  { %2704 = vmatpush.msra.mxu2 %v2548_v18  ;;  %2724 = vmatpush.msra.mxu3 %v2612_v39  ;;  %v2524_v18 = vunpack.c.h.bf16 %v11614_v6  ;;  %v2588_v39 = vunpack.c.h.bf16 %v11615_v50 }
 0x84d   :  { %2664 = vmatpush.msra.mxu0 %v2547_v44  ;;  %2684 = vmatpush.msra.mxu1 %v2611_v59  ;;  %v2523_v44 = vunpack.c.l.bf16 %v11614_v6  ;;  %v2587_v59 = vunpack.c.l.bf16 %v11615_v50  ;;  %v11627_v6 = vld [vmem:[#allocation138_spill] sm:$0xff] }
 0x84e   :  { %2705 = vmatpush.msra.mxu2 %v2544_v3  ;;  %2725 = vmatpush.msra.mxu3 %v2608_v30  ;;  %v2520_v3 = vunpack.c.h.bf16 %v11616_v11  ;;  %v2584_v30 = vunpack.c.h.bf16 %v11617_v12  ;;  %v11629_v11 = vld [vmem:[#allocation136_spill] sm:$0xff] }
 0x84f   :  { %2665 = vmatpush.msra.mxu0 %v2543_v62  ;;  %2685 = vmatpush.msra.mxu1 %v2607_v31  ;;  %v11618_v62 = vld [vmem:[#allocation114_spill] sm:$0xff] }
 0x850   :  { %2706 = vmatpush.msra.mxu2 %v2540_v45  ;;  %2726 = vmatpush.msra.mxu3 %v2604_v28  ;;  %v2582_v31 = vunpack.c.h.bf16 %v11618_v62  ;;  %v2646_v45 = vunpack.c.h.bf16 %v11619_v53  ;;  %v2583_v28 = vunpack.c.l.bf16 %v11617_v12  ;;  %v2581_v40 = vunpack.c.l.bf16 %v11618_v62  ;;  %v11630_v62 = vld [vmem:[#allocation102_spill] sm:$0xff] }
 0x851   :  { %2666 = vmatpush.msra.mxu0 %v2539_v26  ;;  %2686 = vmatpush.msra.mxu1 %v2603_v58  ;;  %v11620_v26 = vld [vmem:[#allocation112_spill] sm:$0xff] }
 0x852   :  { %2707 = vmatpush.msra.mxu2 %v2536_v55  ;;  %2727 = vmatpush.msra.mxu3 %v2600_v47  ;;  %v2578_v58 = vunpack.c.h.bf16 %v11620_v26  ;;  %v2642_v55 = vunpack.c.h.bf16 %v11621_v46  ;;  %v2645_v47 = vunpack.c.l.bf16 %v11619_v53  ;;  %v2577_v9 = vunpack.c.l.bf16 %v11620_v26  ;;  %v11631_v53 = vld [vmem:[#allocation134_spill] sm:$0xff]  ;;  %v11632_v26 = vld [vmem:[#allocation100_spill] sm:$0xff] }
 0x853   :  { %2667 = vmatpush.msra.mxu0 %v2535_v24  ;;  %2687 = vmatpush.msra.mxu1 %v2599_v56  ;;  %v11622_v24 = vld [vmem:[#allocation110_spill] sm:$0xff] }
 0x854   :  { %2708 = vmatpush.msra.mxu2 %v2532_v54  ;;  %2728 = vmatpush.msra.mxu3 %v2596_v14  ;;  %v2574_v56 = vunpack.c.h.bf16 %v11622_v24  ;;  %v2638_v54 = vunpack.c.h.bf16 %v11623_v22  ;;  %v2641_v14 = vunpack.c.l.bf16 %v11621_v46  ;;  %v2573_v35 = vunpack.c.l.bf16 %v11622_v24  ;;  %v11633_v46 = vld [vmem:[#allocation132_spill] sm:$0xff]  ;;  %v11634_v24 = vld [vmem:[#allocation98_spill] sm:$0xff] }
 0x855   :  { %2668 = vmatpush.msra.mxu0 %v2531_v48  ;;  %2688 = vmatpush.msra.mxu1 %v2595_v8  ;;  %v11624_v48 = vld [vmem:[#allocation108_spill] sm:$0xff] }
 0x856   :  { %2709 = vmatpush.msra.mxu2 %v2528_v52  ;;  %2729 = vmatpush.msra.mxu3 %v2592_v42  ;;  %v2570_v8 = vunpack.c.h.bf16 %v11624_v48  ;;  %v2634_v52 = vunpack.c.h.bf16 %v11625_v20  ;;  %v2637_v42 = vunpack.c.l.bf16 %v11623_v22  ;;  %v2569_v50 = vunpack.c.l.bf16 %v11624_v48  ;;  %v11635_v22 = vld [vmem:[#allocation130_spill] sm:$0xff]  ;;  %v11636_v48 = vld [vmem:[#allocation96_spill] sm:$0xff] }
 0x857   :  { %2669 = vmatpush.msra.mxu0 %v2527_v36  ;;  %2689 = vmatpush.msra.mxu1 %v2591_v38  ;;  %v11626_v36 = vld [vmem:[#allocation106_spill] sm:$0xff] }
 0x858   :  { %2710 = vmatpush.msra.mxu2 %v2524_v18  ;;  %2730 = vmatpush.msra.mxu3 %v2588_v39  ;;  %v2566_v38 = vunpack.c.h.bf16 %v11626_v36  ;;  %v2630_v18 = vunpack.c.h.bf16 %v11627_v6  ;;  %v2633_v39 = vunpack.c.l.bf16 %v11625_v20  ;;  %v2565_v12 = vunpack.c.l.bf16 %v11626_v36  ;;  %v11637_v20 = vld [vmem:[#allocation128_spill] sm:$0xff]  ;;  %v11638_v36 = vld [vmem:[#allocation94_spill] sm:$0xff] }
 0x859   :  { %2670 = vmatpush.msra.mxu0 %v2523_v44  ;;  %2690 = vmatpush.msra.mxu1 %v2587_v59  ;;  %v11628_v44 = vld [vmem:[#allocation104_spill] sm:$0xff] }
 0x85a   :  { %2711 = vmatpush.msra.mxu2 %v2520_v3  ;;  %2731 = vmatpush.msra.mxu3 %v2584_v30  ;;  %v2562_v59 = vunpack.c.h.bf16 %v11628_v44  ;;  %v2626_v3 = vunpack.c.h.bf16 %v11629_v11  ;;  %v2629_v30 = vunpack.c.l.bf16 %v11627_v6  ;;  %v11639_v6 = vld [vmem:[#allocation126_spill] sm:$0xff] }
 0x85b   :  { %2671 = vmatpush.msra.mxu0 %v2519_v0  ;;  %2691 = vmatpush.msra.mxu1 %v2583_v28  ;;  %v2561_v0 = vunpack.c.l.bf16 %v11628_v44  ;;  %v2625_v28 = vunpack.c.l.bf16 %v11629_v11  ;;  %v11641_v44 = vld [vmem:[#allocation124_spill] sm:$0xff] }
 0x85c   :  { %2776 = vmatpush.msrb.mxu2 %v2582_v31  ;;  %2796 = vmatpush.msrb.mxu3 %v2646_v45  ;;  %v2558_v31 = vunpack.c.h.bf16 %v11630_v62  ;;  %v2622_v45 = vunpack.c.h.bf16 %v11631_v53  ;;  %v2652_v11 = vld [vmem:[#allocation1] sm:$0xff] }
 0x85d   :  { %2736 = vmatpush.msrb.mxu0 %v2581_v40  ;;  %2756 = vmatpush.msrb.mxu1 %v2645_v47  ;;  %v2557_v40 = vunpack.c.l.bf16 %v11630_v62  ;;  %v2621_v47 = vunpack.c.l.bf16 %v11631_v53  ;;  %v11642_v62 = vld [vmem:[#allocation90_spill] sm:$0xff] }
 0x85e   :  { %2777 = vmatpush.msrb.mxu2 %v2578_v58  ;;  %2797 = vmatpush.msrb.mxu3 %v2642_v55  ;;  %v2554_v58 = vunpack.c.h.bf16 %v11632_v26  ;;  %v2618_v55 = vunpack.c.h.bf16 %v11633_v46  ;;  %v11643_v53 = vld [vmem:[#allocation122_spill] sm:$0xff] }
 0x85f   :  { %2737 = vmatpush.msrb.mxu0 %v2577_v9  ;;  %2757 = vmatpush.msrb.mxu1 %v2641_v14  ;;  %v2553_v9 = vunpack.c.l.bf16 %v11632_v26  ;;  %v2617_v14 = vunpack.c.l.bf16 %v11633_v46  ;;  %v11644_v26 = vld [vmem:[#allocation88_spill] sm:$0xff] }
 0x860   :  { %2778 = vmatpush.msrb.mxu2 %v2574_v56  ;;  %2798 = vmatpush.msrb.mxu3 %v2638_v54  ;;  %v2550_v56 = vunpack.c.h.bf16 %v11634_v24  ;;  %v2614_v54 = vunpack.c.h.bf16 %v11635_v22  ;;  %v11645_v46 = vld [vmem:[#allocation120_spill] sm:$0xff] }
 0x861   :  { %2738 = vmatpush.msrb.mxu0 %v2573_v35  ;;  %2758 = vmatpush.msrb.mxu1 %v2637_v42  ;;  %v2549_v35 = vunpack.c.l.bf16 %v11634_v24  ;;  %v2613_v42 = vunpack.c.l.bf16 %v11635_v22  ;;  %v11646_v24 = vld [vmem:[#allocation86_spill] sm:$0xff] }
 0x862   :  { %2779 = vmatpush.msrb.mxu2 %v2570_v8  ;;  %2799 = vmatpush.msrb.mxu3 %v2634_v52  ;;  %v2546_v8 = vunpack.c.h.bf16 %v11636_v48  ;;  %v2610_v52 = vunpack.c.h.bf16 %v11637_v20  ;;  %v11647_v22 = vld [vmem:[#allocation118_spill] sm:$0xff] }
 0x863   :  { %2739 = vmatpush.msrb.mxu0 %v2569_v50  ;;  %2759 = vmatpush.msrb.mxu1 %v2633_v39  ;;  %v11640_v50 = vld [vmem:[#allocation92_spill] sm:$0xff] }
 0x864   :  { %2780 = vmatpush.msrb.mxu2 %v2566_v38  ;;  %2800 = vmatpush.msrb.mxu3 %v2630_v18  ;;  %v2542_v38 = vunpack.c.h.bf16 %v11638_v36  ;;  %v2606_v18 = vunpack.c.h.bf16 %v11639_v6  ;;  %v2538_v39 = vunpack.c.h.bf16 %v11640_v50 }
 0x865   :  { %2740 = vmatpush.msrb.mxu0 %v2565_v12  ;;  %2760 = vmatpush.msrb.mxu1 %v2629_v30  ;;  %v2545_v12 = vunpack.c.l.bf16 %v11636_v48  ;;  %v2609_v30 = vunpack.c.l.bf16 %v11637_v20  ;;  %v11648_v48 = vld [vmem:[#allocation84_spill] sm:$0xff] }
 0x866   :  { %2781 = vmatpush.msrb.mxu2 %v2562_v59  ;;  %2801 = vmatpush.msrb.mxu3 %v2626_v3  ;;  %v2602_v59 = vunpack.c.h.bf16 %v11641_v44  ;;  %v2653_v3 = vld [vmem:[#allocation1 + $0x9] sm:$0xff] }
 0x867   :  { %2741 = vmatpush.msrb.mxu0 %v2561_v0  ;;  %2761 = vmatpush.msrb.mxu1 %v2625_v28  ;;  %v2541_v0 = vunpack.c.l.bf16 %v11638_v36  ;;  %v2605_v28 = vunpack.c.l.bf16 %v11639_v6  ;;  %v11649_v20 = vld [vmem:[#allocation116_spill] sm:$0xff]  ;;  %v2525_v36 = vunpack.c.l.bf16 %v11646_v24  ;;  %v2521_v6 = vunpack.c.l.bf16 %v11648_v48 }
 0x868   :  { %2782 = vmatpush.msrb.mxu2 %v2558_v31  ;;  %2802 = vmatpush.msrb.mxu3 %v2622_v45  ;;  %v2534_v31 = vunpack.c.h.bf16 %v11642_v62  ;;  %v2598_v45 = vunpack.c.h.bf16 %v11643_v53 }
 0x869   :  { %2742 = vmatpush.msrb.mxu0 %v2557_v40  ;;  %2762 = vmatpush.msrb.mxu1 %v2621_v47  ;;  %v2537_v40 = vunpack.c.l.bf16 %v11640_v50  ;;  %v2601_v47 = vunpack.c.l.bf16 %v11641_v44 }
 0x86a   :  { %2783 = vmatpush.msrb.mxu2 %v2554_v58  ;;  %2803 = vmatpush.msrb.mxu3 %v2618_v55  ;;  %v2530_v58 = vunpack.c.h.bf16 %v11644_v26  ;;  %v2594_v55 = vunpack.c.h.bf16 %v11645_v46 }
 0x86b   :  { %2743 = vmatpush.msrb.mxu0 %v2553_v9  ;;  %2763 = vmatpush.msrb.mxu1 %v2617_v14  ;;  %v2533_v9 = vunpack.c.l.bf16 %v11642_v62  ;;  %v2597_v14 = vunpack.c.l.bf16 %v11643_v53 }
 0x86c   :  { %2784 = vmatpush.msrb.mxu2 %v2550_v56  ;;  %2804 = vmatpush.msrb.mxu3 %v2614_v54  ;;  %v2526_v56 = vunpack.c.h.bf16 %v11646_v24  ;;  %v2590_v54 = vunpack.c.h.bf16 %v11647_v22 }
 0x86d   :  { %2744 = vmatpush.msrb.mxu0 %v2549_v35  ;;  %2764 = vmatpush.msrb.mxu1 %v2613_v42  ;;  %v2529_v35 = vunpack.c.l.bf16 %v11644_v26  ;;  %v2593_v42 = vunpack.c.l.bf16 %v11645_v46  ;;  %v11650_v46 = vld [vmem:[#allocation177_spill] sm:$0xff] }
 0x86e   :  { %2785 = vmatpush.msrb.mxu2 %v2546_v8  ;;  %2805 = vmatpush.msrb.mxu3 %v2610_v52  ;;  %v2522_v8 = vunpack.c.h.bf16 %v11648_v48  ;;  %v2586_v52 = vunpack.c.h.bf16 %v11649_v20 }
 0x86f   :  { %2712 = vmatmul.f32.vlgmr.msra.gmra.mxu2 %v2652_v11  ;;  %2732 = vmatmul.f32.vlgmr.msra.gmra.mxu3 %v2653_v3 }
 0x870   :  { %2786 = vmatpush.msrb.mxu2 %v2542_v38  ;;  %2806 = vmatpush.msrb.mxu3 %v2606_v18  ;;  %v2589_v38 = vunpack.c.l.bf16 %v11647_v22  ;;  %v2585_v18 = vunpack.c.l.bf16 %v11649_v20 }
 0x871   :  { %2745 = vmatpush.msrb.mxu0 %v2545_v12  ;;  %2765 = vmatpush.msrb.mxu1 %v2609_v30 }
 0x872   :  { %2787 = vmatpush.msrb.mxu2 %v2538_v39  ;;  %2807 = vmatpush.msrb.mxu3 %v2602_v59 }
 0x873   :  { %2746 = vmatpush.msrb.mxu0 %v2541_v0  ;;  %2766 = vmatpush.msrb.mxu1 %v2605_v28 }
 0x874   :  { %2788 = vmatpush.msrb.mxu2 %v2534_v31  ;;  %2808 = vmatpush.msrb.mxu3 %v2598_v45 }
 0x875   :  { %2747 = vmatpush.msrb.mxu0 %v2537_v40  ;;  %2767 = vmatpush.msrb.mxu1 %v2601_v47  ;;  %v11651_v40 = vld [vmem:[#allocation209_spill] sm:$0xff]  ;;  %v11652_v47 = vld [vmem:[#allocation175_spill] sm:$0xff] }
 0x876   :  { %2789 = vmatpush.msrb.mxu2 %v2530_v58  ;;  %2809 = vmatpush.msrb.mxu3 %v2594_v55  ;;  %v2947_v55 = vunpack.c.h.bf16 %v11650_v46  ;;  %v2943_v24 = vunpack.c.h.bf16 %v11652_v47 }
 0x877   :  { %2672 = vmatmul.f32.vlgmr.msra.gmra.mxu0 %v2652_v11  ;;  %2692 = vmatmul.f32.vlgmr.msra.gmra.mxu1 %v2653_v3 }
 0x878   :  { %2790 = vmatpush.msrb.mxu2 %v2526_v56  ;;  %2810 = vmatpush.msrb.mxu3 %v2590_v54 }
 0x879   :  { %2748 = vmatpush.msrb.mxu0 %v2533_v9  ;;  %2768 = vmatpush.msrb.mxu1 %v2597_v14 }
 0x87a   :  { %2791 = vmatpush.msrb.mxu2 %v2522_v8  ;;  %2811 = vmatpush.msrb.mxu3 %v2586_v52 }
 0x87b   :  { %2792 = vmatmul.f32.vlgmr.msrb.gmra.mxu2 %v2652_v11  ;;  %2812 = vmatmul.f32.vlgmr.msrb.gmra.mxu3 %v2653_v3 }
 0x87c   :  { %2749 = vmatpush.msrb.mxu0 %v2529_v35  ;;  %2769 = vmatpush.msrb.mxu1 %v2593_v42 }
 0x87e   :  { %2750 = vmatpush.msrb.mxu0 %v2525_v36  ;;  %2770 = vmatpush.msrb.mxu1 %v2589_v38 }
 0x880   :  { %2751 = vmatpush.msrb.mxu0 %v2521_v6  ;;  %2771 = vmatpush.msrb.mxu1 %v2585_v18 }
 0x881   :  { %2752 = vmatmul.f32.vlgmr.msrb.gmra.mxu0 %v2652_v11  ;;  %2772 = vmatmul.f32.vlgmr.msrb.gmra.mxu1 %v2653_v3 }
 0x8f2   :  { %v2713_v50 = vpop.f32.mrf.mxu2  ;;  %v2733_v39 = vpop.f32.mrf.mxu3 }
 0x8f3   :  { %v2734_v44 = vadd.f32 %v2733_v39, %v2713_v50 }
 0x8f4   :  { %v2673_v59 = vpop.f32.mrf.mxu0  ;;  %v2693_v12 = vpop.f32.mrf.mxu1 }
 0x8f5   :  { %v2694_v30 = vadd.f32 %v2693_v12, %v2673_v59  ;;  %v9490_v62 = vadd.f32 %v2734_v44, %v9347_v60  ;;  %v3011_v60 = vunpack.c.h.bf16 %v11651_v40 }
 0x8f7   :  { %v9493_v31 = vadd.f32 %v2694_v30, %v9349_v16  ;;  %v11653_v16 = vld [vmem:[#allocation207_spill] sm:$0xff] }
 0x8f8   :  { %v3007_v56 = vunpack.c.h.bf16 %v11653_v16 }
 0x8fe   :  { %v2753_v53 = vpop.f32.mrf.mxu0  ;;  %v2773_v45 = vpop.f32.mrf.mxu1 }
 0x8ff   :  { %v2774_v0 = vadd.f32 %v2773_v45, %v2753_v53  ;;  %v2793_v28 = vpop.f32.mrf.mxu2  ;;  %v2813_v26 = vpop.f32.mrf.mxu3 }
 0x900   :  { %v2814_v58 = vadd.f32 %v2813_v26, %v2793_v28 }
 0x901   :  { %v9496_v11 = vadd.f32 %v2774_v0, %v9353_v5 }
 0x902   :  { %v9499_v3 = vadd.f32 %v2814_v58, %v9355_v2 }
 0x903   :  { %5924 = dma.done.wait [#allocation3 + $0x2], 8192 }
 0x904   :  { %5925 = vsyncadd [#allocation3 + $0x2], 4294959104  ;;  %v2946_v22 = vunpack.c.l.bf16 %v11650_v46  ;;  %v3010_v54 = vunpack.c.l.bf16 %v11651_v40  ;;  %3016 = vst [vmem:[#allocation1] ss:$9 sm:$0xff] %v1647_v1  ;;  %3063 = vmatpush.msra.mxu2 %v2947_v55  ;;  %3083 = vmatpush.msra.mxu3 %v3011_v60  ;;  %v11654_v5 = vld [vmem:[#allocation173_spill] sm:$0xff]  ;;  %v2942_v48 = vunpack.c.l.bf16 %v11652_v47  ;;  %v3006_v8 = vunpack.c.l.bf16 %v11653_v16  ;;  %v11656_v1 = vld [vmem:[#allocation171_spill] sm:$0xff] }
 0x905   :  { %v2939_v2 = vunpack.c.h.bf16 %v11654_v5  ;;  %v11655_v9 = vld [vmem:[#allocation205_spill] sm:$0xff]  ;;  %3018 = vst [vmem:[#allocation1 + $0x1] ss:$9 sm:$0xff] %v1648_v33  ;;  %v2938_v20 = vunpack.c.l.bf16 %v11654_v5  ;;  %v2935_v52 = vunpack.c.h.bf16 %v11656_v1  ;;  %v11657_v35 = vld [vmem:[#allocation203_spill] sm:$0xff]  ;;  %v2934_v36 = vunpack.c.l.bf16 %v11656_v1 }
 0x906   :  { %v3003_v14 = vunpack.c.h.bf16 %v11655_v9  ;;  %3023 = vmatpush.msra.mxu0 %v2946_v22  ;;  %3043 = vmatpush.msra.mxu1 %v3010_v54  ;;  %v3002_v63 = vunpack.c.l.bf16 %v11655_v9  ;;  %v2999_v42 = vunpack.c.h.bf16 %v11657_v35  ;;  %v2998_v38 = vunpack.c.l.bf16 %v11657_v35  ;;  %v11658_v57 = vld [vmem:[#allocation169_spill] sm:$0xff]  ;;  %v11660_v44 = vld [vmem:[#allocation167_spill] sm:$0xff] }
 0x907   :  { %3064 = vmatpush.msra.mxu2 %v2943_v24  ;;  %3084 = vmatpush.msra.mxu3 %v3007_v56  ;;  %v2931_v33 = vunpack.c.h.bf16 %v11658_v57  ;;  %v11659_v6 = vld [vmem:[#allocation201_spill] sm:$0xff]  ;;  %v2930_v50 = vunpack.c.l.bf16 %v11658_v57  ;;  %v2927_v59 = vunpack.c.h.bf16 %v11660_v44  ;;  %v11661_v12 = vld [vmem:[#allocation199_spill] sm:$0xff]  ;;  %v2926_v53 = vunpack.c.l.bf16 %v11660_v44 }
 0x908   :  { %3024 = vmatpush.msra.mxu0 %v2942_v48  ;;  %3044 = vmatpush.msra.mxu1 %v3006_v8  ;;  %v2995_v18 = vunpack.c.h.bf16 %v11659_v6  ;;  %v2994_v39 = vunpack.c.l.bf16 %v11659_v6  ;;  %v2991_v30 = vunpack.c.h.bf16 %v11661_v12  ;;  %v2990_v45 = vunpack.c.l.bf16 %v11661_v12  ;;  %v11662_v0 = vld [vmem:[#allocation165_spill] sm:$0xff]  ;;  %v11664_v40 = vld [vmem:[#allocation163_spill] sm:$0xff] }
 0x909   :  { %3065 = vmatpush.msra.mxu2 %v2939_v2  ;;  %3085 = vmatpush.msra.mxu3 %v3003_v14  ;;  %v2923_v28 = vunpack.c.h.bf16 %v11662_v0  ;;  %v11663_v26 = vld [vmem:[#allocation197_spill] sm:$0xff]  ;;  %v2922_v46 = vunpack.c.l.bf16 %v11662_v0  ;;  %v2919_v60 = vunpack.c.h.bf16 %v11664_v40  ;;  %v11665_v47 = vld [vmem:[#allocation195_spill] sm:$0xff]  ;;  %v2918_v16 = vunpack.c.l.bf16 %v11664_v40 }
 0x90a   :  { %3025 = vmatpush.msra.mxu0 %v2938_v20  ;;  %3045 = vmatpush.msra.mxu1 %v3002_v63  ;;  %v2987_v58 = vunpack.c.h.bf16 %v11663_v26  ;;  %v2986_v55 = vunpack.c.l.bf16 %v11663_v26  ;;  %v2983_v24 = vunpack.c.h.bf16 %v11665_v47  ;;  %v2982_v56 = vunpack.c.l.bf16 %v11665_v47  ;;  %v11666_v22 = vld [vmem:[#allocation161_spill] sm:$0xff]  ;;  %v11668_v48 = vld [vmem:[#allocation159_spill] sm:$0xff] }
 0x90b   :  { %3066 = vmatpush.msra.mxu2 %v2935_v52  ;;  %3086 = vmatpush.msra.mxu3 %v2999_v42  ;;  %v2915_v54 = vunpack.c.h.bf16 %v11666_v22  ;;  %v11667_v5 = vld [vmem:[#allocation193_spill] sm:$0xff]  ;;  %v2914_v9 = vunpack.c.l.bf16 %v11666_v22  ;;  %v2911_v8 = vunpack.c.h.bf16 %v11668_v48  ;;  %v11669_v20 = vld [vmem:[#allocation191_spill] sm:$0xff]  ;;  %v2910_v1 = vunpack.c.l.bf16 %v11668_v48  ;;  %v11682_v48 = vld [vmem:[#allocation178_spill] sm:$0xff] }
 0x90c   :  { %3026 = vmatpush.msra.mxu0 %v2934_v36  ;;  %3046 = vmatpush.msra.mxu1 %v2998_v38  ;;  %v2979_v2 = vunpack.c.h.bf16 %v11667_v5  ;;  %v2978_v14 = vunpack.c.l.bf16 %v11667_v5  ;;  %v2975_v63 = vunpack.c.h.bf16 %v11669_v20  ;;  %v2974_v52 = vunpack.c.l.bf16 %v11669_v20  ;;  %v11670_v35 = vld [vmem:[#allocation157_spill] sm:$0xff]  ;;  %v11672_v6 = vld [vmem:[#allocation155_spill] sm:$0xff]  ;;  %v11683_v20 = vld [vmem:[#allocation210_spill] sm:$0xff] }
 0x90d   :  { %3067 = vmatpush.msra.mxu2 %v2931_v33  ;;  %3087 = vmatpush.msra.mxu3 %v2995_v18  ;;  %v2907_v42 = vunpack.c.h.bf16 %v11670_v35  ;;  %v11671_v36 = vld [vmem:[#allocation189_spill] sm:$0xff]  ;;  %v2906_v57 = vunpack.c.l.bf16 %v11670_v35  ;;  %v2903_v18 = vunpack.c.h.bf16 %v11672_v6  ;;  %v2902_v44 = vunpack.c.l.bf16 %v11672_v6  ;;  %v11676_v26 = vld [vmem:[#allocation151_spill] sm:$0xff]  ;;  %v11684_v35 = vld [vmem:[#allocation176_spill] sm:$0xff] }
 0x90e   :  { %3027 = vmatpush.msra.mxu0 %v2930_v50  ;;  %3047 = vmatpush.msra.mxu1 %v2994_v39  ;;  %v2971_v38 = vunpack.c.h.bf16 %v11671_v36  ;;  %v2970_v33 = vunpack.c.l.bf16 %v11671_v36  ;;  %v11673_v50 = vld [vmem:[#allocation187_spill] sm:$0xff]  ;;  %v11674_v12 = vld [vmem:[#allocation153_spill] sm:$0xff]  ;;  %v2894_v40 = vunpack.c.l.bf16 %v11676_v26  ;;  %v11685_v36 = vld [vmem:[#allocation208_spill] sm:$0xff] }
 0x90f   :  { %3068 = vmatpush.msra.mxu2 %v2927_v59  ;;  %3088 = vmatpush.msra.mxu3 %v2991_v30  ;;  %v2967_v39 = vunpack.c.h.bf16 %v11673_v50  ;;  %v2966_v59 = vunpack.c.l.bf16 %v11673_v50  ;;  %v2899_v30 = vunpack.c.h.bf16 %v11674_v12  ;;  %v2898_v0 = vunpack.c.l.bf16 %v11674_v12  ;;  %v11678_v47 = vld [vmem:[#allocation149_spill] sm:$0xff]  ;;  %v11680_v5 = vld [vmem:[#allocation147_spill] sm:$0xff]  ;;  %v11686_v6 = vld [vmem:[#allocation174_spill] sm:$0xff] }
 0x910   :  { %3028 = vmatpush.msra.mxu0 %v2926_v53  ;;  %3048 = vmatpush.msra.mxu1 %v2990_v45  ;;  %v11675_v53 = vld [vmem:[#allocation185_spill] sm:$0xff]  ;;  %v2890_v22 = vunpack.c.l.bf16 %v11678_v47  ;;  %v11687_v50 = vld [vmem:[#allocation206_spill] sm:$0xff]  ;;  %v11688_v12 = vld [vmem:[#allocation172_spill] sm:$0xff] }
 0x911   :  { %3069 = vmatpush.msra.mxu2 %v2923_v28  ;;  %3089 = vmatpush.msra.mxu3 %v2987_v58  ;;  %v2963_v45 = vunpack.c.h.bf16 %v11675_v53  ;;  %v2962_v28 = vunpack.c.l.bf16 %v11675_v53  ;;  %v2895_v58 = vunpack.c.h.bf16 %v11676_v26  ;;  %v11689_v53 = vld [vmem:[#allocation204_spill] sm:$0xff]  ;;  %v11690_v26 = vld [vmem:[#allocation170_spill] sm:$0xff] }
 0x912   :  { %3029 = vmatpush.msra.mxu0 %v2922_v46  ;;  %3049 = vmatpush.msra.mxu1 %v2986_v55  ;;  %v11677_v46 = vld [vmem:[#allocation183_spill] sm:$0xff] }
 0x913   :  { %3070 = vmatpush.msra.mxu2 %v2919_v60  ;;  %3090 = vmatpush.msra.mxu3 %v2983_v24  ;;  %v2959_v55 = vunpack.c.h.bf16 %v11677_v46  ;;  %v2958_v60 = vunpack.c.l.bf16 %v11677_v46  ;;  %v2891_v24 = vunpack.c.h.bf16 %v11678_v47  ;;  %v11691_v46 = vld [vmem:[#allocation202_spill] sm:$0xff]  ;;  %v11692_v47 = vld [vmem:[#allocation168_spill] sm:$0xff] }
 0x914   :  { %3030 = vmatpush.msra.mxu0 %v2918_v16  ;;  %3050 = vmatpush.msra.mxu1 %v2982_v56  ;;  %v11679_v16 = vld [vmem:[#allocation181_spill] sm:$0xff] }
 0x915   :  { %3071 = vmatpush.msra.mxu2 %v2915_v54  ;;  %3091 = vmatpush.msra.mxu3 %v2979_v2  ;;  %v2955_v56 = vunpack.c.h.bf16 %v11679_v16  ;;  %v2954_v54 = vunpack.c.l.bf16 %v11679_v16  ;;  %v2887_v2 = vunpack.c.h.bf16 %v11680_v5  ;;  %v11693_v16 = vld [vmem:[#allocation200_spill] sm:$0xff] }
 0x916   :  { %3031 = vmatpush.msra.mxu0 %v2914_v9  ;;  %3051 = vmatpush.msra.mxu1 %v2978_v14  ;;  %v11681_v9 = vld [vmem:[#allocation179_spill] sm:$0xff] }
 0x917   :  { %3072 = vmatpush.msra.mxu2 %v2911_v8  ;;  %3092 = vmatpush.msra.mxu3 %v2975_v63  ;;  %v2951_v14 = vunpack.c.h.bf16 %v11681_v9  ;;  %v2949_v8 = vunpack.c.h.bf16 %v11682_v48  ;;  %v3013_v63 = vunpack.c.h.bf16 %v11683_v20 }
 0x918   :  { %3032 = vmatpush.msra.mxu0 %v2910_v1  ;;  %3052 = vmatpush.msra.mxu1 %v2974_v52  ;;  %v2886_v1 = vunpack.c.l.bf16 %v11680_v5  ;;  %v2950_v52 = vunpack.c.l.bf16 %v11681_v9  ;;  %v11694_v5 = vld [vmem:[#allocation166_spill] sm:$0xff] }
 0x919   :  { %3073 = vmatpush.msra.mxu2 %v2907_v42  ;;  %3093 = vmatpush.msra.mxu3 %v2971_v38  ;;  %v2945_v42 = vunpack.c.h.bf16 %v11684_v35  ;;  %v3009_v38 = vunpack.c.h.bf16 %v11685_v36  ;;  %v11695_v9 = vld [vmem:[#allocation198_spill] sm:$0xff] }
 0x91a   :  { %3033 = vmatpush.msra.mxu0 %v2906_v57  ;;  %3053 = vmatpush.msra.mxu1 %v2970_v33  ;;  %v2948_v57 = vunpack.c.l.bf16 %v11682_v48  ;;  %v3012_v33 = vunpack.c.l.bf16 %v11683_v20  ;;  %v2928_v48 = vunpack.c.l.bf16 %v11692_v47  ;;  %v11696_v20 = vld [vmem:[#allocation164_spill] sm:$0xff] }
 0x91b   :  { %3074 = vmatpush.msra.mxu2 %v2903_v18  ;;  %3094 = vmatpush.msra.mxu3 %v2967_v39  ;;  %v2941_v18 = vunpack.c.h.bf16 %v11686_v6  ;;  %v3005_v39 = vunpack.c.h.bf16 %v11687_v50 }
 0x91c   :  { %3034 = vmatpush.msra.mxu0 %v2902_v44  ;;  %3054 = vmatpush.msra.mxu1 %v2966_v59  ;;  %v2944_v44 = vunpack.c.l.bf16 %v11684_v35  ;;  %v3008_v59 = vunpack.c.l.bf16 %v11685_v36  ;;  %v2924_v35 = vunpack.c.l.bf16 %v11694_v5  ;;  %v11698_v36 = vld [vmem:[#allocation162_spill] sm:$0xff] }
 0x91d   :  { %3075 = vmatpush.msra.mxu2 %v2899_v30  ;;  %3095 = vmatpush.msra.mxu3 %v2963_v45  ;;  %v2937_v30 = vunpack.c.h.bf16 %v11688_v12  ;;  %v3001_v45 = vunpack.c.h.bf16 %v11689_v53 }
 0x91e   :  { %3035 = vmatpush.msra.mxu0 %v2898_v0  ;;  %3055 = vmatpush.msra.mxu1 %v2962_v28  ;;  %v2940_v0 = vunpack.c.l.bf16 %v11686_v6  ;;  %v3004_v28 = vunpack.c.l.bf16 %v11687_v50  ;;  %v2920_v6 = vunpack.c.l.bf16 %v11696_v20  ;;  %v11700_v50 = vld [vmem:[#allocation160_spill] sm:$0xff] }
 0x91f   :  { %3076 = vmatpush.msra.mxu2 %v2895_v58  ;;  %3096 = vmatpush.msra.mxu3 %v2959_v55  ;;  %v2933_v58 = vunpack.c.h.bf16 %v11690_v26  ;;  %v2997_v55 = vunpack.c.h.bf16 %v11691_v46 }
 0x920   :  { %3036 = vmatpush.msra.mxu0 %v2894_v40  ;;  %3056 = vmatpush.msra.mxu1 %v2958_v60  ;;  %v2936_v40 = vunpack.c.l.bf16 %v11688_v12  ;;  %v3000_v60 = vunpack.c.l.bf16 %v11689_v53  ;;  %v2916_v12 = vunpack.c.l.bf16 %v11698_v36  ;;  %v11702_v53 = vld [vmem:[#allocation158_spill] sm:$0xff] }
 0x921   :  { %3077 = vmatpush.msra.mxu2 %v2891_v24  ;;  %3097 = vmatpush.msra.mxu3 %v2955_v56  ;;  %v2929_v24 = vunpack.c.h.bf16 %v11692_v47  ;;  %v2993_v56 = vunpack.c.h.bf16 %v11693_v16  ;;  %v2912_v47 = vunpack.c.l.bf16 %v11700_v50 }
 0x922   :  { %3037 = vmatpush.msra.mxu0 %v2890_v22  ;;  %3057 = vmatpush.msra.mxu1 %v2954_v54  ;;  %v2932_v22 = vunpack.c.l.bf16 %v11690_v26  ;;  %v2996_v54 = vunpack.c.l.bf16 %v11691_v46  ;;  %v11704_v26 = vld [vmem:[#allocation156_spill] sm:$0xff] }
 0x923   :  { %3078 = vmatpush.msra.mxu2 %v2887_v2  ;;  %3098 = vmatpush.msra.mxu3 %v2951_v14  ;;  %v2925_v2 = vunpack.c.h.bf16 %v11694_v5  ;;  %v2989_v14 = vunpack.c.h.bf16 %v11695_v9  ;;  %v11705_v46 = vld [vmem:[#allocation188_spill] sm:$0xff]  ;;  %v2908_v5 = vunpack.c.l.bf16 %v11702_v53 }
 0x924   :  { %3038 = vmatpush.msra.mxu0 %v2886_v1  ;;  %3058 = vmatpush.msra.mxu1 %v2950_v52  ;;  %v11697_v1 = vld [vmem:[#allocation196_spill] sm:$0xff] }
 0x925   :  { %3143 = vmatpush.msrb.mxu2 %v2949_v8  ;;  %3163 = vmatpush.msrb.mxu3 %v3013_v63  ;;  %v2992_v8 = vunpack.c.l.bf16 %v11693_v16  ;;  %v2921_v63 = vunpack.c.h.bf16 %v11696_v20  ;;  %v2985_v52 = vunpack.c.h.bf16 %v11697_v1  ;;  %v11706_v16 = vld [vmem:[#allocation154_spill] sm:$0xff]  ;;  %v2904_v20 = vunpack.c.l.bf16 %v11704_v26 }
 0x926   :  { %3103 = vmatpush.msrb.mxu0 %v2948_v57  ;;  %3123 = vmatpush.msrb.mxu1 %v3012_v33  ;;  %v11699_v57 = vld [vmem:[#allocation194_spill] sm:$0xff] }
 0x927   :  { %3144 = vmatpush.msrb.mxu2 %v2945_v42  ;;  %3164 = vmatpush.msrb.mxu3 %v3009_v38  ;;  %v2988_v42 = vunpack.c.l.bf16 %v11695_v9  ;;  %v2917_v38 = vunpack.c.h.bf16 %v11698_v36  ;;  %v2981_v33 = vunpack.c.h.bf16 %v11699_v57  ;;  %v11708_v9 = vld [vmem:[#allocation152_spill] sm:$0xff]  ;;  %v2900_v36 = vunpack.c.l.bf16 %v11706_v16 }
 0x928   :  { %3104 = vmatpush.msrb.mxu0 %v2944_v44  ;;  %3124 = vmatpush.msrb.mxu1 %v3008_v59  ;;  %v11701_v44 = vld [vmem:[#allocation192_spill] sm:$0xff] }
 0x929   :  { %3145 = vmatpush.msrb.mxu2 %v2941_v18  ;;  %3165 = vmatpush.msrb.mxu3 %v3005_v39  ;;  %v2984_v18 = vunpack.c.l.bf16 %v11697_v1  ;;  %v2913_v39 = vunpack.c.h.bf16 %v11700_v50  ;;  %v2977_v59 = vunpack.c.h.bf16 %v11701_v44  ;;  %v11710_v1 = vld [vmem:[#allocation150_spill] sm:$0xff]  ;;  %v2896_v50 = vunpack.c.l.bf16 %v11708_v9 }
 0x92a   :  { %3105 = vmatpush.msrb.mxu0 %v2940_v0  ;;  %3125 = vmatpush.msrb.mxu1 %v3004_v28  ;;  %v11703_v0 = vld [vmem:[#allocation190_spill] sm:$0xff] }
 0x92b   :  { %3146 = vmatpush.msrb.mxu2 %v2937_v30  ;;  %3166 = vmatpush.msrb.mxu3 %v3001_v45  ;;  %v2980_v30 = vunpack.c.l.bf16 %v11699_v57  ;;  %v2909_v45 = vunpack.c.h.bf16 %v11702_v53  ;;  %v2973_v28 = vunpack.c.h.bf16 %v11703_v0  ;;  %v11712_v57 = vld [vmem:[#allocation148_spill] sm:$0xff] }
 0x92c   :  { %3106 = vmatpush.msrb.mxu0 %v2936_v40  ;;  %3126 = vmatpush.msrb.mxu1 %v3000_v60  ;;  %v3019_v40 = vld [vmem:[#allocation1] sm:$0xff]  ;;  %v3020_v60 = vld [vmem:[#allocation1 + $0x9] sm:$0xff] }
 0x92d   :  { %3147 = vmatpush.msrb.mxu2 %v2933_v58  ;;  %3167 = vmatpush.msrb.mxu3 %v2997_v55  ;;  %v2905_v58 = vunpack.c.h.bf16 %v11704_v26  ;;  %v2969_v55 = vunpack.c.h.bf16 %v11705_v46 }
 0x92e   :  { %3107 = vmatpush.msrb.mxu0 %v2932_v22  ;;  %3127 = vmatpush.msrb.mxu1 %v2996_v54  ;;  %v11707_v22 = vld [vmem:[#allocation186_spill] sm:$0xff] }
 0x92f   :  { %3148 = vmatpush.msrb.mxu2 %v2929_v24  ;;  %3168 = vmatpush.msrb.mxu3 %v2993_v56  ;;  %v2976_v24 = vunpack.c.l.bf16 %v11701_v44  ;;  %v2901_v56 = vunpack.c.h.bf16 %v11706_v16  ;;  %v2965_v54 = vunpack.c.h.bf16 %v11707_v22  ;;  %v2892_v44 = vunpack.c.l.bf16 %v11710_v1 }
 0x930   :  { %3108 = vmatpush.msrb.mxu0 %v2928_v48  ;;  %3128 = vmatpush.msrb.mxu1 %v2992_v8  ;;  %v11709_v48 = vld [vmem:[#allocation184_spill] sm:$0xff] }
 0x931   :  { %3149 = vmatpush.msrb.mxu2 %v2925_v2  ;;  %3169 = vmatpush.msrb.mxu3 %v2989_v14  ;;  %v2972_v2 = vunpack.c.l.bf16 %v11703_v0  ;;  %v2897_v14 = vunpack.c.h.bf16 %v11708_v9  ;;  %v2961_v8 = vunpack.c.h.bf16 %v11709_v48  ;;  %v11715_v9 = vld [vmem:[#allocation273_spill] sm:$0xff] }
 0x932   :  { %3109 = vmatpush.msrb.mxu0 %v2924_v35  ;;  %3129 = vmatpush.msrb.mxu1 %v2988_v42  ;;  %v11711_v35 = vld [vmem:[#allocation182_spill] sm:$0xff] }
 0x933   :  { %3150 = vmatpush.msrb.mxu2 %v2921_v63  ;;  %3170 = vmatpush.msrb.mxu3 %v2985_v52  ;;  %v2968_v63 = vunpack.c.l.bf16 %v11705_v46  ;;  %v2893_v52 = vunpack.c.h.bf16 %v11710_v1  ;;  %v2957_v42 = vunpack.c.h.bf16 %v11711_v35 }
 0x934   :  { %3110 = vmatpush.msrb.mxu0 %v2920_v6  ;;  %3130 = vmatpush.msrb.mxu1 %v2984_v18  ;;  %v11713_v6 = vld [vmem:[#allocation180_spill] sm:$0xff] }
 0x935   :  { %3151 = vmatpush.msrb.mxu2 %v2917_v38  ;;  %3171 = vmatpush.msrb.mxu3 %v2981_v33  ;;  %v2964_v38 = vunpack.c.l.bf16 %v11707_v22  ;;  %v2889_v33 = vunpack.c.h.bf16 %v11712_v57  ;;  %v2953_v18 = vunpack.c.h.bf16 %v11713_v6 }
 0x936   :  { %3111 = vmatpush.msrb.mxu0 %v2916_v12  ;;  %3131 = vmatpush.msrb.mxu1 %v2980_v30  ;;  %v2888_v12 = vunpack.c.l.bf16 %v11712_v57  ;;  %v2952_v30 = vunpack.c.l.bf16 %v11713_v6 }
 0x937   :  { %3152 = vmatpush.msrb.mxu2 %v2913_v39  ;;  %3172 = vmatpush.msrb.mxu3 %v2977_v59  ;;  %v2960_v39 = vunpack.c.l.bf16 %v11709_v48  ;;  %v2956_v59 = vunpack.c.l.bf16 %v11711_v35 }
 0x938   :  { %3079 = vmatmul.f32.vlgmr.msra.gmra.mxu2 %v3019_v40  ;;  %3099 = vmatmul.f32.vlgmr.msra.gmra.mxu3 %v3020_v60 }
 0x939   :  { %3153 = vmatpush.msrb.mxu2 %v2909_v45  ;;  %3173 = vmatpush.msrb.mxu3 %v2973_v28 }
 0x93a   :  { %3112 = vmatpush.msrb.mxu0 %v2912_v47  ;;  %3132 = vmatpush.msrb.mxu1 %v2976_v24 }
 0x93b   :  { %3154 = vmatpush.msrb.mxu2 %v2905_v58  ;;  %3174 = vmatpush.msrb.mxu3 %v2969_v55 }
 0x93c   :  { %3113 = vmatpush.msrb.mxu0 %v2908_v5  ;;  %3133 = vmatpush.msrb.mxu1 %v2972_v2  ;;  %v11714_v5 = vld [vmem:[#allocation241_spill] sm:$0xff] }
 0x93d   :  { %3155 = vmatpush.msrb.mxu2 %v2901_v56  ;;  %3175 = vmatpush.msrb.mxu3 %v2965_v54  ;;  %v3314_v2 = vunpack.c.h.bf16 %v11714_v5 }
 0x93e   :  { %3114 = vmatpush.msrb.mxu0 %v2904_v20  ;;  %3134 = vmatpush.msrb.mxu1 %v2968_v63 }
 0x93f   :  { %3156 = vmatpush.msrb.mxu2 %v2897_v14  ;;  %3176 = vmatpush.msrb.mxu3 %v2961_v8  ;;  %v11716_v14 = vld [vmem:[#allocation239_spill] sm:$0xff] }
 0x940   :  { %3039 = vmatmul.f32.vlgmr.msra.gmra.mxu0 %v3019_v40  ;;  %3059 = vmatmul.f32.vlgmr.msra.gmra.mxu1 %v3020_v60  ;;  %v3310_v48 = vunpack.c.h.bf16 %v11716_v14 }
 0x941   :  { %3157 = vmatpush.msrb.mxu2 %v2893_v52  ;;  %3177 = vmatpush.msrb.mxu3 %v2957_v42 }
 0x942   :  { %3115 = vmatpush.msrb.mxu0 %v2900_v36  ;;  %3135 = vmatpush.msrb.mxu1 %v2964_v38 }
 0x943   :  { %3158 = vmatpush.msrb.mxu2 %v2889_v33  ;;  %3178 = vmatpush.msrb.mxu3 %v2953_v18 }
 0x944   :  { %3159 = vmatmul.f32.vlgmr.msrb.gmra.mxu2 %v3019_v40  ;;  %3179 = vmatmul.f32.vlgmr.msrb.gmra.mxu3 %v3020_v60 }
 0x945   :  { %3116 = vmatpush.msrb.mxu0 %v2896_v50  ;;  %3136 = vmatpush.msrb.mxu1 %v2960_v39 }
 0x947   :  { %3117 = vmatpush.msrb.mxu0 %v2892_v44  ;;  %3137 = vmatpush.msrb.mxu1 %v2956_v59 }
 0x949   :  { %3118 = vmatpush.msrb.mxu0 %v2888_v12  ;;  %3138 = vmatpush.msrb.mxu1 %v2952_v30 }
 0x94a   :  { %3119 = vmatmul.f32.vlgmr.msrb.gmra.mxu0 %v3019_v40  ;;  %3139 = vmatmul.f32.vlgmr.msrb.gmra.mxu1 %v3020_v60 }
 0x9bb   :  { %v3080_v53 = vpop.f32.mrf.mxu2  ;;  %v3100_v45 = vpop.f32.mrf.mxu3 }
 0x9bc   :  { %v3101_v0 = vadd.f32 %v3100_v45, %v3080_v53 }
 0x9bd   :  { %v3040_v28 = vpop.f32.mrf.mxu0  ;;  %v3060_v26 = vpop.f32.mrf.mxu1 }
 0x9be   :  { %v3061_v58 = vadd.f32 %v3060_v26, %v3040_v28  ;;  %v9634_v46 = vadd.f32 %v3101_v0, %v9490_v62  ;;  %v3378_v62 = vunpack.c.h.bf16 %v11715_v9 }
 0x9c0   :  { %v9637_v55 = vadd.f32 %v3061_v58, %v9493_v31  ;;  %v11717_v31 = vld [vmem:[#allocation271_spill] sm:$0xff] }
 0x9c1   :  { %v3374_v8 = vunpack.c.h.bf16 %v11717_v31 }
 0x9c7   :  { %v3120_v47 = vpop.f32.mrf.mxu0  ;;  %v3140_v24 = vpop.f32.mrf.mxu1 }
 0x9c8   :  { %v3141_v16 = vadd.f32 %v3140_v24, %v3120_v47  ;;  %v3160_v56 = vpop.f32.mrf.mxu2  ;;  %v3180_v22 = vpop.f32.mrf.mxu3 }
 0x9c9   :  { %v3181_v54 = vadd.f32 %v3180_v22, %v3160_v56 }
 0x9ca   :  { %v9640_v40 = vadd.f32 %v3141_v16, %v9496_v11 }
 0x9cb   :  { %v9643_v60 = vadd.f32 %v3181_v54, %v9499_v3 }
 0x9cc   :  { %5926 = dma.done.wait [#allocation3 + $0x3], 8192 }
 0x9cd   :  { %5927 = vsyncadd [#allocation3 + $0x3], 4294959104  ;;  %v3313_v20 = vunpack.c.l.bf16 %v11714_v5  ;;  %v3377_v63 = vunpack.c.l.bf16 %v11715_v9  ;;  %3383 = vst [vmem:[#allocation1] ss:$9 sm:$0xff] %v1732_v32  ;;  %3430 = vmatpush.msra.mxu2 %v3314_v2  ;;  %3450 = vmatpush.msra.mxu3 %v3378_v62  ;;  %v11718_v11 = vld [vmem:[#allocation237_spill] sm:$0xff]  ;;  %v3309_v35 = vunpack.c.l.bf16 %v11716_v14  ;;  %v3373_v42 = vunpack.c.l.bf16 %v11717_v31  ;;  %v11720_v32 = vld [vmem:[#allocation235_spill] sm:$0xff] }
 0x9ce   :  { %v3306_v3 = vunpack.c.h.bf16 %v11718_v11  ;;  %v11719_v1 = vld [vmem:[#allocation269_spill] sm:$0xff]  ;;  %3385 = vst [vmem:[#allocation1 + $0x1] ss:$9 sm:$0xff] %v1733_v13  ;;  %v3305_v36 = vunpack.c.l.bf16 %v11718_v11  ;;  %v3302_v38 = vunpack.c.h.bf16 %v11720_v32  ;;  %v11721_v57 = vld [vmem:[#allocation267_spill] sm:$0xff]  ;;  %v3301_v6 = vunpack.c.l.bf16 %v11720_v32 }
 0x9cf   :  { %v3370_v52 = vunpack.c.h.bf16 %v11719_v1  ;;  %3390 = vmatpush.msra.mxu0 %v3313_v20  ;;  %3410 = vmatpush.msra.mxu1 %v3377_v63  ;;  %v3369_v7 = vunpack.c.l.bf16 %v11719_v1  ;;  %v3366_v33 = vunpack.c.h.bf16 %v11721_v57  ;;  %v3365_v18 = vunpack.c.l.bf16 %v11721_v57  ;;  %v11722_v27 = vld [vmem:[#allocation233_spill] sm:$0xff]  ;;  %v11724_v12 = vld [vmem:[#allocation231_spill] sm:$0xff] }
 0x9d0   :  { %3431 = vmatpush.msra.mxu2 %v3310_v48  ;;  %3451 = vmatpush.msra.mxu3 %v3374_v8  ;;  %v3298_v13 = vunpack.c.h.bf16 %v11722_v27  ;;  %v11723_v50 = vld [vmem:[#allocation265_spill] sm:$0xff]  ;;  %v3297_v44 = vunpack.c.l.bf16 %v11722_v27  ;;  %v3294_v30 = vunpack.c.h.bf16 %v11724_v12  ;;  %v11725_v53 = vld [vmem:[#allocation263_spill] sm:$0xff]  ;;  %v3293_v0 = vunpack.c.l.bf16 %v11724_v12 }
 0x9d1   :  { %3391 = vmatpush.msra.mxu0 %v3309_v35  ;;  %3411 = vmatpush.msra.mxu1 %v3373_v42  ;;  %v3362_v39 = vunpack.c.h.bf16 %v11723_v50  ;;  %v3361_v59 = vunpack.c.l.bf16 %v11723_v50  ;;  %v3358_v45 = vunpack.c.h.bf16 %v11725_v53  ;;  %v3357_v28 = vunpack.c.l.bf16 %v11725_v53  ;;  %v11726_v26 = vld [vmem:[#allocation229_spill] sm:$0xff]  ;;  %v11728_v22 = vld [vmem:[#allocation227_spill] sm:$0xff] }
 0x9d2   :  { %3432 = vmatpush.msra.mxu2 %v3306_v3  ;;  %3452 = vmatpush.msra.mxu3 %v3370_v52  ;;  %v3290_v58 = vunpack.c.h.bf16 %v11726_v26  ;;  %v11727_v47 = vld [vmem:[#allocation261_spill] sm:$0xff]  ;;  %v3289_v16 = vunpack.c.l.bf16 %v11726_v26  ;;  %v3286_v54 = vunpack.c.h.bf16 %v11728_v22  ;;  %v11729_v5 = vld [vmem:[#allocation259_spill] sm:$0xff]  ;;  %v3285_v9 = vunpack.c.l.bf16 %v11728_v22 }
 0x9d3   :  { %3392 = vmatpush.msra.mxu0 %v3305_v36  ;;  %3412 = vmatpush.msra.mxu1 %v3369_v7  ;;  %v3354_v24 = vunpack.c.h.bf16 %v11727_v47  ;;  %v3353_v56 = vunpack.c.l.bf16 %v11727_v47  ;;  %v3350_v2 = vunpack.c.h.bf16 %v11729_v5  ;;  %v3349_v62 = vunpack.c.l.bf16 %v11729_v5  ;;  %v11730_v14 = vld [vmem:[#allocation225_spill] sm:$0xff]  ;;  %v11732_v11 = vld [vmem:[#allocation223_spill] sm:$0xff] }
 0x9d4   :  { %3433 = vmatpush.msra.mxu2 %v3302_v38  ;;  %3453 = vmatpush.msra.mxu3 %v3366_v33  ;;  %v3282_v48 = vunpack.c.h.bf16 %v11730_v14  ;;  %v11731_v31 = vld [vmem:[#allocation257_spill] sm:$0xff]  ;;  %v3281_v20 = vunpack.c.l.bf16 %v11730_v14  ;;  %v3278_v3 = vunpack.c.h.bf16 %v11732_v11  ;;  %v11733_v1 = vld [vmem:[#allocation255_spill] sm:$0xff]  ;;  %v3277_v35 = vunpack.c.l.bf16 %v11732_v11 }
 0x9d5   :  { %3393 = vmatpush.msra.mxu0 %v3301_v6  ;;  %3413 = vmatpush.msra.mxu1 %v3365_v18  ;;  %v3346_v8 = vunpack.c.h.bf16 %v11731_v31  ;;  %v3345_v63 = vunpack.c.l.bf16 %v11731_v31  ;;  %v3342_v52 = vunpack.c.h.bf16 %v11733_v1  ;;  %v3341_v42 = vunpack.c.l.bf16 %v11733_v1  ;;  %v11734_v36 = vld [vmem:[#allocation221_spill] sm:$0xff]  ;;  %v11736_v6 = vld [vmem:[#allocation219_spill] sm:$0xff]  ;;  %v11746_v31 = vld [vmem:[#allocation242_spill] sm:$0xff] }
 0x9d6   :  { %3434 = vmatpush.msra.mxu2 %v3298_v13  ;;  %3454 = vmatpush.msra.mxu3 %v3362_v39  ;;  %v3274_v7 = vunpack.c.h.bf16 %v11734_v36  ;;  %v11735_v32 = vld [vmem:[#allocation253_spill] sm:$0xff]  ;;  %v3273_v57 = vunpack.c.l.bf16 %v11734_v36  ;;  %v3270_v18 = vunpack.c.h.bf16 %v11736_v6  ;;  %v11737_v27 = vld [vmem:[#allocation251_spill] sm:$0xff]  ;;  %v3269_v50 = vunpack.c.l.bf16 %v11736_v6  ;;  %v11748_v1 = vld [vmem:[#allocation240_spill] sm:$0xff] }
 0x9d7   :  { %3394 = vmatpush.msra.mxu0 %v3297_v44  ;;  %3414 = vmatpush.msra.mxu1 %v3361_v59  ;;  %v3338_v38 = vunpack.c.h.bf16 %v11735_v32  ;;  %v3337_v33 = vunpack.c.l.bf16 %v11735_v32  ;;  %v3334_v13 = vunpack.c.h.bf16 %v11737_v27  ;;  %v3333_v39 = vunpack.c.l.bf16 %v11737_v27  ;;  %v11738_v44 = vld [vmem:[#allocation217_spill] sm:$0xff]  ;;  %v11741_v26 = vld [vmem:[#allocation247_spill] sm:$0xff]  ;;  %v11750_v32 = vld [vmem:[#allocation238_spill] sm:$0xff] }
 0x9d8   :  { %3435 = vmatpush.msra.mxu2 %v3294_v30  ;;  %3455 = vmatpush.msra.mxu3 %v3358_v45  ;;  %v3266_v59 = vunpack.c.h.bf16 %v11738_v44  ;;  %v11739_v12 = vld [vmem:[#allocation249_spill] sm:$0xff]  ;;  %v3265_v53 = vunpack.c.l.bf16 %v11738_v44  ;;  %v11745_v14 = vld [vmem:[#allocation243_spill] sm:$0xff]  ;;  %v3315_v36 = vunpack.c.l.bf16 %v11746_v31  ;;  %v3311_v6 = vunpack.c.l.bf16 %v11748_v1  ;;  %v11752_v27 = vld [vmem:[#allocation236_spill] sm:$0xff] }
 0x9d9   :  { %3395 = vmatpush.msra.mxu0 %v3293_v0  ;;  %3415 = vmatpush.msra.mxu1 %v3357_v28  ;;  %v3330_v30 = vunpack.c.h.bf16 %v11739_v12  ;;  %v3329_v45 = vunpack.c.l.bf16 %v11739_v12  ;;  %v11740_v0 = vld [vmem:[#allocation215_spill] sm:$0xff]  ;;  %v11743_v22 = vld [vmem:[#allocation245_spill] sm:$0xff]  ;;  %v3307_v44 = vunpack.c.l.bf16 %v11750_v32  ;;  %v11754_v12 = vld [vmem:[#allocation234_spill] sm:$0xff] }
 0x9da   :  { %3436 = vmatpush.msra.mxu2 %v3290_v58  ;;  %3456 = vmatpush.msra.mxu3 %v3354_v24  ;;  %v3262_v28 = vunpack.c.h.bf16 %v11740_v0  ;;  %v3326_v58 = vunpack.c.h.bf16 %v11741_v26  ;;  %v3261_v47 = vunpack.c.l.bf16 %v11740_v0  ;;  %v3325_v24 = vunpack.c.l.bf16 %v11741_v26  ;;  %v11756_v26 = vld [vmem:[#allocation232_spill] sm:$0xff] }
 0x9db   :  { %3396 = vmatpush.msra.mxu0 %v3289_v16  ;;  %3416 = vmatpush.msra.mxu1 %v3353_v56  ;;  %v11742_v16 = vld [vmem:[#allocation213_spill] sm:$0xff]  ;;  %v3303_v0 = vunpack.c.l.bf16 %v11752_v27 }
 0x9dc   :  { %3437 = vmatpush.msra.mxu2 %v3286_v54  ;;  %3457 = vmatpush.msra.mxu3 %v3350_v2  ;;  %v3258_v56 = vunpack.c.h.bf16 %v11742_v16  ;;  %v3322_v54 = vunpack.c.h.bf16 %v11743_v22  ;;  %v3257_v5 = vunpack.c.l.bf16 %v11742_v16  ;;  %v3321_v2 = vunpack.c.l.bf16 %v11743_v22  ;;  %v11758_v22 = vld [vmem:[#allocation230_spill] sm:$0xff] }
 0x9dd   :  { %3397 = vmatpush.msra.mxu0 %v3285_v9  ;;  %3417 = vmatpush.msra.mxu1 %v3349_v62  ;;  %v11744_v9 = vld [vmem:[#allocation211_spill] sm:$0xff]  ;;  %v3299_v16 = vunpack.c.l.bf16 %v11754_v12 }
 0x9de   :  { %3438 = vmatpush.msra.mxu2 %v3282_v48  ;;  %3458 = vmatpush.msra.mxu3 %v3346_v8  ;;  %v3254_v62 = vunpack.c.h.bf16 %v11744_v9  ;;  %v3318_v48 = vunpack.c.h.bf16 %v11745_v14  ;;  %v3316_v8 = vunpack.c.h.bf16 %v11746_v31  ;;  %v3253_v11 = vunpack.c.l.bf16 %v11744_v9  ;;  %v11761_v31 = vld [vmem:[#allocation260_spill] sm:$0xff] }
 0x9df   :  { %3398 = vmatpush.msra.mxu0 %v3281_v20  ;;  %3418 = vmatpush.msra.mxu1 %v3345_v63  ;;  %v11747_v20 = vld [vmem:[#allocation274_spill] sm:$0xff]  ;;  %v3295_v9 = vunpack.c.l.bf16 %v11756_v26 }
 0x9e0   :  { %3439 = vmatpush.msra.mxu2 %v3278_v3  ;;  %3459 = vmatpush.msra.mxu3 %v3342_v52  ;;  %v3380_v63 = vunpack.c.h.bf16 %v11747_v20  ;;  %v3317_v3 = vunpack.c.l.bf16 %v11745_v14  ;;  %v3312_v52 = vunpack.c.h.bf16 %v11748_v1  ;;  %v11760_v14 = vld [vmem:[#allocation228_spill] sm:$0xff]  ;;  %v11763_v1 = vld [vmem:[#allocation258_spill] sm:$0xff] }
 0x9e1   :  { %3399 = vmatpush.msra.mxu0 %v3277_v35  ;;  %3419 = vmatpush.msra.mxu1 %v3341_v42  ;;  %v11749_v35 = vld [vmem:[#allocation272_spill] sm:$0xff] }
 0x9e2   :  { %3440 = vmatpush.msra.mxu2 %v3274_v7  ;;  %3460 = vmatpush.msra.mxu3 %v3338_v38  ;;  %v3376_v42 = vunpack.c.h.bf16 %v11749_v35  ;;  %v3379_v7 = vunpack.c.l.bf16 %v11747_v20  ;;  %v3308_v38 = vunpack.c.h.bf16 %v11750_v32  ;;  %v3291_v20 = vunpack.c.l.bf16 %v11758_v22  ;;  %v11765_v32 = vld [vmem:[#allocation256_spill] sm:$0xff] }
 0x9e3   :  { %3400 = vmatpush.msra.mxu0 %v3273_v57  ;;  %3420 = vmatpush.msra.mxu1 %v3337_v33  ;;  %v11751_v57 = vld [vmem:[#allocation270_spill] sm:$0xff] }
 0x9e4   :  { %3441 = vmatpush.msra.mxu2 %v3270_v18  ;;  %3461 = vmatpush.msra.mxu3 %v3334_v13  ;;  %v3372_v33 = vunpack.c.h.bf16 %v11751_v57  ;;  %v3375_v18 = vunpack.c.l.bf16 %v11749_v35  ;;  %v3304_v13 = vunpack.c.h.bf16 %v11752_v27  ;;  %v3287_v35 = vunpack.c.l.bf16 %v11760_v14  ;;  %v11767_v27 = vld [vmem:[#allocation254_spill] sm:$0xff] }
 0x9e5   :  { %3401 = vmatpush.msra.mxu0 %v3269_v50  ;;  %3421 = vmatpush.msra.mxu1 %v3333_v39  ;;  %v11753_v50 = vld [vmem:[#allocation268_spill] sm:$0xff] }
 0x9e6   :  { %3442 = vmatpush.msra.mxu2 %v3266_v59  ;;  %3462 = vmatpush.msra.mxu3 %v3330_v30  ;;  %v3368_v39 = vunpack.c.h.bf16 %v11753_v50  ;;  %v3371_v59 = vunpack.c.l.bf16 %v11751_v57  ;;  %v3300_v30 = vunpack.c.h.bf16 %v11754_v12  ;;  %v3386_v12 = vld [vmem:[#allocation1] sm:$0xff] }
 0x9e7   :  { %3402 = vmatpush.msra.mxu0 %v3265_v53  ;;  %3422 = vmatpush.msra.mxu1 %v3329_v45  ;;  %v11755_v53 = vld [vmem:[#allocation266_spill] sm:$0xff] }
 0x9e8   :  { %3443 = vmatpush.msra.mxu2 %v3262_v28  ;;  %3463 = vmatpush.msra.mxu3 %v3326_v58  ;;  %v3364_v45 = vunpack.c.h.bf16 %v11755_v53  ;;  %v3367_v28 = vunpack.c.l.bf16 %v11753_v50  ;;  %v3296_v58 = vunpack.c.h.bf16 %v11756_v26  ;;  %v11768_v50 = vld [vmem:[#allocation220_spill] sm:$0xff]  ;;  %v11771_v26 = vld [vmem:[#allocation250_spill] sm:$0xff] }
 0x9e9   :  { %3403 = vmatpush.msra.mxu0 %v3261_v47  ;;  %3423 = vmatpush.msra.mxu1 %v3325_v24  ;;  %v11757_v47 = vld [vmem:[#allocation264_spill] sm:$0xff] }
 0x9ea   :  { %3444 = vmatpush.msra.mxu2 %v3258_v56  ;;  %3464 = vmatpush.msra.mxu3 %v3322_v54  ;;  %v3360_v24 = vunpack.c.h.bf16 %v11757_v47  ;;  %v3363_v56 = vunpack.c.l.bf16 %v11755_v53  ;;  %v3292_v54 = vunpack.c.h.bf16 %v11758_v22  ;;  %v11773_v22 = vld [vmem:[#allocation248_spill] sm:$0xff] }
 0x9eb   :  { %3404 = vmatpush.msra.mxu0 %v3257_v5  ;;  %3424 = vmatpush.msra.mxu1 %v3321_v2  ;;  %v11759_v5 = vld [vmem:[#allocation262_spill] sm:$0xff] }
 0x9ec   :  { %3445 = vmatpush.msra.mxu2 %v3254_v62  ;;  %3465 = vmatpush.msra.mxu3 %v3318_v48  ;;  %v3356_v2 = vunpack.c.h.bf16 %v11759_v5  ;;  %v3359_v62 = vunpack.c.l.bf16 %v11757_v47  ;;  %v3288_v48 = vunpack.c.h.bf16 %v11760_v14  ;;  %v11775_v14 = vld [vmem:[#allocation246_spill] sm:$0xff] }
 0x9ed   :  { %3405 = vmatpush.msra.mxu0 %v3253_v11  ;;  %3425 = vmatpush.msra.mxu1 %v3317_v3  ;;  %v11762_v11 = vld [vmem:[#allocation226_spill] sm:$0xff] }
 0x9ee   :  { %3510 = vmatpush.msrb.mxu2 %v3316_v8  ;;  %3530 = vmatpush.msrb.mxu3 %v3380_v63  ;;  %v3352_v8 = vunpack.c.h.bf16 %v11761_v31  ;;  %v3355_v63 = vunpack.c.l.bf16 %v11759_v5  ;;  %v3284_v3 = vunpack.c.h.bf16 %v11762_v11  ;;  %v3283_v57 = vunpack.c.l.bf16 %v11762_v11  ;;  %v11777_v11 = vld [vmem:[#allocation244_spill] sm:$0xff] }
 0x9ef   :  { %3470 = vmatpush.msrb.mxu0 %v3315_v36  ;;  %3490 = vmatpush.msrb.mxu1 %v3379_v7  ;;  %v11764_v36 = vld [vmem:[#allocation224_spill] sm:$0xff]  ;;  %v3271_v5 = vunpack.c.l.bf16 %v11768_v50 }
 0x9f0   :  { %3511 = vmatpush.msrb.mxu2 %v3312_v52  ;;  %3531 = vmatpush.msrb.mxu3 %v3376_v42  ;;  %v3348_v52 = vunpack.c.h.bf16 %v11763_v1  ;;  %v3351_v42 = vunpack.c.l.bf16 %v11761_v31  ;;  %v3280_v7 = vunpack.c.h.bf16 %v11764_v36  ;;  %v3279_v53 = vunpack.c.l.bf16 %v11764_v36 }
 0x9f1   :  { %3471 = vmatpush.msrb.mxu0 %v3311_v6  ;;  %3491 = vmatpush.msrb.mxu1 %v3375_v18  ;;  %v11766_v6 = vld [vmem:[#allocation222_spill] sm:$0xff] }
 0x9f2   :  { %3512 = vmatpush.msrb.mxu2 %v3308_v38  ;;  %3532 = vmatpush.msrb.mxu3 %v3372_v33  ;;  %v3344_v38 = vunpack.c.h.bf16 %v11765_v32  ;;  %v3347_v33 = vunpack.c.l.bf16 %v11763_v1  ;;  %v3276_v18 = vunpack.c.h.bf16 %v11766_v6  ;;  %v3275_v47 = vunpack.c.l.bf16 %v11766_v6 }
 0x9f3   :  { %3472 = vmatpush.msrb.mxu0 %v3307_v44  ;;  %3492 = vmatpush.msrb.mxu1 %v3371_v59  ;;  %v11769_v44 = vld [vmem:[#allocation252_spill] sm:$0xff] }
 0x9f4   :  { %3513 = vmatpush.msrb.mxu2 %v3304_v13  ;;  %3533 = vmatpush.msrb.mxu3 %v3368_v39  ;;  %v3340_v13 = vunpack.c.h.bf16 %v11767_v27  ;;  %v3272_v39 = vunpack.c.h.bf16 %v11768_v50  ;;  %v3336_v59 = vunpack.c.h.bf16 %v11769_v44 }
 0x9f5   :  { %3473 = vmatpush.msrb.mxu0 %v3303_v0  ;;  %3493 = vmatpush.msrb.mxu1 %v3367_v28  ;;  %v11770_v0 = vld [vmem:[#allocation218_spill] sm:$0xff] }
 0x9f6   :  { %3514 = vmatpush.msrb.mxu2 %v3300_v30  ;;  %3534 = vmatpush.msrb.mxu3 %v3364_v45  ;;  %v3387_v30 = vld [vmem:[#allocation1 + $0x9] sm:$0xff]  ;;  %v3343_v45 = vunpack.c.l.bf16 %v11765_v32  ;;  %v3268_v28 = vunpack.c.h.bf16 %v11770_v0  ;;  %v3267_v31 = vunpack.c.l.bf16 %v11770_v0 }
 0x9f7   :  { %3474 = vmatpush.msrb.mxu0 %v3299_v16  ;;  %3494 = vmatpush.msrb.mxu1 %v3363_v56  ;;  %v11772_v16 = vld [vmem:[#allocation216_spill] sm:$0xff]  ;;  %v11778_v0 = vld [vmem:[#allocation305_spill] sm:$0xff] }
 0x9f8   :  { %3515 = vmatpush.msrb.mxu2 %v3296_v58  ;;  %3535 = vmatpush.msrb.mxu3 %v3360_v24  ;;  %v3332_v58 = vunpack.c.h.bf16 %v11771_v26  ;;  %v3339_v24 = vunpack.c.l.bf16 %v11767_v27  ;;  %v3264_v56 = vunpack.c.h.bf16 %v11772_v16  ;;  %v3263_v1 = vunpack.c.l.bf16 %v11772_v16 }
 0x9f9   :  { %3475 = vmatpush.msrb.mxu0 %v3295_v9  ;;  %3495 = vmatpush.msrb.mxu1 %v3359_v62  ;;  %v11774_v9 = vld [vmem:[#allocation214_spill] sm:$0xff] }
 0x9fa   :  { %3516 = vmatpush.msrb.mxu2 %v3292_v54  ;;  %3536 = vmatpush.msrb.mxu3 %v3356_v2  ;;  %v3328_v54 = vunpack.c.h.bf16 %v11773_v22  ;;  %v3335_v2 = vunpack.c.l.bf16 %v11769_v44  ;;  %v3260_v62 = vunpack.c.h.bf16 %v11774_v9 }
 0x9fb   :  { %3476 = vmatpush.msrb.mxu0 %v3291_v20  ;;  %3496 = vmatpush.msrb.mxu1 %v3355_v63  ;;  %v11776_v20 = vld [vmem:[#allocation212_spill] sm:$0xff] }
 0x9fc   :  { %3517 = vmatpush.msrb.mxu2 %v3288_v48  ;;  %3537 = vmatpush.msrb.mxu3 %v3352_v8  ;;  %v3324_v48 = vunpack.c.h.bf16 %v11775_v14  ;;  %v3331_v8 = vunpack.c.l.bf16 %v11771_v26  ;;  %v3256_v63 = vunpack.c.h.bf16 %v11776_v20  ;;  %v3255_v36 = vunpack.c.l.bf16 %v11776_v20  ;;  %v11779_v26 = vld [vmem:[#allocation337_spill] sm:$0xff] }
 0x9fd   :  { %3477 = vmatpush.msrb.mxu0 %v3287_v35  ;;  %3497 = vmatpush.msrb.mxu1 %v3351_v42  ;;  %v3259_v35 = vunpack.c.l.bf16 %v11774_v9  ;;  %v3323_v42 = vunpack.c.l.bf16 %v11775_v14 }
 0x9fe   :  { %3518 = vmatpush.msrb.mxu2 %v3284_v3  ;;  %3538 = vmatpush.msrb.mxu3 %v3348_v52  ;;  %v3320_v3 = vunpack.c.h.bf16 %v11777_v11  ;;  %v3327_v52 = vunpack.c.l.bf16 %v11773_v22 }
 0x9ff   :  { %3478 = vmatpush.msrb.mxu0 %v3283_v57  ;;  %3498 = vmatpush.msrb.mxu1 %v3347_v33 }
 0xa00   :  { %3519 = vmatpush.msrb.mxu2 %v3280_v7  ;;  %3539 = vmatpush.msrb.mxu3 %v3344_v38  ;;  %v3319_v7 = vunpack.c.l.bf16 %v11777_v11 }
 0xa01   :  { %3446 = vmatmul.f32.vlgmr.msra.gmra.mxu2 %v3386_v12  ;;  %3466 = vmatmul.f32.vlgmr.msra.gmra.mxu3 %v3387_v30 }
 0xa02   :  { %3520 = vmatpush.msrb.mxu2 %v3276_v18  ;;  %3540 = vmatpush.msrb.mxu3 %v3340_v13 }
 0xa03   :  { %3479 = vmatpush.msrb.mxu0 %v3279_v53  ;;  %3499 = vmatpush.msrb.mxu1 %v3343_v45 }
 0xa04   :  { %3521 = vmatpush.msrb.mxu2 %v3272_v39  ;;  %3541 = vmatpush.msrb.mxu3 %v3336_v59 }
 0xa05   :  { %3480 = vmatpush.msrb.mxu0 %v3275_v47  ;;  %3500 = vmatpush.msrb.mxu1 %v3339_v24 }
 0xa06   :  { %3522 = vmatpush.msrb.mxu2 %v3268_v28  ;;  %3542 = vmatpush.msrb.mxu3 %v3332_v58  ;;  %v3681_v28 = vunpack.c.h.bf16 %v11778_v0  ;;  %v11780_v58 = vld [vmem:[#allocation303_spill] sm:$0xff] }
 0xa07   :  { %3481 = vmatpush.msrb.mxu0 %v3271_v5  ;;  %3501 = vmatpush.msrb.mxu1 %v3335_v2  ;;  %v3677_v47 = vunpack.c.h.bf16 %v11780_v58 }
 0xa08   :  { %3523 = vmatpush.msrb.mxu2 %v3264_v56  ;;  %3543 = vmatpush.msrb.mxu3 %v3328_v54 }
 0xa09   :  { %3406 = vmatmul.f32.vlgmr.msra.gmra.mxu0 %v3386_v12  ;;  %3426 = vmatmul.f32.vlgmr.msra.gmra.mxu1 %v3387_v30 }
 0xa0a   :  { %3524 = vmatpush.msrb.mxu2 %v3260_v62  ;;  %3544 = vmatpush.msrb.mxu3 %v3324_v48 }
 0xa0b   :  { %3482 = vmatpush.msrb.mxu0 %v3267_v31  ;;  %3502 = vmatpush.msrb.mxu1 %v3331_v8 }
 0xa0c   :  { %3525 = vmatpush.msrb.mxu2 %v3256_v63  ;;  %3545 = vmatpush.msrb.mxu3 %v3320_v3 }
 0xa0d   :  { %3526 = vmatmul.f32.vlgmr.msrb.gmra.mxu2 %v3386_v12  ;;  %3546 = vmatmul.f32.vlgmr.msrb.gmra.mxu3 %v3387_v30 }
 0xa0e   :  { %3483 = vmatpush.msrb.mxu0 %v3263_v1  ;;  %3503 = vmatpush.msrb.mxu1 %v3327_v52 }
 0xa10   :  { %3484 = vmatpush.msrb.mxu0 %v3259_v35  ;;  %3504 = vmatpush.msrb.mxu1 %v3323_v42 }
 0xa12   :  { %3485 = vmatpush.msrb.mxu0 %v3255_v36  ;;  %3505 = vmatpush.msrb.mxu1 %v3319_v7 }
 0xa13   :  { %3486 = vmatmul.f32.vlgmr.msrb.gmra.mxu0 %v3386_v12  ;;  %3506 = vmatmul.f32.vlgmr.msrb.gmra.mxu1 %v3387_v30 }
 0xa84   :  { %v3447_v32 = vpop.f32.mrf.mxu2  ;;  %v3467_v38 = vpop.f32.mrf.mxu3 }
 0xa85   :  { %v3468_v57 = vadd.f32 %v3467_v38, %v3447_v32 }
 0xa86   :  { %v3407_v33 = vpop.f32.mrf.mxu0  ;;  %v3427_v6 = vpop.f32.mrf.mxu1 }
 0xa87   :  { %v3428_v18 = vadd.f32 %v3427_v6, %v3407_v33  ;;  %v9778_v27 = vadd.f32 %v3468_v57, %v9634_v46  ;;  %v3745_v46 = vunpack.c.h.bf16 %v11779_v26 }
 0xa89   :  { %v9781_v13 = vadd.f32 %v3428_v18, %v9637_v55  ;;  %v11781_v55 = vld [vmem:[#allocation335_spill] sm:$0xff] }
 0xa8a   :  { %v3741_v24 = vunpack.c.h.bf16 %v11781_v55 }
 0xa90   :  { %v3487_v50 = vpop.f32.mrf.mxu0  ;;  %v3507_v39 = vpop.f32.mrf.mxu1 }
 0xa91   :  { %v3508_v44 = vadd.f32 %v3507_v39, %v3487_v50  ;;  %v3527_v59 = vpop.f32.mrf.mxu2  ;;  %v3547_v53 = vpop.f32.mrf.mxu3 }
 0xa92   :  { %v3548_v45 = vadd.f32 %v3547_v53, %v3527_v59 }
 0xa93   :  { %v9784_v12 = vadd.f32 %v3508_v44, %v9640_v40 }
 0xa94   :  { %v9787_v30 = vadd.f32 %v3548_v45, %v9643_v60 }
 0xa95   :  { %5928 = dma.done.wait [#allocation3 + $0x4], 8192 }
 0xa96   :  { %5929 = vsyncadd [#allocation3 + $0x4], 4294959104  ;;  %v3680_v16 = vunpack.c.l.bf16 %v11778_v0  ;;  %v3744_v56 = vunpack.c.l.bf16 %v11779_v26  ;;  %3750 = vst [vmem:[#allocation1] ss:$9 sm:$0xff] %v1817_v41  ;;  %3797 = vmatpush.msra.mxu2 %v3681_v28  ;;  %3817 = vmatpush.msra.mxu3 %v3745_v46  ;;  %v11782_v40 = vld [vmem:[#allocation301_spill] sm:$0xff]  ;;  %v3676_v5 = vunpack.c.l.bf16 %v11780_v58  ;;  %v3740_v2 = vunpack.c.l.bf16 %v11781_v55  ;;  %v11784_v41 = vld [vmem:[#allocation299_spill] sm:$0xff] }
 0xa97   :  { %v3673_v60 = vunpack.c.h.bf16 %v11782_v40  ;;  %v11783_v22 = vld [vmem:[#allocation333_spill] sm:$0xff]  ;;  %3752 = vst [vmem:[#allocation1 + $0x1] ss:$9 sm:$0xff] %v1818_v25  ;;  %v3672_v9 = vunpack.c.l.bf16 %v11782_v40  ;;  %v3669_v62 = vunpack.c.h.bf16 %v11784_v41  ;;  %v11785_v14 = vld [vmem:[#allocation331_spill] sm:$0xff]  ;;  %v3668_v31 = vunpack.c.l.bf16 %v11784_v41 }
 0xa98   :  { %v3737_v54 = vunpack.c.h.bf16 %v11783_v22  ;;  %3757 = vmatpush.msra.mxu0 %v3680_v16  ;;  %3777 = vmatpush.msra.mxu1 %v3744_v56  ;;  %v3736_v21 = vunpack.c.l.bf16 %v11783_v22  ;;  %v3733_v48 = vunpack.c.h.bf16 %v11785_v14  ;;  %v3732_v8 = vunpack.c.l.bf16 %v11785_v14  ;;  %v11786_v51 = vld [vmem:[#allocation297_spill] sm:$0xff]  ;;  %v11788_v1 = vld [vmem:[#allocation295_spill] sm:$0xff] }
 0xa99   :  { %3798 = vmatpush.msra.mxu2 %v3677_v47  ;;  %3818 = vmatpush.msra.mxu3 %v3741_v24  ;;  %v3665_v25 = vunpack.c.h.bf16 %v11786_v51  ;;  %v11787_v20 = vld [vmem:[#allocation329_spill] sm:$0xff]  ;;  %v3664_v11 = vunpack.c.l.bf16 %v11786_v51  ;;  %v3661_v52 = vunpack.c.h.bf16 %v11788_v1  ;;  %v11789_v35 = vld [vmem:[#allocation327_spill] sm:$0xff]  ;;  %v3660_v36 = vunpack.c.l.bf16 %v11788_v1 }
 0xa9a   :  { %3758 = vmatpush.msra.mxu0 %v3676_v5  ;;  %3778 = vmatpush.msra.mxu1 %v3740_v2  ;;  %v3729_v63 = vunpack.c.h.bf16 %v11787_v20  ;;  %v3728_v3 = vunpack.c.l.bf16 %v11787_v20  ;;  %v3725_v42 = vunpack.c.h.bf16 %v11789_v35  ;;  %v3724_v7 = vunpack.c.l.bf16 %v11789_v35  ;;  %v11790_v32 = vld [vmem:[#allocation293_spill] sm:$0xff]  ;;  %v11792_v50 = vld [vmem:[#allocation291_spill] sm:$0xff] }
 0xa9b   :  { %3799 = vmatpush.msra.mxu2 %v3673_v60  ;;  %3819 = vmatpush.msra.mxu3 %v3737_v54  ;;  %v3657_v38 = vunpack.c.h.bf16 %v11790_v32  ;;  %v11791_v57 = vld [vmem:[#allocation325_spill] sm:$0xff]  ;;  %v3656_v6 = vunpack.c.l.bf16 %v11790_v32  ;;  %v3653_v39 = vunpack.c.h.bf16 %v11792_v50  ;;  %v11793_v44 = vld [vmem:[#allocation323_spill] sm:$0xff]  ;;  %v3652_v53 = vunpack.c.l.bf16 %v11792_v50 }
 0xa9c   :  { %3759 = vmatpush.msra.mxu0 %v3672_v9  ;;  %3779 = vmatpush.msra.mxu1 %v3736_v21  ;;  %v3721_v33 = vunpack.c.h.bf16 %v11791_v57  ;;  %v3720_v18 = vunpack.c.l.bf16 %v11791_v57  ;;  %v3717_v59 = vunpack.c.h.bf16 %v11793_v44  ;;  %v3716_v45 = vunpack.c.l.bf16 %v11793_v44  ;;  %v11794_v0 = vld [vmem:[#allocation289_spill] sm:$0xff]  ;;  %v11796_v55 = vld [vmem:[#allocation287_spill] sm:$0xff] }
 0xa9d   :  { %3800 = vmatpush.msra.mxu2 %v3669_v62  ;;  %3820 = vmatpush.msra.mxu3 %v3733_v48  ;;  %v3649_v28 = vunpack.c.h.bf16 %v11794_v0  ;;  %v11795_v26 = vld [vmem:[#allocation321_spill] sm:$0xff]  ;;  %v3648_v58 = vunpack.c.l.bf16 %v11794_v0  ;;  %v3645_v24 = vunpack.c.h.bf16 %v11796_v55  ;;  %v11797_v16 = vld [vmem:[#allocation319_spill] sm:$0xff]  ;;  %v3644_v40 = vunpack.c.l.bf16 %v11796_v55  ;;  %v11811_v0 = vld [vmem:[#allocation338_spill] sm:$0xff] }
 0xa9e   :  { %3760 = vmatpush.msra.mxu0 %v3668_v31  ;;  %3780 = vmatpush.msra.mxu1 %v3732_v8  ;;  %v3713_v46 = vunpack.c.h.bf16 %v11795_v26  ;;  %v3712_v47 = vunpack.c.l.bf16 %v11795_v26  ;;  %v3709_v56 = vunpack.c.h.bf16 %v11797_v16  ;;  %v3708_v60 = vunpack.c.l.bf16 %v11797_v16  ;;  %v11798_v22 = vld [vmem:[#allocation285_spill] sm:$0xff]  ;;  %v11800_v41 = vld [vmem:[#allocation283_spill] sm:$0xff]  ;;  %v11813_v55 = vld [vmem:[#allocation336_spill] sm:$0xff] }
 0xa9f   :  { %3801 = vmatpush.msra.mxu2 %v3665_v25  ;;  %3821 = vmatpush.msra.mxu3 %v3729_v63  ;;  %v3641_v54 = vunpack.c.h.bf16 %v11798_v22  ;;  %v11799_v5 = vld [vmem:[#allocation317_spill] sm:$0xff]  ;;  %v3640_v9 = vunpack.c.l.bf16 %v11798_v22  ;;  %v3637_v62 = vunpack.c.h.bf16 %v11800_v41  ;;  %v11801_v14 = vld [vmem:[#allocation315_spill] sm:$0xff]  ;;  %v3636_v31 = vunpack.c.l.bf16 %v11800_v41  ;;  %v11815_v22 = vld [vmem:[#allocation334_spill] sm:$0xff] }
 0xaa0   :  { %3761 = vmatpush.msra.mxu0 %v3664_v11  ;;  %3781 = vmatpush.msra.mxu1 %v3728_v3  ;;  %v3705_v2 = vunpack.c.h.bf16 %v11799_v5  ;;  %v3704_v21 = vunpack.c.l.bf16 %v11799_v5  ;;  %v3701_v48 = vunpack.c.h.bf16 %v11801_v14  ;;  %v3700_v8 = vunpack.c.l.bf16 %v11801_v14  ;;  %v11802_v51 = vld [vmem:[#allocation281_spill] sm:$0xff]  ;;  %v11804_v1 = vld [vmem:[#allocation279_spill] sm:$0xff]  ;;  %v11817_v41 = vld [vmem:[#allocation332_spill] sm:$0xff] }
 0xaa1   :  { %3802 = vmatpush.msra.mxu2 %v3661_v52  ;;  %3822 = vmatpush.msra.mxu3 %v3725_v42  ;;  %v3633_v25 = vunpack.c.h.bf16 %v11802_v51  ;;  %v11803_v20 = vld [vmem:[#allocation313_spill] sm:$0xff]  ;;  %v3632_v11 = vunpack.c.l.bf16 %v11802_v51  ;;  %v3629_v52 = vunpack.c.h.bf16 %v11804_v1  ;;  %v11805_v35 = vld [vmem:[#allocation311_spill] sm:$0xff]  ;;  %v11819_v51 = vld [vmem:[#allocation330_spill] sm:$0xff] }
 0xaa2   :  { %3762 = vmatpush.msra.mxu0 %v3660_v36  ;;  %3782 = vmatpush.msra.mxu1 %v3724_v7  ;;  %v3697_v63 = vunpack.c.h.bf16 %v11803_v20  ;;  %v3696_v3 = vunpack.c.l.bf16 %v11803_v20  ;;  %v3693_v42 = vunpack.c.h.bf16 %v11805_v35  ;;  %v3628_v36 = vunpack.c.l.bf16 %v11804_v1  ;;  %v11806_v32 = vld [vmem:[#allocation277_spill] sm:$0xff]  ;;  %v11808_v50 = vld [vmem:[#allocation275_spill] sm:$0xff]  ;;  %v11821_v1 = vld [vmem:[#allocation328_spill] sm:$0xff] }
 0xaa3   :  { %3803 = vmatpush.msra.mxu2 %v3657_v38  ;;  %3823 = vmatpush.msra.mxu3 %v3721_v33  ;;  %v3692_v7 = vunpack.c.l.bf16 %v11805_v35  ;;  %v3625_v38 = vunpack.c.h.bf16 %v11806_v32  ;;  %v11807_v57 = vld [vmem:[#allocation309_spill] sm:$0xff]  ;;  %v11809_v44 = vld [vmem:[#allocation307_spill] sm:$0xff]  ;;  %v3620_v26 = vunpack.c.l.bf16 %v11808_v50 }
 0xaa4   :  { %3763 = vmatpush.msra.mxu0 %v3656_v6  ;;  %3783 = vmatpush.msra.mxu1 %v3720_v18  ;;  %v3689_v33 = vunpack.c.h.bf16 %v11807_v57  ;;  %v3624_v6 = vunpack.c.l.bf16 %v11806_v32  ;;  %v3688_v18 = vunpack.c.l.bf16 %v11807_v57  ;;  %v11823_v32 = vld [vmem:[#allocation326_spill] sm:$0xff] }
 0xaa5   :  { %3804 = vmatpush.msra.mxu2 %v3653_v39  ;;  %3824 = vmatpush.msra.mxu3 %v3717_v59  ;;  %v3621_v39 = vunpack.c.h.bf16 %v11808_v50  ;;  %v3685_v59 = vunpack.c.h.bf16 %v11809_v44  ;;  %v11825_v50 = vld [vmem:[#allocation324_spill] sm:$0xff] }
 0xaa6   :  { %3764 = vmatpush.msra.mxu0 %v3652_v53  ;;  %3784 = vmatpush.msra.mxu1 %v3716_v45  ;;  %v11810_v53 = vld [vmem:[#allocation306_spill] sm:$0xff] }
 0xaa7   :  { %3805 = vmatpush.msra.mxu2 %v3649_v28  ;;  %3825 = vmatpush.msra.mxu3 %v3713_v46  ;;  %v3683_v45 = vunpack.c.h.bf16 %v11810_v53  ;;  %v3747_v28 = vunpack.c.h.bf16 %v11811_v0  ;;  %v3684_v46 = vunpack.c.l.bf16 %v11809_v44  ;;  %v3682_v16 = vunpack.c.l.bf16 %v11810_v53  ;;  %v11826_v53 = vld [vmem:[#allocation290_spill] sm:$0xff] }
 0xaa8   :  { %3765 = vmatpush.msra.mxu0 %v3648_v58  ;;  %3785 = vmatpush.msra.mxu1 %v3712_v47  ;;  %v11812_v58 = vld [vmem:[#allocation304_spill] sm:$0xff] }
 0xaa9   :  { %3806 = vmatpush.msra.mxu2 %v3645_v24  ;;  %3826 = vmatpush.msra.mxu3 %v3709_v56  ;;  %v3679_v47 = vunpack.c.h.bf16 %v11812_v58  ;;  %v3743_v24 = vunpack.c.h.bf16 %v11813_v55  ;;  %v3746_v56 = vunpack.c.l.bf16 %v11811_v0  ;;  %v3678_v5 = vunpack.c.l.bf16 %v11812_v58  ;;  %v11827_v0 = vld [vmem:[#allocation322_spill] sm:$0xff]  ;;  %v11828_v58 = vld [vmem:[#allocation288_spill] sm:$0xff] }
 0xaaa   :  { %3766 = vmatpush.msra.mxu0 %v3644_v40  ;;  %3786 = vmatpush.msra.mxu1 %v3708_v60  ;;  %v11814_v40 = vld [vmem:[#allocation302_spill] sm:$0xff] }
 0xaab   :  { %3807 = vmatpush.msra.mxu2 %v3641_v54  ;;  %3827 = vmatpush.msra.mxu3 %v3705_v2  ;;  %v3675_v60 = vunpack.c.h.bf16 %v11814_v40  ;;  %v3739_v54 = vunpack.c.h.bf16 %v11815_v22  ;;  %v3742_v2 = vunpack.c.l.bf16 %v11813_v55  ;;  %v3674_v14 = vunpack.c.l.bf16 %v11814_v40  ;;  %v11829_v55 = vld [vmem:[#allocation320_spill] sm:$0xff]  ;;  %v11830_v40 = vld [vmem:[#allocation286_spill] sm:$0xff] }
 0xaac   :  { %3767 = vmatpush.msra.mxu0 %v3640_v9  ;;  %3787 = vmatpush.msra.mxu1 %v3704_v21  ;;  %v11816_v9 = vld [vmem:[#allocation300_spill] sm:$0xff] }
 0xaad   :  { %3808 = vmatpush.msra.mxu2 %v3637_v62  ;;  %3828 = vmatpush.msra.mxu3 %v3701_v48  ;;  %v3671_v21 = vunpack.c.h.bf16 %v11816_v9  ;;  %v3735_v62 = vunpack.c.h.bf16 %v11817_v41  ;;  %v3738_v48 = vunpack.c.l.bf16 %v11815_v22  ;;  %v3670_v20 = vunpack.c.l.bf16 %v11816_v9  ;;  %v11831_v22 = vld [vmem:[#allocation318_spill] sm:$0xff]  ;;  %v11833_v9 = vld [vmem:[#allocation316_spill] sm:$0xff] }
 0xaae   :  { %3768 = vmatpush.msra.mxu0 %v3636_v31  ;;  %3788 = vmatpush.msra.mxu1 %v3700_v8  ;;  %v11818_v31 = vld [vmem:[#allocation298_spill] sm:$0xff] }
 0xaaf   :  { %3809 = vmatpush.msra.mxu2 %v3633_v25  ;;  %3829 = vmatpush.msra.mxu3 %v3697_v63  ;;  %v3667_v8 = vunpack.c.h.bf16 %v11818_v31  ;;  %v3731_v25 = vunpack.c.h.bf16 %v11819_v51  ;;  %v3734_v63 = vunpack.c.l.bf16 %v11817_v41  ;;  %v3666_v35 = vunpack.c.l.bf16 %v11818_v31  ;;  %v3753_v41 = vld [vmem:[#allocation1] sm:$0xff]  ;;  %v11834_v31 = vld [vmem:[#allocation282_spill] sm:$0xff] }
 0xab0   :  { %3769 = vmatpush.msra.mxu0 %v3632_v11  ;;  %3789 = vmatpush.msra.mxu1 %v3696_v3  ;;  %v11820_v11 = vld [vmem:[#allocation296_spill] sm:$0xff] }
 0xab1   :  { %3810 = vmatpush.msra.mxu2 %v3629_v52  ;;  %3830 = vmatpush.msra.mxu3 %v3693_v42  ;;  %v3663_v3 = vunpack.c.h.bf16 %v11820_v11  ;;  %v3727_v52 = vunpack.c.h.bf16 %v11821_v1  ;;  %v3730_v42 = vunpack.c.l.bf16 %v11819_v51  ;;  %v3662_v57 = vunpack.c.l.bf16 %v11820_v11  ;;  %v11835_v51 = vld [vmem:[#allocation314_spill] sm:$0xff]  ;;  %v11836_v11 = vld [vmem:[#allocation280_spill] sm:$0xff] }
 0xab2   :  { %3770 = vmatpush.msra.mxu0 %v3628_v36  ;;  %3790 = vmatpush.msra.mxu1 %v3692_v7  ;;  %v11822_v36 = vld [vmem:[#allocation294_spill] sm:$0xff] }
 0xab3   :  { %3811 = vmatpush.msra.mxu2 %v3625_v38  ;;  %3831 = vmatpush.msra.mxu3 %v3689_v33  ;;  %v3659_v7 = vunpack.c.h.bf16 %v11822_v36  ;;  %v3723_v38 = vunpack.c.h.bf16 %v11823_v32  ;;  %v3726_v33 = vunpack.c.l.bf16 %v11821_v1  ;;  %v3658_v44 = vunpack.c.l.bf16 %v11822_v36  ;;  %v11837_v1 = vld [vmem:[#allocation312_spill] sm:$0xff]  ;;  %v11838_v36 = vld [vmem:[#allocation278_spill] sm:$0xff] }
 0xab4   :  { %3771 = vmatpush.msra.mxu0 %v3624_v6  ;;  %3791 = vmatpush.msra.mxu1 %v3688_v18  ;;  %v11824_v6 = vld [vmem:[#allocation292_spill] sm:$0xff] }
 0xab5   :  { %3812 = vmatpush.msra.mxu2 %v3621_v39  ;;  %3832 = vmatpush.msra.mxu3 %v3685_v59  ;;  %v3655_v18 = vunpack.c.h.bf16 %v11824_v6  ;;  %v3719_v39 = vunpack.c.h.bf16 %v11825_v50  ;;  %v3722_v59 = vunpack.c.l.bf16 %v11823_v32  ;;  %v11839_v32 = vld [vmem:[#allocation310_spill] sm:$0xff] }
 0xab6   :  { %3772 = vmatpush.msra.mxu0 %v3620_v26  ;;  %3792 = vmatpush.msra.mxu1 %v3684_v46  ;;  %v3654_v26 = vunpack.c.l.bf16 %v11824_v6  ;;  %v3718_v46 = vunpack.c.l.bf16 %v11825_v50  ;;  %v11840_v6 = vld [vmem:[#allocation276_spill] sm:$0xff] }
 0xab7   :  { %3877 = vmatpush.msrb.mxu2 %v3683_v45  ;;  %3897 = vmatpush.msrb.mxu3 %v3747_v28  ;;  %v3651_v45 = vunpack.c.h.bf16 %v11826_v53  ;;  %v3715_v28 = vunpack.c.h.bf16 %v11827_v0  ;;  %v11841_v50 = vld [vmem:[#allocation308_spill] sm:$0xff] }
 0xab8   :  { %3837 = vmatpush.msrb.mxu0 %v3682_v16  ;;  %3857 = vmatpush.msrb.mxu1 %v3746_v56  ;;  %v3650_v16 = vunpack.c.l.bf16 %v11826_v53  ;;  %v3714_v56 = vunpack.c.l.bf16 %v11827_v0  ;;  %v3626_v53 = vunpack.c.l.bf16 %v11838_v36  ;;  %v3622_v0 = vunpack.c.l.bf16 %v11840_v6 }
 0xab9   :  { %3878 = vmatpush.msrb.mxu2 %v3679_v47  ;;  %3898 = vmatpush.msrb.mxu3 %v3743_v24  ;;  %v3647_v47 = vunpack.c.h.bf16 %v11828_v58  ;;  %v3711_v24 = vunpack.c.h.bf16 %v11829_v55 }
 0xaba   :  { %3838 = vmatpush.msrb.mxu0 %v3678_v5  ;;  %3858 = vmatpush.msrb.mxu1 %v3742_v2  ;;  %v11832_v5 = vld [vmem:[#allocation284_spill] sm:$0xff] }
 0xabb   :  { %3879 = vmatpush.msrb.mxu2 %v3675_v60  ;;  %3899 = vmatpush.msrb.mxu3 %v3739_v54  ;;  %v3643_v60 = vunpack.c.h.bf16 %v11830_v40  ;;  %v3707_v54 = vunpack.c.h.bf16 %v11831_v22  ;;  %v3639_v2 = vunpack.c.h.bf16 %v11832_v5 }
 0xabc   :  { %3839 = vmatpush.msrb.mxu0 %v3674_v14  ;;  %3859 = vmatpush.msrb.mxu1 %v3738_v48  ;;  %v3646_v14 = vunpack.c.l.bf16 %v11828_v58  ;;  %v3710_v48 = vunpack.c.l.bf16 %v11829_v55 }
 0xabd   :  { %3880 = vmatpush.msrb.mxu2 %v3671_v21  ;;  %3900 = vmatpush.msrb.mxu3 %v3735_v62  ;;  %v3703_v21 = vunpack.c.h.bf16 %v11833_v9  ;;  %v3754_v62 = vld [vmem:[#allocation1 + $0x9] sm:$0xff] }
 0xabe   :  { %3840 = vmatpush.msrb.mxu0 %v3670_v20  ;;  %3860 = vmatpush.msrb.mxu1 %v3734_v63  ;;  %v3642_v20 = vunpack.c.l.bf16 %v11830_v40  ;;  %v3706_v63 = vunpack.c.l.bf16 %v11831_v22 }
 0xabf   :  { %3881 = vmatpush.msrb.mxu2 %v3667_v8  ;;  %3901 = vmatpush.msrb.mxu3 %v3731_v25  ;;  %v3635_v8 = vunpack.c.h.bf16 %v11834_v31  ;;  %v3699_v25 = vunpack.c.h.bf16 %v11835_v51 }
 0xac0   :  { %3841 = vmatpush.msrb.mxu0 %v3666_v35  ;;  %3861 = vmatpush.msrb.mxu1 %v3730_v42  ;;  %v3638_v35 = vunpack.c.l.bf16 %v11832_v5  ;;  %v3702_v42 = vunpack.c.l.bf16 %v11833_v9 }
 0xac1   :  { %3882 = vmatpush.msrb.mxu2 %v3663_v3  ;;  %3902 = vmatpush.msrb.mxu3 %v3727_v52  ;;  %v3631_v3 = vunpack.c.h.bf16 %v11836_v11  ;;  %v3695_v52 = vunpack.c.h.bf16 %v11837_v1 }
 0xac2   :  { %3842 = vmatpush.msrb.mxu0 %v3662_v57  ;;  %3862 = vmatpush.msrb.mxu1 %v3726_v33  ;;  %v3634_v57 = vunpack.c.l.bf16 %v11834_v31  ;;  %v3698_v33 = vunpack.c.l.bf16 %v11835_v51 }
 0xac3   :  { %3883 = vmatpush.msrb.mxu2 %v3659_v7  ;;  %3903 = vmatpush.msrb.mxu3 %v3723_v38  ;;  %v3627_v7 = vunpack.c.h.bf16 %v11838_v36  ;;  %v3691_v38 = vunpack.c.h.bf16 %v11839_v32 }
 0xac4   :  { %3843 = vmatpush.msrb.mxu0 %v3658_v44  ;;  %3863 = vmatpush.msrb.mxu1 %v3722_v59  ;;  %v3630_v44 = vunpack.c.l.bf16 %v11836_v11  ;;  %v3694_v59 = vunpack.c.l.bf16 %v11837_v1 }
 0xac5   :  { %3884 = vmatpush.msrb.mxu2 %v3655_v18  ;;  %3904 = vmatpush.msrb.mxu3 %v3719_v39  ;;  %v3623_v18 = vunpack.c.h.bf16 %v11840_v6  ;;  %v3687_v39 = vunpack.c.h.bf16 %v11841_v50 }
 0xac6   :  { %3844 = vmatpush.msrb.mxu0 %v3654_v26  ;;  %3864 = vmatpush.msrb.mxu1 %v3718_v46 }
 0xac7   :  { %3885 = vmatpush.msrb.mxu2 %v3651_v45  ;;  %3905 = vmatpush.msrb.mxu3 %v3715_v28  ;;  %v3690_v45 = vunpack.c.l.bf16 %v11839_v32  ;;  %v3686_v28 = vunpack.c.l.bf16 %v11841_v50 }
 0xac8   :  { %3845 = vmatpush.msrb.mxu0 %v3650_v16  ;;  %3865 = vmatpush.msrb.mxu1 %v3714_v56 }
 0xac9   :  { %3886 = vmatpush.msrb.mxu2 %v3647_v47  ;;  %3906 = vmatpush.msrb.mxu3 %v3711_v24 }
 0xaca   :  { %3813 = vmatmul.f32.vlgmr.msra.gmra.mxu2 %v3753_v41  ;;  %3833 = vmatmul.f32.vlgmr.msra.gmra.mxu3 %v3754_v62 }
 0xacb   :  { %3887 = vmatpush.msrb.mxu2 %v3643_v60  ;;  %3907 = vmatpush.msrb.mxu3 %v3707_v54 }
 0xacc   :  { %3846 = vmatpush.msrb.mxu0 %v3646_v14  ;;  %3866 = vmatpush.msrb.mxu1 %v3710_v48  ;;  %v11843_v14 = vld [vmem:[#allocation401_spill] sm:$0xff]  ;;  %v11844_v48 = vld [vmem:[#allocation367_spill] sm:$0xff] }
 0xacd   :  { %3888 = vmatpush.msrb.mxu2 %v3639_v2  ;;  %3908 = vmatpush.msrb.mxu3 %v3703_v21  ;;  %v4044_v31 = vunpack.c.h.bf16 %v11844_v48 }
 0xace   :  { %3847 = vmatpush.msrb.mxu0 %v3642_v20  ;;  %3867 = vmatpush.msrb.mxu1 %v3706_v63 }
 0xacf   :  { %3889 = vmatpush.msrb.mxu2 %v3635_v8  ;;  %3909 = vmatpush.msrb.mxu3 %v3699_v25 }
 0xad0   :  { %3848 = vmatpush.msrb.mxu0 %v3638_v35  ;;  %3868 = vmatpush.msrb.mxu1 %v3702_v42 }
 0xad1   :  { %3890 = vmatpush.msrb.mxu2 %v3631_v3  ;;  %3910 = vmatpush.msrb.mxu3 %v3695_v52 }
 0xad2   :  { %3773 = vmatmul.f32.vlgmr.msra.gmra.mxu0 %v3753_v41  ;;  %3793 = vmatmul.f32.vlgmr.msra.gmra.mxu1 %v3754_v62 }
 0xad3   :  { %3891 = vmatpush.msrb.mxu2 %v3627_v7  ;;  %3911 = vmatpush.msrb.mxu3 %v3691_v38 }
 0xad4   :  { %3849 = vmatpush.msrb.mxu0 %v3634_v57  ;;  %3869 = vmatpush.msrb.mxu1 %v3698_v33 }
 0xad5   :  { %3892 = vmatpush.msrb.mxu2 %v3623_v18  ;;  %3912 = vmatpush.msrb.mxu3 %v3687_v39 }
 0xad6   :  { %3893 = vmatmul.f32.vlgmr.msrb.gmra.mxu2 %v3753_v41  ;;  %3913 = vmatmul.f32.vlgmr.msrb.gmra.mxu3 %v3754_v62 }
 0xad7   :  { %3850 = vmatpush.msrb.mxu0 %v3630_v44  ;;  %3870 = vmatpush.msrb.mxu1 %v3694_v59 }
 0xad9   :  { %3851 = vmatpush.msrb.mxu0 %v3626_v53  ;;  %3871 = vmatpush.msrb.mxu1 %v3690_v45 }
 0xadb   :  { %3852 = vmatpush.msrb.mxu0 %v3622_v0  ;;  %3872 = vmatpush.msrb.mxu1 %v3686_v28 }
 0xadc   :  { %3853 = vmatmul.f32.vlgmr.msrb.gmra.mxu0 %v3753_v41  ;;  %3873 = vmatmul.f32.vlgmr.msrb.gmra.mxu1 %v3754_v62  ;;  %v11842_v41 = vld [vmem:[#allocation369_spill] sm:$0xff] }
 0xadd   :  { %v4048_v62 = vunpack.c.h.bf16 %v11842_v41 }
 0xb4d   :  { %v3814_v26 = vpop.f32.mrf.mxu2  ;;  %v3834_v46 = vpop.f32.mrf.mxu3 }
 0xb4e   :  { %v3835_v58 = vadd.f32 %v3834_v46, %v3814_v26 }
 0xb4f   :  { %v3774_v47 = vpop.f32.mrf.mxu0  ;;  %v3794_v55 = vpop.f32.mrf.mxu1 }
 0xb50   :  { %v3795_v24 = vadd.f32 %v3794_v55, %v3774_v47  ;;  %v9922_v16 = vadd.f32 %v3835_v58, %v9778_v27  ;;  %v4112_v27 = vunpack.c.h.bf16 %v11843_v14 }
 0xb52   :  { %v9925_v56 = vadd.f32 %v3795_v24, %v9781_v13  ;;  %v11845_v13 = vld [vmem:[#allocation399_spill] sm:$0xff] }
 0xb53   :  { %v4108_v8 = vunpack.c.h.bf16 %v11845_v13 }
 0xb59   :  { %v3854_v40 = vpop.f32.mrf.mxu0  ;;  %v3874_v60 = vpop.f32.mrf.mxu1 }
 0xb5a   :  { %v3875_v22 = vadd.f32 %v3874_v60, %v3854_v40  ;;  %v3894_v54 = vpop.f32.mrf.mxu2  ;;  %v3914_v5 = vpop.f32.mrf.mxu3 }
 0xb5b   :  { %v3915_v2 = vadd.f32 %v3914_v5, %v3894_v54 }
 0xb5c   :  { %v9928_v9 = vadd.f32 %v3875_v22, %v9784_v12 }
 0xb5d   :  { %v9931_v21 = vadd.f32 %v3915_v2, %v9787_v30 }
 0xb5e   :  { %5930 = dma.done.wait [#allocation3 + $0x5], 8192 }
 0xb5f   :  { %5931 = vsyncadd [#allocation3 + $0x5], 4294959104  ;;  %v4047_v51 = vunpack.c.l.bf16 %v11842_v41  ;;  %v4111_v25 = vunpack.c.l.bf16 %v11843_v14  ;;  %4117 = vst [vmem:[#allocation1] ss:$9 sm:$0xff] %v1902_v34  ;;  %4164 = vmatpush.msra.mxu2 %v4048_v62  ;;  %4184 = vmatpush.msra.mxu3 %v4112_v27  ;;  %v11846_v12 = vld [vmem:[#allocation365_spill] sm:$0xff]  ;;  %v4043_v11 = vunpack.c.l.bf16 %v11844_v48  ;;  %v4107_v3 = vunpack.c.l.bf16 %v11845_v13  ;;  %v11848_v34 = vld [vmem:[#allocation363_spill] sm:$0xff] }
 0xb60   :  { %v4040_v30 = vunpack.c.h.bf16 %v11846_v12  ;;  %v11847_v20 = vld [vmem:[#allocation397_spill] sm:$0xff]  ;;  %4119 = vst [vmem:[#allocation1 + $0x1] ss:$9 sm:$0xff] %v1903_v29  ;;  %v4039_v1 = vunpack.c.l.bf16 %v11846_v12  ;;  %v4036_v52 = vunpack.c.h.bf16 %v11848_v34  ;;  %v11849_v35 = vld [vmem:[#allocation395_spill] sm:$0xff]  ;;  %v4035_v36 = vunpack.c.l.bf16 %v11848_v34 }
 0xb61   :  { %v4104_v63 = vunpack.c.h.bf16 %v11847_v20  ;;  %4124 = vmatpush.msra.mxu0 %v4047_v51  ;;  %4144 = vmatpush.msra.mxu1 %v4111_v25  ;;  %v4103_v19 = vunpack.c.l.bf16 %v11847_v20  ;;  %v4100_v42 = vunpack.c.h.bf16 %v11849_v35  ;;  %v4099_v7 = vunpack.c.l.bf16 %v11849_v35  ;;  %v11850_v17 = vld [vmem:[#allocation361_spill] sm:$0xff]  ;;  %v11852_v6 = vld [vmem:[#allocation359_spill] sm:$0xff] }
 0xb62   :  { %4165 = vmatpush.msra.mxu2 %v4044_v31  ;;  %4185 = vmatpush.msra.mxu3 %v4108_v8  ;;  %v4032_v29 = vunpack.c.h.bf16 %v11850_v17  ;;  %v11851_v32 = vld [vmem:[#allocation393_spill] sm:$0xff]  ;;  %v4031_v57 = vunpack.c.l.bf16 %v11850_v17  ;;  %v4028_v18 = vunpack.c.h.bf16 %v11852_v6  ;;  %v11853_v50 = vld [vmem:[#allocation391_spill] sm:$0xff]  ;;  %v4027_v44 = vunpack.c.l.bf16 %v11852_v6 }
 0xb63   :  { %4125 = vmatpush.msra.mxu0 %v4043_v11  ;;  %4145 = vmatpush.msra.mxu1 %v4107_v3  ;;  %v4096_v38 = vunpack.c.h.bf16 %v11851_v32  ;;  %v4095_v33 = vunpack.c.l.bf16 %v11851_v32  ;;  %v4092_v39 = vunpack.c.h.bf16 %v11853_v50  ;;  %v4091_v59 = vunpack.c.l.bf16 %v11853_v50  ;;  %v11854_v53 = vld [vmem:[#allocation357_spill] sm:$0xff]  ;;  %v11856_v58 = vld [vmem:[#allocation355_spill] sm:$0xff] }
 0xb64   :  { %4166 = vmatpush.msra.mxu2 %v4040_v30  ;;  %4186 = vmatpush.msra.mxu3 %v4104_v63  ;;  %v4024_v45 = vunpack.c.h.bf16 %v11854_v53  ;;  %v11855_v0 = vld [vmem:[#allocation389_spill] sm:$0xff]  ;;  %v4023_v26 = vunpack.c.l.bf16 %v11854_v53  ;;  %v4020_v47 = vunpack.c.h.bf16 %v11856_v58  ;;  %v11857_v55 = vld [vmem:[#allocation387_spill] sm:$0xff]  ;;  %v4019_v40 = vunpack.c.l.bf16 %v11856_v58  ;;  %v11874_v58 = vld [vmem:[#allocation370_spill] sm:$0xff] }
 0xb65   :  { %4126 = vmatpush.msra.mxu0 %v4039_v1  ;;  %4146 = vmatpush.msra.mxu1 %v4103_v19  ;;  %v4088_v28 = vunpack.c.h.bf16 %v11855_v0  ;;  %v4087_v46 = vunpack.c.l.bf16 %v11855_v0  ;;  %v4084_v24 = vunpack.c.h.bf16 %v11857_v55  ;;  %v4083_v60 = vunpack.c.l.bf16 %v11857_v55  ;;  %v11858_v22 = vld [vmem:[#allocation353_spill] sm:$0xff]  ;;  %v11860_v14 = vld [vmem:[#allocation351_spill] sm:$0xff]  ;;  %v11875_v55 = vld [vmem:[#allocation402_spill] sm:$0xff] }
 0xb66   :  { %4167 = vmatpush.msra.mxu2 %v4036_v52  ;;  %4187 = vmatpush.msra.mxu3 %v4100_v42  ;;  %v4016_v54 = vunpack.c.h.bf16 %v11858_v22  ;;  %v11859_v5 = vld [vmem:[#allocation385_spill] sm:$0xff]  ;;  %v4015_v41 = vunpack.c.l.bf16 %v11858_v22  ;;  %v4012_v27 = vunpack.c.h.bf16 %v11860_v14  ;;  %v11861_v48 = vld [vmem:[#allocation383_spill] sm:$0xff]  ;;  %v4011_v13 = vunpack.c.l.bf16 %v11860_v14  ;;  %v11876_v22 = vld [vmem:[#allocation368_spill] sm:$0xff] }
 0xb67   :  { %4127 = vmatpush.msra.mxu0 %v4035_v36  ;;  %4147 = vmatpush.msra.mxu1 %v4099_v7  ;;  %v4080_v2 = vunpack.c.h.bf16 %v11859_v5  ;;  %v4079_v62 = vunpack.c.l.bf16 %v11859_v5  ;;  %v4076_v31 = vunpack.c.h.bf16 %v11861_v48  ;;  %v4075_v8 = vunpack.c.l.bf16 %v11861_v48  ;;  %v11862_v51 = vld [vmem:[#allocation349_spill] sm:$0xff]  ;;  %v11864_v11 = vld [vmem:[#allocation347_spill] sm:$0xff]  ;;  %v11877_v5 = vld [vmem:[#allocation400_spill] sm:$0xff] }
 0xb68   :  { %4168 = vmatpush.msra.mxu2 %v4032_v29  ;;  %4188 = vmatpush.msra.mxu3 %v4096_v38  ;;  %v4008_v25 = vunpack.c.h.bf16 %v11862_v51  ;;  %v11863_v12 = vld [vmem:[#allocation381_spill] sm:$0xff]  ;;  %v4007_v20 = vunpack.c.l.bf16 %v11862_v51  ;;  %v4004_v3 = vunpack.c.h.bf16 %v11864_v11  ;;  %v11865_v1 = vld [vmem:[#allocation379_spill] sm:$0xff]  ;;  %v4003_v34 = vunpack.c.l.bf16 %v11864_v11  ;;  %v11878_v14 = vld [vmem:[#allocation366_spill] sm:$0xff] }
 0xb69   :  { %4128 = vmatpush.msra.mxu0 %v4031_v57  ;;  %4148 = vmatpush.msra.mxu1 %v4095_v33  ;;  %v4072_v30 = vunpack.c.h.bf16 %v11863_v12  ;;  %v4071_v63 = vunpack.c.l.bf16 %v11863_v12  ;;  %v4068_v19 = vunpack.c.h.bf16 %v11865_v1  ;;  %v4067_v52 = vunpack.c.l.bf16 %v11865_v1  ;;  %v11866_v35 = vld [vmem:[#allocation345_spill] sm:$0xff]  ;;  %v11868_v32 = vld [vmem:[#allocation343_spill] sm:$0xff]  ;;  %v11879_v48 = vld [vmem:[#allocation398_spill] sm:$0xff] }
 0xb6a   :  { %4169 = vmatpush.msra.mxu2 %v4028_v18  ;;  %4189 = vmatpush.msra.mxu3 %v4092_v39  ;;  %v4000_v42 = vunpack.c.h.bf16 %v11866_v35  ;;  %v11867_v36 = vld [vmem:[#allocation377_spill] sm:$0xff]  ;;  %v3999_v17 = vunpack.c.l.bf16 %v11866_v35  ;;  %v3996_v38 = vunpack.c.h.bf16 %v11868_v32  ;;  %v11869_v57 = vld [vmem:[#allocation375_spill] sm:$0xff]  ;;  %v3995_v6 = vunpack.c.l.bf16 %v11868_v32  ;;  %v11880_v51 = vld [vmem:[#allocation364_spill] sm:$0xff] }
 0xb6b   :  { %4129 = vmatpush.msra.mxu0 %v4027_v44  ;;  %4149 = vmatpush.msra.mxu1 %v4091_v59  ;;  %v4064_v7 = vunpack.c.h.bf16 %v11867_v36  ;;  %v4063_v29 = vunpack.c.l.bf16 %v11867_v36  ;;  %v4060_v33 = vunpack.c.h.bf16 %v11869_v57  ;;  %v4059_v18 = vunpack.c.l.bf16 %v11869_v57  ;;  %v11870_v50 = vld [vmem:[#allocation341_spill] sm:$0xff]  ;;  %v11872_v0 = vld [vmem:[#allocation339_spill] sm:$0xff]  ;;  %v11881_v12 = vld [vmem:[#allocation396_spill] sm:$0xff] }
 0xb6c   :  { %4170 = vmatpush.msra.mxu2 %v4024_v45  ;;  %4190 = vmatpush.msra.mxu3 %v4088_v28  ;;  %v3992_v39 = vunpack.c.h.bf16 %v11870_v50  ;;  %v11871_v44 = vld [vmem:[#allocation373_spill] sm:$0xff]  ;;  %v3991_v53 = vunpack.c.l.bf16 %v11870_v50  ;;  %v3988_v28 = vunpack.c.h.bf16 %v11872_v0  ;;  %v11882_v11 = vld [vmem:[#allocation362_spill] sm:$0xff]  ;;  %v11884_v35 = vld [vmem:[#allocation360_spill] sm:$0xff] }
 0xb6d   :  { %4130 = vmatpush.msra.mxu0 %v4023_v26  ;;  %4150 = vmatpush.msra.mxu1 %v4087_v46  ;;  %v4056_v59 = vunpack.c.h.bf16 %v11871_v44  ;;  %v4055_v45 = vunpack.c.l.bf16 %v11871_v44  ;;  %v11873_v26 = vld [vmem:[#allocation371_spill] sm:$0xff]  ;;  %v11883_v1 = vld [vmem:[#allocation394_spill] sm:$0xff]  ;;  %v11885_v36 = vld [vmem:[#allocation392_spill] sm:$0xff] }
 0xb6e   :  { %4171 = vmatpush.msra.mxu2 %v4020_v47  ;;  %4191 = vmatpush.msra.mxu3 %v4084_v24  ;;  %v4052_v46 = vunpack.c.h.bf16 %v11873_v26  ;;  %v4050_v47 = vunpack.c.h.bf16 %v11874_v58  ;;  %v4114_v24 = vunpack.c.h.bf16 %v11875_v55  ;;  %v11886_v32 = vld [vmem:[#allocation358_spill] sm:$0xff]  ;;  %v11888_v50 = vld [vmem:[#allocation356_spill] sm:$0xff] }
 0xb6f   :  { %4131 = vmatpush.msra.mxu0 %v4019_v40  ;;  %4151 = vmatpush.msra.mxu1 %v4083_v60  ;;  %v3987_v40 = vunpack.c.l.bf16 %v11872_v0  ;;  %v4051_v60 = vunpack.c.l.bf16 %v11873_v26  ;;  %v11887_v57 = vld [vmem:[#allocation390_spill] sm:$0xff]  ;;  %v11889_v44 = vld [vmem:[#allocation388_spill] sm:$0xff] }
 0xb70   :  { %4172 = vmatpush.msra.mxu2 %v4016_v54  ;;  %4192 = vmatpush.msra.mxu3 %v4080_v2  ;;  %v4046_v54 = vunpack.c.h.bf16 %v11876_v22  ;;  %v4110_v2 = vunpack.c.h.bf16 %v11877_v5  ;;  %v11890_v0 = vld [vmem:[#allocation354_spill] sm:$0xff] }
 0xb71   :  { %4132 = vmatpush.msra.mxu0 %v4015_v41  ;;  %4152 = vmatpush.msra.mxu1 %v4079_v62  ;;  %v4049_v41 = vunpack.c.l.bf16 %v11874_v58  ;;  %v4113_v62 = vunpack.c.l.bf16 %v11875_v55  ;;  %v11891_v26 = vld [vmem:[#allocation386_spill] sm:$0xff]  ;;  %v4021_v58 = vunpack.c.l.bf16 %v11888_v50  ;;  %v11892_v55 = vld [vmem:[#allocation352_spill] sm:$0xff] }
 0xb72   :  { %4173 = vmatpush.msra.mxu2 %v4012_v27  ;;  %4193 = vmatpush.msra.mxu3 %v4076_v31  ;;  %v4042_v27 = vunpack.c.h.bf16 %v11878_v14  ;;  %v4106_v31 = vunpack.c.h.bf16 %v11879_v48 }
 0xb73   :  { %4133 = vmatpush.msra.mxu0 %v4011_v13  ;;  %4153 = vmatpush.msra.mxu1 %v4075_v8  ;;  %v4045_v13 = vunpack.c.l.bf16 %v11876_v22  ;;  %v4109_v8 = vunpack.c.l.bf16 %v11877_v5  ;;  %v4017_v22 = vunpack.c.l.bf16 %v11890_v0  ;;  %v11894_v5 = vld [vmem:[#allocation350_spill] sm:$0xff] }
 0xb74   :  { %4174 = vmatpush.msra.mxu2 %v4008_v25  ;;  %4194 = vmatpush.msra.mxu3 %v4072_v30  ;;  %v4038_v25 = vunpack.c.h.bf16 %v11880_v51  ;;  %v4102_v30 = vunpack.c.h.bf16 %v11881_v12 }
 0xb75   :  { %4134 = vmatpush.msra.mxu0 %v4007_v20  ;;  %4154 = vmatpush.msra.mxu1 %v4071_v63  ;;  %v4041_v20 = vunpack.c.l.bf16 %v11878_v14  ;;  %v4105_v63 = vunpack.c.l.bf16 %v11879_v48  ;;  %v11896_v14 = vld [vmem:[#allocation348_spill] sm:$0xff] }
 0xb76   :  { %4175 = vmatpush.msra.mxu2 %v4004_v3  ;;  %4195 = vmatpush.msra.mxu3 %v4068_v19  ;;  %v4034_v3 = vunpack.c.h.bf16 %v11882_v11  ;;  %v4098_v19 = vunpack.c.h.bf16 %v11883_v1  ;;  %v11897_v48 = vld [vmem:[#allocation380_spill] sm:$0xff] }
 0xb77   :  { %4135 = vmatpush.msra.mxu0 %v4003_v34  ;;  %4155 = vmatpush.msra.mxu1 %v4067_v52  ;;  %v4037_v34 = vunpack.c.l.bf16 %v11880_v51  ;;  %v4101_v52 = vunpack.c.l.bf16 %v11881_v12  ;;  %v4013_v51 = vunpack.c.l.bf16 %v11892_v55  ;;  %v11898_v12 = vld [vmem:[#allocation346_spill] sm:$0xff] }
 0xb78   :  { %4176 = vmatpush.msra.mxu2 %v4000_v42  ;;  %4196 = vmatpush.msra.mxu3 %v4064_v7  ;;  %v4030_v42 = vunpack.c.h.bf16 %v11884_v35  ;;  %v4094_v7 = vunpack.c.h.bf16 %v11885_v36 }
 0xb79   :  { %4136 = vmatpush.msra.mxu0 %v3999_v17  ;;  %4156 = vmatpush.msra.mxu1 %v4063_v29  ;;  %v4033_v17 = vunpack.c.l.bf16 %v11882_v11  ;;  %v4097_v29 = vunpack.c.l.bf16 %v11883_v1  ;;  %v4009_v11 = vunpack.c.l.bf16 %v11894_v5  ;;  %v11900_v1 = vld [vmem:[#allocation344_spill] sm:$0xff] }
 0xb7a   :  { %4177 = vmatpush.msra.mxu2 %v3996_v38  ;;  %4197 = vmatpush.msra.mxu3 %v4060_v33  ;;  %v4026_v38 = vunpack.c.h.bf16 %v11886_v32  ;;  %v4090_v33 = vunpack.c.h.bf16 %v11887_v57 }
 0xb7b   :  { %4137 = vmatpush.msra.mxu0 %v3995_v6  ;;  %4157 = vmatpush.msra.mxu1 %v4059_v18  ;;  %v4029_v6 = vunpack.c.l.bf16 %v11884_v35  ;;  %v4093_v18 = vunpack.c.l.bf16 %v11885_v36  ;;  %v4005_v35 = vunpack.c.l.bf16 %v11896_v14  ;;  %v11902_v36 = vld [vmem:[#allocation342_spill] sm:$0xff] }
 0xb7c   :  { %4178 = vmatpush.msra.mxu2 %v3992_v39  ;;  %4198 = vmatpush.msra.mxu3 %v4056_v59  ;;  %v4022_v39 = vunpack.c.h.bf16 %v11888_v50  ;;  %v4086_v59 = vunpack.c.h.bf16 %v11889_v44  ;;  %v3997_v50 = vunpack.c.l.bf16 %v11900_v1 }
 0xb7d   :  { %4138 = vmatpush.msra.mxu0 %v3991_v53  ;;  %4158 = vmatpush.msra.mxu1 %v4055_v45  ;;  %v4025_v53 = vunpack.c.l.bf16 %v11886_v32  ;;  %v4089_v45 = vunpack.c.l.bf16 %v11887_v57  ;;  %v4001_v32 = vunpack.c.l.bf16 %v11898_v12  ;;  %v11904_v57 = vld [vmem:[#allocation340_spill] sm:$0xff] }
 0xb7e   :  { %4179 = vmatpush.msra.mxu2 %v3988_v28  ;;  %4199 = vmatpush.msra.mxu3 %v4052_v46  ;;  %v4018_v28 = vunpack.c.h.bf16 %v11890_v0  ;;  %v4082_v46 = vunpack.c.h.bf16 %v11891_v26 }
 0xb7f   :  { %4139 = vmatpush.msra.mxu0 %v3987_v40  ;;  %4159 = vmatpush.msra.mxu1 %v4051_v60  ;;  %v11893_v40 = vld [vmem:[#allocation384_spill] sm:$0xff] }
 0xb80   :  { %4244 = vmatpush.msrb.mxu2 %v4050_v47  ;;  %4264 = vmatpush.msrb.mxu3 %v4114_v24  ;;  %v4085_v47 = vunpack.c.l.bf16 %v11889_v44  ;;  %v4014_v24 = vunpack.c.h.bf16 %v11892_v55  ;;  %v4078_v60 = vunpack.c.h.bf16 %v11893_v40  ;;  %v3993_v44 = vunpack.c.l.bf16 %v11902_v36 }
 0xb81   :  { %4204 = vmatpush.msrb.mxu0 %v4049_v41  ;;  %4224 = vmatpush.msrb.mxu1 %v4113_v62  ;;  %v11895_v41 = vld [vmem:[#allocation382_spill] sm:$0xff] }
 0xb82   :  { %4245 = vmatpush.msrb.mxu2 %v4046_v54  ;;  %4265 = vmatpush.msrb.mxu3 %v4110_v2  ;;  %v4081_v54 = vunpack.c.l.bf16 %v11891_v26  ;;  %v4010_v2 = vunpack.c.h.bf16 %v11894_v5  ;;  %v4074_v62 = vunpack.c.h.bf16 %v11895_v41 }
 0xb83   :  { %4205 = vmatpush.msrb.mxu0 %v4045_v13  ;;  %4225 = vmatpush.msrb.mxu1 %v4109_v8  ;;  %v4120_v13 = vld [vmem:[#allocation1] sm:$0xff]  ;;  %v4121_v8 = vld [vmem:[#allocation1 + $0x9] sm:$0xff] }
 0xb84   :  { %4246 = vmatpush.msrb.mxu2 %v4042_v27  ;;  %4266 = vmatpush.msrb.mxu3 %v4106_v31  ;;  %v4006_v27 = vunpack.c.h.bf16 %v11896_v14  ;;  %v4070_v31 = vunpack.c.h.bf16 %v11897_v48  ;;  %v11906_v14 = vld [vmem:[#allocation433_spill] sm:$0xff] }
 0xb85   :  { %4206 = vmatpush.msrb.mxu0 %v4041_v20  ;;  %4226 = vmatpush.msrb.mxu1 %v4105_v63  ;;  %v11899_v20 = vld [vmem:[#allocation378_spill] sm:$0xff] }
 0xb86   :  { %4247 = vmatpush.msrb.mxu2 %v4038_v25  ;;  %4267 = vmatpush.msrb.mxu3 %v4102_v30  ;;  %v4077_v25 = vunpack.c.l.bf16 %v11893_v40  ;;  %v4002_v30 = vunpack.c.h.bf16 %v11898_v12  ;;  %v4066_v63 = vunpack.c.h.bf16 %v11899_v20 }
 0xb87   :  { %4207 = vmatpush.msrb.mxu0 %v4037_v34  ;;  %4227 = vmatpush.msrb.mxu1 %v4101_v52  ;;  %v11901_v34 = vld [vmem:[#allocation376_spill] sm:$0xff] }
 0xb88   :  { %4248 = vmatpush.msrb.mxu2 %v4034_v3  ;;  %4268 = vmatpush.msrb.mxu3 %v4098_v19  ;;  %v4073_v3 = vunpack.c.l.bf16 %v11895_v41  ;;  %v3998_v19 = vunpack.c.h.bf16 %v11900_v1  ;;  %v4062_v52 = vunpack.c.h.bf16 %v11901_v34 }
 0xb89   :  { %4208 = vmatpush.msrb.mxu0 %v4033_v17  ;;  %4228 = vmatpush.msrb.mxu1 %v4097_v29  ;;  %v11903_v17 = vld [vmem:[#allocation374_spill] sm:$0xff] }
 0xb8a   :  { %4249 = vmatpush.msrb.mxu2 %v4030_v42  ;;  %4269 = vmatpush.msrb.mxu3 %v4094_v7  ;;  %v4069_v42 = vunpack.c.l.bf16 %v11897_v48  ;;  %v3994_v7 = vunpack.c.h.bf16 %v11902_v36  ;;  %v4058_v29 = vunpack.c.h.bf16 %v11903_v17  ;;  %v11907_v48 = vld [vmem:[#allocation465_spill] sm:$0xff] }
 0xb8b   :  { %4209 = vmatpush.msrb.mxu0 %v4029_v6  ;;  %4229 = vmatpush.msrb.mxu1 %v4093_v18  ;;  %v11905_v6 = vld [vmem:[#allocation372_spill] sm:$0xff] }
 0xb8c   :  { %4250 = vmatpush.msrb.mxu2 %v4026_v38  ;;  %4270 = vmatpush.msrb.mxu3 %v4090_v33  ;;  %v4065_v38 = vunpack.c.l.bf16 %v11899_v20  ;;  %v3990_v33 = vunpack.c.h.bf16 %v11904_v57  ;;  %v4054_v18 = vunpack.c.h.bf16 %v11905_v6 }
 0xb8d   :  { %4210 = vmatpush.msrb.mxu0 %v4025_v53  ;;  %4230 = vmatpush.msrb.mxu1 %v4089_v45  ;;  %v3989_v53 = vunpack.c.l.bf16 %v11904_v57  ;;  %v4053_v45 = vunpack.c.l.bf16 %v11905_v6 }
 0xb8e   :  { %4251 = vmatpush.msrb.mxu2 %v4022_v39  ;;  %4271 = vmatpush.msrb.mxu3 %v4086_v59  ;;  %v4061_v39 = vunpack.c.l.bf16 %v11901_v34  ;;  %v4057_v59 = vunpack.c.l.bf16 %v11903_v17 }
 0xb8f   :  { %4211 = vmatpush.msrb.mxu0 %v4021_v58  ;;  %4231 = vmatpush.msrb.mxu1 %v4085_v47 }
 0xb90   :  { %4252 = vmatpush.msrb.mxu2 %v4018_v28  ;;  %4272 = vmatpush.msrb.mxu3 %v4082_v46 }
 0xb91   :  { %4212 = vmatpush.msrb.mxu0 %v4017_v22  ;;  %4232 = vmatpush.msrb.mxu1 %v4081_v54 }
 0xb92   :  { %4253 = vmatpush.msrb.mxu2 %v4014_v24  ;;  %4273 = vmatpush.msrb.mxu3 %v4078_v60 }
 0xb93   :  { %4180 = vmatmul.f32.vlgmr.msra.gmra.mxu2 %v4120_v13  ;;  %4200 = vmatmul.f32.vlgmr.msra.gmra.mxu3 %v4121_v8 }
 0xb94   :  { %4254 = vmatpush.msrb.mxu2 %v4010_v2  ;;  %4274 = vmatpush.msrb.mxu3 %v4074_v62 }
 0xb95   :  { %4213 = vmatpush.msrb.mxu0 %v4013_v51  ;;  %4233 = vmatpush.msrb.mxu1 %v4077_v25 }
 0xb96   :  { %4255 = vmatpush.msrb.mxu2 %v4006_v27  ;;  %4275 = vmatpush.msrb.mxu3 %v4070_v31  ;;  %v4415_v27 = vunpack.c.h.bf16 %v11906_v14  ;;  %v11908_v31 = vld [vmem:[#allocation431_spill] sm:$0xff] }
 0xb97   :  { %4214 = vmatpush.msrb.mxu0 %v4009_v11  ;;  %4234 = vmatpush.msrb.mxu1 %v4073_v3 }
 0xb98   :  { %4256 = vmatpush.msrb.mxu2 %v4002_v30  ;;  %4276 = vmatpush.msrb.mxu3 %v4066_v63 }
 0xb99   :  { %4215 = vmatpush.msrb.mxu0 %v4005_v35  ;;  %4235 = vmatpush.msrb.mxu1 %v4069_v42 }
 0xb9a   :  { %4257 = vmatpush.msrb.mxu2 %v3998_v19  ;;  %4277 = vmatpush.msrb.mxu3 %v4062_v52 }
 0xb9b   :  { %4140 = vmatmul.f32.vlgmr.msra.gmra.mxu0 %v4120_v13  ;;  %4160 = vmatmul.f32.vlgmr.msra.gmra.mxu1 %v4121_v8 }
 0xb9c   :  { %4258 = vmatpush.msrb.mxu2 %v3994_v7  ;;  %4278 = vmatpush.msrb.mxu3 %v4058_v29 }
 0xb9d   :  { %4216 = vmatpush.msrb.mxu0 %v4001_v32  ;;  %4236 = vmatpush.msrb.mxu1 %v4065_v38 }
 0xb9e   :  { %4259 = vmatpush.msrb.mxu2 %v3990_v33  ;;  %4279 = vmatpush.msrb.mxu3 %v4054_v18 }
 0xb9f   :  { %4260 = vmatmul.f32.vlgmr.msrb.gmra.mxu2 %v4120_v13  ;;  %4280 = vmatmul.f32.vlgmr.msrb.gmra.mxu3 %v4121_v8 }
 0xba0   :  { %4217 = vmatpush.msrb.mxu0 %v3997_v50  ;;  %4237 = vmatpush.msrb.mxu1 %v4061_v39 }
 0xba2   :  { %4218 = vmatpush.msrb.mxu0 %v3993_v44  ;;  %4238 = vmatpush.msrb.mxu1 %v4057_v59 }
 0xba4   :  { %4219 = vmatpush.msrb.mxu0 %v3989_v53  ;;  %4239 = vmatpush.msrb.mxu1 %v4053_v45 }
 0xba5   :  { %4220 = vmatmul.f32.vlgmr.msrb.gmra.mxu0 %v4120_v13  ;;  %4240 = vmatmul.f32.vlgmr.msrb.gmra.mxu1 %v4121_v8  ;;  %v4411_v13 = vunpack.c.h.bf16 %v11908_v31 }
 0xc16   :  { %v4181_v0 = vpop.f32.mrf.mxu2  ;;  %v4201_v28 = vpop.f32.mrf.mxu3 }
 0xc17   :  { %v4202_v26 = vadd.f32 %v4201_v28, %v4181_v0 }
 0xc18   :  { %v4141_v46 = vpop.f32.mrf.mxu0  ;;  %v4161_v58 = vpop.f32.mrf.mxu1 }
 0xc19   :  { %v4162_v47 = vadd.f32 %v4161_v58, %v4141_v46  ;;  %v10066_v55 = vadd.f32 %v4202_v26, %v9922_v16  ;;  %v4479_v16 = vunpack.c.h.bf16 %v11907_v48 }
 0xc1b   :  { %v10069_v24 = vadd.f32 %v4162_v47, %v9925_v56  ;;  %v11909_v56 = vld [vmem:[#allocation463_spill] sm:$0xff] }
 0xc1c   :  { %v4475_v8 = vunpack.c.h.bf16 %v11909_v56 }
 0xc22   :  { %v4221_v40 = vpop.f32.mrf.mxu0  ;;  %v4241_v60 = vpop.f32.mrf.mxu1 }
 0xc23   :  { %v4242_v22 = vadd.f32 %v4241_v60, %v4221_v40  ;;  %v4261_v54 = vpop.f32.mrf.mxu2  ;;  %v4281_v5 = vpop.f32.mrf.mxu3 }
 0xc24   :  { %v4282_v2 = vadd.f32 %v4281_v5, %v4261_v54 }
 0xc25   :  { %v10072_v41 = vadd.f32 %v4242_v22, %v9928_v9 }
 0xc26   :  { %v10075_v62 = vadd.f32 %v4282_v2, %v9931_v21 }
 0xc27   :  { %5932 = dma.done.wait [#allocation3 + $0x6], 8192 }
 0xc28   :  { %5933 = vsyncadd [#allocation3 + $0x6], 4294959104  ;;  %v4414_v51 = vunpack.c.l.bf16 %v11906_v14  ;;  %v4478_v25 = vunpack.c.l.bf16 %v11907_v48  ;;  %4484 = vst [vmem:[#allocation1] ss:$9 sm:$0xff] %v1987_v4  ;;  %4531 = vmatpush.msra.mxu2 %v4415_v27  ;;  %4551 = vmatpush.msra.mxu3 %v4479_v16  ;;  %v11910_v9 = vld [vmem:[#allocation429_spill] sm:$0xff]  ;;  %v4410_v20 = vunpack.c.l.bf16 %v11908_v31  ;;  %v4474_v63 = vunpack.c.l.bf16 %v11909_v56  ;;  %v11912_v4 = vld [vmem:[#allocation427_spill] sm:$0xff] }
 0xc29   :  { %v4407_v21 = vunpack.c.h.bf16 %v11910_v9  ;;  %v11911_v12 = vld [vmem:[#allocation461_spill] sm:$0xff]  ;;  %4486 = vst [vmem:[#allocation1 + $0x1] ss:$9 sm:$0xff] %v1988_v61  ;;  %v4406_v11 = vunpack.c.l.bf16 %v11910_v9  ;;  %v4403_v3 = vunpack.c.h.bf16 %v11912_v4  ;;  %v11913_v1 = vld [vmem:[#allocation459_spill] sm:$0xff]  ;;  %v4402_v34 = vunpack.c.l.bf16 %v11912_v4 }
 0xc2a   :  { %v4471_v30 = vunpack.c.h.bf16 %v11911_v12  ;;  %4491 = vmatpush.msra.mxu0 %v4414_v51  ;;  %4511 = vmatpush.msra.mxu1 %v4478_v25  ;;  %v4470_v37 = vunpack.c.l.bf16 %v11911_v12  ;;  %v4467_v19 = vunpack.c.h.bf16 %v11913_v1  ;;  %v4466_v52 = vunpack.c.l.bf16 %v11913_v1  ;;  %v11914_v43 = vld [vmem:[#allocation425_spill] sm:$0xff]  ;;  %v11916_v17 = vld [vmem:[#allocation423_spill] sm:$0xff] }
 0xc2b   :  { %4532 = vmatpush.msra.mxu2 %v4411_v13  ;;  %4552 = vmatpush.msra.mxu3 %v4475_v8  ;;  %v4399_v61 = vunpack.c.h.bf16 %v11914_v43  ;;  %v11915_v35 = vld [vmem:[#allocation457_spill] sm:$0xff]  ;;  %v4398_v36 = vunpack.c.l.bf16 %v11914_v43  ;;  %v4395_v29 = vunpack.c.h.bf16 %v11916_v17  ;;  %v11917_v32 = vld [vmem:[#allocation455_spill] sm:$0xff]  ;;  %v4394_v57 = vunpack.c.l.bf16 %v11916_v17 }
 0xc2c   :  { %4492 = vmatpush.msra.mxu0 %v4410_v20  ;;  %4512 = vmatpush.msra.mxu1 %v4474_v63  ;;  %v4463_v42 = vunpack.c.h.bf16 %v11915_v35  ;;  %v4462_v7 = vunpack.c.l.bf16 %v11915_v35  ;;  %v4459_v38 = vunpack.c.h.bf16 %v11917_v32  ;;  %v4458_v33 = vunpack.c.l.bf16 %v11917_v32  ;;  %v11918_v6 = vld [vmem:[#allocation421_spill] sm:$0xff]  ;;  %v11920_v53 = vld [vmem:[#allocation419_spill] sm:$0xff] }
 0xc2d   :  { %4533 = vmatpush.msra.mxu2 %v4407_v21  ;;  %4553 = vmatpush.msra.mxu3 %v4471_v30  ;;  %v4391_v18 = vunpack.c.h.bf16 %v11918_v6  ;;  %v11919_v50 = vld [vmem:[#allocation453_spill] sm:$0xff]  ;;  %v4390_v44 = vunpack.c.l.bf16 %v11918_v6  ;;  %v4387_v45 = vunpack.c.h.bf16 %v11920_v53  ;;  %v11921_v0 = vld [vmem:[#allocation451_spill] sm:$0xff]  ;;  %v4386_v26 = vunpack.c.l.bf16 %v11920_v53 }
 0xc2e   :  { %4493 = vmatpush.msra.mxu0 %v4406_v11  ;;  %4513 = vmatpush.msra.mxu1 %v4470_v37  ;;  %v4455_v39 = vunpack.c.h.bf16 %v11919_v50  ;;  %v4454_v59 = vunpack.c.l.bf16 %v11919_v50  ;;  %v4451_v28 = vunpack.c.h.bf16 %v11921_v0  ;;  %v4450_v46 = vunpack.c.l.bf16 %v11921_v0  ;;  %v11922_v58 = vld [vmem:[#allocation417_spill] sm:$0xff]  ;;  %v11924_v5 = vld [vmem:[#allocation415_spill] sm:$0xff]  ;;  %v11938_v50 = vld [vmem:[#allocation434_spill] sm:$0xff] }
 0xc2f   :  { %4534 = vmatpush.msra.mxu2 %v4403_v3  ;;  %4554 = vmatpush.msra.mxu3 %v4467_v19  ;;  %v4383_v47 = vunpack.c.h.bf16 %v11922_v58  ;;  %v11923_v40 = vld [vmem:[#allocation449_spill] sm:$0xff]  ;;  %v4382_v22 = vunpack.c.l.bf16 %v11922_v58  ;;  %v4379_v2 = vunpack.c.h.bf16 %v11924_v5  ;;  %v11925_v14 = vld [vmem:[#allocation447_spill] sm:$0xff]  ;;  %v4378_v48 = vunpack.c.l.bf16 %v11924_v5  ;;  %v11940_v0 = vld [vmem:[#allocation432_spill] sm:$0xff] }
 0xc30   :  { %4494 = vmatpush.msra.mxu0 %v4402_v34  ;;  %4514 = vmatpush.msra.mxu1 %v4466_v52  ;;  %v4447_v60 = vunpack.c.h.bf16 %v11923_v40  ;;  %v4446_v54 = vunpack.c.l.bf16 %v11923_v40  ;;  %v4443_v27 = vunpack.c.h.bf16 %v11925_v14  ;;  %v4442_v16 = vunpack.c.l.bf16 %v11925_v14  ;;  %v11926_v31 = vld [vmem:[#allocation413_spill] sm:$0xff]  ;;  %v11928_v9 = vld [vmem:[#allocation411_spill] sm:$0xff]  ;;  %v11942_v40 = vld [vmem:[#allocation430_spill] sm:$0xff] }
 0xc31   :  { %4535 = vmatpush.msra.mxu2 %v4399_v61  ;;  %4555 = vmatpush.msra.mxu3 %v4463_v42  ;;  %v4375_v13 = vunpack.c.h.bf16 %v11926_v31  ;;  %v11927_v56 = vld [vmem:[#allocation445_spill] sm:$0xff]  ;;  %v4374_v51 = vunpack.c.l.bf16 %v11926_v31  ;;  %v4371_v21 = vunpack.c.h.bf16 %v11928_v9  ;;  %v11929_v12 = vld [vmem:[#allocation443_spill] sm:$0xff]  ;;  %v4370_v20 = vunpack.c.l.bf16 %v11928_v9  ;;  %v11944_v14 = vld [vmem:[#allocation428_spill] sm:$0xff] }
 0xc32   :  { %4495 = vmatpush.msra.mxu0 %v4398_v36  ;;  %4515 = vmatpush.msra.mxu1 %v4462_v7  ;;  %v4439_v8 = vunpack.c.h.bf16 %v11927_v56  ;;  %v4438_v25 = vunpack.c.l.bf16 %v11927_v56  ;;  %v4435_v30 = vunpack.c.h.bf16 %v11929_v12  ;;  %v4434_v63 = vunpack.c.l.bf16 %v11929_v12  ;;  %v11930_v11 = vld [vmem:[#allocation409_spill] sm:$0xff]  ;;  %v11932_v34 = vld [vmem:[#allocation407_spill] sm:$0xff]  ;;  %v11946_v56 = vld [vmem:[#allocation426_spill] sm:$0xff] }
 0xc33   :  { %4536 = vmatpush.msra.mxu2 %v4395_v29  ;;  %4556 = vmatpush.msra.mxu3 %v4459_v38  ;;  %v4367_v37 = vunpack.c.h.bf16 %v11930_v11  ;;  %v11931_v4 = vld [vmem:[#allocation441_spill] sm:$0xff]  ;;  %v4366_v1 = vunpack.c.l.bf16 %v11930_v11  ;;  %v4363_v52 = vunpack.c.h.bf16 %v11932_v34  ;;  %v11933_v43 = vld [vmem:[#allocation439_spill] sm:$0xff]  ;;  %v4362_v35 = vunpack.c.l.bf16 %v11932_v34  ;;  %v11948_v12 = vld [vmem:[#allocation424_spill] sm:$0xff] }
 0xc34   :  { %4496 = vmatpush.msra.mxu0 %v4394_v57  ;;  %4516 = vmatpush.msra.mxu1 %v4458_v33  ;;  %v4431_v3 = vunpack.c.h.bf16 %v11931_v4  ;;  %v4430_v19 = vunpack.c.l.bf16 %v11931_v4  ;;  %v4427_v61 = vunpack.c.h.bf16 %v11933_v43  ;;  %v4426_v42 = vunpack.c.l.bf16 %v11933_v43  ;;  %v11934_v36 = vld [vmem:[#allocation405_spill] sm:$0xff]  ;;  %v11936_v57 = vld [vmem:[#allocation403_spill] sm:$0xff]  ;;  %v11950_v4 = vld [vmem:[#allocation422_spill] sm:$0xff] }
 0xc35   :  { %4537 = vmatpush.msra.mxu2 %v4391_v18  ;;  %4557 = vmatpush.msra.mxu3 %v4455_v39  ;;  %v4359_v7 = vunpack.c.h.bf16 %v11934_v36  ;;  %v11935_v17 = vld [vmem:[#allocation437_spill] sm:$0xff]  ;;  %v4358_v32 = vunpack.c.l.bf16 %v11934_v36  ;;  %v4355_v33 = vunpack.c.h.bf16 %v11936_v57  ;;  %v11937_v6 = vld [vmem:[#allocation435_spill] sm:$0xff]  ;;  %v4417_v39 = vunpack.c.h.bf16 %v11938_v50  ;;  %v11952_v43 = vld [vmem:[#allocation420_spill] sm:$0xff] }
 0xc36   :  { %4497 = vmatpush.msra.mxu0 %v4390_v44  ;;  %4517 = vmatpush.msra.mxu1 %v4454_v59  ;;  %v4423_v29 = vunpack.c.h.bf16 %v11935_v17  ;;  %v4422_v38 = vunpack.c.l.bf16 %v11935_v17  ;;  %v4419_v18 = vunpack.c.h.bf16 %v11937_v6  ;;  %v11939_v44 = vld [vmem:[#allocation466_spill] sm:$0xff]  ;;  %v4354_v53 = vunpack.c.l.bf16 %v11936_v57 }
 0xc37   :  { %4538 = vmatpush.msra.mxu2 %v4387_v45  ;;  %4558 = vmatpush.msra.mxu3 %v4451_v28  ;;  %v4481_v59 = vunpack.c.h.bf16 %v11939_v44  ;;  %v4418_v45 = vunpack.c.l.bf16 %v11937_v6  ;;  %v4413_v28 = vunpack.c.h.bf16 %v11940_v0  ;;  %v4416_v58 = vunpack.c.l.bf16 %v11938_v50  ;;  %v11954_v17 = vld [vmem:[#allocation418_spill] sm:$0xff]  ;;  %v11956_v6 = vld [vmem:[#allocation416_spill] sm:$0xff] }
 0xc38   :  { %4498 = vmatpush.msra.mxu0 %v4386_v26  ;;  %4518 = vmatpush.msra.mxu1 %v4450_v46  ;;  %v11941_v26 = vld [vmem:[#allocation464_spill] sm:$0xff]  ;;  %v4412_v5 = vunpack.c.l.bf16 %v11940_v0  ;;  %v4408_v31 = vunpack.c.l.bf16 %v11942_v40  ;;  %v4404_v9 = vunpack.c.l.bf16 %v11944_v14  ;;  %v4400_v11 = vunpack.c.l.bf16 %v11946_v56  ;;  %v11959_v0 = vld [vmem:[#allocation446_spill] sm:$0xff] }
 0xc39   :  { %4539 = vmatpush.msra.mxu2 %v4383_v47  ;;  %4559 = vmatpush.msra.mxu3 %v4447_v60  ;;  %v4477_v46 = vunpack.c.h.bf16 %v11941_v26  ;;  %v4480_v47 = vunpack.c.l.bf16 %v11939_v44  ;;  %v4409_v60 = vunpack.c.h.bf16 %v11942_v40  ;;  %v4396_v34 = vunpack.c.l.bf16 %v11948_v12  ;;  %v11957_v50 = vld [vmem:[#allocation448_spill] sm:$0xff] }
 0xc3a   :  { %4499 = vmatpush.msra.mxu0 %v4382_v22  ;;  %4519 = vmatpush.msra.mxu1 %v4446_v54  ;;  %v11943_v22 = vld [vmem:[#allocation462_spill] sm:$0xff]  ;;  %v4392_v36 = vunpack.c.l.bf16 %v11950_v4  ;;  %v4388_v57 = vunpack.c.l.bf16 %v11952_v43  ;;  %v4384_v44 = vunpack.c.l.bf16 %v11954_v17  ;;  %v4487_v40 = vld [vmem:[#allocation1] sm:$0xff] }
 0xc3b   :  { %4540 = vmatpush.msra.mxu2 %v4379_v2  ;;  %4560 = vmatpush.msra.mxu3 %v4443_v27  ;;  %v4473_v54 = vunpack.c.h.bf16 %v11943_v22  ;;  %v4476_v2 = vunpack.c.l.bf16 %v11941_v26  ;;  %v4405_v27 = vunpack.c.h.bf16 %v11944_v14  ;;  %v11960_v26 = vld [vmem:[#allocation412_spill] sm:$0xff]  ;;  %v11963_v14 = vld [vmem:[#allocation442_spill] sm:$0xff] }
 0xc3c   :  { %4500 = vmatpush.msra.mxu0 %v4378_v48  ;;  %4520 = vmatpush.msra.mxu1 %v4442_v16  ;;  %v11945_v48 = vld [vmem:[#allocation460_spill] sm:$0xff] }
 0xc3d   :  { %4541 = vmatpush.msra.mxu2 %v4375_v13  ;;  %4561 = vmatpush.msra.mxu3 %v4439_v8  ;;  %v4469_v16 = vunpack.c.h.bf16 %v11945_v48  ;;  %v4472_v13 = vunpack.c.l.bf16 %v11943_v22  ;;  %v4401_v8 = vunpack.c.h.bf16 %v11946_v56  ;;  %v4380_v22 = vunpack.c.l.bf16 %v11956_v6  ;;  %v11965_v56 = vld [vmem:[#allocation440_spill] sm:$0xff] }
 0xc3e   :  { %4501 = vmatpush.msra.mxu0 %v4374_v51  ;;  %4521 = vmatpush.msra.mxu1 %v4438_v25  ;;  %v11947_v51 = vld [vmem:[#allocation458_spill] sm:$0xff] }
 0xc3f   :  { %4542 = vmatpush.msra.mxu2 %v4371_v21  ;;  %4562 = vmatpush.msra.mxu3 %v4435_v30  ;;  %v4465_v25 = vunpack.c.h.bf16 %v11947_v51  ;;  %v4468_v21 = vunpack.c.l.bf16 %v11945_v48  ;;  %v4397_v30 = vunpack.c.h.bf16 %v11948_v12  ;;  %v11967_v12 = vld [vmem:[#allocation438_spill] sm:$0xff] }
 0xc40   :  { %4502 = vmatpush.msra.mxu0 %v4370_v20  ;;  %4522 = vmatpush.msra.mxu1 %v4434_v63  ;;  %v11949_v20 = vld [vmem:[#allocation456_spill] sm:$0xff] }
 0xc41   :  { %4543 = vmatpush.msra.mxu2 %v4367_v37  ;;  %4563 = vmatpush.msra.mxu3 %v4431_v3  ;;  %v4461_v63 = vunpack.c.h.bf16 %v11949_v20  ;;  %v4464_v37 = vunpack.c.l.bf16 %v11947_v51  ;;  %v4393_v3 = vunpack.c.h.bf16 %v11950_v4  ;;  %v4372_v51 = vunpack.c.l.bf16 %v11960_v26  ;;  %v11969_v4 = vld [vmem:[#allocation436_spill] sm:$0xff] }
 0xc42   :  { %4503 = vmatpush.msra.mxu0 %v4366_v1  ;;  %4523 = vmatpush.msra.mxu1 %v4430_v19  ;;  %v11951_v1 = vld [vmem:[#allocation454_spill] sm:$0xff] }
 0xc43   :  { %4544 = vmatpush.msra.mxu2 %v4363_v52  ;;  %4564 = vmatpush.msra.mxu3 %v4427_v61  ;;  %v4457_v19 = vunpack.c.h.bf16 %v11951_v1  ;;  %v4460_v52 = vunpack.c.l.bf16 %v11949_v20  ;;  %v4389_v61 = vunpack.c.h.bf16 %v11952_v43 }
 0xc44   :  { %4504 = vmatpush.msra.mxu0 %v4362_v35  ;;  %4524 = vmatpush.msra.mxu1 %v4426_v42  ;;  %v11953_v35 = vld [vmem:[#allocation452_spill] sm:$0xff] }
 0xc45   :  { %4545 = vmatpush.msra.mxu2 %v4359_v7  ;;  %4565 = vmatpush.msra.mxu3 %v4423_v29  ;;  %v4453_v42 = vunpack.c.h.bf16 %v11953_v35  ;;  %v4456_v7 = vunpack.c.l.bf16 %v11951_v1  ;;  %v4385_v29 = vunpack.c.h.bf16 %v11954_v17 }
 0xc46   :  { %4505 = vmatpush.msra.mxu0 %v4358_v32  ;;  %4525 = vmatpush.msra.mxu1 %v4422_v38  ;;  %v11955_v32 = vld [vmem:[#allocation450_spill] sm:$0xff] }
 0xc47   :  { %4546 = vmatpush.msra.mxu2 %v4355_v33  ;;  %4566 = vmatpush.msra.mxu3 %v4419_v18  ;;  %v4449_v38 = vunpack.c.h.bf16 %v11955_v32  ;;  %v4452_v33 = vunpack.c.l.bf16 %v11953_v35  ;;  %v4381_v18 = vunpack.c.h.bf16 %v11956_v6 }
 0xc48   :  { %4506 = vmatpush.msra.mxu0 %v4354_v53  ;;  %4526 = vmatpush.msra.mxu1 %v4418_v45  ;;  %v11958_v53 = vld [vmem:[#allocation414_spill] sm:$0xff] }
 0xc49   :  { %4611 = vmatpush.msrb.mxu2 %v4417_v39  ;;  %4631 = vmatpush.msrb.mxu3 %v4481_v59  ;;  %v4445_v39 = vunpack.c.h.bf16 %v11957_v50  ;;  %v4448_v59 = vunpack.c.l.bf16 %v11955_v32  ;;  %v4377_v45 = vunpack.c.h.bf16 %v11958_v53  ;;  %v4376_v48 = vunpack.c.l.bf16 %v11958_v53  ;;  %v11970_v53 = vld [vmem:[#allocation497_spill] sm:$0xff] }
 0xc4a   :  { %4571 = vmatpush.msrb.mxu0 %v4416_v58  ;;  %4591 = vmatpush.msrb.mxu1 %v4480_v47  ;;  %v11961_v58 = vld [vmem:[#allocation444_spill] sm:$0xff] }
 0xc4b   :  { %4612 = vmatpush.msrb.mxu2 %v4413_v28  ;;  %4632 = vmatpush.msrb.mxu3 %v4477_v46  ;;  %v4441_v28 = vunpack.c.h.bf16 %v11959_v0  ;;  %v4373_v46 = vunpack.c.h.bf16 %v11960_v26  ;;  %v4437_v47 = vunpack.c.h.bf16 %v11961_v58 }
 0xc4c   :  { %4572 = vmatpush.msrb.mxu0 %v4412_v5  ;;  %4592 = vmatpush.msrb.mxu1 %v4476_v2  ;;  %v11962_v5 = vld [vmem:[#allocation410_spill] sm:$0xff] }
 0xc4d   :  { %4613 = vmatpush.msrb.mxu2 %v4409_v60  ;;  %4633 = vmatpush.msrb.mxu3 %v4473_v54  ;;  %v4488_v60 = vld [vmem:[#allocation1 + $0x9] sm:$0xff]  ;;  %v4444_v54 = vunpack.c.l.bf16 %v11957_v50  ;;  %v4369_v2 = vunpack.c.h.bf16 %v11962_v5  ;;  %v4368_v20 = vunpack.c.l.bf16 %v11962_v5 }
 0xc4e   :  { %4573 = vmatpush.msrb.mxu0 %v4408_v31  ;;  %4593 = vmatpush.msrb.mxu1 %v4472_v13  ;;  %v11964_v31 = vld [vmem:[#allocation408_spill] sm:$0xff] }
 0xc4f   :  { %4614 = vmatpush.msrb.mxu2 %v4405_v27  ;;  %4634 = vmatpush.msrb.mxu3 %v4469_v16  ;;  %v4433_v27 = vunpack.c.h.bf16 %v11963_v14  ;;  %v4440_v16 = vunpack.c.l.bf16 %v11959_v0  ;;  %v4365_v13 = vunpack.c.h.bf16 %v11964_v31  ;;  %v4364_v1 = vunpack.c.l.bf16 %v11964_v31  ;;  %v11971_v0 = vld [vmem:[#allocation529_spill] sm:$0xff] }
 0xc50   :  { %4574 = vmatpush.msrb.mxu0 %v4404_v9  ;;  %4594 = vmatpush.msrb.mxu1 %v4468_v21  ;;  %v11966_v9 = vld [vmem:[#allocation406_spill] sm:$0xff] }
 0xc51   :  { %4615 = vmatpush.msrb.mxu2 %v4401_v8  ;;  %4635 = vmatpush.msrb.mxu3 %v4465_v25  ;;  %v4429_v8 = vunpack.c.h.bf16 %v11965_v56  ;;  %v4436_v25 = vunpack.c.l.bf16 %v11961_v58  ;;  %v4361_v21 = vunpack.c.h.bf16 %v11966_v9 }
 0xc52   :  { %4575 = vmatpush.msrb.mxu0 %v4400_v11  ;;  %4595 = vmatpush.msrb.mxu1 %v4464_v37  ;;  %v11968_v11 = vld [vmem:[#allocation404_spill] sm:$0xff] }
 0xc53   :  { %4616 = vmatpush.msrb.mxu2 %v4397_v30  ;;  %4636 = vmatpush.msrb.mxu3 %v4461_v63  ;;  %v4425_v30 = vunpack.c.h.bf16 %v11967_v12  ;;  %v4432_v63 = vunpack.c.l.bf16 %v11963_v14  ;;  %v4357_v37 = vunpack.c.h.bf16 %v11968_v11  ;;  %v4356_v43 = vunpack.c.l.bf16 %v11968_v11 }
 0xc54   :  { %4576 = vmatpush.msrb.mxu0 %v4396_v34  ;;  %4596 = vmatpush.msrb.mxu1 %v4460_v52  ;;  %v4360_v34 = vunpack.c.l.bf16 %v11966_v9  ;;  %v4424_v52 = vunpack.c.l.bf16 %v11967_v12 }
 0xc55   :  { %4617 = vmatpush.msrb.mxu2 %v4393_v3  ;;  %4637 = vmatpush.msrb.mxu3 %v4457_v19  ;;  %v4421_v3 = vunpack.c.h.bf16 %v11969_v4  ;;  %v4428_v19 = vunpack.c.l.bf16 %v11965_v56 }
 0xc56   :  { %4577 = vmatpush.msrb.mxu0 %v4392_v36  ;;  %4597 = vmatpush.msrb.mxu1 %v4456_v7 }
 0xc57   :  { %4618 = vmatpush.msrb.mxu2 %v4389_v61  ;;  %4638 = vmatpush.msrb.mxu3 %v4453_v42  ;;  %v4420_v61 = vunpack.c.l.bf16 %v11969_v4 }
 0xc58   :  { %4578 = vmatpush.msrb.mxu0 %v4388_v57  ;;  %4598 = vmatpush.msrb.mxu1 %v4452_v33 }
 0xc59   :  { %4619 = vmatpush.msrb.mxu2 %v4385_v29  ;;  %4639 = vmatpush.msrb.mxu3 %v4449_v38 }
 0xc5a   :  { %4579 = vmatpush.msrb.mxu0 %v4384_v44  ;;  %4599 = vmatpush.msrb.mxu1 %v4448_v59 }
 0xc5b   :  { %4620 = vmatpush.msrb.mxu2 %v4381_v18  ;;  %4640 = vmatpush.msrb.mxu3 %v4445_v39 }
 0xc5c   :  { %4547 = vmatmul.f32.vlgmr.msra.gmra.mxu2 %v4487_v40  ;;  %4567 = vmatmul.f32.vlgmr.msra.gmra.mxu3 %v4488_v60 }
 0xc5d   :  { %4621 = vmatpush.msrb.mxu2 %v4377_v45  ;;  %4641 = vmatpush.msrb.mxu3 %v4441_v28  ;;  %v4782_v45 = vunpack.c.h.bf16 %v11970_v53  ;;  %v11972_v28 = vld [vmem:[#allocation495_spill] sm:$0xff] }
 0xc5e   :  { %4580 = vmatpush.msrb.mxu0 %v4380_v22  ;;  %4600 = vmatpush.msrb.mxu1 %v4444_v54  ;;  %v4778_v26 = vunpack.c.h.bf16 %v11972_v28 }
 0xc5f   :  { %4622 = vmatpush.msrb.mxu2 %v4373_v46  ;;  %4642 = vmatpush.msrb.mxu3 %v4437_v47 }
 0xc60   :  { %4581 = vmatpush.msrb.mxu0 %v4376_v48  ;;  %4601 = vmatpush.msrb.mxu1 %v4440_v16 }
 0xc61   :  { %4623 = vmatpush.msrb.mxu2 %v4369_v2  ;;  %4643 = vmatpush.msrb.mxu3 %v4433_v27 }
 0xc62   :  { %4582 = vmatpush.msrb.mxu0 %v4372_v51  ;;  %4602 = vmatpush.msrb.mxu1 %v4436_v25 }
 0xc63   :  { %4624 = vmatpush.msrb.mxu2 %v4365_v13  ;;  %4644 = vmatpush.msrb.mxu3 %v4429_v8 }
 0xc64   :  { %4507 = vmatmul.f32.vlgmr.msra.gmra.mxu0 %v4487_v40  ;;  %4527 = vmatmul.f32.vlgmr.msra.gmra.mxu1 %v4488_v60 }
 0xc65   :  { %4625 = vmatpush.msrb.mxu2 %v4361_v21  ;;  %4645 = vmatpush.msrb.mxu3 %v4425_v30 }
 0xc66   :  { %4583 = vmatpush.msrb.mxu0 %v4368_v20  ;;  %4603 = vmatpush.msrb.mxu1 %v4432_v63 }
 0xc67   :  { %4626 = vmatpush.msrb.mxu2 %v4357_v37  ;;  %4646 = vmatpush.msrb.mxu3 %v4421_v3 }
 0xc68   :  { %4627 = vmatmul.f32.vlgmr.msrb.gmra.mxu2 %v4487_v40  ;;  %4647 = vmatmul.f32.vlgmr.msrb.gmra.mxu3 %v4488_v60 }
 0xc69   :  { %4584 = vmatpush.msrb.mxu0 %v4364_v1  ;;  %4604 = vmatpush.msrb.mxu1 %v4428_v19 }
 0xc6b   :  { %4585 = vmatpush.msrb.mxu0 %v4360_v34  ;;  %4605 = vmatpush.msrb.mxu1 %v4424_v52 }
 0xc6d   :  { %4586 = vmatpush.msrb.mxu0 %v4356_v43  ;;  %4606 = vmatpush.msrb.mxu1 %v4420_v61 }
 0xc6e   :  { %4587 = vmatmul.f32.vlgmr.msrb.gmra.mxu0 %v4487_v40  ;;  %4607 = vmatmul.f32.vlgmr.msrb.gmra.mxu1 %v4488_v60 }
 0xcdf   :  { %v4548_v35 = vpop.f32.mrf.mxu2  ;;  %v4568_v42 = vpop.f32.mrf.mxu3 }
 0xce0   :  { %v4569_v36 = vadd.f32 %v4568_v42, %v4548_v35 }
 0xce1   :  { %v4508_v7 = vpop.f32.mrf.mxu0  ;;  %v4528_v17 = vpop.f32.mrf.mxu1 }
 0xce2   :  { %v4529_v29 = vadd.f32 %v4528_v17, %v4508_v7  ;;  %v10210_v32 = vadd.f32 %v4569_v36, %v10066_v55  ;;  %v4846_v55 = vunpack.c.h.bf16 %v11971_v0 }
 0xce4   :  { %v10213_v38 = vadd.f32 %v4529_v29, %v10069_v24  ;;  %v11973_v24 = vld [vmem:[#allocation527_spill] sm:$0xff] }
 0xce5   :  { %v4842_v46 = vunpack.c.h.bf16 %v11973_v24 }
 0xceb   :  { %v4588_v57 = vpop.f32.mrf.mxu0  ;;  %v4608_v33 = vpop.f32.mrf.mxu1 }
 0xcec   :  { %v4609_v6 = vadd.f32 %v4608_v33, %v4588_v57  ;;  %v4628_v18 = vpop.f32.mrf.mxu2  ;;  %v4648_v50 = vpop.f32.mrf.mxu3 }
 0xced   :  { %v4649_v39 = vadd.f32 %v4648_v50, %v4628_v18 }
 0xcee   :  { %v10216_v44 = vadd.f32 %v4609_v6, %v10072_v41 }
 0xcef   :  { %v10219_v59 = vadd.f32 %v4649_v39, %v10075_v62 }
 0xcf0   :  { %5934 = dma.done.wait [#allocation3 + $0x7], 8192 }
 0xcf1   :  { %5935 = vsyncadd [#allocation3 + $0x7], 4294959104  ;;  %v4781_v58 = vunpack.c.l.bf16 %v11970_v53  ;;  %v4845_v47 = vunpack.c.l.bf16 %v11971_v0  ;;  %4851 = vst [vmem:[#allocation1] ss:$9 sm:$0xff] %v2072_v49  ;;  %4898 = vmatpush.msra.mxu2 %v4782_v45  ;;  %4918 = vmatpush.msra.mxu3 %v4846_v55  ;;  %v11974_v41 = vld [vmem:[#allocation493_spill] sm:$0xff]  ;;  %v4777_v22 = vunpack.c.l.bf16 %v11972_v28  ;;  %v4841_v54 = vunpack.c.l.bf16 %v11973_v24  ;;  %v11976_v49 = vld [vmem:[#allocation491_spill] sm:$0xff] }
 0xcf2   :  { %v4774_v62 = vunpack.c.h.bf16 %v11974_v41  ;;  %v11975_v40 = vld [vmem:[#allocation525_spill] sm:$0xff]  ;;  %4853 = vst [vmem:[#allocation1 + $0x1] ss:$9 sm:$0xff] %v2073_v10  ;;  %v4773_v5 = vunpack.c.l.bf16 %v11974_v41  ;;  %v4770_v2 = vunpack.c.h.bf16 %v11976_v49  ;;  %v11977_v14 = vld [vmem:[#allocation523_spill] sm:$0xff]  ;;  %v4769_v48 = vunpack.c.l.bf16 %v11976_v49 }
 0xcf3   :  { %v4838_v60 = vunpack.c.h.bf16 %v11975_v40  ;;  %4858 = vmatpush.msra.mxu0 %v4781_v58  ;;  %4878 = vmatpush.msra.mxu1 %v4845_v47  ;;  %v4837_v23 = vunpack.c.l.bf16 %v11975_v40  ;;  %v4834_v27 = vunpack.c.h.bf16 %v11977_v14  ;;  %v4833_v16 = vunpack.c.l.bf16 %v11977_v14  ;;  %v11978_v15 = vld [vmem:[#allocation489_spill] sm:$0xff]  ;;  %v11980_v51 = vld [vmem:[#allocation487_spill] sm:$0xff] }
 0xcf4   :  { %4899 = vmatpush.msra.mxu2 %v4778_v26  ;;  %4919 = vmatpush.msra.mxu3 %v4842_v46  ;;  %v4766_v10 = vunpack.c.h.bf16 %v11978_v15  ;;  %v11979_v31 = vld [vmem:[#allocation521_spill] sm:$0xff]  ;;  %v4765_v56 = vunpack.c.l.bf16 %v11978_v15  ;;  %v4762_v25 = vunpack.c.h.bf16 %v11980_v51  ;;  %v11981_v9 = vld [vmem:[#allocation519_spill] sm:$0xff]  ;;  %v4761_v12 = vunpack.c.l.bf16 %v11980_v51 }
 0xcf5   :  { %4859 = vmatpush.msra.mxu0 %v4777_v22  ;;  %4879 = vmatpush.msra.mxu1 %v4841_v54  ;;  %v4830_v13 = vunpack.c.h.bf16 %v11979_v31  ;;  %v4829_v8 = vunpack.c.l.bf16 %v11979_v31  ;;  %v4826_v21 = vunpack.c.h.bf16 %v11981_v9  ;;  %v4825_v30 = vunpack.c.l.bf16 %v11981_v9  ;;  %v11982_v20 = vld [vmem:[#allocation485_spill] sm:$0xff]  ;;  %v11984_v1 = vld [vmem:[#allocation483_spill] sm:$0xff] }
 0xcf6   :  { %4900 = vmatpush.msra.mxu2 %v4774_v62  ;;  %4920 = vmatpush.msra.mxu3 %v4838_v60  ;;  %v4758_v63 = vunpack.c.h.bf16 %v11982_v20  ;;  %v11983_v11 = vld [vmem:[#allocation517_spill] sm:$0xff]  ;;  %v4757_v4 = vunpack.c.l.bf16 %v11982_v20  ;;  %v4754_v19 = vunpack.c.h.bf16 %v11984_v1  ;;  %v11985_v34 = vld [vmem:[#allocation515_spill] sm:$0xff]  ;;  %v4753_v43 = vunpack.c.l.bf16 %v11984_v1  ;;  %v12003_v20 = vld [vmem:[#allocation530_spill] sm:$0xff] }
 0xcf7   :  { %4860 = vmatpush.msra.mxu0 %v4773_v5  ;;  %4880 = vmatpush.msra.mxu1 %v4837_v23  ;;  %v4822_v37 = vunpack.c.h.bf16 %v11983_v11  ;;  %v4821_v3 = vunpack.c.l.bf16 %v11983_v11  ;;  %v4818_v52 = vunpack.c.h.bf16 %v11985_v34  ;;  %v4817_v61 = vunpack.c.l.bf16 %v11985_v34  ;;  %v11986_v35 = vld [vmem:[#allocation481_spill] sm:$0xff]  ;;  %v11988_v57 = vld [vmem:[#allocation479_spill] sm:$0xff]  ;;  %v12005_v1 = vld [vmem:[#allocation528_spill] sm:$0xff] }
 0xcf8   :  { %4901 = vmatpush.msra.mxu2 %v4770_v2  ;;  %4921 = vmatpush.msra.mxu3 %v4834_v27  ;;  %v4750_v42 = vunpack.c.h.bf16 %v11986_v35  ;;  %v11987_v36 = vld [vmem:[#allocation513_spill] sm:$0xff]  ;;  %v4749_v17 = vunpack.c.l.bf16 %v11986_v35  ;;  %v4746_v33 = vunpack.c.h.bf16 %v11988_v57  ;;  %v11989_v6 = vld [vmem:[#allocation511_spill] sm:$0xff]  ;;  %v4745_v50 = vunpack.c.l.bf16 %v11988_v57  ;;  %v12007_v35 = vld [vmem:[#allocation526_spill] sm:$0xff] }
 0xcf9   :  { %4861 = vmatpush.msra.mxu0 %v4769_v48  ;;  %4881 = vmatpush.msra.mxu1 %v4833_v16  ;;  %v4814_v7 = vunpack.c.h.bf16 %v11987_v36  ;;  %v4813_v29 = vunpack.c.l.bf16 %v11987_v36  ;;  %v4810_v18 = vunpack.c.h.bf16 %v11989_v6  ;;  %v4809_v39 = vunpack.c.l.bf16 %v11989_v6  ;;  %v11990_v53 = vld [vmem:[#allocation477_spill] sm:$0xff]  ;;  %v11992_v24 = vld [vmem:[#allocation475_spill] sm:$0xff]  ;;  %v12009_v57 = vld [vmem:[#allocation524_spill] sm:$0xff] }
 0xcfa   :  { %4902 = vmatpush.msra.mxu2 %v4766_v10  ;;  %4922 = vmatpush.msra.mxu3 %v4830_v13  ;;  %v4742_v45 = vunpack.c.h.bf16 %v11990_v53  ;;  %v11991_v0 = vld [vmem:[#allocation509_spill] sm:$0xff]  ;;  %v4741_v28 = vunpack.c.l.bf16 %v11990_v53  ;;  %v4738_v46 = vunpack.c.h.bf16 %v11992_v24  ;;  %v11993_v58 = vld [vmem:[#allocation507_spill] sm:$0xff]  ;;  %v4737_v41 = vunpack.c.l.bf16 %v11992_v24  ;;  %v12011_v53 = vld [vmem:[#allocation522_spill] sm:$0xff] }
 0xcfb   :  { %4862 = vmatpush.msra.mxu0 %v4765_v56  ;;  %4882 = vmatpush.msra.mxu1 %v4829_v8  ;;  %v4806_v55 = vunpack.c.h.bf16 %v11991_v0  ;;  %v4805_v26 = vunpack.c.l.bf16 %v11991_v0  ;;  %v4802_v47 = vunpack.c.h.bf16 %v11993_v58  ;;  %v4801_v62 = vunpack.c.l.bf16 %v11993_v58  ;;  %v11994_v40 = vld [vmem:[#allocation473_spill] sm:$0xff]  ;;  %v11996_v49 = vld [vmem:[#allocation471_spill] sm:$0xff]  ;;  %v12013_v24 = vld [vmem:[#allocation520_spill] sm:$0xff] }
 0xcfc   :  { %4903 = vmatpush.msra.mxu2 %v4762_v25  ;;  %4923 = vmatpush.msra.mxu3 %v4826_v21  ;;  %v4734_v60 = vunpack.c.h.bf16 %v11994_v40  ;;  %v11995_v22 = vld [vmem:[#allocation505_spill] sm:$0xff]  ;;  %v4733_v5 = vunpack.c.l.bf16 %v11994_v40  ;;  %v4730_v2 = vunpack.c.h.bf16 %v11996_v49  ;;  %v11997_v14 = vld [vmem:[#allocation503_spill] sm:$0xff]  ;;  %v4729_v48 = vunpack.c.l.bf16 %v11996_v49  ;;  %v12015_v40 = vld [vmem:[#allocation518_spill] sm:$0xff] }
 0xcfd   :  { %4863 = vmatpush.msra.mxu0 %v4761_v12  ;;  %4883 = vmatpush.msra.mxu1 %v4825_v30  ;;  %v4798_v54 = vunpack.c.h.bf16 %v11995_v22  ;;  %v4797_v23 = vunpack.c.l.bf16 %v11995_v22  ;;  %v4794_v27 = vunpack.c.h.bf16 %v11997_v14  ;;  %v4793_v16 = vunpack.c.l.bf16 %v11997_v14  ;;  %v11998_v15 = vld [vmem:[#allocation469_spill] sm:$0xff]  ;;  %v12000_v51 = vld [vmem:[#allocation467_spill] sm:$0xff]  ;;  %v12002_v12 = vld [vmem:[#allocation498_spill] sm:$0xff] }
 0xcfe   :  { %4904 = vmatpush.msra.mxu2 %v4758_v63  ;;  %4924 = vmatpush.msra.mxu3 %v4822_v37  ;;  %v4726_v10 = vunpack.c.h.bf16 %v11998_v15  ;;  %v11999_v31 = vld [vmem:[#allocation501_spill] sm:$0xff]  ;;  %v4725_v56 = vunpack.c.l.bf16 %v11998_v15  ;;  %v4722_v25 = vunpack.c.h.bf16 %v12000_v51  ;;  %v12001_v9 = vld [vmem:[#allocation499_spill] sm:$0xff]  ;;  %v4784_v30 = vunpack.c.h.bf16 %v12002_v12  ;;  %v12017_v49 = vld [vmem:[#allocation516_spill] sm:$0xff] }
 0xcff   :  { %4864 = vmatpush.msra.mxu0 %v4757_v4  ;;  %4884 = vmatpush.msra.mxu1 %v4821_v3  ;;  %v4790_v13 = vunpack.c.h.bf16 %v11999_v31  ;;  %v4789_v8 = vunpack.c.l.bf16 %v11999_v31  ;;  %v4786_v21 = vunpack.c.h.bf16 %v12001_v9  ;;  %v4848_v63 = vunpack.c.h.bf16 %v12003_v20  ;;  %v12004_v4 = vld [vmem:[#allocation496_spill] sm:$0xff]  ;;  %v12019_v15 = vld [vmem:[#allocation514_spill] sm:$0xff] }
 0xd00   :  { %4905 = vmatpush.msra.mxu2 %v4754_v19  ;;  %4925 = vmatpush.msra.mxu3 %v4818_v52  ;;  %v4721_v11 = vunpack.c.l.bf16 %v12000_v51  ;;  %v4785_v37 = vunpack.c.l.bf16 %v12001_v9  ;;  %v4780_v3 = vunpack.c.h.bf16 %v12004_v4  ;;  %v4844_v19 = vunpack.c.h.bf16 %v12005_v1  ;;  %v12021_v51 = vld [vmem:[#allocation512_spill] sm:$0xff] }
 0xd01   :  { %4865 = vmatpush.msra.mxu0 %v4753_v43  ;;  %4885 = vmatpush.msra.mxu1 %v4817_v61  ;;  %v4783_v34 = vunpack.c.l.bf16 %v12002_v12  ;;  %v4847_v52 = vunpack.c.l.bf16 %v12003_v20  ;;  %v12006_v43 = vld [vmem:[#allocation494_spill] sm:$0xff]  ;;  %v4779_v36 = vunpack.c.l.bf16 %v12004_v4  ;;  %v12025_v4 = vld [vmem:[#allocation508_spill] sm:$0xff] }
 0xd02   :  { %4906 = vmatpush.msra.mxu2 %v4750_v42  ;;  %4926 = vmatpush.msra.mxu3 %v4814_v7  ;;  %v4776_v61 = vunpack.c.h.bf16 %v12006_v43  ;;  %v4840_v42 = vunpack.c.h.bf16 %v12007_v35  ;;  %v4843_v7 = vunpack.c.l.bf16 %v12005_v1  ;;  %v4775_v6 = vunpack.c.l.bf16 %v12006_v43  ;;  %v12022_v12 = vld [vmem:[#allocation478_spill] sm:$0xff]  ;;  %v4854_v1 = vld [vmem:[#allocation1] sm:$0xff] }
 0xd03   :  { %4866 = vmatpush.msra.mxu0 %v4749_v17  ;;  %4886 = vmatpush.msra.mxu1 %v4813_v29  ;;  %v12008_v17 = vld [vmem:[#allocation492_spill] sm:$0xff]  ;;  %v12023_v20 = vld [vmem:[#allocation510_spill] sm:$0xff] }
 0xd04   :  { %4907 = vmatpush.msra.mxu2 %v4746_v33  ;;  %4927 = vmatpush.msra.mxu3 %v4810_v18  ;;  %v4772_v29 = vunpack.c.h.bf16 %v12008_v17  ;;  %v4836_v33 = vunpack.c.h.bf16 %v12009_v57  ;;  %v4839_v18 = vunpack.c.l.bf16 %v12007_v35  ;;  %v4771_v0 = vunpack.c.l.bf16 %v12008_v17  ;;  %v12026_v43 = vld [vmem:[#allocation474_spill] sm:$0xff]  ;;  %v12028_v17 = vld [vmem:[#allocation472_spill] sm:$0xff] }
 0xd05   :  { %4867 = vmatpush.msra.mxu0 %v4745_v50  ;;  %4887 = vmatpush.msra.mxu1 %v4809_v39  ;;  %v12010_v50 = vld [vmem:[#allocation490_spill] sm:$0xff] }
 0xd06   :  { %4908 = vmatpush.msra.mxu2 %v4742_v45  ;;  %4928 = vmatpush.msra.mxu3 %v4806_v55  ;;  %v4768_v39 = vunpack.c.h.bf16 %v12010_v50  ;;  %v4832_v45 = vunpack.c.h.bf16 %v12011_v53  ;;  %v4835_v55 = vunpack.c.l.bf16 %v12009_v57  ;;  %v4767_v58 = vunpack.c.l.bf16 %v12010_v50  ;;  %v12027_v35 = vld [vmem:[#allocation506_spill] sm:$0xff]  ;;  %v12029_v57 = vld [vmem:[#allocation504_spill] sm:$0xff] }
 0xd07   :  { %4868 = vmatpush.msra.mxu0 %v4741_v28  ;;  %4888 = vmatpush.msra.mxu1 %v4805_v26  ;;  %v12012_v28 = vld [vmem:[#allocation488_spill] sm:$0xff]  ;;  %v12030_v50 = vld [vmem:[#allocation470_spill] sm:$0xff] }
 0xd08   :  { %4909 = vmatpush.msra.mxu2 %v4738_v46  ;;  %4929 = vmatpush.msra.mxu3 %v4802_v47  ;;  %v4764_v26 = vunpack.c.h.bf16 %v12012_v28  ;;  %v4828_v46 = vunpack.c.h.bf16 %v12013_v24  ;;  %v4831_v47 = vunpack.c.l.bf16 %v12011_v53  ;;  %v4763_v22 = vunpack.c.l.bf16 %v12012_v28  ;;  %v12031_v53 = vld [vmem:[#allocation502_spill] sm:$0xff]  ;;  %v12032_v28 = vld [vmem:[#allocation468_spill] sm:$0xff] }
 0xd09   :  { %4869 = vmatpush.msra.mxu0 %v4737_v41  ;;  %4889 = vmatpush.msra.mxu1 %v4801_v62  ;;  %v12014_v41 = vld [vmem:[#allocation486_spill] sm:$0xff] }
 0xd0a   :  { %4910 = vmatpush.msra.mxu2 %v4734_v60  ;;  %4930 = vmatpush.msra.mxu3 %v4798_v54  ;;  %v4760_v62 = vunpack.c.h.bf16 %v12014_v41  ;;  %v4824_v60 = vunpack.c.h.bf16 %v12015_v40  ;;  %v4827_v54 = vunpack.c.l.bf16 %v12013_v24  ;;  %v4759_v14 = vunpack.c.l.bf16 %v12014_v41  ;;  %v12033_v24 = vld [vmem:[#allocation500_spill] sm:$0xff] }
 0xd0b   :  { %4870 = vmatpush.msra.mxu0 %v4733_v5  ;;  %4890 = vmatpush.msra.mxu1 %v4797_v23  ;;  %v12016_v5 = vld [vmem:[#allocation484_spill] sm:$0xff]  ;;  %v4727_v41 = vunpack.c.l.bf16 %v12030_v50 }
 0xd0c   :  { %4911 = vmatpush.msra.mxu2 %v4730_v2  ;;  %4931 = vmatpush.msra.mxu3 %v4794_v27  ;;  %v4756_v23 = vunpack.c.h.bf16 %v12016_v5  ;;  %v4820_v2 = vunpack.c.h.bf16 %v12017_v49  ;;  %v4823_v27 = vunpack.c.l.bf16 %v12015_v40  ;;  %v4755_v31 = vunpack.c.l.bf16 %v12016_v5 }
 0xd0d   :  { %4871 = vmatpush.msra.mxu0 %v4729_v48  ;;  %4891 = vmatpush.msra.mxu1 %v4793_v16  ;;  %v12018_v48 = vld [vmem:[#allocation482_spill] sm:$0xff]  ;;  %v4723_v40 = vunpack.c.l.bf16 %v12032_v28 }
 0xd0e   :  { %4912 = vmatpush.msra.mxu2 %v4726_v10  ;;  %4932 = vmatpush.msra.mxu3 %v4790_v13  ;;  %v4752_v16 = vunpack.c.h.bf16 %v12018_v48  ;;  %v4816_v10 = vunpack.c.h.bf16 %v12019_v15  ;;  %v4819_v13 = vunpack.c.l.bf16 %v12017_v49  ;;  %v4751_v9 = vunpack.c.l.bf16 %v12018_v48 }
 0xd0f   :  { %4872 = vmatpush.msra.mxu0 %v4725_v56  ;;  %4892 = vmatpush.msra.mxu1 %v4789_v8  ;;  %v12020_v56 = vld [vmem:[#allocation480_spill] sm:$0xff] }
 0xd10   :  { %4913 = vmatpush.msra.mxu2 %v4722_v25  ;;  %4933 = vmatpush.msra.mxu3 %v4786_v21  ;;  %v4748_v8 = vunpack.c.h.bf16 %v12020_v56  ;;  %v4812_v25 = vunpack.c.h.bf16 %v12021_v51  ;;  %v4815_v21 = vunpack.c.l.bf16 %v12019_v15 }
 0xd11   :  { %4873 = vmatpush.msra.mxu0 %v4721_v11  ;;  %4893 = vmatpush.msra.mxu1 %v4785_v37  ;;  %v12024_v11 = vld [vmem:[#allocation476_spill] sm:$0xff] }
 0xd12   :  { %4978 = vmatpush.msrb.mxu2 %v4784_v30  ;;  %4998 = vmatpush.msrb.mxu3 %v4848_v63  ;;  %v4744_v30 = vunpack.c.h.bf16 %v12022_v12  ;;  %v4808_v63 = vunpack.c.h.bf16 %v12023_v20  ;;  %v4740_v37 = vunpack.c.h.bf16 %v12024_v11 }
 0xd13   :  { %4938 = vmatpush.msrb.mxu0 %v4783_v34  ;;  %4958 = vmatpush.msrb.mxu1 %v4847_v52  ;;  %v4747_v34 = vunpack.c.l.bf16 %v12020_v56  ;;  %v4811_v52 = vunpack.c.l.bf16 %v12021_v51 }
 0xd14   :  { %4979 = vmatpush.msrb.mxu2 %v4780_v3  ;;  %4999 = vmatpush.msrb.mxu3 %v4844_v19  ;;  %v4804_v3 = vunpack.c.h.bf16 %v12025_v4  ;;  %v4855_v19 = vld [vmem:[#allocation1 + $0x9] sm:$0xff] }
 0xd15   :  { %4939 = vmatpush.msrb.mxu0 %v4779_v36  ;;  %4959 = vmatpush.msrb.mxu1 %v4843_v7  ;;  %v4743_v36 = vunpack.c.l.bf16 %v12022_v12  ;;  %v4807_v7 = vunpack.c.l.bf16 %v12023_v20 }
 0xd16   :  { %4980 = vmatpush.msrb.mxu2 %v4776_v61  ;;  %5000 = vmatpush.msrb.mxu3 %v4840_v42  ;;  %v4736_v61 = vunpack.c.h.bf16 %v12026_v43  ;;  %v4800_v42 = vunpack.c.h.bf16 %v12027_v35 }
 0xd17   :  { %4940 = vmatpush.msrb.mxu0 %v4775_v6  ;;  %4960 = vmatpush.msrb.mxu1 %v4839_v18  ;;  %v4739_v6 = vunpack.c.l.bf16 %v12024_v11  ;;  %v4803_v18 = vunpack.c.l.bf16 %v12025_v4 }
 0xd18   :  { %4981 = vmatpush.msrb.mxu2 %v4772_v29  ;;  %5001 = vmatpush.msrb.mxu3 %v4836_v33  ;;  %v4732_v29 = vunpack.c.h.bf16 %v12028_v17  ;;  %v4796_v33 = vunpack.c.h.bf16 %v12029_v57 }
 0xd19   :  { %4941 = vmatpush.msrb.mxu0 %v4771_v0  ;;  %4961 = vmatpush.msrb.mxu1 %v4835_v55  ;;  %v4735_v0 = vunpack.c.l.bf16 %v12026_v43  ;;  %v4799_v55 = vunpack.c.l.bf16 %v12027_v35 }
 0xd1a   :  { %4982 = vmatpush.msrb.mxu2 %v4768_v39  ;;  %5002 = vmatpush.msrb.mxu3 %v4832_v45  ;;  %v4728_v39 = vunpack.c.h.bf16 %v12030_v50  ;;  %v4792_v45 = vunpack.c.h.bf16 %v12031_v53 }
 0xd1b   :  { %4942 = vmatpush.msrb.mxu0 %v4767_v58  ;;  %4962 = vmatpush.msrb.mxu1 %v4831_v47  ;;  %v4731_v58 = vunpack.c.l.bf16 %v12028_v17  ;;  %v4795_v47 = vunpack.c.l.bf16 %v12029_v57 }
 0xd1c   :  { %4983 = vmatpush.msrb.mxu2 %v4764_v26  ;;  %5003 = vmatpush.msrb.mxu3 %v4828_v46  ;;  %v4724_v26 = vunpack.c.h.bf16 %v12032_v28  ;;  %v4788_v46 = vunpack.c.h.bf16 %v12033_v24 }
 0xd1d   :  { %4943 = vmatpush.msrb.mxu0 %v4763_v22  ;;  %4963 = vmatpush.msrb.mxu1 %v4827_v54 }
 0xd1e   :  { %4984 = vmatpush.msrb.mxu2 %v4760_v62  ;;  %5004 = vmatpush.msrb.mxu3 %v4824_v60  ;;  %v4791_v62 = vunpack.c.l.bf16 %v12031_v53  ;;  %v4787_v60 = vunpack.c.l.bf16 %v12033_v24 }
 0xd1f   :  { %4944 = vmatpush.msrb.mxu0 %v4759_v14  ;;  %4964 = vmatpush.msrb.mxu1 %v4823_v27 }
 0xd20   :  { %4985 = vmatpush.msrb.mxu2 %v4756_v23  ;;  %5005 = vmatpush.msrb.mxu3 %v4820_v2 }
 0xd21   :  { %4945 = vmatpush.msrb.mxu0 %v4755_v31  ;;  %4965 = vmatpush.msrb.mxu1 %v4819_v13 }
 0xd22   :  { %4986 = vmatpush.msrb.mxu2 %v4752_v16  ;;  %5006 = vmatpush.msrb.mxu3 %v4816_v10 }
 0xd23   :  { %4946 = vmatpush.msrb.mxu0 %v4751_v9  ;;  %4966 = vmatpush.msrb.mxu1 %v4815_v21  ;;  %v12034_v9 = vld [vmem:[#allocation578_spill] sm:$0xff] }
 0xd24   :  { %4987 = vmatpush.msrb.mxu2 %v4748_v8  ;;  %5007 = vmatpush.msrb.mxu3 %v4812_v25  ;;  %v12035_v21 = vld [vmem:[#allocation546_spill] sm:$0xff] }
 0xd25   :  { %4914 = vmatmul.f32.vlgmr.msra.gmra.mxu2 %v4854_v1  ;;  %4934 = vmatmul.f32.vlgmr.msra.gmra.mxu3 %v4855_v19 }
 0xd26   :  { %4988 = vmatpush.msrb.mxu2 %v4744_v30  ;;  %5008 = vmatpush.msrb.mxu3 %v4808_v63 }
 0xd27   :  { %4947 = vmatpush.msrb.mxu0 %v4747_v34  ;;  %4967 = vmatpush.msrb.mxu1 %v4811_v52 }
 0xd28   :  { %4989 = vmatpush.msrb.mxu2 %v4740_v37  ;;  %5009 = vmatpush.msrb.mxu3 %v4804_v3 }
 0xd29   :  { %4948 = vmatpush.msrb.mxu0 %v4743_v36  ;;  %4968 = vmatpush.msrb.mxu1 %v4807_v7 }
 0xd2a   :  { %4990 = vmatpush.msrb.mxu2 %v4736_v61  ;;  %5010 = vmatpush.msrb.mxu3 %v4800_v42 }
 0xd2b   :  { %4949 = vmatpush.msrb.mxu0 %v4739_v6  ;;  %4969 = vmatpush.msrb.mxu1 %v4803_v18 }
 0xd2c   :  { %4991 = vmatpush.msrb.mxu2 %v4732_v29  ;;  %5011 = vmatpush.msrb.mxu3 %v4796_v33 }
 0xd2d   :  { %4874 = vmatmul.f32.vlgmr.msra.gmra.mxu0 %v4854_v1  ;;  %4894 = vmatmul.f32.vlgmr.msra.gmra.mxu1 %v4855_v19 }
 0xd2e   :  { %4992 = vmatpush.msrb.mxu2 %v4728_v39  ;;  %5012 = vmatpush.msrb.mxu3 %v4792_v45 }
 0xd2f   :  { %4950 = vmatpush.msrb.mxu0 %v4735_v0  ;;  %4970 = vmatpush.msrb.mxu1 %v4799_v55 }
 0xd30   :  { %4993 = vmatpush.msrb.mxu2 %v4724_v26  ;;  %5013 = vmatpush.msrb.mxu3 %v4788_v46 }
 0xd31   :  { %4994 = vmatmul.f32.vlgmr.msrb.gmra.mxu2 %v4854_v1  ;;  %5014 = vmatmul.f32.vlgmr.msrb.gmra.mxu3 %v4855_v19 }
 0xd32   :  { %4951 = vmatpush.msrb.mxu0 %v4731_v58  ;;  %4971 = vmatpush.msrb.mxu1 %v4795_v47 }
 0xd33   :  { %5137 = vmatpush.msra.mxu2 %v12034_v9 }
 0xd34   :  { %4952 = vmatpush.msrb.mxu0 %v4727_v41  ;;  %4972 = vmatpush.msrb.mxu1 %v4791_v62 }
 0xd36   :  { %4953 = vmatpush.msrb.mxu0 %v4723_v40  ;;  %4973 = vmatpush.msrb.mxu1 %v4787_v60 }
 0xd37   :  { %4954 = vmatmul.f32.vlgmr.msrb.gmra.mxu0 %v4854_v1  ;;  %4974 = vmatmul.f32.vlgmr.msrb.gmra.mxu1 %v4855_v19 }
 0xd38   :  { %5097 = vmatpush.msra.mxu0 %v12035_v21 }
 0xda8   :  { %v4915_v22 = vpop.f32.mrf.mxu2  ;;  %v4935_v54 = vpop.f32.mrf.mxu3 }
 0xda9   :  { %v4936_v5 = vadd.f32 %v4935_v54, %v4915_v22 }
 0xdaa   :  { %v4875_v23 = vpop.f32.mrf.mxu0  ;;  %v4895_v49 = vpop.f32.mrf.mxu1 }
 0xdab   :  { %v4896_v2 = vadd.f32 %v4895_v49, %v4875_v23  ;;  %v5019_v14 = vadd.f32 %v4936_v5, %v10210_v32 }
 0xdad   :  { %v5018_v27 = vadd.f32 %v4896_v2, %v10213_v38  ;;  %5856 = vtanh.f32 %v5019_v14 }
 0xdaf   :  { %5858 = vtanh.f32 %v5018_v27 }
 0xdb3   :  { %v10355_v48 = vpop.eup %5856 }
 0xdb4   :  { %v4955_v16 = vpop.f32.mrf.mxu0  ;;  %v4975_v15 = vpop.f32.mrf.mxu1 }
 0xdb5   :  { %v4976_v10 = vadd.f32 %v4975_v15, %v4955_v16  ;;  %v4995_v31 = vpop.f32.mrf.mxu2  ;;  %v5015_v13 = vpop.f32.mrf.mxu3 }
 0xdb6   :  { %v10357_v56 = vpop.eup %5858  ;;  %v5016_v8 = vadd.f32 %v5015_v13, %v4995_v31 }
 0xdb7   :  { %v5020_v51 = vadd.f32 %v4976_v10, %v10216_v44 }
 0xdb8   :  { %v5021_v25 = vadd.f32 %v5016_v8, %v10219_v59 }
 0xdb9   :  { %5860 = vtanh.f32 %v5020_v51 }
 0xdba   :  { %5862 = vtanh.f32 %v5021_v25 }
 0xdbf   :  { %v10361_v32 = vpop.eup %5860 }
 0xdc0   :  { %v10363_v38 = vpop.eup %5862 }
 0xdc1   :  { %5936 = dma.done.wait [#allocation5], 8192 }
 0xdc2   :  { %5937 = vsyncadd [#allocation5], 4294959104  ;;  %v12036_v12 = vld [vmem:[#allocation594_spill] sm:$0xff]  ;;  %v12038_v20 = vld [vmem:[#allocation577_spill] sm:$0xff]  ;;  %vm5190_vm10 = vcmask 523264   ;;  %s5943_s12 = smov [#allocation11]  }
 0xdc3   :  { %5157 = vmatpush.msra.mxu3 %v12036_v12  ;;  %v12037_v30 = vld [vmem:[#allocation562_spill] sm:$0xff]  ;;  %5138 = vmatpush.msra.mxu2 %v12038_v20  ;;  %v12039_v44 = vld [vmem:[#allocation545_spill] sm:$0xff]  ;;  %v12042_v11 = vld [vmem:[#allocation576_spill] sm:$0xff]  ;;  %s5221_s13 = sshll.u32 %s5943_s12, 4  ;;  %s5223_s14 = sshll.u32 %s10475_s9, 4  ;;  %vm5214_vm11 = vcmask 58368   ;;  %s5222_s13 = int_to_ptr.vmem [resolvable:$true] %s5221_s13  ;;  %s5224_s14 = int_to_ptr.hbm [resolvable:$true] %s5223_s14 }
 0xdc4   :  { %5117 = vmatpush.msra.mxu1 %v12037_v30  ;;  %5098 = vmatpush.msra.mxu0 %v12039_v44  ;;  %v12040_v59 = vld [vmem:[#allocation593_spill] sm:$0xff]  ;;  %v12043_v37 = vld [vmem:[#allocation544_spill] sm:$0xff]  ;;  %v12046_v1 = vld [vmem:[#allocation575_spill] sm:$0xff] }
 0xdc5   :  { %5158 = vmatpush.msra.mxu3 %v12040_v59  ;;  %v12041_v63 = vld [vmem:[#allocation561_spill] sm:$0xff]  ;;  %5139 = vmatpush.msra.mxu2 %v12042_v11  ;;  %v12044_v4 = vld [vmem:[#allocation592_spill] sm:$0xff]  ;;  %v12047_v19 = vld [vmem:[#allocation543_spill] sm:$0xff] }
 0xdc6   :  { %5118 = vmatpush.msra.mxu1 %v12041_v63  ;;  %5099 = vmatpush.msra.mxu0 %v12043_v37  ;;  %v12045_v3 = vld [vmem:[#allocation560_spill] sm:$0xff]  ;;  %v12048_v34 = vld [vmem:[#allocation591_spill] sm:$0xff]  ;;  %v12050_v43 = vld [vmem:[#allocation574_spill] sm:$0xff] }
 0xdc7   :  { %5159 = vmatpush.msra.mxu3 %v12044_v4  ;;  %5140 = vmatpush.msra.mxu2 %v12046_v1  ;;  %v12049_v52 = vld [vmem:[#allocation559_spill] sm:$0xff]  ;;  %v12051_v61 = vld [vmem:[#allocation542_spill] sm:$0xff]  ;;  %v12054_v36 = vld [vmem:[#allocation573_spill] sm:$0xff] }
 0xdc8   :  { %5119 = vmatpush.msra.mxu1 %v12045_v3  ;;  %5100 = vmatpush.msra.mxu0 %v12047_v19  ;;  %v12052_v35 = vld [vmem:[#allocation590_spill] sm:$0xff]  ;;  %v12055_v7 = vld [vmem:[#allocation541_spill] sm:$0xff]  ;;  %v12058_v57 = vld [vmem:[#allocation572_spill] sm:$0xff] }
 0xdc9   :  { %5160 = vmatpush.msra.mxu3 %v12048_v34  ;;  %5141 = vmatpush.msra.mxu2 %v12050_v43  ;;  %v12053_v42 = vld [vmem:[#allocation558_spill] sm:$0xff]  ;;  %v12056_v17 = vld [vmem:[#allocation589_spill] sm:$0xff]  ;;  %v12059_v33 = vld [vmem:[#allocation540_spill] sm:$0xff] }
 0xdca   :  { %5120 = vmatpush.msra.mxu1 %v12049_v52  ;;  %5101 = vmatpush.msra.mxu0 %v12051_v61  ;;  %v12057_v29 = vld [vmem:[#allocation557_spill] sm:$0xff]  ;;  %v12060_v6 = vld [vmem:[#allocation588_spill] sm:$0xff]  ;;  %v12062_v50 = vld [vmem:[#allocation571_spill] sm:$0xff] }
 0xdcb   :  { %5161 = vmatpush.msra.mxu3 %v12052_v35  ;;  %5142 = vmatpush.msra.mxu2 %v12054_v36  ;;  %v12061_v18 = vld [vmem:[#allocation556_spill] sm:$0xff]  ;;  %v12063_v39 = vld [vmem:[#allocation539_spill] sm:$0xff]  ;;  %v12066_v0 = vld [vmem:[#allocation570_spill] sm:$0xff] }
 0xdcc   :  { %5121 = vmatpush.msra.mxu1 %v12053_v42  ;;  %5102 = vmatpush.msra.mxu0 %v12055_v7  ;;  %v12064_v53 = vld [vmem:[#allocation587_spill] sm:$0xff]  ;;  %v12067_v55 = vld [vmem:[#allocation538_spill] sm:$0xff]  ;;  %v12070_v24 = vld [vmem:[#allocation569_spill] sm:$0xff] }
 0xdcd   :  { %5162 = vmatpush.msra.mxu3 %v12056_v17  ;;  %5143 = vmatpush.msra.mxu2 %v12058_v57  ;;  %v12065_v45 = vld [vmem:[#allocation555_spill] sm:$0xff]  ;;  %v12068_v28 = vld [vmem:[#allocation586_spill] sm:$0xff]  ;;  %v12071_v46 = vld [vmem:[#allocation537_spill] sm:$0xff] }
 0xdce   :  { %5122 = vmatpush.msra.mxu1 %v12057_v29  ;;  %5103 = vmatpush.msra.mxu0 %v12059_v33  ;;  %v12069_v26 = vld [vmem:[#allocation554_spill] sm:$0xff]  ;;  %v12072_v58 = vld [vmem:[#allocation585_spill] sm:$0xff]  ;;  %v12074_v41 = vld [vmem:[#allocation568_spill] sm:$0xff] }
 0xdcf   :  { %5163 = vmatpush.msra.mxu3 %v12060_v6  ;;  %5144 = vmatpush.msra.mxu2 %v12062_v50  ;;  %v12073_v47 = vld [vmem:[#allocation553_spill] sm:$0xff]  ;;  %v12075_v62 = vld [vmem:[#allocation536_spill] sm:$0xff]  ;;  %v12078_v22 = vld [vmem:[#allocation567_spill] sm:$0xff] }
 0xdd0   :  { %5123 = vmatpush.msra.mxu1 %v12061_v18  ;;  %5104 = vmatpush.msra.mxu0 %v12063_v39  ;;  %v12076_v40 = vld [vmem:[#allocation584_spill] sm:$0xff]  ;;  %v12079_v54 = vld [vmem:[#allocation535_spill] sm:$0xff]  ;;  %v12082_v49 = vld [vmem:[#allocation566_spill] sm:$0xff] }
 0xdd1   :  { %5164 = vmatpush.msra.mxu3 %v12064_v53  ;;  %5145 = vmatpush.msra.mxu2 %v12066_v0  ;;  %v12077_v60 = vld [vmem:[#allocation552_spill] sm:$0xff]  ;;  %v12080_v5 = vld [vmem:[#allocation583_spill] sm:$0xff]  ;;  %v12083_v2 = vld [vmem:[#allocation534_spill] sm:$0xff] }
 0xdd2   :  { %5124 = vmatpush.msra.mxu1 %v12065_v45  ;;  %5105 = vmatpush.msra.mxu0 %v12067_v55  ;;  %v12081_v23 = vld [vmem:[#allocation551_spill] sm:$0xff]  ;;  %v12084_v14 = vld [vmem:[#allocation582_spill] sm:$0xff]  ;;  %v12086_v16 = vld [vmem:[#allocation565_spill] sm:$0xff] }
 0xdd3   :  { %5165 = vmatpush.msra.mxu3 %v12068_v28  ;;  %5146 = vmatpush.msra.mxu2 %v12070_v24  ;;  %v12085_v27 = vld [vmem:[#allocation550_spill] sm:$0xff]  ;;  %v12087_v15 = vld [vmem:[#allocation533_spill] sm:$0xff]  ;;  %v12090_v13 = vld [vmem:[#allocation564_spill] sm:$0xff] }
 0xdd4   :  { %5125 = vmatpush.msra.mxu1 %v12069_v26  ;;  %5106 = vmatpush.msra.mxu0 %v12071_v46  ;;  %v12088_v10 = vld [vmem:[#allocation581_spill] sm:$0xff]  ;;  %v12091_v8 = vld [vmem:[#allocation532_spill] sm:$0xff]  ;;  %v12094_v9 = vld [vmem:[#allocation563_spill] sm:$0xff] }
 0xdd5   :  { %5166 = vmatpush.msra.mxu3 %v12072_v58  ;;  %5147 = vmatpush.msra.mxu2 %v12074_v41  ;;  %v12089_v31 = vld [vmem:[#allocation549_spill] sm:$0xff]  ;;  %v12092_v51 = vld [vmem:[#allocation580_spill] sm:$0xff]  ;;  %v12095_v21 = vld [vmem:[#allocation531_spill] sm:$0xff] }
 0xdd6   :  { %5126 = vmatpush.msra.mxu1 %v12073_v47  ;;  %5107 = vmatpush.msra.mxu0 %v12075_v62  ;;  %v12093_v25 = vld [vmem:[#allocation548_spill] sm:$0xff]  ;;  %v12096_v12 = vld [vmem:[#allocation579_spill] sm:$0xff]  ;;  %v5184_v44 = vld [vmem:[%s10473_s7 + $0x30] sm:$0xff] }
 0xdd7   :  { %5167 = vmatpush.msra.mxu3 %v12076_v40  ;;  %5148 = vmatpush.msra.mxu2 %v12078_v22  ;;  %v12097_v30 = vld [vmem:[#allocation547_spill] sm:$0xff]  ;;  %v5179_v59 = vld [vmem:[%s10473_s7 + $0x8] sm:$0xff] }
 0xdd8   :  { %5127 = vmatpush.msra.mxu1 %v12077_v60  ;;  %5108 = vmatpush.msra.mxu0 %v12079_v54  ;;  %v5185_v20 = vld [vmem:[%s10473_s7 + $0x38] sm:$0xff]  ;;  %v5178_v63 = vld [vmem:[%s10473_s7] sm:$0xff] }
 0xdd9   :  { %5168 = vmatpush.msra.mxu3 %v12080_v5  ;;  %5149 = vmatpush.msra.mxu2 %v12082_v49  ;;  %v5864_v11 = vld [vmem:[%s10472_s6] ss:$0 sm:$0xff] }
 0xdda   :  { %5128 = vmatpush.msra.mxu1 %v12081_v23  ;;  %5109 = vmatpush.msra.mxu0 %v12083_v2  ;;  %v5865_v35 = vld [vmem:[%s10474_s8] ss:$0 sm:$0xff] }
 0xddb   :  { %5169 = vmatpush.msra.mxu3 %v12084_v14  ;;  %5150 = vmatpush.msra.mxu2 %v12086_v16 }
 0xddc   :  { %5129 = vmatpush.msra.mxu1 %v12085_v27  ;;  %5110 = vmatpush.msra.mxu0 %v12087_v15 }
 0xddd   :  { %5170 = vmatpush.msra.mxu3 %v12088_v10  ;;  %5151 = vmatpush.msra.mxu2 %v12090_v13 }
 0xdde   :  { %5130 = vmatpush.msra.mxu1 %v12089_v31  ;;  %5111 = vmatpush.msra.mxu0 %v12091_v8 }
 0xddf   :  { %5171 = vmatpush.msra.mxu3 %v12092_v51  ;;  %5152 = vmatpush.msra.mxu2 %v12094_v9 }
 0xde0   :  { %5131 = vmatpush.msra.mxu1 %v12093_v25  ;;  %5112 = vmatpush.msra.mxu0 %v12095_v21 }
 0xde1   :  { %5153 = vmatmul.f32.vlgmr.msra.gmra.mxu2 %v10361_v32  ;;  %5172 = vmatpush.msra.mxu3 %v12096_v12  ;;  %v5182_v32 = vld [vmem:[%s10473_s7 + $0x20] sm:$0xff] }
 0xde2   :  { %5113 = vmatmul.f32.vlgmr.msra.gmra.mxu0 %v10357_v56  ;;  %5173 = vmatmul.f32.vlgmr.msra.gmra.mxu3 %v10363_v38  ;;  %v5183_v56 = vld [vmem:[%s10473_s7 + $0x28] sm:$0xff]  ;;  %v5180_v38 = vld [vmem:[%s10473_s7 + $0x10] sm:$0xff] }
 0xde3   :  { %5132 = vmatpush.msra.mxu1 %v12097_v30  ;;  %5202 = vmatpush.msrb.mxu0 %v5185_v20 }
 0xde4   :  { %5133 = vmatmul.f32.vlgmr.msra.gmra.mxu1 %v10355_v48  ;;  %v5181_v48 = vld [vmem:[%s10473_s7 + $0x18] sm:$0xff] }
 0xde5   :  { %5203 = vmatpush.msrb.mxu0 %v5184_v44 }
 0xde7   :  { %5204 = vmatpush.msrb.mxu0 %v5183_v56 }
 0xde9   :  { %5205 = vmatpush.msrb.mxu0 %v5182_v32 }
 0xdeb   :  { %5206 = vmatpush.msrb.mxu0 %v5181_v48 }
 0xded   :  { %5207 = vmatpush.msrb.mxu0 %v5180_v38 }
 0xdef   :  { %5208 = vmatpush.msrb.mxu0 %v5179_v59 }
 0xdf1   :  { %5209 = vmatpush.msrb.mxu0 %v5178_v63 }
 0xe5f   :  { %v5114_v37 = vpop.f32.mrf.mxu0 }
 0xe60   :  { %v5115_v4 = vadd.f32 %v5864_v11, %v5114_v37 }
 0xe61   :  { %v5134_v3 = vpop.f32.mrf.mxu1 }
 0xe62   :  { %v5135_v1 = vadd.f32 %v5134_v3, %v5115_v4 }
 0xe64   :  { %v5154_v19 = vpop.f32.mrf.mxu2 }
 0xe65   :  { %v5155_v34 = vadd.f32 %v5154_v19, %v5135_v1  ;;  %v5174_v52 = vpop.f32.mrf.mxu3 }
 0xe67   :  { %v5175_v43 = vadd.f32 %v5174_v52, %v5155_v34 }
 0xe69   :  { %5866 = vtanh.f32 %v5175_v43 }
 0xe6f   :  { %v5867_v61 = vpop.eup %5866 }
 0xe70   :  { %5824 = vmatmul.msk.f32.vlgmr.msrb.gmra.mxu0 %vm5190_vm10, %v5867_v61 }
 0xeed   :  { %v5211_v42 = vpop.f32.mrf.mxu0 }
 0xeee   :  { %v5212_v36 = vadd.f32 %v5865_v35, %v5211_v42 }
 0xef0   :  { %5215 = vst.msk [vmem:[#allocation11] sm:$0x3] %vm5214_vm11, %v5212_v36 }
 0xef1   :  { %5226 = dma.vmem_to_hbm [thread:$0]  %s5222_s13, 32, %s5224_s14, [#allocation7]  }
 0xef2   :  { %5938 = dma.done.wait [#allocation7], 32  }
 0xef3   :  { %5939 = vsyncadd [#allocation7], 4294967264 }
 0xef4   :  { %5231 = vsyncpa [#allocation7], 1 }
 0xef5   :  { %5232 = vsyncpa [#allocation8], 1 }
 0xef6   :  { %5233 = vsyncpa [#allocation10], 1 }
 0xef7   :  { %5234 = vsyncmov [#allocation3] }
 0xefa   :  { %s5235_s8 = vpop.sfrf %5234 }
 0xefb   :  { %p5825_p0 = scmp.ne.s32.totalorder %s5235_s8, 0 }
 0xefd   :  { %5239 = shalt.err (%p5825_p0)  }
 0xefe   :  { %5241 = vsyncmov [#allocation3 + $0x1] }
 0xf01   :  { %s5242_s15 = vpop.sfrf %5241 }
 0xf02   :  { %p5826_p1 = scmp.ne.s32.totalorder %s5242_s15, 0 }
 0xf04   :  { %5246 = shalt.err (%p5826_p1)  }
 0xf05   :  { %5248 = vsyncmov [#allocation3 + $0x2] }
 0xf08   :  { %s5249_s9 = vpop.sfrf %5248 }
 0xf09   :  { %p5827_p2 = scmp.ne.s32.totalorder %s5249_s9, 0 }
 0xf0b   :  { %5253 = shalt.err (%p5827_p2)  }
 0xf0c   :  { %5255 = vsyncmov [#allocation3 + $0x3] }
 0xf0f   :  { %s5256_s16 = vpop.sfrf %5255 }
 0xf10   :  { %p5828_p3 = scmp.ne.s32.totalorder %s5256_s16, 0 }
 0xf12   :  { %5260 = shalt.err (%p5828_p3)  }
 0xf13   :  { %5262 = vsyncmov [#allocation3 + $0x4] }
 0xf16   :  { %s5263_s17 = vpop.sfrf %5262 }
 0xf17   :  { %p5829_p4 = scmp.ne.s32.totalorder %s5263_s17, 0 }
 0xf19   :  { %5267 = shalt.err (%p5829_p4)  }
 0xf1a   :  { %5269 = vsyncmov [#allocation3 + $0x5] }
 0xf1d   :  { %s5270_s18 = vpop.sfrf %5269 }
 0xf1e   :  { %p5830_p5 = scmp.ne.s32.totalorder %s5270_s18, 0 }
 0xf20   :  { %5274 = shalt.err (%p5830_p5)  }
 0xf21   :  { %5276 = vsyncmov [#allocation3 + $0x6] }
 0xf24   :  { %s5277_s4 = vpop.sfrf %5276 }
 0xf25   :  { %p5831_p6 = scmp.ne.s32.totalorder %s5277_s4, 0 }
 0xf27   :  { %5281 = shalt.err (%p5831_p6)  }
 0xf28   :  { %5283 = vsyncmov [#allocation3 + $0x7] }
 0xf2b   :  { %s5284_s1 = vpop.sfrf %5283 }
 0xf2c   :  { %p5832_p7 = scmp.ne.s32.totalorder %s5284_s1, 0 }
 0xf2e   :  { %5288 = shalt.err (%p5832_p7)  }
 0xf2f   :  { %5289 = vsyncmov [#allocation5] }
 0xf32   :  { %s5290_s19 = vpop.sfrf %5289 }
 0xf33   :  { %p5833_p8 = scmp.ne.s32.totalorder %s5290_s19, 0 }
 0xf35   :  { %5294 = shalt.err (%p5833_p8)  }

</bundles_post_ra>
